<compile_context>
chip_gen: v5e
topology: v5e:2x2
jax: 0.10.0
libtpu: 0.0.40
codegen_flags: <defaults>
</compile_context>

<pallas_src>
import functools
import numpy as np

import jax
import jax.numpy as jnp
from jax.experimental import pallas as pl
from jax.experimental.pallas import tpu as pltpu


def _round_up(x, m):
    return (x + m - 1) // m * m


# ----------------------------------------------------------------------------
# Pallas kernel 1: fused matmul + affine epilogue (+ optional ReLU)
#   - single-K fast path (no scratch) when the K axis fits in one block
#   - multi-K path with f32 VMEM accumulator (assign on k==0)
# ----------------------------------------------------------------------------
def _mm_single_k_kernel(x_ref, w_ref, s_ref, t_ref, o_ref, *, relu):
    y = jnp.dot(x_ref[...], w_ref[...], preferred_element_type=jnp.float32)
    y = y * s_ref[...] + t_ref[...]
    if relu:
        y = jnp.maximum(y, 0.0)
    o_ref[...] = y.astype(o_ref.dtype)


def _mm_multi_k_kernel(x_ref, w_ref, s_ref, t_ref, o_ref, acc_ref, *, relu):
    k = pl.program_id(2)
    prod = jnp.dot(x_ref[...], w_ref[...], preferred_element_type=jnp.float32)

    @pl.when(k == 0)
    def _():
        acc_ref[...] = prod          # assign (no zero-init pass)

    @pl.when(k > 0)
    def _():
        acc_ref[...] += prod

    @pl.when(k == pl.num_programs(2) - 1)
    def _():
        y = acc_ref[...] * s_ref[...] + t_ref[...]
        if relu:
            y = jnp.maximum(y, 0.0)
        o_ref[...] = y.astype(o_ref.dtype)


def _pick_tm(Mp):
    # Expose >= 2 blocks on the parallel M axis for megacore when M is large;
    # otherwise use a single block (fewer grid steps on 1-TC chips).
    if Mp >= 512 and Mp % 256 == 0:
        return 256
    for c in (512, 256, 128, 64, 32, 16, 8):
        if c <= Mp and Mp % c == 0:
            return c
    return Mp


def _pick_tk(Kp, tm, tn, out_bytes):
    budget = 12 * 1024 * 1024   # conservative double-buffered block budget

    def fits(tk):
        est = 2 * (tm * tk * 2 + tk * tn * 2) + 2 * (tm * tn * out_bytes) \
              + tm * tn * 4 + 4 * tn * 4
        return est <= budget

    if fits(Kp):
        return Kp                # single-K fast path
    for c in (1024, 896, 768, 640, 512, 384, 256, 128):
        if Kp % c == 0 and fits(c):
            return c
    return 128


def matmul_affine_packed(col, w_p, s_p, t_p, *, relu, out_dtype):
    """col: (M, K) any float dtype.  w_p: pre-packed (Kp, Np) bf16,
    s_p/t_p: (1, Np) f32.  Returns the PADDED (Mp, Np) result in out_dtype;
    the caller slices off the M/N padding."""
    M, K = col.shape
    Kp, Np = w_p.shape
    Mp = _round_up(M, 128) if M >= 128 else _round_up(M, 16)   # 16: bf16 sublane pack

    xb = col.astype(jnp.bfloat16)
    if (Mp - M) or (Kp - K):
        xb = jnp.pad(xb, ((0, Mp - M), (0, Kp - K)))

    out_bytes = jnp.dtype(out_dtype).itemsize
    tm = _pick_tm(Mp)
    tn = 256 if Np % 256 == 0 else 128
    tk = _pick_tk(Kp, tm, tn, out_bytes)

    if tk == Kp:
        # ---- single-K fast path: no scratch, no accumulate/finalize copy ----
        grid = (Mp // tm, Np // tn)
        out = pl.pallas_call(
            functools.partial(_mm_single_k_kernel, relu=relu),
            out_shape=jax.ShapeDtypeStruct((Mp, Np), out_dtype),
            grid_spec=pltpu.PrefetchScalarGridSpec(
                num_scalar_prefetch=0,
                grid=grid,
                in_specs=[
                    pl.BlockSpec((tm, Kp), lambda i, j: (i, 0)),
                    pl.BlockSpec((Kp, tn), lambda i, j: (0, j)),
                    pl.BlockSpec((1, tn), lambda i, j: (0, j)),
                    pl.BlockSpec((1, tn), lambda i, j: (0, j)),
                ],
                out_specs=pl.BlockSpec((tm, tn), lambda i, j: (i, j)),
            ),
            compiler_params=pltpu.CompilerParams(
                dimension_semantics=("parallel", "parallel"),
                vmem_limit_bytes=32 * 1024 * 1024,
            ),
        )(xb, w_p, s_p, t_p)
    else:
        # ---- multi-K path with f32 VMEM accumulator ----
        grid = (Mp // tm, Np // tn, Kp // tk)
        out = pl.pallas_call(
            functools.partial(_mm_multi_k_kernel, relu=relu),
            out_shape=jax.ShapeDtypeStruct((Mp, Np), out_dtype),
            grid_spec=pltpu.PrefetchScalarGridSpec(
                num_scalar_prefetch=0,
                grid=grid,
                in_specs=[
                    pl.BlockSpec((tm, tk), lambda i, j, k: (i, k)),
                    pl.BlockSpec((tk, tn), lambda i, j, k: (k, j)),
                    pl.BlockSpec((1, tn), lambda i, j, k: (0, j)),
                    pl.BlockSpec((1, tn), lambda i, j, k: (0, j)),
                ],
                out_specs=pl.BlockSpec((tm, tn), lambda i, j, k: (i, j)),
                scratch_shapes=[pltpu.VMEM((tm, tn), jnp.float32)],
            ),
            compiler_params=pltpu.CompilerParams(
                dimension_semantics=("parallel", "parallel", "arbitrary"),
                vmem_limit_bytes=32 * 1024 * 1024,
            ),
        )(xb, w_p, s_p, t_p)
    return out


# ----------------------------------------------------------------------------
# Pallas kernel 2: fused frontend  (power -> Mel (f32) -> log1p -> InstanceNorm)
# One grid step per batch instance; everything stays in VMEM.
# ----------------------------------------------------------------------------
def _frontend_kernel(mag_ref, fb_ref, o_ref, *, n_mels, eps):
    x = mag_ref[0]                                            # (T, Fp) f32
    # Mel matmul kept in f32 (power spectrogram dynamic range; review note).
    mel = jnp.dot(x * x, fb_ref[...], preferred_element_type=jnp.float32)
    y = jnp.log1p(jnp.maximum(mel, 1e-9))                     # (T, Np)
    lane = jax.lax.broadcasted_iota(jnp.int32, y.shape, 1)
    y = jnp.where(lane < n_mels, y, 0.0)                      # mask mel padding
    n = float(y.shape[0] * n_mels)
    s = jnp.sum(y, keepdims=True)                             # (1, 1)
    ss = jnp.sum(y * y, keepdims=True)
    mean = s * (1.0 / n)
    var = jnp.maximum(ss * (1.0 / n) - mean * mean, 0.0)      # biased var (torch)
    o_ref[0] = (y - mean) * jax.lax.rsqrt(var + eps)


def frontend_melnorm(mag, fb_p, n_mels, eps=1e-4):
    """mag: (B, T, F) magnitude STFT.  fb_p: padded (Fp, Np) f32 Mel filterbank.
    Returns the log-Mel, per-instance-normalized spectrogram (B, T, n_mels)."""
    B, T, F_ = mag.shape
    Fp, Np = fb_p.shape
    mag_p = jnp.pad(mag, ((0, 0), (0, 0), (0, Fp - F_))) if Fp != F_ else mag
    out = pl.pallas_call(
        functools.partial(_frontend_kernel, n_mels=n_mels, eps=eps),
        out_shape=jax.ShapeDtypeStruct((B, T, Np), jnp.float32),
        grid_spec=pltpu.PrefetchScalarGridSpec(
            num_scalar_prefetch=0,
            grid=(B,),
            in_specs=[
                pl.BlockSpec((1, T, Fp), lambda b: (b, 0, 0)),
                pl.BlockSpec((Fp, Np), lambda b: (0, 0)),
            ],
            out_specs=pl.BlockSpec((1, T, Np), lambda b: (b, 0, 0)),
        ),
        compiler_params=pltpu.CompilerParams(
            dimension_semantics=("parallel",),
            vmem_limit_bytes=32 * 1024 * 1024,
        ),
    )(mag_p, fb_p)
    return out[:, :, :n_mels]


# ----------------------------------------------------------------------------
# Conv / deconv layers lowered onto the fused Pallas matmul
# (weights are pre-packed at init; activations flow in bf16 NHWC)
# ----------------------------------------------------------------------------
def conv2d_s2(x, packed, cout, *, relu, out_dtype):
    """Conv2d(k=3, stride=2, padding=1) + folded BN affine [+ ReLU].  x: NHWC."""
    w_p, s_p, t_p = packed
    B, H, W, Cin = x.shape
    Ho, Wo = (H + 1) // 2, (W + 1) // 2
    # TODO(synk): im2col is plain-JAX glue (fused by XLA under jit); an
    # in-kernel strided tap gather would avoid the 2.25x col materialization.
    xp = jnp.pad(x, ((0, 0), (1, 1), (1, 1), (0, 0)))
    cols = [xp[:, kh:kh + 2 * (Ho - 1) + 1:2, kw:kw + 2 * (Wo - 1) + 1:2, :]
            for kh in range(3) for kw in range(3)]
    col = jnp.concatenate(cols, axis=-1).reshape(B * Ho * Wo, 9 * Cin)
    y = matmul_affine_packed(col, w_p, s_p, t_p, relu=relu, out_dtype=out_dtype)
    return y[:B * Ho * Wo, :cout].reshape(B, Ho, Wo, cout)


def deconv2d_s2(x, packed, cout, *, relu, out_dtype):
    """ConvTranspose2d(k=3, stride=2, padding=1, output_padding=1) + BN [+ ReLU]
    via the sub-pixel (4-phase) decomposition as one fused matmul.  x: NHWC."""
    w_p, s_p, t_p = packed
    B, H, W, Cin = x.shape
    xp = jnp.pad(x, ((0, 0), (0, 1), (0, 1), (0, 0)))
    col = jnp.concatenate([
        xp[:, 0:H,     0:W,     :],
        xp[:, 0:H,     1:W + 1, :],
        xp[:, 1:H + 1, 0:W,     :],
        xp[:, 1:H + 1, 1:W + 1, :],
    ], axis=-1).reshape(B * H * W, 4 * Cin)
    y = matmul_affine_packed(col, w_p, s_p, t_p, relu=relu, out_dtype=out_dtype)
    y = y[:B * H * W, :4 * cout].reshape(B, H, W, 2, 2, cout)
    y = jnp.transpose(y, (0, 1, 3, 2, 4, 5)).reshape(B, 2 * H, 2 * W, cout)
    return y


# ----------------------------------------------------------------------------
# One-time weight packing (done at init, NOT per forward)
# ----------------------------------------------------------------------------
def _pack_matmul_params(w_mat, scale, shift):
    K, N = w_mat.shape
    Kp, Np = _round_up(K, 128), _round_up(N, 128)
    w_p = jnp.pad(w_mat, ((0, Kp - K), (0, Np - N))).astype(jnp.bfloat16)
    s_p = jnp.pad(scale.astype(jnp.float32), (0, Np - N)).reshape(1, Np)
    t_p = jnp.pad(shift.astype(jnp.float32), (0, Np - N)).reshape(1, Np)
    return w_p, s_p, t_p


def pack_conv_layer(w_torch, bias, scale, shift):
    """w_torch: (Cout, Cin, 3, 3) — Conv2d layout."""
    cout, cin = w_torch.shape[:2]
    w_mat = jnp.transpose(w_torch, (2, 3, 1, 0)).reshape(9 * cin, cout)
    return _pack_matmul_params(w_mat, scale, bias * scale + shift)


def pack_deconv_layer(w_torch, bias, scale, shift):
    """w_torch: (Cin, Cout, 3, 3) — ConvTranspose2d layout.  Builds the 4x4
    tap-block weight for the sub-pixel decomposition (rows = input taps
    [x(i,j), x(i,j+1), x(i+1,j), x(i+1,j+1)], columns = output phases)."""
    cin, cout = w_torch.shape[:2]

    def tap(kh, kw):
        return w_torch[:, :, kh, kw]                  # (Cin, Cout)

    zeros = jnp.zeros((cin, cout), w_torch.dtype)
    rows = [
        [tap(1, 1), tap(1, 2), tap(2, 1), tap(2, 2)],   # from x[i, j]
        [zeros,     tap(1, 0), zeros,     tap(2, 0)],   # from x[i, j+1]
        [zeros,     zeros,     tap(0, 1), tap(0, 2)],   # from x[i+1, j]
        [zeros,     zeros,     zeros,     tap(0, 0)],   # from x[i+1, j+1]
    ]
    w_mat = jnp.concatenate([jnp.concatenate(r, axis=1) for r in rows], axis=0)
    return _pack_matmul_params(w_mat, jnp.tile(scale, 4),
                               jnp.tile(bias * scale + shift, 4))


# ----------------------------------------------------------------------------
# Frontend glue: STFT magnitude (FFT stays plain JAX) + slaney Mel filterbank
# ----------------------------------------------------------------------------
def stft_mag(x, nfft, hop, target_width):
    """torch.stft(center=True, reflect, hann periodic, onesided) magnitude.
    Returns (B, T, F) — time-major."""
    B, L = x.shape
    target_len = (target_width - 1) * hop
    if L < target_len:
        x = jnp.pad(x, ((0, 0), (0, target_len - L)))
    elif L > target_len:
        x = x[:, :target_len]
    window = 0.5 * (1.0 - jnp.cos(2.0 * jnp.pi * jnp.arange(nfft) / nfft))
    pad = nfft // 2
    xp = jnp.pad(x, ((0, 0), (pad, pad)), mode="reflect")
    n_frames = 1 + target_len // hop
    idx = jnp.arange(n_frames)[:, None] * hop + jnp.arange(nfft)[None, :]
    frames = xp[:, idx] * window[None, None, :]
    # TODO(synk): FFT has no Pallas primitive; rfft stays in plain JAX.
    mag = jnp.abs(jnp.fft.rfft(frames, axis=-1))                 # (B, T, F)
    T = mag.shape[1]
    if T < target_width:
        mag = jnp.pad(mag, ((0, 0), (0, target_width - T), (0, 0)))
    elif T > target_width:
        mag = mag[:, :target_width, :]
    return mag


def slaney_mel_fb(n_freqs, f_min, f_max, n_mels, sr):
    """torchaudio MelScale(norm='slaney', mel_scale='slaney') filterbank (F, n_mels)."""
    f_sp = 200.0 / 3
    min_log_hz = 1000.0
    min_log_mel = min_log_hz / f_sp
    logstep = np.log(6.4) / 27.0

    def hz_to_mel(f):
        f = np.asarray(f, dtype=np.float64)
        lin = f / f_sp
        log = min_log_mel + np.log(np.maximum(f, 1e-10) / min_log_hz) / logstep
        return np.where(f >= min_log_hz, log, lin)

    def mel_to_hz(m):
        m = np.asarray(m, dtype=np.float64)
        lin = f_sp * m
        log = min_log_hz * np.exp(logstep * (m - min_log_mel))
        return np.where(m >= min_log_mel, log, lin)

    all_freqs = np.linspace(0.0, sr / 2, n_freqs)
    m_pts = np.linspace(hz_to_mel(f_min), hz_to_mel(f_max), n_mels + 2)
    f_pts = mel_to_hz(m_pts)
    f_diff = np.diff(f_pts)
    slopes = f_pts[None, :] - all_freqs[:, None]
    down = -slopes[:, :-2] / f_diff[:-1]
    up = slopes[:, 2:] / f_diff[1:]
    fb = np.maximum(0.0, np.minimum(down, up))
    enorm = 2.0 / (f_pts[2:n_mels + 2] - f_pts[:n_mels])
    fb = fb * enorm[None, :]
    return fb.astype(np.float32)


# ----------------------------------------------------------------------------
# Deterministic parameter init + packing (BatchNorm folded to scale/shift, eval)
# ----------------------------------------------------------------------------
def init_params(key, bottleneck_dim=256):
    enc_ch = [(1, 32), (32, 64), (64, 128), (128, 256), (256, bottleneck_dim)]
    dec_ch = [(bottleneck_dim, 256), (256, 128), (128, 64), (64, 32), (32, 1)]

    def bn_affine(ks, cout, has_bn):
        if not has_bn:
            return jnp.ones((cout,), jnp.float32), jnp.zeros((cout,), jnp.float32)
        k3, k4, k5, k6 = ks
        gamma = 1.0 + 0.1 * jax.random.normal(k3, (cout,), jnp.float32)
        beta = 0.1 * jax.random.normal(k4, (cout,), jnp.float32)
        rmean = 0.01 * jax.random.normal(k5, (cout,), jnp.float32)
        rvar = 1.0 + 0.1 * jnp.abs(jax.random.normal(k6, (cout,), jnp.float32))
        s = gamma / jnp.sqrt(rvar + 1e-5)
        t = beta - rmean * s
        return s, t

    packed = {"enc": [], "dec": []}
    for i, (cin, cout) in enumerate(enc_ch):
        key, k1, k2, k3, k4, k5, k6 = jax.random.split(key, 7)
        w = 0.05 * jax.random.normal(k1, (cout, cin, 3, 3), jnp.float32)   # Conv2d layout
        b = 0.01 * jax.random.normal(k2, (cout,), jnp.float32)
        s, t = bn_affine((k3, k4, k5, k6), cout, i < 4)
        packed["enc"].append(pack_conv_layer(w, b, s, t))
    for i, (cin, cout) in enumerate(dec_ch):
        key, k1, k2, k3, k4, k5, k6 = jax.random.split(key, 7)
        w = 0.05 * jax.random.normal(k1, (cin, cout, 3, 3), jnp.float32)   # ConvTranspose2d layout
        b = 0.01 * jax.random.normal(k2, (cout,), jnp.float32)
        s, t = bn_affine((k3, k4, k5, k6), cout, i < 4)
        packed["dec"].append(pack_deconv_layer(w, b, s, t))
    return packed


# ----------------------------------------------------------------------------
# Full forward pass (jit-compiled by the caller)
# ----------------------------------------------------------------------------
def autoencoder_forward(x_audio, params, fb_p, *, cfg):
    n_mels = cfg["n_mels"]
    # --- fused frontend: STFT (JAX) -> [power -> Mel(f32) -> log1p -> InstanceNorm] (Pallas)
    mag = stft_mag(x_audio, cfg["nfft"], cfg["hop"], cfg["target_width"])   # (B, T, F)
    norm = frontend_melnorm(mag, fb_p, n_mels, eps=1e-4)                    # (B, T, Mels) f32
    B, T, _ = norm.shape
    mel_shape_nchw = (B, 1, n_mels, T)

    # --- encoder (NHWC, bf16 activations): H = n_mels, W = T, C = 1
    h = jnp.transpose(norm, (0, 2, 1))[..., None].astype(jnp.bfloat16)      # (B,Mels,T,1)
    n_enc = len(params["enc"])
    for i, (packed, cout) in enumerate(zip(params["enc"], cfg["enc_channels"])):
        relu = i < 4                                                         # last layer: plain Conv2d
        out_dtype = jnp.float32 if i == n_enc - 1 else jnp.bfloat16
        h = conv2d_s2(h, packed, cout, relu=relu, out_dtype=out_dtype)
    encoded = h                                                              # (B,H',W',bottleneck) f32

    # --- decoder (bf16 activations, final layer f32)
    d = encoded.astype(jnp.bfloat16)
    n_dec = len(params["dec"])
    for i, (packed, cout) in enumerate(zip(params["dec"], cfg["dec_channels"])):
        relu = i < 4                                                         # last layer: plain deconv
        out_dtype = jnp.float32 if i == n_dec - 1 else jnp.bfloat16
        d = deconv2d_s2(d, packed, cout, relu=relu, out_dtype=out_dtype)

    decoded = jnp.transpose(d, (0, 3, 1, 2))                                 # (B,1,Mels,T)
    # Sizes are divisible by 32 so PyTorch's F.interpolate fallback is never taken.
    assert decoded.shape == mel_shape_nchw
    encoded_nchw = jnp.transpose(encoded, (0, 3, 1, 2))                      # (B,bottleneck,H',W')
    return decoded, encoded_nchw


# ----------------------------------------------------------------------------
if __name__ == "__main__":
    # Small, module-consistent config: n_mels=32, nfft=256 (hop=64), width=32,
    # so 5 stride-2 downsamplings give 32 -> 1 and the decoder exactly inverts.
    bottleneck_dim = 256
    cfg = dict(sr=16000, n_mels=32, nfft=256, fmin=100.0, fmax=8000.0)
    max_spec_width = 32
    cfg["target_width"] = (max_spec_width + 31) // 32 * 32
    cfg["hop"] = max(cfg["nfft"] // 4, 1)
    cfg["enc_channels"] = [32, 64, 128, 256, bottleneck_dim]
    cfg["dec_channels"] = [256, 128, 64, 32, 1]

    # Mel filterbank, padded once to lane-dense (Fp, Np) and kept f32.
    fb_np = slaney_mel_fb(cfg["nfft"] // 2 + 1, cfg["fmin"], cfg["fmax"],
                          cfg["n_mels"], cfg["sr"])
    F_ = fb_np.shape[0]
    Fp, Np = _round_up(F_, 128), _round_up(cfg["n_mels"], 128)
    fb_p = jnp.pad(jnp.asarray(fb_np), ((0, Fp - F_), (0, Np - cfg["n_mels"])))

    key = jax.random.PRNGKey(0)
    key, pkey, xkey = jax.random.split(key, 3)
    params = init_params(pkey, bottleneck_dim=bottleneck_dim)   # packed once at init

    x = jax.random.normal(xkey, (2, 2000), jnp.float32)         # [B, Time] audio

    forward = jax.jit(functools.partial(autoencoder_forward, cfg=cfg))
    decoded, encoded = forward(x, params, fb_p)
    jax.block_until_ready((decoded, encoded))

    assert decoded.shape == (2, 1, cfg["n_mels"], cfg["target_width"])
    assert encoded.shape == (2, bottleneck_dim, 1, 1)
    assert bool(jnp.all(jnp.isfinite(decoded))) and bool(jnp.all(jnp.isfinite(encoded)))
    print("KERNEL_OK")
</pallas_src>

<mosaic_0001>
module attributes {stable_mosaic.version = 11 : i64} {
  func.func @_frontend_kernel(%arg0: i32, %arg1: memref<1x32x256xf32, #tpu.memory_space<vmem>>, %arg2: memref<256x128xf32, #tpu.memory_space<vmem>>, %arg3: memref<1x32x128xf32, #tpu.memory_space<vmem>>) attributes {dimension_semantics = [#tpu.dimension_semantics<parallel>], iteration_bounds = array<i64: 2>, scalar_prefetch = 0 : i64, scratch_operands = 0 : i64, tpu.core_type = #tpu.core_type<tc>, window_params = [{transform_indices = @transform_0, window_bounds = array<i64: 1, 32, 256>}, {pipeline_mode = #tpu.pipeline_mode<synchronous>, transform_indices = @transform_1, window_bounds = array<i64: 256, 128>}, {transform_indices = @transform_2, window_bounds = array<i64: 1, 32, 128>}]} {
    %c0 = arith.constant 0 : index
    %c0_0 = arith.constant 0 : index
    %c0_1 = arith.constant 0 : index
    %0 = vector.load %arg1[%c0, %c0_0, %c0_1] : memref<1x32x256xf32, #tpu.memory_space<vmem>>, vector<1x32x256xf32>
    %1 = vector.shape_cast %0 : vector<1x32x256xf32> to vector<32x256xf32>
    %2 = arith.mulf %1, %1 : vector<32x256xf32>
    %c0_2 = arith.constant 0 : index
    %c0_3 = arith.constant 0 : index
    %3 = vector.load %arg2[%c0_2, %c0_3] : memref<256x128xf32, #tpu.memory_space<vmem>>, vector<256x128xf32>
    %cst = arith.constant dense<0.000000e+00> : vector<32x128xf32>
    %4 = tpu.matmul %2, %3, %cst {dimension_numbers = #tpu.dot_dimension_numbers<[1], [0], [0], [1], [0, 0, 1, 1], [], []>} : vector<32x256xf32>, vector<256x128xf32>, vector<32x128xf32> -> vector<32x128xf32>
    %cst_4 = arith.constant 9.99999971E-10 : f32
    %5 = vector.broadcast %cst_4 : f32 to vector<32x128xf32>
    %6 = arith.maximumf %4, %5 : vector<32x128xf32>
    %7 = math.log1p %6 : vector<32x128xf32>
    %8 = tpu.iota {dimensions = array<i32: 1>} : vector<32x128xi32>
    %c32_i32 = arith.constant 32 : i32
    %9 = vector.broadcast %c32_i32 : i32 to vector<32x128xi32>
    %10 = arith.cmpi slt, %8, %9 : vector<32x128xi32>
    %cst_5 = arith.constant 0.000000e+00 : f32
    %11 = vector.broadcast %cst_5 : f32 to vector<32x128xf32>
    %12 = arith.select %10, %7, %11 : vector<32x128xi1>, vector<32x128xf32>
    %13 = vector.shape_cast %12 : vector<32x128xf32> to vector<1x32x128xf32>
    %cst_6 = arith.constant dense<0.000000e+00> : vector<1xf32>
    %14 = vector.multi_reduction <add>, %13, %cst_6 [1, 2] : vector<1x32x128xf32> to vector<1xf32>
    %15 = vector.shape_cast %14 : vector<1xf32> to vector<1x1x1xf32>
    %16 = vector.extract %15[0, 0, 0] : f32 from vector<1x1x1xf32>
    %17 = vector.broadcast %16 : f32 to vector<1x1xf32>
    %18 = arith.mulf %12, %12 : vector<32x128xf32>
    %19 = vector.shape_cast %18 : vector<32x128xf32> to vector<1x32x128xf32>
    %cst_7 = arith.constant dense<0.000000e+00> : vector<1xf32>
    %20 = vector.multi_reduction <add>, %19, %cst_7 [1, 2] : vector<1x32x128xf32> to vector<1xf32>
    %21 = vector.shape_cast %20 : vector<1xf32> to vector<1x1x1xf32>
    %22 = vector.extract %21[0, 0, 0] : f32 from vector<1x1x1xf32>
    %23 = vector.broadcast %22 : f32 to vector<1x1xf32>
    %cst_8 = arith.constant 9.765625E-4 : f32
    %24 = vector.broadcast %cst_8 : f32 to vector<1x1xf32>
    %25 = arith.mulf %17, %24 : vector<1x1xf32>
    %cst_9 = arith.constant 9.765625E-4 : f32
    %26 = vector.broadcast %cst_9 : f32 to vector<1x1xf32>
    %27 = arith.mulf %23, %26 : vector<1x1xf32>
    %28 = arith.mulf %25, %25 : vector<1x1xf32>
    %29 = arith.subf %27, %28 : vector<1x1xf32>
    %cst_10 = arith.constant 0.000000e+00 : f32
    %30 = vector.broadcast %cst_10 : f32 to vector<1x1xf32>
    %31 = arith.maximumf %29, %30 : vector<1x1xf32>
    %32 = vector.broadcast %25 : vector<1x1xf32> to vector<32x128xf32>
    %33 = arith.subf %12, %32 : vector<32x128xf32>
    %cst_11 = arith.constant 9.99999974E-5 : f32
    %34 = vector.broadcast %cst_11 : f32 to vector<1x1xf32>
    %35 = arith.addf %31, %34 : vector<1x1xf32>
    %36 = math.rsqrt %35 : vector<1x1xf32>
    %37 = vector.broadcast %36 : vector<1x1xf32> to vector<32x128xf32>
    %38 = arith.mulf %33, %37 : vector<32x128xf32>
    %c0_12 = arith.constant 0 : index
    %c0_13 = arith.constant 0 : index
    %c0_14 = arith.constant 0 : index
    %39 = vector.load %arg3[%c0_12, %c0_13, %c0_14] : memref<1x32x128xf32, #tpu.memory_space<vmem>>, vector<1x32x128xf32>
    %40 = vector.shape_cast %39 : vector<1x32x128xf32> to vector<32x128xf32>
    %41 = vector.shape_cast %38 : vector<32x128xf32> to vector<1x32x128xf32>
    tpu.vector_store %arg3[%c0_12, %c0_13, %c0_14], %41 {strides = array<i32>} : memref<1x32x128xf32, #tpu.memory_space<vmem>>, vector<1x32x128xf32>,
    return
  }
  func.func @transform_0(%arg0: i32) -> (i32, i32, i32) {
    %c0_i32 = arith.constant 0 : i32
    %c0_i32_0 = arith.constant 0 : i32
    %c0_i32_1 = arith.constant 0 : i32
    return %arg0, %c0_i32, %c0_i32_0 : i32, i32, i32
  }
  func.func @transform_1(%arg0: i32) -> (i32, i32) {
    %c0_i32 = arith.constant 0 : i32
    %c0_i32_0 = arith.constant 0 : i32
    %c0_i32_1 = arith.constant 0 : i32
    return %c0_i32, %c0_i32_0 : i32, i32
  }
  func.func @transform_2(%arg0: i32) -> (i32, i32, i32) {
    %c0_i32 = arith.constant 0 : i32
    %c0_i32_0 = arith.constant 0 : i32
    %c0_i32_1 = arith.constant 0 : i32
    return %arg0, %c0_i32, %c0_i32_0 : i32, i32, i32
  }
}

module attributes {stable_mosaic.version = 11 : i64} {
  func.func @_mm_single_k_kernel(%arg0: i32, %arg1: i32, %arg2: memref<256x128xbf16, #tpu.memory_space<vmem>>, %arg3: memref<128x128xbf16, #tpu.memory_space<vmem>>, %arg4: memref<1x128xf32, #tpu.memory_space<vmem>>, %arg5: memref<1x128xf32, #tpu.memory_space<vmem>>, %arg6: memref<256x128xbf16, #tpu.memory_space<vmem>>) attributes {dimension_semantics = [#tpu.dimension_semantics<parallel>, #tpu.dimension_semantics<parallel>], iteration_bounds = array<i64: 2, 1>, scalar_prefetch = 0 : i64, scratch_operands = 0 : i64, tpu.core_type = #tpu.core_type<tc>, window_params = [{transform_indices = @transform_0, window_bounds = array<i64: 256, 128>}, {transform_indices = @transform_1, window_bounds = array<i64: 128, 128>}, {transform_indices = @transform_2, window_bounds = array<i64: 1, 128>}, {transform_indices = @transform_3, window_bounds = array<i64: 1, 128>}, {transform_indices = @transform_4, window_bounds = array<i64: 256, 128>}]} {
    %c0 = arith.constant 0 : index
    %c0_0 = arith.constant 0 : index
    %0 = vector.load %arg2[%c0, %c0_0] : memref<256x128xbf16, #tpu.memory_space<vmem>>, vector<256x128xbf16>
    %c0_1 = arith.constant 0 : index
    %c0_2 = arith.constant 0 : index
    %1 = vector.load %arg3[%c0_1, %c0_2] : memref<128x128xbf16, #tpu.memory_space<vmem>>, vector<128x128xbf16>
    %cst = arith.constant dense<0.000000e+00> : vector<256x128xf32>
    %2 = tpu.matmul %0, %1, %cst {dimension_numbers = #tpu.dot_dimension_numbers<[1], [0], [0], [1], [0, 0, 1, 1], [], []>} : vector<256x128xbf16>, vector<128x128xbf16>, vector<256x128xf32> -> vector<256x128xf32>
    %c0_3 = arith.constant 0 : index
    %c0_4 = arith.constant 0 : index
    %3 = vector.load %arg4[%c0_3, %c0_4] : memref<1x128xf32, #tpu.memory_space<vmem>>, vector<1x128xf32>
    %4 = vector.broadcast %3 : vector<1x128xf32> to vector<256x128xf32>
    %5 = arith.mulf %2, %4 : vector<256x128xf32>
    %c0_5 = arith.constant 0 : index
    %c0_6 = arith.constant 0 : index
    %6 = vector.load %arg5[%c0_5, %c0_6] : memref<1x128xf32, #tpu.memory_space<vmem>>, vector<1x128xf32>
    %7 = vector.broadcast %6 : vector<1x128xf32> to vector<256x128xf32>
    %8 = arith.addf %5, %7 : vector<256x128xf32>
    %cst_7 = arith.constant 0.000000e+00 : f32
    %9 = vector.broadcast %cst_7 : f32 to vector<256x128xf32>
    %10 = arith.maximumf %8, %9 : vector<256x128xf32>
    %11 = arith.truncf %10 : vector<256x128xf32> to vector<256x128xbf16>
    %c0_8 = arith.constant 0 : index
    %c0_9 = arith.constant 0 : index
    %12 = vector.load %arg6[%c0_8, %c0_9] : memref<256x128xbf16, #tpu.memory_space<vmem>>, vector<256x128xbf16>
    tpu.vector_store %arg6[%c0_8, %c0_9], %11 {strides = array<i32>} : memref<256x128xbf16, #tpu.memory_space<vmem>>, vector<256x128xbf16>,
    return
  }
  func.func @transform_0(%arg0: i32, %arg1: i32) -> (i32, i32) {
    %c0_i32 = arith.constant 0 : i32
    %c0_i32_0 = arith.constant 0 : i32
    return %arg0, %c0_i32 : i32, i32
  }
  func.func @transform_1(%arg0: i32, %arg1: i32) -> (i32, i32) {
    %c0_i32 = arith.constant 0 : i32
    %c0_i32_0 = arith.constant 0 : i32
    return %c0_i32, %arg1 : i32, i32
  }
  func.func @transform_2(%arg0: i32, %arg1: i32) -> (i32, i32) {
    %c0_i32 = arith.constant 0 : i32
    %c0_i32_0 = arith.constant 0 : i32
    return %c0_i32, %arg1 : i32, i32
  }
  func.func @transform_3(%arg0: i32, %arg1: i32) -> (i32, i32) {
    %c0_i32 = arith.constant 0 : i32
    %c0_i32_0 = arith.constant 0 : i32
    return %c0_i32, %arg1 : i32, i32
  }
  func.func @transform_4(%arg0: i32, %arg1: i32) -> (i32, i32) {
    %c0_i32 = arith.constant 0 : i32
    return %arg0, %arg1 : i32, i32
  }
}

module attributes {stable_mosaic.version = 11 : i64} {
  func.func @_mm_single_k_kernel(%arg0: i32, %arg1: i32, %arg2: memref<128x384xbf16, #tpu.memory_space<vmem>>, %arg3: memref<384x128xbf16, #tpu.memory_space<vmem>>, %arg4: memref<1x128xf32, #tpu.memory_space<vmem>>, %arg5: memref<1x128xf32, #tpu.memory_space<vmem>>, %arg6: memref<128x128xbf16, #tpu.memory_space<vmem>>) attributes {dimension_semantics = [#tpu.dimension_semantics<parallel>, #tpu.dimension_semantics<parallel>], iteration_bounds = array<i64: 1, 1>, scalar_prefetch = 0 : i64, scratch_operands = 0 : i64, tpu.core_type = #tpu.core_type<tc>, window_params = [{transform_indices = @transform_0, window_bounds = array<i64: 128, 384>}, {transform_indices = @transform_1, window_bounds = array<i64: 384, 128>}, {transform_indices = @transform_2, window_bounds = array<i64: 1, 128>}, {transform_indices = @transform_3, window_bounds = array<i64: 1, 128>}, {transform_indices = @transform_4, window_bounds = array<i64: 128, 128>}]} {
    %c0 = arith.constant 0 : index
    %c0_0 = arith.constant 0 : index
    %0 = vector.load %arg2[%c0, %c0_0] : memref<128x384xbf16, #tpu.memory_space<vmem>>, vector<128x384xbf16>
    %c0_1 = arith.constant 0 : index
    %c0_2 = arith.constant 0 : index
    %1 = vector.load %arg3[%c0_1, %c0_2] : memref<384x128xbf16, #tpu.memory_space<vmem>>, vector<384x128xbf16>
    %cst = arith.constant dense<0.000000e+00> : vector<128x128xf32>
    %2 = tpu.matmul %0, %1, %cst {dimension_numbers = #tpu.dot_dimension_numbers<[1], [0], [0], [1], [0, 0, 1, 1], [], []>} : vector<128x384xbf16>, vector<384x128xbf16>, vector<128x128xf32> -> vector<128x128xf32>
    %c0_3 = arith.constant 0 : index
    %c0_4 = arith.constant 0 : index
    %3 = vector.load %arg4[%c0_3, %c0_4] : memref<1x128xf32, #tpu.memory_space<vmem>>, vector<1x128xf32>
    %4 = vector.broadcast %3 : vector<1x128xf32> to vector<128x128xf32>
    %5 = arith.mulf %2, %4 : vector<128x128xf32>
    %c0_5 = arith.constant 0 : index
    %c0_6 = arith.constant 0 : index
    %6 = vector.load %arg5[%c0_5, %c0_6] : memref<1x128xf32, #tpu.memory_space<vmem>>, vector<1x128xf32>
    %7 = vector.broadcast %6 : vector<1x128xf32> to vector<128x128xf32>
    %8 = arith.addf %5, %7 : vector<128x128xf32>
    %cst_7 = arith.constant 0.000000e+00 : f32
    %9 = vector.broadcast %cst_7 : f32 to vector<128x128xf32>
    %10 = arith.maximumf %8, %9 : vector<128x128xf32>
    %11 = arith.truncf %10 : vector<128x128xf32> to vector<128x128xbf16>
    %c0_8 = arith.constant 0 : index
    %c0_9 = arith.constant 0 : index
    %12 = vector.load %arg6[%c0_8, %c0_9] : memref<128x128xbf16, #tpu.memory_space<vmem>>, vector<128x128xbf16>
    tpu.vector_store %arg6[%c0_8, %c0_9], %11 {strides = array<i32>} : memref<128x128xbf16, #tpu.memory_space<vmem>>, vector<128x128xbf16>,
    return
  }
  func.func @transform_0(%arg0: i32, %arg1: i32) -> (i32, i32) {
    %c0_i32 = arith.constant 0 : i32
    %c0_i32_0 = arith.constant 0 : i32
    return %arg0, %c0_i32 : i32, i32
  }
  func.func @transform_1(%arg0: i32, %arg1: i32) -> (i32, i32) {
    %c0_i32 = arith.constant 0 : i32
    %c0_i32_0 = arith.constant 0 : i32
    return %c0_i32, %arg1 : i32, i32
  }
  func.func @transform_2(%arg0: i32, %arg1: i32) -> (i32, i32) {
    %c0_i32 = arith.constant 0 : i32
    %c0_i32_0 = arith.constant 0 : i32
    return %c0_i32, %arg1 : i32, i32
  }
  func.func @transform_3(%arg0: i32, %arg1: i32) -> (i32, i32) {
    %c0_i32 = arith.constant 0 : i32
    %c0_i32_0 = arith.constant 0 : i32
    return %c0_i32, %arg1 : i32, i32
  }
  func.func @transform_4(%arg0: i32, %arg1: i32) -> (i32, i32) {
    %c0_i32 = arith.constant 0 : i32
    return %arg0, %arg1 : i32, i32
  }
}

module attributes {stable_mosaic.version = 11 : i64} {
  func.func @_mm_single_k_kernel(%arg0: i32, %arg1: i32, %arg2: memref<32x640xbf16, #tpu.memory_space<vmem>>, %arg3: memref<640x128xbf16, #tpu.memory_space<vmem>>, %arg4: memref<1x128xf32, #tpu.memory_space<vmem>>, %arg5: memref<1x128xf32, #tpu.memory_space<vmem>>, %arg6: memref<32x128xbf16, #tpu.memory_space<vmem>>) attributes {dimension_semantics = [#tpu.dimension_semantics<parallel>, #tpu.dimension_semantics<parallel>], iteration_bounds = array<i64: 1, 1>, scalar_prefetch = 0 : i64, scratch_operands = 0 : i64, tpu.core_type = #tpu.core_type<tc>, window_params = [{transform_indices = @transform_0, window_bounds = array<i64: 32, 640>}, {transform_indices = @transform_1, window_bounds = array<i64: 640, 128>}, {transform_indices = @transform_2, window_bounds = array<i64: 1, 128>}, {transform_indices = @transform_3, window_bounds = array<i64: 1, 128>}, {transform_indices = @transform_4, window_bounds = array<i64: 32, 128>}]} {
    %c0 = arith.constant 0 : index
    %c0_0 = arith.constant 0 : index
    %0 = vector.load %arg2[%c0, %c0_0] : memref<32x640xbf16, #tpu.memory_space<vmem>>, vector<32x640xbf16>
    %c0_1 = arith.constant 0 : index
    %c0_2 = arith.constant 0 : index
    %1 = vector.load %arg3[%c0_1, %c0_2] : memref<640x128xbf16, #tpu.memory_space<vmem>>, vector<640x128xbf16>
    %cst = arith.constant dense<0.000000e+00> : vector<32x128xf32>
    %2 = tpu.matmul %0, %1, %cst {dimension_numbers = #tpu.dot_dimension_numbers<[1], [0], [0], [1], [0, 0, 1, 1], [], []>} : vector<32x640xbf16>, vector<640x128xbf16>, vector<32x128xf32> -> vector<32x128xf32>
    %c0_3 = arith.constant 0 : index
    %c0_4 = arith.constant 0 : index
    %3 = vector.load %arg4[%c0_3, %c0_4] : memref<1x128xf32, #tpu.memory_space<vmem>>, vector<1x128xf32>
    %4 = vector.broadcast %3 : vector<1x128xf32> to vector<32x128xf32>
    %5 = arith.mulf %2, %4 : vector<32x128xf32>
    %c0_5 = arith.constant 0 : index
    %c0_6 = arith.constant 0 : index
    %6 = vector.load %arg5[%c0_5, %c0_6] : memref<1x128xf32, #tpu.memory_space<vmem>>, vector<1x128xf32>
    %7 = vector.broadcast %6 : vector<1x128xf32> to vector<32x128xf32>
    %8 = arith.addf %5, %7 : vector<32x128xf32>
    %cst_7 = arith.constant 0.000000e+00 : f32
    %9 = vector.broadcast %cst_7 : f32 to vector<32x128xf32>
    %10 = arith.maximumf %8, %9 : vector<32x128xf32>
    %11 = arith.truncf %10 : vector<32x128xf32> to vector<32x128xbf16>
    %c0_8 = arith.constant 0 : index
    %c0_9 = arith.constant 0 : index
    %12 = vector.load %arg6[%c0_8, %c0_9] : memref<32x128xbf16, #tpu.memory_space<vmem>>, vector<32x128xbf16>
    tpu.vector_store %arg6[%c0_8, %c0_9], %11 {strides = array<i32>} : memref<32x128xbf16, #tpu.memory_space<vmem>>, vector<32x128xbf16>,
    return
  }
  func.func @transform_0(%arg0: i32, %arg1: i32) -> (i32, i32) {
    %c0_i32 = arith.constant 0 : i32
    %c0_i32_0 = arith.constant 0 : i32
    return %arg0, %c0_i32 : i32, i32
  }
  func.func @transform_1(%arg0: i32, %arg1: i32) -> (i32, i32) {
    %c0_i32 = arith.constant 0 : i32
    %c0_i32_0 = arith.constant 0 : i32
    return %c0_i32, %arg1 : i32, i32
  }
  func.func @transform_2(%arg0: i32, %arg1: i32) -> (i32, i32) {
    %c0_i32 = arith.constant 0 : i32
    %c0_i32_0 = arith.constant 0 : i32
    return %c0_i32, %arg1 : i32, i32
  }
  func.func @transform_3(%arg0: i32, %arg1: i32) -> (i32, i32) {
    %c0_i32 = arith.constant 0 : i32
    %c0_i32_0 = arith.constant 0 : i32
    return %c0_i32, %arg1 : i32, i32
  }
  func.func @transform_4(%arg0: i32, %arg1: i32) -> (i32, i32) {
    %c0_i32 = arith.constant 0 : i32
    return %arg0, %arg1 : i32, i32
  }
}

module attributes {stable_mosaic.version = 11 : i64} {
  func.func @_mm_single_k_kernel(%arg0: i32, %arg1: i32, %arg2: memref<16x1152xbf16, #tpu.memory_space<vmem>>, %arg3: memref<1152x256xbf16, #tpu.memory_space<vmem>>, %arg4: memref<1x256xf32, #tpu.memory_space<vmem>>, %arg5: memref<1x256xf32, #tpu.memory_space<vmem>>, %arg6: memref<16x256xbf16, #tpu.memory_space<vmem>>) attributes {dimension_semantics = [#tpu.dimension_semantics<parallel>, #tpu.dimension_semantics<parallel>], iteration_bounds = array<i64: 1, 1>, scalar_prefetch = 0 : i64, scratch_operands = 0 : i64, tpu.core_type = #tpu.core_type<tc>, window_params = [{transform_indices = @transform_0, window_bounds = array<i64: 16, 1152>}, {transform_indices = @transform_1, window_bounds = array<i64: 1152, 256>}, {transform_indices = @transform_2, window_bounds = array<i64: 1, 256>}, {transform_indices = @transform_3, window_bounds = array<i64: 1, 256>}, {transform_indices = @transform_4, window_bounds = array<i64: 16, 256>}]} {
    %c0 = arith.constant 0 : index
    %c0_0 = arith.constant 0 : index
    %0 = vector.load %arg2[%c0, %c0_0] : memref<16x1152xbf16, #tpu.memory_space<vmem>>, vector<16x1152xbf16>
    %c0_1 = arith.constant 0 : index
    %c0_2 = arith.constant 0 : index
    %1 = vector.load %arg3[%c0_1, %c0_2] : memref<1152x256xbf16, #tpu.memory_space<vmem>>, vector<1152x256xbf16>
    %cst = arith.constant dense<0.000000e+00> : vector<16x256xf32>
    %2 = tpu.matmul %0, %1, %cst {dimension_numbers = #tpu.dot_dimension_numbers<[1], [0], [0], [1], [0, 0, 1, 1], [], []>} : vector<16x1152xbf16>, vector<1152x256xbf16>, vector<16x256xf32> -> vector<16x256xf32>
    %c0_3 = arith.constant 0 : index
    %c0_4 = arith.constant 0 : index
    %3 = vector.load %arg4[%c0_3, %c0_4] : memref<1x256xf32, #tpu.memory_space<vmem>>, vector<1x256xf32>
    %4 = vector.broadcast %3 : vector<1x256xf32> to vector<16x256xf32>
    %5 = arith.mulf %2, %4 : vector<16x256xf32>
    %c0_5 = arith.constant 0 : index
    %c0_6 = arith.constant 0 : index
    %6 = vector.load %arg5[%c0_5, %c0_6] : memref<1x256xf32, #tpu.memory_space<vmem>>, vector<1x256xf32>
    %7 = vector.broadcast %6 : vector<1x256xf32> to vector<16x256xf32>
    %8 = arith.addf %5, %7 : vector<16x256xf32>
    %cst_7 = arith.constant 0.000000e+00 : f32
    %9 = vector.broadcast %cst_7 : f32 to vector<16x256xf32>
    %10 = arith.maximumf %8, %9 : vector<16x256xf32>
    %11 = arith.truncf %10 : vector<16x256xf32> to vector<16x256xbf16>
    %c0_8 = arith.constant 0 : index
    %c0_9 = arith.constant 0 : index
    %12 = vector.load %arg6[%c0_8, %c0_9] : memref<16x256xbf16, #tpu.memory_space<vmem>>, vector<16x256xbf16>
    tpu.vector_store %arg6[%c0_8, %c0_9], %11 {strides = array<i32>} : memref<16x256xbf16, #tpu.memory_space<vmem>>, vector<16x256xbf16>,
    return
  }
  func.func @transform_0(%arg0: i32, %arg1: i32) -> (i32, i32) {
    %c0_i32 = arith.constant 0 : i32
    %c0_i32_0 = arith.constant 0 : i32
    return %arg0, %c0_i32 : i32, i32
  }
  func.func @transform_1(%arg0: i32, %arg1: i32) -> (i32, i32) {
    %c0_i32 = arith.constant 0 : i32
    %c0_i32_0 = arith.constant 0 : i32
    return %c0_i32, %arg1 : i32, i32
  }
  func.func @transform_2(%arg0: i32, %arg1: i32) -> (i32, i32) {
    %c0_i32 = arith.constant 0 : i32
    %c0_i32_0 = arith.constant 0 : i32
    return %c0_i32, %arg1 : i32, i32
  }
  func.func @transform_3(%arg0: i32, %arg1: i32) -> (i32, i32) {
    %c0_i32 = arith.constant 0 : i32
    %c0_i32_0 = arith.constant 0 : i32
    return %c0_i32, %arg1 : i32, i32
  }
  func.func @transform_4(%arg0: i32, %arg1: i32) -> (i32, i32) {
    %c0_i32 = arith.constant 0 : i32
    return %arg0, %arg1 : i32, i32
  }
}

module attributes {stable_mosaic.version = 11 : i64} {
  func.func @_mm_single_k_kernel(%arg0: i32, %arg1: i32, %arg2: memref<16x2304xbf16, #tpu.memory_space<vmem>>, %arg3: memref<2304x256xbf16, #tpu.memory_space<vmem>>, %arg4: memref<1x256xf32, #tpu.memory_space<vmem>>, %arg5: memref<1x256xf32, #tpu.memory_space<vmem>>, %arg6: memref<16x256xf32, #tpu.memory_space<vmem>>) attributes {dimension_semantics = [#tpu.dimension_semantics<parallel>, #tpu.dimension_semantics<parallel>], iteration_bounds = array<i64: 1, 1>, scalar_prefetch = 0 : i64, scratch_operands = 0 : i64, tpu.core_type = #tpu.core_type<tc>, window_params = [{transform_indices = @transform_0, window_bounds = array<i64: 16, 2304>}, {transform_indices = @transform_1, window_bounds = array<i64: 2304, 256>}, {transform_indices = @transform_2, window_bounds = array<i64: 1, 256>}, {transform_indices = @transform_3, window_bounds = array<i64: 1, 256>}, {transform_indices = @transform_4, window_bounds = array<i64: 16, 256>}]} {
    %c0 = arith.constant 0 : index
    %c0_0 = arith.constant 0 : index
    %0 = vector.load %arg2[%c0, %c0_0] : memref<16x2304xbf16, #tpu.memory_space<vmem>>, vector<16x2304xbf16>
    %c0_1 = arith.constant 0 : index
    %c0_2 = arith.constant 0 : index
    %1 = vector.load %arg3[%c0_1, %c0_2] : memref<2304x256xbf16, #tpu.memory_space<vmem>>, vector<2304x256xbf16>
    %cst = arith.constant dense<0.000000e+00> : vector<16x256xf32>
    %2 = tpu.matmul %0, %1, %cst {dimension_numbers = #tpu.dot_dimension_numbers<[1], [0], [0], [1], [0, 0, 1, 1], [], []>} : vector<16x2304xbf16>, vector<2304x256xbf16>, vector<16x256xf32> -> vector<16x256xf32>
    %c0_3 = arith.constant 0 : index
    %c0_4 = arith.constant 0 : index
    %3 = vector.load %arg4[%c0_3, %c0_4] : memref<1x256xf32, #tpu.memory_space<vmem>>, vector<1x256xf32>
    %4 = vector.broadcast %3 : vector<1x256xf32> to vector<16x256xf32>
    %5 = arith.mulf %2, %4 : vector<16x256xf32>
    %c0_5 = arith.constant 0 : index
    %c0_6 = arith.constant 0 : index
    %6 = vector.load %arg5[%c0_5, %c0_6] : memref<1x256xf32, #tpu.memory_space<vmem>>, vector<1x256xf32>
    %7 = vector.broadcast %6 : vector<1x256xf32> to vector<16x256xf32>
    %8 = arith.addf %5, %7 : vector<16x256xf32>
    %c0_7 = arith.constant 0 : index
    %c0_8 = arith.constant 0 : index
    %9 = vector.load %arg6[%c0_7, %c0_8] : memref<16x256xf32, #tpu.memory_space<vmem>>, vector<16x256xf32>
    tpu.vector_store %arg6[%c0_7, %c0_8], %8 {strides = array<i32>} : memref<16x256xf32, #tpu.memory_space<vmem>>, vector<16x256xf32>,
    return
  }
  func.func @transform_0(%arg0: i32, %arg1: i32) -> (i32, i32) {
    %c0_i32 = arith.constant 0 : i32
    %c0_i32_0 = arith.constant 0 : i32
    return %arg0, %c0_i32 : i32, i32
  }
  func.func @transform_1(%arg0: i32, %arg1: i32) -> (i32, i32) {
    %c0_i32 = arith.constant 0 : i32
    %c0_i32_0 = arith.constant 0 : i32
    return %c0_i32, %arg1 : i32, i32
  }
  func.func @transform_2(%arg0: i32, %arg1: i32) -> (i32, i32) {
    %c0_i32 = arith.constant 0 : i32
    %c0_i32_0 = arith.constant 0 : i32
    return %c0_i32, %arg1 : i32, i32
  }
  func.func @transform_3(%arg0: i32, %arg1: i32) -> (i32, i32) {
    %c0_i32 = arith.constant 0 : i32
    %c0_i32_0 = arith.constant 0 : i32
    return %c0_i32, %arg1 : i32, i32
  }
  func.func @transform_4(%arg0: i32, %arg1: i32) -> (i32, i32) {
    %c0_i32 = arith.constant 0 : i32
    return %arg0, %arg1 : i32, i32
  }
}

module attributes {stable_mosaic.version = 11 : i64} {
  func.func @_mm_single_k_kernel(%arg0: i32, %arg1: i32, %arg2: memref<16x1024xbf16, #tpu.memory_space<vmem>>, %arg3: memref<1024x256xbf16, #tpu.memory_space<vmem>>, %arg4: memref<1x256xf32, #tpu.memory_space<vmem>>, %arg5: memref<1x256xf32, #tpu.memory_space<vmem>>, %arg6: memref<16x256xbf16, #tpu.memory_space<vmem>>) attributes {dimension_semantics = [#tpu.dimension_semantics<parallel>, #tpu.dimension_semantics<parallel>], iteration_bounds = array<i64: 1, 2>, scalar_prefetch = 0 : i64, scratch_operands = 0 : i64, tpu.core_type = #tpu.core_type<tc>, window_params = [{transform_indices = @transform_0, window_bounds = array<i64: 16, 1024>}, {transform_indices = @transform_1, window_bounds = array<i64: 1024, 256>}, {transform_indices = @transform_2, window_bounds = array<i64: 1, 256>}, {transform_indices = @transform_3, window_bounds = array<i64: 1, 256>}, {transform_indices = @transform_4, window_bounds = array<i64: 16, 256>}]} {
    %c0 = arith.constant 0 : index
    %c0_0 = arith.constant 0 : index
    %0 = vector.load %arg2[%c0, %c0_0] : memref<16x1024xbf16, #tpu.memory_space<vmem>>, vector<16x1024xbf16>
    %c0_1 = arith.constant 0 : index
    %c0_2 = arith.constant 0 : index
    %1 = vector.load %arg3[%c0_1, %c0_2] : memref<1024x256xbf16, #tpu.memory_space<vmem>>, vector<1024x256xbf16>
    %cst = arith.constant dense<0.000000e+00> : vector<16x256xf32>
    %2 = tpu.matmul %0, %1, %cst {dimension_numbers = #tpu.dot_dimension_numbers<[1], [0], [0], [1], [0, 0, 1, 1], [], []>} : vector<16x1024xbf16>, vector<1024x256xbf16>, vector<16x256xf32> -> vector<16x256xf32>
    %c0_3 = arith.constant 0 : index
    %c0_4 = arith.constant 0 : index
    %3 = vector.load %arg4[%c0_3, %c0_4] : memref<1x256xf32, #tpu.memory_space<vmem>>, vector<1x256xf32>
    %4 = vector.broadcast %3 : vector<1x256xf32> to vector<16x256xf32>
    %5 = arith.mulf %2, %4 : vector<16x256xf32>
    %c0_5 = arith.constant 0 : index
    %c0_6 = arith.constant 0 : index
    %6 = vector.load %arg5[%c0_5, %c0_6] : memref<1x256xf32, #tpu.memory_space<vmem>>, vector<1x256xf32>
    %7 = vector.broadcast %6 : vector<1x256xf32> to vector<16x256xf32>
    %8 = arith.addf %5, %7 : vector<16x256xf32>
    %cst_7 = arith.constant 0.000000e+00 : f32
    %9 = vector.broadcast %cst_7 : f32 to vector<16x256xf32>
    %10 = arith.maximumf %8, %9 : vector<16x256xf32>
    %11 = arith.truncf %10 : vector<16x256xf32> to vector<16x256xbf16>
    %c0_8 = arith.constant 0 : index
    %c0_9 = arith.constant 0 : index
    %12 = vector.load %arg6[%c0_8, %c0_9] : memref<16x256xbf16, #tpu.memory_space<vmem>>, vector<16x256xbf16>
    tpu.vector_store %arg6[%c0_8, %c0_9], %11 {strides = array<i32>} : memref<16x256xbf16, #tpu.memory_space<vmem>>, vector<16x256xbf16>,
    return
  }
  func.func @transform_0(%arg0: i32, %arg1: i32) -> (i32, i32) {
    %c0_i32 = arith.constant 0 : i32
    %c0_i32_0 = arith.constant 0 : i32
    return %arg0, %c0_i32 : i32, i32
  }
  func.func @transform_1(%arg0: i32, %arg1: i32) -> (i32, i32) {
    %c0_i32 = arith.constant 0 : i32
    %c0_i32_0 = arith.constant 0 : i32
    return %c0_i32, %arg1 : i32, i32
  }
  func.func @transform_2(%arg0: i32, %arg1: i32) -> (i32, i32) {
    %c0_i32 = arith.constant 0 : i32
    %c0_i32_0 = arith.constant 0 : i32
    return %c0_i32, %arg1 : i32, i32
  }
  func.func @transform_3(%arg0: i32, %arg1: i32) -> (i32, i32) {
    %c0_i32 = arith.constant 0 : i32
    %c0_i32_0 = arith.constant 0 : i32
    return %c0_i32, %arg1 : i32, i32
  }
  func.func @transform_4(%arg0: i32, %arg1: i32) -> (i32, i32) {
    %c0_i32 = arith.constant 0 : i32
    return %arg0, %arg1 : i32, i32
  }
}

module attributes {stable_mosaic.version = 11 : i64} {
  func.func @_mm_single_k_kernel(%arg0: i32, %arg1: i32, %arg2: memref<16x1024xbf16, #tpu.memory_space<vmem>>, %arg3: memref<1024x256xbf16, #tpu.memory_space<vmem>>, %arg4: memref<1x256xf32, #tpu.memory_space<vmem>>, %arg5: memref<1x256xf32, #tpu.memory_space<vmem>>, %arg6: memref<16x256xbf16, #tpu.memory_space<vmem>>) attributes {dimension_semantics = [#tpu.dimension_semantics<parallel>, #tpu.dimension_semantics<parallel>], iteration_bounds = array<i64: 1, 4>, scalar_prefetch = 0 : i64, scratch_operands = 0 : i64, tpu.core_type = #tpu.core_type<tc>, window_params = [{transform_indices = @transform_0, window_bounds = array<i64: 16, 1024>}, {transform_indices = @transform_1, window_bounds = array<i64: 1024, 256>}, {transform_indices = @transform_2, window_bounds = array<i64: 1, 256>}, {transform_indices = @transform_3, window_bounds = array<i64: 1, 256>}, {transform_indices = @transform_4, window_bounds = array<i64: 16, 256>}]} {
    %c0 = arith.constant 0 : index
    %c0_0 = arith.constant 0 : index
    %0 = vector.load %arg2[%c0, %c0_0] : memref<16x1024xbf16, #tpu.memory_space<vmem>>, vector<16x1024xbf16>
    %c0_1 = arith.constant 0 : index
    %c0_2 = arith.constant 0 : index
    %1 = vector.load %arg3[%c0_1, %c0_2] : memref<1024x256xbf16, #tpu.memory_space<vmem>>, vector<1024x256xbf16>
    %cst = arith.constant dense<0.000000e+00> : vector<16x256xf32>
    %2 = tpu.matmul %0, %1, %cst {dimension_numbers = #tpu.dot_dimension_numbers<[1], [0], [0], [1], [0, 0, 1, 1], [], []>} : vector<16x1024xbf16>, vector<1024x256xbf16>, vector<16x256xf32> -> vector<16x256xf32>
    %c0_3 = arith.constant 0 : index
    %c0_4 = arith.constant 0 : index
    %3 = vector.load %arg4[%c0_3, %c0_4] : memref<1x256xf32, #tpu.memory_space<vmem>>, vector<1x256xf32>
    %4 = vector.broadcast %3 : vector<1x256xf32> to vector<16x256xf32>
    %5 = arith.mulf %2, %4 : vector<16x256xf32>
    %c0_5 = arith.constant 0 : index
    %c0_6 = arith.constant 0 : index
    %6 = vector.load %arg5[%c0_5, %c0_6] : memref<1x256xf32, #tpu.memory_space<vmem>>, vector<1x256xf32>
    %7 = vector.broadcast %6 : vector<1x256xf32> to vector<16x256xf32>
    %8 = arith.addf %5, %7 : vector<16x256xf32>
    %cst_7 = arith.constant 0.000000e+00 : f32
    %9 = vector.broadcast %cst_7 : f32 to vector<16x256xf32>
    %10 = arith.maximumf %8, %9 : vector<16x256xf32>
    %11 = arith.truncf %10 : vector<16x256xf32> to vector<16x256xbf16>
    %c0_8 = arith.constant 0 : index
    %c0_9 = arith.constant 0 : index
    %12 = vector.load %arg6[%c0_8, %c0_9] : memref<16x256xbf16, #tpu.memory_space<vmem>>, vector<16x256xbf16>
    tpu.vector_store %arg6[%c0_8, %c0_9], %11 {strides = array<i32>} : memref<16x256xbf16, #tpu.memory_space<vmem>>, vector<16x256xbf16>,
    return
  }
  func.func @transform_0(%arg0: i32, %arg1: i32) -> (i32, i32) {
    %c0_i32 = arith.constant 0 : i32
    %c0_i32_0 = arith.constant 0 : i32
    return %arg0, %c0_i32 : i32, i32
  }
  func.func @transform_1(%arg0: i32, %arg1: i32) -> (i32, i32) {
    %c0_i32 = arith.constant 0 : i32
    %c0_i32_0 = arith.constant 0 : i32
    return %c0_i32, %arg1 : i32, i32
  }
  func.func @transform_2(%arg0: i32, %arg1: i32) -> (i32, i32) {
    %c0_i32 = arith.constant 0 : i32
    %c0_i32_0 = arith.constant 0 : i32
    return %c0_i32, %arg1 : i32, i32
  }
  func.func @transform_3(%arg0: i32, %arg1: i32) -> (i32, i32) {
    %c0_i32 = arith.constant 0 : i32
    %c0_i32_0 = arith.constant 0 : i32
    return %c0_i32, %arg1 : i32, i32
  }
  func.func @transform_4(%arg0: i32, %arg1: i32) -> (i32, i32) {
    %c0_i32 = arith.constant 0 : i32
    return %arg0, %arg1 : i32, i32
  }
}

module attributes {stable_mosaic.version = 11 : i64} {
  func.func @_mm_single_k_kernel(%arg0: i32, %arg1: i32, %arg2: memref<32x512xbf16, #tpu.memory_space<vmem>>, %arg3: memref<512x256xbf16, #tpu.memory_space<vmem>>, %arg4: memref<1x256xf32, #tpu.memory_space<vmem>>, %arg5: memref<1x256xf32, #tpu.memory_space<vmem>>, %arg6: memref<32x256xbf16, #tpu.memory_space<vmem>>) attributes {dimension_semantics = [#tpu.dimension_semantics<parallel>, #tpu.dimension_semantics<parallel>], iteration_bounds = array<i64: 1, 1>, scalar_prefetch = 0 : i64, scratch_operands = 0 : i64, tpu.core_type = #tpu.core_type<tc>, window_params = [{transform_indices = @transform_0, window_bounds = array<i64: 32, 512>}, {transform_indices = @transform_1, window_bounds = array<i64: 512, 256>}, {transform_indices = @transform_2, window_bounds = array<i64: 1, 256>}, {transform_indices = @transform_3, window_bounds = array<i64: 1, 256>}, {transform_indices = @transform_4, window_bounds = array<i64: 32, 256>}]} {
    %c0 = arith.constant 0 : index
    %c0_0 = arith.constant 0 : index
    %0 = vector.load %arg2[%c0, %c0_0] : memref<32x512xbf16, #tpu.memory_space<vmem>>, vector<32x512xbf16>
    %c0_1 = arith.constant 0 : index
    %c0_2 = arith.constant 0 : index
    %1 = vector.load %arg3[%c0_1, %c0_2] : memref<512x256xbf16, #tpu.memory_space<vmem>>, vector<512x256xbf16>
    %cst = arith.constant dense<0.000000e+00> : vector<32x256xf32>
    %2 = tpu.matmul %0, %1, %cst {dimension_numbers = #tpu.dot_dimension_numbers<[1], [0], [0], [1], [0, 0, 1, 1], [], []>} : vector<32x512xbf16>, vector<512x256xbf16>, vector<32x256xf32> -> vector<32x256xf32>
    %c0_3 = arith.constant 0 : index
    %c0_4 = arith.constant 0 : index
    %3 = vector.load %arg4[%c0_3, %c0_4] : memref<1x256xf32, #tpu.memory_space<vmem>>, vector<1x256xf32>
    %4 = vector.broadcast %3 : vector<1x256xf32> to vector<32x256xf32>
    %5 = arith.mulf %2, %4 : vector<32x256xf32>
    %c0_5 = arith.constant 0 : index
    %c0_6 = arith.constant 0 : index
    %6 = vector.load %arg5[%c0_5, %c0_6] : memref<1x256xf32, #tpu.memory_space<vmem>>, vector<1x256xf32>
    %7 = vector.broadcast %6 : vector<1x256xf32> to vector<32x256xf32>
    %8 = arith.addf %5, %7 : vector<32x256xf32>
    %cst_7 = arith.constant 0.000000e+00 : f32
    %9 = vector.broadcast %cst_7 : f32 to vector<32x256xf32>
    %10 = arith.maximumf %8, %9 : vector<32x256xf32>
    %11 = arith.truncf %10 : vector<32x256xf32> to vector<32x256xbf16>
    %c0_8 = arith.constant 0 : index
    %c0_9 = arith.constant 0 : index
    %12 = vector.load %arg6[%c0_8, %c0_9] : memref<32x256xbf16, #tpu.memory_space<vmem>>, vector<32x256xbf16>
    tpu.vector_store %arg6[%c0_8, %c0_9], %11 {strides = array<i32>} : memref<32x256xbf16, #tpu.memory_space<vmem>>, vector<32x256xbf16>,
    return
  }
  func.func @transform_0(%arg0: i32, %arg1: i32) -> (i32, i32) {
    %c0_i32 = arith.constant 0 : i32
    %c0_i32_0 = arith.constant 0 : i32
    return %arg0, %c0_i32 : i32, i32
  }
  func.func @transform_1(%arg0: i32, %arg1: i32) -> (i32, i32) {
    %c0_i32 = arith.constant 0 : i32
    %c0_i32_0 = arith.constant 0 : i32
    return %c0_i32, %arg1 : i32, i32
  }
  func.func @transform_2(%arg0: i32, %arg1: i32) -> (i32, i32) {
    %c0_i32 = arith.constant 0 : i32
    %c0_i32_0 = arith.constant 0 : i32
    return %c0_i32, %arg1 : i32, i32
  }
  func.func @transform_3(%arg0: i32, %arg1: i32) -> (i32, i32) {
    %c0_i32 = arith.constant 0 : i32
    %c0_i32_0 = arith.constant 0 : i32
    return %c0_i32, %arg1 : i32, i32
  }
  func.func @transform_4(%arg0: i32, %arg1: i32) -> (i32, i32) {
    %c0_i32 = arith.constant 0 : i32
    return %arg0, %arg1 : i32, i32
  }
}

module attributes {stable_mosaic.version = 11 : i64} {
  func.func @_mm_single_k_kernel(%arg0: i32, %arg1: i32, %arg2: memref<128x256xbf16, #tpu.memory_space<vmem>>, %arg3: memref<256x128xbf16, #tpu.memory_space<vmem>>, %arg4: memref<1x128xf32, #tpu.memory_space<vmem>>, %arg5: memref<1x128xf32, #tpu.memory_space<vmem>>, %arg6: memref<128x128xbf16, #tpu.memory_space<vmem>>) attributes {dimension_semantics = [#tpu.dimension_semantics<parallel>, #tpu.dimension_semantics<parallel>], iteration_bounds = array<i64: 1, 1>, scalar_prefetch = 0 : i64, scratch_operands = 0 : i64, tpu.core_type = #tpu.core_type<tc>, window_params = [{transform_indices = @transform_0, window_bounds = array<i64: 128, 256>}, {transform_indices = @transform_1, window_bounds = array<i64: 256, 128>}, {transform_indices = @transform_2, window_bounds = array<i64: 1, 128>}, {transform_indices = @transform_3, window_bounds = array<i64: 1, 128>}, {transform_indices = @transform_4, window_bounds = array<i64: 128, 128>}]} {
    %c0 = arith.constant 0 : index
    %c0_0 = arith.constant 0 : index
    %0 = vector.load %arg2[%c0, %c0_0] : memref<128x256xbf16, #tpu.memory_space<vmem>>, vector<128x256xbf16>
    %c0_1 = arith.constant 0 : index
    %c0_2 = arith.constant 0 : index
    %1 = vector.load %arg3[%c0_1, %c0_2] : memref<256x128xbf16, #tpu.memory_space<vmem>>, vector<256x128xbf16>
    %cst = arith.constant dense<0.000000e+00> : vector<128x128xf32>
    %2 = tpu.matmul %0, %1, %cst {dimension_numbers = #tpu.dot_dimension_numbers<[1], [0], [0], [1], [0, 0, 1, 1], [], []>} : vector<128x256xbf16>, vector<256x128xbf16>, vector<128x128xf32> -> vector<128x128xf32>
    %c0_3 = arith.constant 0 : index
    %c0_4 = arith.constant 0 : index
    %3 = vector.load %arg4[%c0_3, %c0_4] : memref<1x128xf32, #tpu.memory_space<vmem>>, vector<1x128xf32>
    %4 = vector.broadcast %3 : vector<1x128xf32> to vector<128x128xf32>
    %5 = arith.mulf %2, %4 : vector<128x128xf32>
    %c0_5 = arith.constant 0 : index
    %c0_6 = arith.constant 0 : index
    %6 = vector.load %arg5[%c0_5, %c0_6] : memref<1x128xf32, #tpu.memory_space<vmem>>, vector<1x128xf32>
    %7 = vector.broadcast %6 : vector<1x128xf32> to vector<128x128xf32>
    %8 = arith.addf %5, %7 : vector<128x128xf32>
    %cst_7 = arith.constant 0.000000e+00 : f32
    %9 = vector.broadcast %cst_7 : f32 to vector<128x128xf32>
    %10 = arith.maximumf %8, %9 : vector<128x128xf32>
    %11 = arith.truncf %10 : vector<128x128xf32> to vector<128x128xbf16>
    %c0_8 = arith.constant 0 : index
    %c0_9 = arith.constant 0 : index
    %12 = vector.load %arg6[%c0_8, %c0_9] : memref<128x128xbf16, #tpu.memory_space<vmem>>, vector<128x128xbf16>
    tpu.vector_store %arg6[%c0_8, %c0_9], %11 {strides = array<i32>} : memref<128x128xbf16, #tpu.memory_space<vmem>>, vector<128x128xbf16>,
    return
  }
  func.func @transform_0(%arg0: i32, %arg1: i32) -> (i32, i32) {
    %c0_i32 = arith.constant 0 : i32
    %c0_i32_0 = arith.constant 0 : i32
    return %arg0, %c0_i32 : i32, i32
  }
  func.func @transform_1(%arg0: i32, %arg1: i32) -> (i32, i32) {
    %c0_i32 = arith.constant 0 : i32
    %c0_i32_0 = arith.constant 0 : i32
    return %c0_i32, %arg1 : i32, i32
  }
  func.func @transform_2(%arg0: i32, %arg1: i32) -> (i32, i32) {
    %c0_i32 = arith.constant 0 : i32
    %c0_i32_0 = arith.constant 0 : i32
    return %c0_i32, %arg1 : i32, i32
  }
  func.func @transform_3(%arg0: i32, %arg1: i32) -> (i32, i32) {
    %c0_i32 = arith.constant 0 : i32
    %c0_i32_0 = arith.constant 0 : i32
    return %c0_i32, %arg1 : i32, i32
  }
  func.func @transform_4(%arg0: i32, %arg1: i32) -> (i32, i32) {
    %c0_i32 = arith.constant 0 : i32
    return %arg0, %arg1 : i32, i32
  }
}

module attributes {stable_mosaic.version = 11 : i64} {
  func.func @_mm_single_k_kernel(%arg0: i32, %arg1: i32, %arg2: memref<256x128xbf16, #tpu.memory_space<vmem>>, %arg3: memref<128x128xbf16, #tpu.memory_space<vmem>>, %arg4: memref<1x128xf32, #tpu.memory_space<vmem>>, %arg5: memref<1x128xf32, #tpu.memory_space<vmem>>, %arg6: memref<256x128xf32, #tpu.memory_space<vmem>>) attributes {dimension_semantics = [#tpu.dimension_semantics<parallel>, #tpu.dimension_semantics<parallel>], iteration_bounds = array<i64: 2, 1>, scalar_prefetch = 0 : i64, scratch_operands = 0 : i64, tpu.core_type = #tpu.core_type<tc>, window_params = [{transform_indices = @transform_0, window_bounds = array<i64: 256, 128>}, {transform_indices = @transform_1, window_bounds = array<i64: 128, 128>}, {transform_indices = @transform_2, window_bounds = array<i64: 1, 128>}, {transform_indices = @transform_3, window_bounds = array<i64: 1, 128>}, {transform_indices = @transform_4, window_bounds = array<i64: 256, 128>}]} {
    %c0 = arith.constant 0 : index
    %c0_0 = arith.constant 0 : index
    %0 = vector.load %arg2[%c0, %c0_0] : memref<256x128xbf16, #tpu.memory_space<vmem>>, vector<256x128xbf16>
    %c0_1 = arith.constant 0 : index
    %c0_2 = arith.constant 0 : index
    %1 = vector.load %arg3[%c0_1, %c0_2] : memref<128x128xbf16, #tpu.memory_space<vmem>>, vector<128x128xbf16>
    %cst = arith.constant dense<0.000000e+00> : vector<256x128xf32>
    %2 = tpu.matmul %0, %1, %cst {dimension_numbers = #tpu.dot_dimension_numbers<[1], [0], [0], [1], [0, 0, 1, 1], [], []>} : vector<256x128xbf16>, vector<128x128xbf16>, vector<256x128xf32> -> vector<256x128xf32>
    %c0_3 = arith.constant 0 : index
    %c0_4 = arith.constant 0 : index
    %3 = vector.load %arg4[%c0_3, %c0_4] : memref<1x128xf32, #tpu.memory_space<vmem>>, vector<1x128xf32>
    %4 = vector.broadcast %3 : vector<1x128xf32> to vector<256x128xf32>
    %5 = arith.mulf %2, %4 : vector<256x128xf32>
    %c0_5 = arith.constant 0 : index
    %c0_6 = arith.constant 0 : index
    %6 = vector.load %arg5[%c0_5, %c0_6] : memref<1x128xf32, #tpu.memory_space<vmem>>, vector<1x128xf32>
    %7 = vector.broadcast %6 : vector<1x128xf32> to vector<256x128xf32>
    %8 = arith.addf %5, %7 : vector<256x128xf32>
    %c0_7 = arith.constant 0 : index
    %c0_8 = arith.constant 0 : index
    %9 = vector.load %arg6[%c0_7, %c0_8] : memref<256x128xf32, #tpu.memory_space<vmem>>, vector<256x128xf32>
    tpu.vector_store %arg6[%c0_7, %c0_8], %8 {strides = array<i32>} : memref<256x128xf32, #tpu.memory_space<vmem>>, vector<256x128xf32>,
    return
  }
  func.func @transform_0(%arg0: i32, %arg1: i32) -> (i32, i32) {
    %c0_i32 = arith.constant 0 : i32
    %c0_i32_0 = arith.constant 0 : i32
    return %arg0, %c0_i32 : i32, i32
  }
  func.func @transform_1(%arg0: i32, %arg1: i32) -> (i32, i32) {
    %c0_i32 = arith.constant 0 : i32
    %c0_i32_0 = arith.constant 0 : i32
    return %c0_i32, %arg1 : i32, i32
  }
  func.func @transform_2(%arg0: i32, %arg1: i32) -> (i32, i32) {
    %c0_i32 = arith.constant 0 : i32
    %c0_i32_0 = arith.constant 0 : i32
    return %c0_i32, %arg1 : i32, i32
  }
  func.func @transform_3(%arg0: i32, %arg1: i32) -> (i32, i32) {
    %c0_i32 = arith.constant 0 : i32
    %c0_i32_0 = arith.constant 0 : i32
    return %c0_i32, %arg1 : i32, i32
  }
  func.func @transform_4(%arg0: i32, %arg1: i32) -> (i32, i32) {
    %c0_i32 = arith.constant 0 : i32
    return %arg0, %arg1 : i32, i32
  }
}

</mosaic_0001>

<bundles_post_ra>
// kernel: autoencoder_forward.11
= control target key start
LH: loop header
LB: loop body
LE: loop exit
PB: predicated region body
PF: predicated region fallthrough
CT: control target
= control target key end

     0   :  { %s500_s9 = smov 0   ;;  %s647_s0 = inlined_call_operand.vmem [shape: f32[2,32,256], index: 0, kind: input, shape index: {}]   ;;  %s648_s1 = inlined_call_operand.vmem [shape: f32[256,128], index: 1, kind: input, shape index: {}]   ;;  %s649_s2 = inlined_call_operand.vmem [shape: f32[2,32,128], index: 2, kind: output, shape index: {}]  }
   0x1 LB: > { %s410_s10 = sadd.s32 4294967295, %s483_s9   ;;  %p414_p0 = scmp.ge.s32.totalorder %s483_s9, 1  ;;  %s483_s9 = sphi %s500_s9, %s12_s9  }
   0x2   : > { %p112_p1 = scmp.lt.s32.totalorder %s483_s9, 3 }
   0x4   : > { %p113_p2 = pnand %p414_p0, %p112_p1 }
   0x5   : > { %p134_p3 = scmp.lt.s32.totalorder (!%p113_p2), %s410_s10, 1 }
   0x6   : > { %116 = sbr.rel (%p113_p2) target bundleno = 423 (0x1a7), region = 28 }
   0xb   : > { %v175_v0 = vld [vmem:[%s648_s1 + $0x78] sm:$0xff]  ;;  %v174_v2 = vld [vmem:[%s648_s1 + $0x70] sm:$0xff]  ;;  %v173_v4 = vld [vmem:[%s648_s1 + $0x68] sm:$0xff]  ;;  %s651_s10 = smov (!%p134_p3, %s410_s10), 1 }
   0xc   : > { %v191_v1 = vld [vmem:[%s648_s1 + $0xf8] sm:$0xff]  ;;  %192 = vmatpush.msra.mxu0 %v175_v0  ;;  %423 = vmatpush.msra.mxu2 %v175_v0  ;;  %v190_v3 = vld [vmem:[%s648_s1 + $0xf0] sm:$0xff]  ;;  %v189_v5 = vld [vmem:[%s648_s1 + $0xe8] sm:$0xff]  ;;  %s421_s3 = sshll.u32 %s651_s10, 6  ;;  %s422_s29 = sshll.u32 %s651_s10, 5 }
   0xd   : > { %221 = vmatpush.msra.mxu1 %v191_v1  ;;  %439 = vmatpush.msra.mxu3 %v191_v1  ;;  %v172_v6 = vld [vmem:[%s648_s1 + $0x60] sm:$0xff]  ;;  %v171_v8 = vld [vmem:[%s648_s1 + $0x58] sm:$0xff]  ;;  %v170_v10 = vld [vmem:[%s648_s1 + $0x50] sm:$0xff]  ;;  %s596_s14 = scalar_lea.vmem %s647_s0, %s421_s3  ;;  %v290_v1 = vlaneseq  ;;  %s143_s4 = scalar_lea.vmem %s649_s2, %s422_s29 }
   0xe   : > { %193 = vmatpush.msra.mxu0 %v174_v2  ;;  %424 = vmatpush.msra.mxu2 %v174_v2  ;;  %v188_v7 = vld [vmem:[%s648_s1 + $0xe0] sm:$0xff]  ;;  %v187_v9 = vld [vmem:[%s648_s1 + $0xd8] sm:$0xff]  ;;  %v186_v11 = vld [vmem:[%s648_s1 + $0xd0] sm:$0xff] }
   0xf   : > { %222 = vmatpush.msra.mxu1 %v190_v3  ;;  %440 = vmatpush.msra.mxu3 %v190_v3  ;;  %v169_v12 = vld [vmem:[%s648_s1 + $0x48] sm:$0xff]  ;;  %v168_v14 = vld [vmem:[%s648_s1 + $0x40] sm:$0xff]  ;;  %v167_v16 = vld [vmem:[%s648_s1 + $0x38] sm:$0xff] }
  0x10   : > { %194 = vmatpush.msra.mxu0 %v173_v4  ;;  %425 = vmatpush.msra.mxu2 %v173_v4  ;;  %v185_v13 = vld [vmem:[%s648_s1 + $0xc8] sm:$0xff]  ;;  %v184_v15 = vld [vmem:[%s648_s1 + $0xc0] sm:$0xff]  ;;  %v183_v17 = vld [vmem:[%s648_s1 + $0xb8] sm:$0xff] }
  0x11   : > { %223 = vmatpush.msra.mxu1 %v189_v5  ;;  %441 = vmatpush.msra.mxu3 %v189_v5  ;;  %v166_v18 = vld [vmem:[%s648_s1 + $0x30] sm:$0xff]  ;;  %v165_v20 = vld [vmem:[%s648_s1 + $0x28] sm:$0xff]  ;;  %v164_v22 = vld [vmem:[%s648_s1 + $0x20] sm:$0xff] }
  0x12   : > { %195 = vmatpush.msra.mxu0 %v172_v6  ;;  %426 = vmatpush.msra.mxu2 %v172_v6  ;;  %v182_v19 = vld [vmem:[%s648_s1 + $0xb0] sm:$0xff]  ;;  %v181_v21 = vld [vmem:[%s648_s1 + $0xa8] sm:$0xff]  ;;  %v180_v23 = vld [vmem:[%s648_s1 + $0xa0] sm:$0xff] }
  0x13   : > { %224 = vmatpush.msra.mxu1 %v188_v7  ;;  %442 = vmatpush.msra.mxu3 %v188_v7  ;;  %v163_v24 = vld [vmem:[%s648_s1 + $0x18] sm:$0xff]  ;;  %v162_v26 = vld [vmem:[%s648_s1 + $0x10] sm:$0xff]  ;;  %v161_v28 = vld [vmem:[%s648_s1 + $0x8] sm:$0xff] }
  0x14   : > { %196 = vmatpush.msra.mxu0 %v171_v8  ;;  %427 = vmatpush.msra.mxu2 %v171_v8  ;;  %v179_v25 = vld [vmem:[%s648_s1 + $0x98] sm:$0xff]  ;;  %v178_v27 = vld [vmem:[%s648_s1 + $0x90] sm:$0xff]  ;;  %v144_v29 = vld [vmem:[%s596_s14] sm:$0xff] }
  0x15   : > { %225 = vmatpush.msra.mxu1 %v187_v9  ;;  %443 = vmatpush.msra.mxu3 %v187_v9  ;;  %v148_v30 = vld [vmem:[%s596_s14 + $0x20] sm:$0xff]  ;;  %v177_v31 = vld [vmem:[%s648_s1 + $0x88] sm:$0xff]  ;;  %v152_v36 = vmul.f32 %v144_v29, %v144_v29  ;;  %v146_v40 = vld [vmem:[%s596_s14 + $0x10] sm:$0xff] }
  0x16   : > { %197 = vmatpush.msra.mxu0 %v170_v10  ;;  %428 = vmatpush.msra.mxu2 %v170_v10  ;;  %v145_v32 = vld [vmem:[%s596_s14 + $0x8] sm:$0xff]  ;;  %v160_v34 = vld [vmem:[%s648_s1] sm:$0xff]  ;;  %v156_v37 = vmul.f32 %v148_v30, %v148_v30  ;;  %v150_v41 = vld [vmem:[%s596_s14 + $0x30] sm:$0xff]  ;;  %v154_v44 = vmul.f32 %v146_v40, %v146_v40  ;;  %v291_v10 = vand.u32 127, %v290_v1 }
  0x17   : > { %226 = vmatpush.msra.mxu1 %v186_v11  ;;  %444 = vmatpush.msra.mxu3 %v186_v11  ;;  %v149_v33 = vld [vmem:[%s596_s14 + $0x28] sm:$0xff]  ;;  %v176_v35 = vld [vmem:[%s648_s1 + $0x80] sm:$0xff]  ;;  %v153_v38 = vmul.f32 %v145_v32, %v145_v32  ;;  %v147_v42 = vld [vmem:[%s596_s14 + $0x18] sm:$0xff]  ;;  %v158_v45 = vmul.f32 %v150_v41, %v150_v41 }
  0x18   : > { %198 = vmatpush.msra.mxu0 %v169_v12  ;;  %429 = vmatpush.msra.mxu2 %v169_v12  ;;  %v157_v39 = vmul.f32 %v149_v33, %v149_v33  ;;  %v151_v43 = vld [vmem:[%s596_s14 + $0x38] sm:$0xff]  ;;  %v155_v46 = vmul.f32 %v147_v42, %v147_v42  ;;  %vm292_vm1 = vcmp.lt.s32.totalorder %v291_v10, 32 }
  0x19   : > { %227 = vmatpush.msra.mxu1 %v185_v13  ;;  %445 = vmatpush.msra.mxu3 %v185_v13  ;;  %v159_v47 = vmul.f32 %v151_v43, %v151_v43 }
  0x1a   : > { %199 = vmatpush.msra.mxu0 %v168_v14  ;;  %430 = vmatpush.msra.mxu2 %v168_v14 }
  0x1b   : > { %228 = vmatpush.msra.mxu1 %v184_v15  ;;  %446 = vmatpush.msra.mxu3 %v184_v15 }
  0x1c   : > { %200 = vmatpush.msra.mxu0 %v167_v16  ;;  %431 = vmatpush.msra.mxu2 %v167_v16 }
  0x1d   : > { %229 = vmatpush.msra.mxu1 %v183_v17  ;;  %447 = vmatpush.msra.mxu3 %v183_v17 }
  0x1e   : > { %201 = vmatpush.msra.mxu0 %v166_v18  ;;  %432 = vmatpush.msra.mxu2 %v166_v18 }
  0x1f   : > { %230 = vmatpush.msra.mxu1 %v182_v19  ;;  %448 = vmatpush.msra.mxu3 %v182_v19 }
  0x20   : > { %202 = vmatpush.msra.mxu0 %v165_v20  ;;  %433 = vmatpush.msra.mxu2 %v165_v20 }
  0x21   : > { %231 = vmatpush.msra.mxu1 %v181_v21  ;;  %449 = vmatpush.msra.mxu3 %v181_v21 }
  0x22   : > { %203 = vmatpush.msra.mxu0 %v164_v22  ;;  %434 = vmatpush.msra.mxu2 %v164_v22 }
  0x23   : > { %232 = vmatpush.msra.mxu1 %v180_v23  ;;  %450 = vmatpush.msra.mxu3 %v180_v23 }
  0x24   : > { %204 = vmatpush.msra.mxu0 %v163_v24  ;;  %435 = vmatpush.msra.mxu2 %v163_v24 }
  0x25   : > { %233 = vmatpush.msra.mxu1 %v179_v25  ;;  %451 = vmatpush.msra.mxu3 %v179_v25 }
  0x26   : > { %205 = vmatpush.msra.mxu0 %v162_v26  ;;  %436 = vmatpush.msra.mxu2 %v162_v26 }
  0x27   : > { %234 = vmatpush.msra.mxu1 %v178_v27  ;;  %452 = vmatpush.msra.mxu3 %v178_v27 }
  0x28   : > { %206 = vmatpush.msra.mxu0 %v161_v28  ;;  %437 = vmatpush.msra.mxu2 %v161_v28 }
  0x29   : > { %235 = vmatpush.msra.mxu1 %v177_v31  ;;  %453 = vmatpush.msra.mxu3 %v177_v31 }
  0x2a   : > { %207 = vmatpush.msra.mxu0 %v160_v34  ;;  %438 = vmatpush.msra.mxu2 %v160_v34 }
  0x2b   : > { %236 = vmatpush.msra.mxu1 %v176_v35  ;;  %454 = vmatpush.msra.mxu3 %v176_v35 }
  0x2c   : > { %208 = vmatmul.f32.vlgmr.msra.gmra.mxu0 %v152_v36  ;;  %214 = vmatmul.f32.vlgmr.msra.gmra.mxu2 %v156_v37 }
  0x2d   : > { %237 = vmatmul.f32.vlgmr.msra.gmra.mxu1 %v153_v38  ;;  %243 = vmatmul.f32.vlgmr.msra.gmra.mxu3 %v157_v39 }
  0x34   : > { %211 = vmatmul.f32.gmra.mxu0 %v154_v44  ;;  %217 = vmatmul.f32.gmra.mxu2 %v158_v45 }
  0x35   : > { %240 = vmatmul.f32.gmra.mxu1 %v155_v46  ;;  %246 = vmatmul.f32.gmra.mxu3 %v159_v47 }
  0xa9   : > { %v209_v48 = vpop.f32.mrf.mxu0 }
  0xaa   : > { %v238_v49 = vpop.f32.mrf.mxu1 }
  0xab   : > { %v239_v50 = vadd.f32 %v238_v49, %v209_v48 }
  0xad   : > { %v250_v51 = vmax.f32 %v239_v50, 1e-09 }
  0xaf   : > { %v254_v52 = vadd.f32 1.0, %v250_v51  ;;  %v215_v53 = vpop.f32.mrf.mxu2  ;;  %v257_v62 = vmul.f32 -0.5, %v250_v51  ;;  %v260_v8 = vand.u32 2147483647, %v250_v51 }
  0xb0   : > { %v244_v54 = vpop.f32.mrf.mxu3 }
  0xb1   : > { %v245_v55 = vadd.f32 %v244_v54, %v215_v53  ;;  %v212_v56 = vpop.f32.mrf.mxu0  ;;  %467 = vlog2.f32 %v254_v52  ;;  %v258_v6 = vadd.f32 1.0, %v257_v62  ;;  %vm261_vm0 = vcmp.lt.f32.partialorder %v260_v8, 0.0004427343 }
  0xb2   : > { %v241_v57 = vpop.f32.mrf.mxu1 }
  0xb3   : > { %v252_v58 = vmax.f32 %v245_v55, 1e-09  ;;  %v242_v59 = vadd.f32 %v241_v57, %v212_v56  ;;  %v259_v16 = vmul.f32 %v258_v6, %v250_v51 }
  0xb5   : > { %v272_v60 = vadd.f32 1.0, %v252_v58  ;;  %v251_v61 = vmax.f32 %v242_v59, 1e-09  ;;  %v275_v7 = vmul.f32 -0.5, %v252_v58  ;;  %v278_v20 = vand.u32 2147483647, %v252_v58 }
  0xb7   : > { %469 = vlog2.f32 %v272_v60  ;;  %v263_v63 = vadd.f32 1.0, %v251_v61  ;;  %v218_v0 = vpop.f32.mrf.mxu2  ;;  %v266_v2 = vmul.f32 -0.5, %v251_v61  ;;  %v468_v4 = vpop.eup %467  ;;  %v269_v14 = vand.u32 2147483647, %v251_v61 }
  0xb8   : > { %v247_v3 = vpop.f32.mrf.mxu3  ;;  %v256_v11 = vmul.f32 0.6931472, %v468_v4  ;;  %v276_v17 = vadd.f32 1.0, %v275_v7  ;;  %vm279_vm3 = vcmp.lt.f32.partialorder %v278_v20, 0.0004427343 }
  0xb9   : > { %471 = vlog2.f32 %v263_v63  ;;  %v248_v5 = vadd.f32 %v247_v3, %v218_v0  ;;  %v267_v12 = vadd.f32 1.0, %v266_v2  ;;  %vm270_vm2 = vcmp.lt.f32.partialorder %v269_v14, 0.0004427343 }
  0xba   : > { %v262_v23 = vsel %vm261_vm0, %v259_v16, %v256_v11  ;;  %v277_v25 = vmul.f32 %v276_v17, %v252_v58 }
  0xbb   : > { %v253_v9 = vmax.f32 %v248_v5, 1e-09  ;;  %v268_v22 = vmul.f32 %v267_v12, %v251_v61  ;;  %v625_v29 = vsel %vm292_vm1, %v262_v23, 0.0 }
  0xbc   : > { %v310_v42 = vmul.f32 %v625_v29, %v625_v29 }
  0xbd   : > { %v470_v13 = vpop.eup %469  ;;  %v281_v15 = vadd.f32 1.0, %v253_v9  ;;  %v284_v18 = vmul.f32 -0.5, %v253_v9  ;;  %v287_v28 = vand.u32 2147483647, %v253_v9 }
  0xbe   : > { %v274_v24 = vmul.f32 0.6931472, %v470_v13 }
  0xbf   : > { %v472_v19 = vpop.eup %471  ;;  %473 = vlog2.f32 %v281_v15  ;;  %v285_v26 = vadd.f32 1.0, %v284_v18  ;;  %vm288_vm4 = vcmp.lt.f32.partialorder %v287_v28, 0.0004427343 }
  0xc0   : > { %v265_v21 = vmul.f32 0.6931472, %v472_v19  ;;  %v280_v31 = vsel %vm279_vm3, %v277_v25, %v274_v24 }
  0xc1   : > { %v286_v35 = vmul.f32 %v285_v26, %v253_v9  ;;  %v295_v36 = vsel %vm292_vm1, %v280_v31, 0.0 }
  0xc2   : > { %v271_v27 = vsel %vm270_vm2, %v268_v22, %v265_v21  ;;  %v312_v44 = vmul.f32 %v295_v36, %v295_v36 }
  0xc3   : > { %v628_v30 = vsel %vm292_vm1, %v271_v27, 0.0 }
  0xc4   : > { %v297_v32 = vadd.f32 %v628_v30, %v625_v29  ;;  %v311_v39 = vmul.f32 %v628_v30, %v628_v30 }
  0xc5   : > { %v474_v33 = vpop.eup %473 }
  0xc6   : > { %v283_v34 = vmul.f32 0.6931472, %v474_v33  ;;  %v298_v38 = vadd.f32 %v297_v32, %v295_v36  ;;  %v314_v43 = vadd.f32 %v311_v39, %v310_v42 }
  0xc8   : > { %v289_v37 = vsel %vm288_vm4, %v286_v35, %v283_v34  ;;  %v315_v46 = vadd.f32 %v314_v43, %v312_v44 }
  0xc9   : > { %v296_v40 = vsel %vm292_vm1, %v289_v37, 0.0 }
  0xca   : > { %v299_v41 = vadd.f32 %v298_v38, %v296_v40  ;;  %v313_v45 = vmul.f32 %v296_v40, %v296_v40 }
  0xcc   : > { %300 = vadd.xlane.f32.xlu0 %v299_v41  ;;  %v316_v47 = vadd.f32 %v315_v46, %v313_v45 }
  0xd4   : > { %317 = vadd.xlane.f32.xlu0 %v316_v47 }
 0x13f   : > { %v301_v48 = vpop.xlane.xlu0 %300 }
 0x140   : > { %v302_v49 = vrot.slane %v301_v48, 4 }
 0x142   : > { %v303_v50 = vadd.f32 %v302_v49, %v301_v48 }
 0x144   : > { %v304_v51 = vrot.slane %v303_v50, 2 }
 0x146   : > { %v305_v52 = vadd.f32 %v304_v51, %v303_v50 }
 0x147   : > { %v318_v53 = vpop.xlane.xlu0 %317 }
 0x148   : > { %v319_v54 = vrot.slane %v318_v53, 4  ;;  %v306_v55 = vrot.slane %v305_v52, 1 }
 0x14a   : > { %v320_v56 = vadd.f32 %v319_v54, %v318_v53  ;;  %v307_v57 = vadd.f32 %v306_v55, %v305_v52 }
 0x14c   : > { %v321_v58 = vrot.slane %v320_v56, 2  ;;  %455 = vpush %v307_v57 }
 0x14e   : > { %v322_v59 = vadd.f32 %v321_v58, %v320_v56 }
 0x150   : > { %v323_v60 = vrot.slane %v322_v59, 1 }
 0x152   : > { %v324_v61 = vadd.f32 %v323_v60, %v322_v59 }
 0x154   : > { %457 = vpush %v324_v61 }
 0x17d   : > { %s456_s27 = spop %455 }
 0x17e   : > { %v309_v62 = vstv %s456_s27 }
 0x17f   : > { %v327_v63 = vmul.f32 0.0009765625, %v309_v62 }
 0x181   : > { %v329_v2 = vmul.f32 %v327_v63, %v327_v63  ;;  %v332_v12 = vsub.f32 %v625_v29, %v327_v63  ;;  %v333_v13 = vsub.f32 %v628_v30, %v327_v63  ;;  %v334_v14 = vsub.f32 %v295_v36, %v327_v63 }
 0x182   : > { %v335_v15 = vsub.f32 %v296_v40, %v327_v63 }
 0x185   : > { %s458_s28 = spop %457 }
 0x186   : > { %v326_v0 = vstv %s458_s28 }
 0x187   : > { %v328_v1 = vmul.f32 0.0009765625, %v326_v0 }
 0x189   : > { %v330_v3 = vsub.f32 %v328_v1, %v329_v2 }
 0x18b   : > { %v331_v4 = vmax.f32 %v330_v3, 0.0 }
 0x18d   : > { %v336_v5 = vadd.f32 0.0001, %v331_v4 }
 0x18f   : > { %475 = vrsqrt.f32 %v336_v5  ;;  %vm343_vm6 = vweird.f32 %v336_v5 }
 0x195   : > { %v476_v6 = vpop.eup %475 }
 0x196   : > { %v338_v7 = vmul.f32 %v476_v6, %v336_v5  ;;  %vm344_vm5 = vweird.f32 %v476_v6 }
 0x197   : > { %vm345_vm7 = vmor %vm343_vm6, %vm344_vm5 }
 0x198   : > { %v339_v8 = vmul.f32 %v476_v6, %v338_v7 }
 0x19a   : > { %v340_v9 = vmul.f32 0.5, %v339_v8 }
 0x19c   : > { %v341_v10 = vsub.f32 1.5, %v340_v9 }
 0x19e   : > { %v342_v11 = vmul.f32 %v476_v6, %v341_v10 }
 0x1a0   : > { %v346_v16 = vsel %vm345_vm7, %v476_v6, %v342_v11 }
 0x1a1   : > { %v347_v17 = vmul.f32 %v346_v16, %v332_v12  ;;  %v348_v18 = vmul.f32 %v346_v16, %v333_v13  ;;  %v349_v19 = vmul.f32 %v346_v16, %v334_v14  ;;  %v350_v20 = vmul.f32 %v346_v16, %v335_v15 }
 0x1a3   : > { %351 = vst [vmem:[%s143_s4] sm:$0xff] %v347_v17 }
 0x1a4   : > { %352 = vst [vmem:[%s143_s4 + $0x8] sm:$0xff] %v348_v18 }
 0x1a5   : > { %353 = vst [vmem:[%s143_s4 + $0x10] sm:$0xff] %v349_v19 }
 0x1a6   : > { %354 = vst [vmem:[%s143_s4 + $0x18] sm:$0xff] %v350_v20 }
 0x1a7 PF: > { %s12_s9 = sadd.s32 1, %s483_s9  }
 0x1a8   : > { %p9_p4 = scmp.ge.s32.totalorder %s12_s9, 4  }
 0x1aa   :  { %11 = sbr.rel (!%p9_p4) target bundleno = 1 (0x1), region = 58 }

// kernel: autoencoder_forward.12
= control target key start
LH: loop header
LB: loop body
LE: loop exit
PB: predicated region body
PF: predicated region fallthrough
CT: control target
= control target key end

     0   :  { %s1157_s15 = smov 0   ;;  %s1159_s16 = smov 0   ;;  %s1334_s0 = inlined_call_operand.vmem [shape: bf16[512,128], index: 0, kind: input, shape index: {}]   ;;  %s1335_s1 = inlined_call_operand.vmem [shape: bf16[128,128], index: 1, kind: input, shape index: {}]   ;;  %s1336_s2 = inlined_call_operand.vmem [shape: f32[1,128], index: 2, kind: input, shape index: {}]   ;;  %s1337_s3 = inlined_call_operand.vmem [shape: f32[1,128], index: 3, kind: input, shape index: {}]   ;;  %s1338_s4 = inlined_call_operand.vmem [shape: bf16[512,128], index: 4, kind: output, shape index: {}]  }
   0x1   :  { %s1161_s17 = smov 0  }
   0x2 LB: > { %s26_s18 = sadd.s32 1, %s1126_s16  ;;  %p836_p0 = scmp.ge.s32.totalorder %s1130_s17, 1  ;;  %s1130_s17 = sphi %s1161_s17, %s14_s17   ;;  %s1126_s16 = sphi %s1159_s16, %s1340_s16   ;;  %s1122_s15 = sphi %s1157_s15, %s1339_s15  }
   0x3   : > { %p28_p1 = scmp.ge.s32.totalorder %s26_s18, 2  ;;  %p202_p2 = scmp.lt.s32.totalorder %s1130_s17, 3 }
   0x5   : > { %s1342_s18 = smov (%p28_p1, %s26_s18), 0  ;;  %p203_p3 = pnand %p836_p0, %p202_p2 }
   0x6   : > { %s837_s27 = sshll.u32 (!%p203_p3), %s1122_s15, 5 }
   0x7   : > { %206 = sbr.rel (%p203_p3) target bundleno = 243 (0xf3), region = 36  ;;  %p242_p4 = scmp.lt.s32.totalorder (!%p203_p3), %s837_s27, 63 }
   0xc   : > { %v962_v0 = vld [vmem:[%s1335_s1 + $0x38] sm:$0xff]  ;;  %v961_v1 = vld [vmem:[%s1335_s1 + $0x30] sm:$0xff]  ;;  %v960_v2 = vld [vmem:[%s1335_s1 + $0x28] sm:$0xff]  ;;  %s1344_s27 = smov (!%p242_p4, %s837_s27), 63 }
   0xd   : > { %458 = vmatpush.bf16.msra.mxu0 %v962_v0  ;;  %1058 = vmatpush.bf16.msra.mxu1 %v962_v0  ;;  %v959_v3 = vld [vmem:[%s1335_s1 + $0x20] sm:$0xff]  ;;  %v958_v4 = vld [vmem:[%s1335_s1 + $0x18] sm:$0xff]  ;;  %v957_v5 = vld [vmem:[%s1335_s1 + $0x10] sm:$0xff]  ;;  %s838_s8 = sshll.u32 %s1344_s27, 2 }
   0xe   : > { %1059 = vmatpush.bf16.msra.mxu2 %v962_v0  ;;  %1060 = vmatpush.bf16.msra.mxu3 %v962_v0  ;;  %v956_v6 = vld [vmem:[%s1335_s1 + $0x8] sm:$0xff]  ;;  %v955_v7 = vld [vmem:[%s1335_s1] sm:$0xff]  ;;  %s1210_s13 = scalar_lea.vmem %s1334_s0, %s838_s8  ;;  %s1253_s23 = scalar_lea.vmem %s1338_s4, %s838_s8 }
   0xf   : > { %v939_v8 = vld [vmem:[%s1210_s13] sm:$0xff]  ;;  %v940_v12 = vld [vmem:[%s1210_s13 + $0x8] sm:$0xff]  ;;  %v941_v16 = vld [vmem:[%s1210_s13 + $0x10] sm:$0xff] }
  0x10   : > { %v943_v9 = vld [vmem:[%s1210_s13 + $0x20] sm:$0xff]  ;;  %v944_v13 = vld [vmem:[%s1210_s13 + $0x28] sm:$0xff]  ;;  %v945_v17 = vld [vmem:[%s1210_s13 + $0x30] sm:$0xff] }
  0x11   : > { %459 = vmatpush.bf16.msra.mxu0 %v961_v1  ;;  %1061 = vmatpush.bf16.msra.mxu1 %v961_v1  ;;  %v947_v10 = vld [vmem:[%s1210_s13 + $0x40] sm:$0xff]  ;;  %v948_v14 = vld [vmem:[%s1210_s13 + $0x48] sm:$0xff]  ;;  %v949_v18 = vld [vmem:[%s1210_s13 + $0x50] sm:$0xff] }
  0x12   : > { %1062 = vmatpush.bf16.msra.mxu2 %v961_v1  ;;  %1063 = vmatpush.bf16.msra.mxu3 %v961_v1  ;;  %v951_v11 = vld [vmem:[%s1210_s13 + $0x60] sm:$0xff]  ;;  %v952_v15 = vld [vmem:[%s1210_s13 + $0x68] sm:$0xff]  ;;  %v953_v19 = vld [vmem:[%s1210_s13 + $0x70] sm:$0xff] }
  0x13   : > { %v942_v20 = vld [vmem:[%s1210_s13 + $0x18] sm:$0xff]  ;;  %v1231_v26 = vld [vmem:[%s1336_s2] ss:$0 sm:$0xff] }
  0x14   : > { %v946_v21 = vld [vmem:[%s1210_s13 + $0x38] sm:$0xff]  ;;  %v1237_v28 = vld [vmem:[%s1337_s3] ss:$0 sm:$0xff] }
  0x15   : > { %460 = vmatpush.bf16.msra.mxu0 %v960_v2  ;;  %1064 = vmatpush.bf16.msra.mxu1 %v960_v2  ;;  %v950_v22 = vld [vmem:[%s1210_s13 + $0x58] sm:$0xff] }
  0x16   : > { %1065 = vmatpush.bf16.msra.mxu2 %v960_v2  ;;  %1066 = vmatpush.bf16.msra.mxu3 %v960_v2  ;;  %v954_v23 = vld [vmem:[%s1210_s13 + $0x78] sm:$0xff] }
  0x19   : > { %461 = vmatpush.bf16.msra.mxu0 %v959_v3  ;;  %1067 = vmatpush.bf16.msra.mxu1 %v959_v3 }
  0x1a   : > { %1068 = vmatpush.bf16.msra.mxu2 %v959_v3  ;;  %1069 = vmatpush.bf16.msra.mxu3 %v959_v3 }
  0x1d   : > { %462 = vmatpush.bf16.msra.mxu0 %v958_v4  ;;  %1070 = vmatpush.bf16.msra.mxu1 %v958_v4 }
  0x1e   : > { %1071 = vmatpush.bf16.msra.mxu2 %v958_v4  ;;  %1072 = vmatpush.bf16.msra.mxu3 %v958_v4 }
  0x21   : > { %463 = vmatpush.bf16.msra.mxu0 %v957_v5  ;;  %1073 = vmatpush.bf16.msra.mxu1 %v957_v5 }
  0x22   : > { %1074 = vmatpush.bf16.msra.mxu2 %v957_v5  ;;  %1075 = vmatpush.bf16.msra.mxu3 %v957_v5 }
  0x25   : > { %464 = vmatpush.bf16.msra.mxu0 %v956_v6  ;;  %1076 = vmatpush.bf16.msra.mxu1 %v956_v6 }
  0x26   : > { %1077 = vmatpush.bf16.msra.mxu2 %v956_v6  ;;  %1078 = vmatpush.bf16.msra.mxu3 %v956_v6 }
  0x29   : > { %465 = vmatpush.bf16.msra.mxu0 %v955_v7  ;;  %1079 = vmatpush.bf16.msra.mxu1 %v955_v7 }
  0x2a   : > { %1080 = vmatpush.bf16.msra.mxu2 %v955_v7  ;;  %1081 = vmatpush.bf16.msra.mxu3 %v955_v7 }
  0x2c   : > { %466 = vmatmul.bf16.vlgmr.msra.gmra.mxu0 %v939_v8  ;;  %486 = vmatmul.bf16.vlgmr.msra.gmra.mxu1 %v943_v9 }
  0x2d   : > { %506 = vmatmul.bf16.vlgmr.msra.gmra.mxu2 %v947_v10  ;;  %526 = vmatmul.bf16.vlgmr.msra.gmra.mxu3 %v951_v11 }
  0x3c   : > { %471 = vmatmul.bf16.gmra.mxu0 %v940_v12  ;;  %491 = vmatmul.bf16.gmra.mxu1 %v944_v13 }
  0x3d   : > { %511 = vmatmul.bf16.gmra.mxu2 %v948_v14  ;;  %531 = vmatmul.bf16.gmra.mxu3 %v952_v15 }
  0x4c   : > { %476 = vmatmul.bf16.gmra.mxu0 %v941_v16  ;;  %496 = vmatmul.bf16.gmra.mxu1 %v945_v17 }
  0x4d   : > { %516 = vmatmul.bf16.gmra.mxu2 %v949_v18  ;;  %536 = vmatmul.bf16.gmra.mxu3 %v953_v19 }
  0x5c   : > { %481 = vmatmul.bf16.gmra.mxu0 %v942_v20  ;;  %501 = vmatmul.bf16.gmra.mxu1 %v946_v21 }
  0x5d   : > { %521 = vmatmul.bf16.gmra.mxu2 %v950_v22  ;;  %541 = vmatmul.bf16.gmra.mxu3 %v954_v23 }
  0xa9   : > { %v467_v24 = vpop.f32.mrf.mxu0  ;;  %v487_v25 = vpop.f32.mrf.mxu1 }
  0xaa   : > { %v551_v27 = vmul.f32 %v1231_v26, %v467_v24  ;;  %v559_v29 = vmul.f32 %v1231_v26, %v487_v25 }
  0xac   : > { %v587_v34 = vadd.f32 %v1237_v28, %v551_v27  ;;  %v595_v35 = vadd.f32 %v1237_v28, %v559_v29 }
  0xae   : > { %v619_v42 = vmax.f32 %v587_v34, 0.0  ;;  %v627_v43 = vmax.f32 %v595_v35, 0.0 }
  0xb0   : > { %v507_v30 = vpop.f32.mrf.mxu2  ;;  %v527_v31 = vpop.f32.mrf.mxu3 }
  0xb1   : > { %v469_v32 = vpop.f32.mrf.mxu0  ;;  %v489_v33 = vpop.f32.mrf.mxu1  ;;  %v567_v40 = vmul.f32 %v1231_v26, %v507_v30  ;;  %v575_v41 = vmul.f32 %v1231_v26, %v527_v31 }
  0xb2   : > { %v552_v36 = vmul.f32 %v1231_v26, %v469_v32  ;;  %v560_v37 = vmul.f32 %v1231_v26, %v489_v33 }
  0xb3   : > { %v603_v50 = vadd.f32 %v1237_v28, %v567_v40  ;;  %v611_v51 = vadd.f32 %v1237_v28, %v575_v41 }
  0xb4   : > { %v588_v38 = vadd.f32 %v1237_v28, %v552_v36  ;;  %v596_v39 = vadd.f32 %v1237_v28, %v560_v37 }
  0xb5   : > { %v635_v58 = vmax.f32 %v603_v50, 0.0  ;;  %v643_v59 = vmax.f32 %v611_v51, 0.0 }
  0xb6   : > { %v620_v44 = vmax.f32 %v588_v38, 0.0  ;;  %v628_v45 = vmax.f32 %v596_v39, 0.0 }
  0xb8   : > { %v966_v46 = vpack.c.bf16 %v620_v44, %v619_v42  ;;  %v986_v47 = vpack.c.bf16 %v628_v45, %v627_v43  ;;  %v509_v48 = vpop.f32.mrf.mxu2  ;;  %v529_v49 = vpop.f32.mrf.mxu3 }
  0xb9   : > { %v568_v52 = vmul.f32 %v1231_v26, %v509_v48  ;;  %v576_v53 = vmul.f32 %v1231_v26, %v529_v49  ;;  %v472_v54 = vpop.f32.mrf.mxu0  ;;  %v492_v55 = vpop.f32.mrf.mxu1 }
  0xba   : > { %967 = vst [vmem:[%s1253_s23] sm:$0xff] %v966_v46   ;;  %v553_v62 = vmul.f32 %v1231_v26, %v472_v54  ;;  %v561_v63 = vmul.f32 %v1231_v26, %v492_v55 }
  0xbb   : > { %1046 = vst [vmem:[%s1253_s23 + $0x20] sm:$0xff] %v986_v47   ;;  %v604_v56 = vadd.f32 %v1237_v28, %v568_v52  ;;  %v612_v57 = vadd.f32 %v1237_v28, %v576_v53 }
  0xbc   : > { %v589_v6 = vadd.f32 %v1237_v28, %v553_v62  ;;  %v597_v7 = vadd.f32 %v1237_v28, %v561_v63 }
  0xbd   : > { %v636_v60 = vmax.f32 %v604_v56, 0.0  ;;  %v644_v61 = vmax.f32 %v612_v57, 0.0 }
  0xbe   : > { %v621_v14 = vmax.f32 %v589_v6, 0.0  ;;  %v629_v15 = vmax.f32 %v597_v7, 0.0 }
  0xbf   : > { %v1006_v0 = vpack.c.bf16 %v636_v60, %v635_v58  ;;  %v1026_v1 = vpack.c.bf16 %v644_v61, %v643_v59 }
  0xc0   : > { %v512_v2 = vpop.f32.mrf.mxu2  ;;  %v532_v3 = vpop.f32.mrf.mxu3 }
  0xc1   : > { %1050 = vst [vmem:[%s1253_s23 + $0x40] sm:$0xff] %v1006_v0   ;;  %v474_v4 = vpop.f32.mrf.mxu0  ;;  %v494_v5 = vpop.f32.mrf.mxu1  ;;  %v569_v12 = vmul.f32 %v1231_v26, %v512_v2  ;;  %v577_v13 = vmul.f32 %v1231_v26, %v532_v3 }
  0xc2   : > { %1054 = vst [vmem:[%s1253_s23 + $0x60] sm:$0xff] %v1026_v1   ;;  %v554_v8 = vmul.f32 %v1231_v26, %v474_v4  ;;  %v562_v9 = vmul.f32 %v1231_v26, %v494_v5 }
  0xc3   : > { %v605_v22 = vadd.f32 %v1237_v28, %v569_v12  ;;  %v613_v23 = vadd.f32 %v1237_v28, %v577_v13 }
  0xc4   : > { %v590_v10 = vadd.f32 %v1237_v28, %v554_v8  ;;  %v598_v11 = vadd.f32 %v1237_v28, %v562_v9 }
  0xc5   : > { %v637_v32 = vmax.f32 %v605_v22, 0.0  ;;  %v645_v33 = vmax.f32 %v613_v23, 0.0 }
  0xc6   : > { %v622_v16 = vmax.f32 %v590_v10, 0.0  ;;  %v630_v17 = vmax.f32 %v598_v11, 0.0 }
  0xc8   : > { %v971_v18 = vpack.c.bf16 %v622_v16, %v621_v14  ;;  %v991_v19 = vpack.c.bf16 %v630_v17, %v629_v15  ;;  %v514_v20 = vpop.f32.mrf.mxu2  ;;  %v534_v21 = vpop.f32.mrf.mxu3 }
  0xc9   : > { %v570_v24 = vmul.f32 %v1231_v26, %v514_v20  ;;  %v578_v25 = vmul.f32 %v1231_v26, %v534_v21  ;;  %v477_v27 = vpop.f32.mrf.mxu0  ;;  %v497_v29 = vpop.f32.mrf.mxu1 }
  0xca   : > { %1043 = vst [vmem:[%s1253_s23 + $0x8] sm:$0xff] %v971_v18   ;;  %v555_v36 = vmul.f32 %v1231_v26, %v477_v27  ;;  %v563_v37 = vmul.f32 %v1231_v26, %v497_v29 }
  0xcb   : > { %1047 = vst [vmem:[%s1253_s23 + $0x28] sm:$0xff] %v991_v19   ;;  %v606_v30 = vadd.f32 %v1237_v28, %v570_v24  ;;  %v614_v31 = vadd.f32 %v1237_v28, %v578_v25 }
  0xcc   : > { %v591_v44 = vadd.f32 %v1237_v28, %v555_v36  ;;  %v599_v45 = vadd.f32 %v1237_v28, %v563_v37 }
  0xcd   : > { %v638_v34 = vmax.f32 %v606_v30, 0.0  ;;  %v646_v35 = vmax.f32 %v614_v31, 0.0 }
  0xce   : > { %v623_v52 = vmax.f32 %v591_v44, 0.0  ;;  %v631_v53 = vmax.f32 %v599_v45, 0.0 }
  0xcf   : > { %v1011_v38 = vpack.c.bf16 %v638_v34, %v637_v32  ;;  %v1031_v39 = vpack.c.bf16 %v646_v35, %v645_v33 }
  0xd0   : > { %v517_v40 = vpop.f32.mrf.mxu2  ;;  %v537_v41 = vpop.f32.mrf.mxu3 }
  0xd1   : > { %1051 = vst [vmem:[%s1253_s23 + $0x48] sm:$0xff] %v1011_v38   ;;  %v479_v42 = vpop.f32.mrf.mxu0  ;;  %v499_v43 = vpop.f32.mrf.mxu1  ;;  %v571_v50 = vmul.f32 %v1231_v26, %v517_v40  ;;  %v579_v51 = vmul.f32 %v1231_v26, %v537_v41 }
  0xd2   : > { %1055 = vst [vmem:[%s1253_s23 + $0x68] sm:$0xff] %v1031_v39   ;;  %v556_v46 = vmul.f32 %v1231_v26, %v479_v42  ;;  %v564_v47 = vmul.f32 %v1231_v26, %v499_v43 }
  0xd3   : > { %v607_v60 = vadd.f32 %v1237_v28, %v571_v50  ;;  %v615_v61 = vadd.f32 %v1237_v28, %v579_v51 }
  0xd4   : > { %v592_v48 = vadd.f32 %v1237_v28, %v556_v46  ;;  %v600_v49 = vadd.f32 %v1237_v28, %v564_v47 }
  0xd5   : > { %v639_v4 = vmax.f32 %v607_v60, 0.0  ;;  %v647_v5 = vmax.f32 %v615_v61, 0.0 }
  0xd6   : > { %v624_v54 = vmax.f32 %v592_v48, 0.0  ;;  %v632_v55 = vmax.f32 %v600_v49, 0.0 }
  0xd8   : > { %v976_v56 = vpack.c.bf16 %v624_v54, %v623_v52  ;;  %v996_v57 = vpack.c.bf16 %v632_v55, %v631_v53  ;;  %v519_v58 = vpop.f32.mrf.mxu2  ;;  %v539_v59 = vpop.f32.mrf.mxu3 }
  0xd9   : > { %v572_v62 = vmul.f32 %v1231_v26, %v519_v58  ;;  %v580_v63 = vmul.f32 %v1231_v26, %v539_v59  ;;  %v482_v0 = vpop.f32.mrf.mxu0  ;;  %v502_v1 = vpop.f32.mrf.mxu1 }
  0xda   : > { %1044 = vst [vmem:[%s1253_s23 + $0x10] sm:$0xff] %v976_v56   ;;  %v557_v8 = vmul.f32 %v1231_v26, %v482_v0  ;;  %v565_v9 = vmul.f32 %v1231_v26, %v502_v1 }
  0xdb   : > { %1048 = vst [vmem:[%s1253_s23 + $0x30] sm:$0xff] %v996_v57   ;;  %v608_v2 = vadd.f32 %v1237_v28, %v572_v62  ;;  %v616_v3 = vadd.f32 %v1237_v28, %v580_v63 }
  0xdc   : > { %v593_v16 = vadd.f32 %v1237_v28, %v557_v8  ;;  %v601_v17 = vadd.f32 %v1237_v28, %v565_v9 }
  0xdd   : > { %v640_v6 = vmax.f32 %v608_v2, 0.0  ;;  %v648_v7 = vmax.f32 %v616_v3, 0.0 }
  0xde   : > { %v625_v24 = vmax.f32 %v593_v16, 0.0  ;;  %v633_v25 = vmax.f32 %v601_v17, 0.0 }
  0xdf   : > { %v1016_v10 = vpack.c.bf16 %v640_v6, %v639_v4  ;;  %v1036_v11 = vpack.c.bf16 %v648_v7, %v647_v5 }
  0xe0   : > { %v522_v12 = vpop.f32.mrf.mxu2  ;;  %v542_v13 = vpop.f32.mrf.mxu3 }
  0xe1   : > { %1052 = vst [vmem:[%s1253_s23 + $0x50] sm:$0xff] %v1016_v10   ;;  %v484_v14 = vpop.f32.mrf.mxu0  ;;  %v504_v15 = vpop.f32.mrf.mxu1  ;;  %v573_v22 = vmul.f32 %v1231_v26, %v522_v12  ;;  %v581_v23 = vmul.f32 %v1231_v26, %v542_v13 }
  0xe2   : > { %1056 = vst [vmem:[%s1253_s23 + $0x70] sm:$0xff] %v1036_v11   ;;  %v558_v18 = vmul.f32 %v1231_v26, %v484_v14  ;;  %v566_v19 = vmul.f32 %v1231_v26, %v504_v15 }
  0xe3   : > { %v609_v34 = vadd.f32 %v1237_v28, %v573_v22  ;;  %v617_v35 = vadd.f32 %v1237_v28, %v581_v23 }
  0xe4   : > { %v594_v20 = vadd.f32 %v1237_v28, %v558_v18  ;;  %v602_v21 = vadd.f32 %v1237_v28, %v566_v19 }
  0xe5   : > { %v641_v40 = vmax.f32 %v609_v34, 0.0  ;;  %v649_v41 = vmax.f32 %v617_v35, 0.0 }
  0xe6   : > { %v626_v27 = vmax.f32 %v594_v20, 0.0  ;;  %v634_v29 = vmax.f32 %v602_v21, 0.0 }
  0xe8   : > { %v981_v30 = vpack.c.bf16 %v626_v27, %v625_v24  ;;  %v1001_v31 = vpack.c.bf16 %v634_v29, %v633_v25  ;;  %v524_v32 = vpop.f32.mrf.mxu2  ;;  %v544_v33 = vpop.f32.mrf.mxu3 }
  0xe9   : > { %v574_v36 = vmul.f32 %v1231_v26, %v524_v32  ;;  %v582_v37 = vmul.f32 %v1231_v26, %v544_v33 }
  0xea   : > { %1045 = vst [vmem:[%s1253_s23 + $0x18] sm:$0xff] %v981_v30  }
  0xeb   : > { %1049 = vst [vmem:[%s1253_s23 + $0x38] sm:$0xff] %v1001_v31   ;;  %v610_v38 = vadd.f32 %v1237_v28, %v574_v36  ;;  %v618_v39 = vadd.f32 %v1237_v28, %v582_v37 }
  0xed   : > { %v642_v42 = vmax.f32 %v610_v38, 0.0  ;;  %v650_v43 = vmax.f32 %v618_v39, 0.0 }
  0xef   : > { %v1021_v44 = vpack.c.bf16 %v642_v42, %v641_v40  ;;  %v1041_v45 = vpack.c.bf16 %v650_v43, %v649_v41 }
  0xf1   : > { %1053 = vst [vmem:[%s1253_s23 + $0x58] sm:$0xff] %v1021_v44  }
  0xf2   : > { %1057 = vst [vmem:[%s1253_s23 + $0x78] sm:$0xff] %v1041_v45  }
  0xf3 PF: > { %s14_s17 = sadd.s32 1, %s1130_s17   ;;  %s1339_s15 = smov %s1126_s16 }
  0xf4   : > { %p11_p5 = scmp.ge.s32.totalorder %s14_s17, 4   ;;  %s1340_s16 = smov %s1342_s18 }
  0xf6   :  { %13 = sbr.rel (!%p11_p5) target bundleno = 2 (0x2), region = 75 }

// kernel: autoencoder_forward.13
= control target key start
LH: loop header
LB: loop body
LE: loop exit
PB: predicated region body
PF: predicated region fallthrough
CT: control target
= control target key end

     0   :  { %s1284_s1 = inlined_call_operand.vmem [shape: bf16[384,128], index: 1, kind: input, shape index: {}]   ;;  %s1285_s0 = inlined_call_operand.vmem [shape: bf16[128,384], index: 0, kind: input, shape index: {}]   ;;  %s1286_s2 = inlined_call_operand.vmem [shape: f32[1,128], index: 2, kind: input, shape index: {}]   ;;  %s1287_s3 = inlined_call_operand.vmem [shape: f32[1,128], index: 3, kind: input, shape index: {}]   ;;  %s1288_s4 = inlined_call_operand.vmem [shape: bf16[128,128], index: 4, kind: output, shape index: {}]  }
   0x1   :  { %v831_v0 = vld [vmem:[%s1284_s1 + $0x38] sm:$0xff]  ;;  %v830_v3 = vld [vmem:[%s1284_s1 + $0x30] sm:$0xff]  ;;  %v829_v6 = vld [vmem:[%s1284_s1 + $0x28] sm:$0xff] }
   0x2   :  { %v952_v1 = vld [vmem:[%s1284_s1 + $0x78] sm:$0xff]  ;;  %369 = vmatpush.bf16.msra.mxu0 %v831_v0  ;;  %895 = vmatpush.bf16.msra.mxu3 %v831_v0  ;;  %v967_v4 = vld [vmem:[%s1284_s1 + $0x70] sm:$0xff]  ;;  %v837_v7 = vld [vmem:[%s1284_s1 + $0x68] sm:$0xff] }
   0x3   :  { %v957_v2 = vld [vmem:[%s1284_s1 + $0xb8] sm:$0xff]  ;;  %418 = vmatpush.bf16.msra.mxu1 %v952_v1  ;;  %v972_v5 = vld [vmem:[%s1284_s1 + $0xb0] sm:$0xff]  ;;  %v985_v8 = vld [vmem:[%s1284_s1 + $0xa8] sm:$0xff] }
   0x4   :  { %467 = vmatpush.bf16.msra.mxu2 %v957_v2  ;;  %v828_v9 = vld [vmem:[%s1284_s1 + $0x20] sm:$0xff]  ;;  %v827_v12 = vld [vmem:[%s1284_s1 + $0x18] sm:$0xff]  ;;  %v826_v15 = vld [vmem:[%s1284_s1 + $0x10] sm:$0xff] }
   0x5   :  { %v994_v10 = vld [vmem:[%s1284_s1 + $0x60] sm:$0xff]  ;;  %v835_v13 = vld [vmem:[%s1284_s1 + $0x58] sm:$0xff]  ;;  %v834_v16 = vld [vmem:[%s1284_s1 + $0x50] sm:$0xff] }
   0x6   :  { %370 = vmatpush.bf16.msra.mxu0 %v830_v3  ;;  %896 = vmatpush.bf16.msra.mxu3 %v830_v3  ;;  %v999_v11 = vld [vmem:[%s1284_s1 + $0xa0] sm:$0xff]  ;;  %v1012_v14 = vld [vmem:[%s1284_s1 + $0x98] sm:$0xff]  ;;  %v1024_v17 = vld [vmem:[%s1284_s1 + $0x90] sm:$0xff] }
   0x7   :  { %419 = vmatpush.bf16.msra.mxu1 %v967_v4  ;;  %v825_v18 = vld [vmem:[%s1284_s1 + $0x8] sm:$0xff]  ;;  %v824_v21 = vld [vmem:[%s1284_s1] sm:$0xff]  ;;  %v682_v26 = vld [vmem:[%s1285_s0 + $0x90] sm:$0xf] }
   0x8   :  { %468 = vmatpush.bf16.msra.mxu2 %v972_v5  ;;  %v833_v19 = vld [vmem:[%s1284_s1 + $0x48] sm:$0xff]  ;;  %v832_v22 = vld [vmem:[%s1284_s1 + $0x40] sm:$0xff]  ;;  %v819_v27 = vld [vmem:[%s1285_s0 + $0x98] sm:$0xf0] }
   0x9   :  { %v1036_v20 = vld [vmem:[%s1284_s1 + $0x88] sm:$0xff]  ;;  %v1047_v23 = vld [vmem:[%s1284_s1 + $0x80] sm:$0xff]  ;;  %v612_v29 = vld [vmem:[%s1285_s0 + $0xc] sm:$0xf0]  ;;  %v683_v33 = vor.u32 %v819_v27, %v682_v26 }
   0xa   :  { %371 = vmatpush.bf16.msra.mxu0 %v829_v6  ;;  %897 = vmatpush.bf16.msra.mxu3 %v829_v6  ;;  %v610_v24 = vld [vmem:[%s1285_s0] sm:$0xf]  ;;  %v801_v25 = vld [vmem:[%s1285_s0 + $0x8] sm:$0xf0]  ;;  %v800_v28 = vld [vmem:[%s1285_s0 + $0x4] sm:$0xf] }
   0xb   :  { %420 = vmatpush.bf16.msra.mxu1 %v837_v7  ;;  %v618_v30 = vld [vmem:[%s1285_s0 + $0x8] sm:$0xf]  ;;  %v802_v31 = vld [vmem:[%s1285_s0 + $0x10] sm:$0xf0]  ;;  %v611_v32 = vor.u32 %v801_v25, %v610_v24  ;;  %v615_v34 = vor.u32 %v800_v28, %v612_v29  ;;  %v622_v36 = vld [vmem:[%s1285_s0 + $0x18] sm:$0xf] }
   0xc   :  { %469 = vmatpush.bf16.msra.mxu2 %v985_v8  ;;  %v619_v35 = vor.u32 %v802_v31, %v618_v30  ;;  %v804_v37 = vld [vmem:[%s1285_s0 + $0x20] sm:$0xf0]  ;;  %v694_v38 = vld [vmem:[%s1285_s0 + $0xa8] sm:$0xf]  ;;  %v822_v39 = vld [vmem:[%s1285_s0 + $0xb0] sm:$0xf0] }
   0xd   :  { %v803_v40 = vld [vmem:[%s1285_s0 + $0x1c] sm:$0xf]  ;;  %v624_v41 = vld [vmem:[%s1285_s0 + $0x24] sm:$0xf0]  ;;  %v630_v42 = vld [vmem:[%s1285_s0 + $0x20] sm:$0xf]  ;;  %v623_v44 = vor.u32 %v804_v37, %v622_v36  ;;  %v695_v45 = vor.u32 %v822_v39, %v694_v38 }
   0xe   :  { %372 = vmatpush.bf16.msra.mxu0 %v828_v9  ;;  %898 = vmatpush.bf16.msra.mxu3 %v828_v9  ;;  %v805_v43 = vld [vmem:[%s1285_s0 + $0x28] sm:$0xf0]  ;;  %v627_v46 = vor.u32 %v803_v40, %v624_v41  ;;  %v634_v48 = vld [vmem:[%s1285_s0 + $0x30] sm:$0xf]  ;;  %v807_v49 = vld [vmem:[%s1285_s0 + $0x38] sm:$0xf0] }
   0xf   :  { %421 = vmatpush.bf16.msra.mxu1 %v994_v10  ;;  %v631_v47 = vor.u32 %v805_v43, %v630_v42  ;;  %v806_v50 = vld [vmem:[%s1285_s0 + $0x34] sm:$0xf]  ;;  %v684_v52 = vld [vmem:[%s1285_s0 + $0x9c] sm:$0xf0]  ;;  %v642_v54 = vld [vmem:[%s1285_s0 + $0x38] sm:$0xf]  ;;  %v635_v56 = vor.u32 %v807_v49, %v634_v48 }
  0x10   :  { %470 = vmatpush.bf16.msra.mxu2 %v999_v11  ;;  %v818_v51 = vld [vmem:[%s1285_s0 + $0x94] sm:$0xf]  ;;  %v636_v53 = vld [vmem:[%s1285_s0 + $0x3c] sm:$0xf0]  ;;  %v808_v55 = vld [vmem:[%s1285_s0 + $0x40] sm:$0xf0] }
  0x11   :  { %v687_v57 = vor.u32 %v818_v51, %v684_v52  ;;  %v639_v58 = vor.u32 %v806_v50, %v636_v53  ;;  %v643_v59 = vor.u32 %v808_v55, %v642_v54  ;;  %v646_v60 = vld [vmem:[%s1285_s0 + $0x48] sm:$0xf]  ;;  %v810_v61 = vld [vmem:[%s1285_s0 + $0x50] sm:$0xf0]  ;;  %v809_v62 = vld [vmem:[%s1285_s0 + $0x4c] sm:$0xf] }
  0x12   :  { %373 = vmatpush.bf16.msra.mxu0 %v827_v12  ;;  %899 = vmatpush.bf16.msra.mxu3 %v827_v12  ;;  %v821_v63 = vld [vmem:[%s1285_s0 + $0xac] sm:$0xf]  ;;  %v696_v0 = vld [vmem:[%s1285_s0 + $0xb4] sm:$0xf0]  ;;  %v811_v3 = vld [vmem:[%s1285_s0 + $0x58] sm:$0xf0] }
  0x13   :  { %422 = vmatpush.bf16.msra.mxu1 %v835_v13  ;;  %v813_v9 = vld [vmem:[%s1285_s0 + $0x68] sm:$0xf0]  ;;  %v820_v12 = vld [vmem:[%s1285_s0 + $0xa0] sm:$0xf0]  ;;  %v823_v24 = vld [vmem:[%s1285_s0 + $0xb8] sm:$0xf0] }
  0x14   :  { %471 = vmatpush.bf16.msra.mxu2 %v1012_v14  ;;  %v672_v25 = vld [vmem:[%s1285_s0 + $0x84] sm:$0xf0]  ;;  %v678_v26 = vld [vmem:[%s1285_s0 + $0x80] sm:$0xf]  ;;  %v817_v27 = vld [vmem:[%s1285_s0 + $0x88] sm:$0xf0] }
  0x15   :  { %v679_v31 = vor.u32 %v817_v27, %v678_v26  ;;  %v1211_v40 = vld [vmem:[%s1286_s2] ss:$0 sm:$0xff] }
  0x16   :  { %374 = vmatpush.bf16.msra.mxu0 %v826_v15  ;;  %900 = vmatpush.bf16.msra.mxu3 %v826_v15  ;;  %v814_v15 = vld [vmem:[%s1285_s0 + $0x70] sm:$0xf0]  ;;  %v1217_v42 = vld [vmem:[%s1287_s3] ss:$0 sm:$0xff] }
  0x17   :  { %423 = vmatpush.bf16.msra.mxu1 %v834_v16 }
  0x18   :  { %472 = vmatpush.bf16.msra.mxu2 %v1024_v17 }
  0x1a   :  { %375 = vmatpush.bf16.msra.mxu0 %v825_v18  ;;  %901 = vmatpush.bf16.msra.mxu3 %v825_v18 }
  0x1b   :  { %424 = vmatpush.bf16.msra.mxu1 %v833_v19 }
  0x1c   :  { %473 = vmatpush.bf16.msra.mxu2 %v1036_v20 }
  0x1e   :  { %376 = vmatpush.bf16.msra.mxu0 %v824_v21  ;;  %902 = vmatpush.bf16.msra.mxu3 %v824_v21  ;;  %v816_v21 = vld [vmem:[%s1285_s0 + $0x80] sm:$0xf0] }
  0x1f   :  { %425 = vmatpush.bf16.msra.mxu1 %v832_v22 }
  0x20   :  { %474 = vmatpush.bf16.msra.mxu2 %v1047_v23 }
  0x21   :  { %377 = vmatmul.bf16.vlgmr.msra.gmra.mxu0 %v611_v32  ;;  %407 = vmatmul.bf16.vlgmr.msra.gmra.mxu3 %v683_v33 }
  0x22   :  { %903 = vmatpush.bf16.msrb.mxu3 %v952_v1  ;;  %426 = vmatmul.bf16.vlgmr.msra.gmra.mxu1 %v615_v34  ;;  %v648_v1 = vld [vmem:[%s1285_s0 + $0x54] sm:$0xf0] }
  0x23   :  { %475 = vmatmul.bf16.vlgmr.msra.gmra.mxu2 %v619_v35  ;;  %v651_v6 = vor.u32 %v809_v62, %v648_v1 }
  0x26   :  { %904 = vmatpush.bf16.msrb.mxu3 %v967_v4  ;;  %v647_v4 = vor.u32 %v810_v61, %v646_v60 }
  0x2a   :  { %905 = vmatpush.bf16.msrb.mxu3 %v837_v7 }
  0x2e   :  { %906 = vmatpush.bf16.msrb.mxu3 %v994_v10  ;;  %v812_v10 = vld [vmem:[%s1285_s0 + $0x64] sm:$0xf] }
  0x31   :  { %382 = vmatmul.bf16.gmra.mxu0 %v623_v44  ;;  %412 = vmatmul.bf16.gmra.mxu3 %v695_v45 }
  0x32   :  { %907 = vmatpush.bf16.msrb.mxu3 %v835_v13  ;;  %431 = vmatmul.bf16.gmra.mxu1 %v627_v46  ;;  %v660_v13 = vld [vmem:[%s1285_s0 + $0x6c] sm:$0xf0] }
  0x33   :  { %480 = vmatmul.bf16.gmra.mxu2 %v631_v47  ;;  %v663_v18 = vor.u32 %v812_v10, %v660_v13 }
  0x36   :  { %908 = vmatpush.bf16.msrb.mxu3 %v834_v16 }
  0x3a   :  { %909 = vmatpush.bf16.msrb.mxu3 %v833_v19 }
  0x3e   :  { %910 = vmatpush.bf16.msrb.mxu3 %v832_v22  ;;  %v815_v22 = vld [vmem:[%s1285_s0 + $0x7c] sm:$0xf] }
  0x3f   :  { %v675_v30 = vor.u32 %v815_v22, %v672_v25 }
  0x41   :  { %387 = vmatmul.bf16.gmra.mxu0 %v635_v56  ;;  %456 = vmatmul.bf16.vlgmr.msrb.gmra.mxu3 %v687_v57 }
  0x42   :  { %911 = vmatpush.bf16.msra.mxu3 %v957_v2  ;;  %436 = vmatmul.bf16.gmra.mxu1 %v639_v58  ;;  %v654_v2 = vld [vmem:[%s1285_s0 + $0x50] sm:$0xf] }
  0x43   :  { %485 = vmatmul.bf16.gmra.mxu2 %v643_v59  ;;  %v655_v7 = vor.u32 %v811_v3, %v654_v2 }
  0x46   :  { %912 = vmatpush.bf16.msra.mxu3 %v972_v5  ;;  %v699_v5 = vor.u32 %v821_v63, %v696_v0 }
  0x4a   :  { %913 = vmatpush.bf16.msra.mxu3 %v985_v8  ;;  %v658_v8 = vld [vmem:[%s1285_s0 + $0x60] sm:$0xf] }
  0x4b   :  { %v659_v16 = vor.u32 %v813_v9, %v658_v8 }
  0x4e   :  { %914 = vmatpush.bf16.msra.mxu3 %v999_v11  ;;  %v690_v11 = vld [vmem:[%s1285_s0 + $0x98] sm:$0xf] }
  0x51   :  { %392 = vmatmul.bf16.gmra.mxu0 %v647_v4  ;;  %461 = vmatmul.bf16.gmra.mxu3 %v699_v5 }
  0x52   :  { %915 = vmatpush.bf16.msra.mxu3 %v1012_v14  ;;  %441 = vmatmul.bf16.gmra.mxu1 %v651_v6  ;;  %v666_v14 = vld [vmem:[%s1285_s0 + $0x68] sm:$0xf] }
  0x53   :  { %490 = vmatmul.bf16.gmra.mxu2 %v655_v7  ;;  %v667_v19 = vor.u32 %v814_v15, %v666_v14 }
  0x56   :  { %916 = vmatpush.bf16.msra.mxu3 %v1024_v17  ;;  %v691_v17 = vor.u32 %v820_v12, %v690_v11 }
  0x5a   :  { %917 = vmatpush.bf16.msra.mxu3 %v1036_v20  ;;  %v670_v20 = vld [vmem:[%s1285_s0 + $0x78] sm:$0xf] }
  0x5b   :  { %v671_v28 = vor.u32 %v816_v21, %v670_v20 }
  0x5e   :  { %918 = vmatpush.bf16.msra.mxu3 %v1047_v23  ;;  %v702_v23 = vld [vmem:[%s1285_s0 + $0xb0] sm:$0xf] }
  0x5f   :  { %v703_v29 = vor.u32 %v823_v24, %v702_v23 }
  0x61   :  { %397 = vmatmul.bf16.gmra.mxu0 %v659_v16  ;;  %505 = vmatmul.bf16.vlgmr.msra.gmra.mxu3 %v691_v17 }
  0x62   :  { %446 = vmatmul.bf16.gmra.mxu1 %v663_v18 }
  0x63   :  { %495 = vmatmul.bf16.gmra.mxu2 %v667_v19 }
  0x71   :  { %402 = vmatmul.bf16.gmra.mxu0 %v671_v28  ;;  %510 = vmatmul.bf16.gmra.mxu3 %v703_v29 }
  0x72   :  { %451 = vmatmul.bf16.gmra.mxu1 %v675_v30 }
  0x73   :  { %500 = vmatmul.bf16.gmra.mxu2 %v679_v31 }
  0x9e   :  { %v378_v32 = vpop.f32.mrf.mxu0 }
  0x9f   :  { %v427_v33 = vpop.f32.mrf.mxu1 }
  0xa0   :  { %v428_v34 = vadd.f32 %v427_v33, %v378_v32 }
  0xa4   :  { %v1206_v35 = vpop.f32.mrf.mxu3 }
  0xa6   :  { %v476_v36 = vpop.f32.mrf.mxu2  ;;  %v380_v37 = vpop.f32.mrf.mxu0 }
  0xa7   :  { %v429_v38 = vpop.f32.mrf.mxu1  ;;  %v477_v39 = vadd.f32 %v476_v36, %v428_v34 }
  0xa8   :  { %v430_v43 = vadd.f32 %v429_v38, %v380_v37 }
  0xa9   :  { %v520_v41 = vmul.f32 %v1211_v40, %v477_v39 }
  0xab   :  { %v540_v49 = vadd.f32 %v1217_v42, %v520_v41 }
  0xac   :  { %v1219_v44 = vpop.f32.mrf.mxu3 }
  0xad   :  { %v556_v52 = vmax.f32 %v540_v49, 0.0 }
  0xae   :  { %v478_v45 = vpop.f32.mrf.mxu2  ;;  %v383_v47 = vpop.f32.mrf.mxu0 }
  0xaf   :  { %v479_v46 = vadd.f32 %v478_v45, %v430_v43  ;;  %v432_v48 = vpop.f32.mrf.mxu1 }
  0xb0   :  { %v433_v54 = vadd.f32 %v432_v48, %v383_v47 }
  0xb1   :  { %v521_v50 = vmul.f32 %v1211_v40, %v479_v46 }
  0xb3   :  { %v541_v51 = vadd.f32 %v1217_v42, %v521_v50 }
  0xb4   :  { %v1224_v55 = vpop.f32.mrf.mxu3 }
  0xb5   :  { %v557_v53 = vmax.f32 %v541_v51, 0.0 }
  0xb6   :  { %v481_v56 = vpop.f32.mrf.mxu2  ;;  %v385_v58 = vpop.f32.mrf.mxu0 }
  0xb7   :  { %v851_v57 = vpack.c.bf16 %v557_v53, %v556_v52  ;;  %v434_v59 = vpop.f32.mrf.mxu1  ;;  %v482_v60 = vadd.f32 %v481_v56, %v433_v54 }
  0xb8   :  { %v435_v62 = vadd.f32 %v434_v59, %v385_v58 }
  0xb9   :  { %852 = vst [vmem:[%s1288_s4] sm:$0xff] %v851_v57   ;;  %v522_v61 = vmul.f32 %v1211_v40, %v482_v60 }
  0xbb   :  { %v542_v4 = vadd.f32 %v1217_v42, %v522_v61 }
  0xbc   :  { %v1230_v63 = vpop.f32.mrf.mxu3 }
  0xbd   :  { %v558_v7 = vmax.f32 %v542_v4, 0.0 }
  0xbe   :  { %v483_v0 = vpop.f32.mrf.mxu2  ;;  %v388_v2 = vpop.f32.mrf.mxu0 }
  0xbf   :  { %v484_v1 = vadd.f32 %v483_v0, %v435_v62  ;;  %v437_v3 = vpop.f32.mrf.mxu1 }
  0xc0   :  { %v438_v9 = vadd.f32 %v437_v3, %v388_v2 }
  0xc1   :  { %v523_v5 = vmul.f32 %v1211_v40, %v484_v1 }
  0xc3   :  { %v543_v6 = vadd.f32 %v1217_v42, %v523_v5 }
  0xc4   :  { %v457_v10 = vpop.f32.mrf.mxu3 }
  0xc5   :  { %v559_v8 = vmax.f32 %v543_v6, 0.0  ;;  %v458_v53 = vadd.f32 %v457_v10, %v1206_v35 }
  0xc6   :  { %v486_v11 = vpop.f32.mrf.mxu2  ;;  %v390_v13 = vpop.f32.mrf.mxu0 }
  0xc7   :  { %v856_v12 = vpack.c.bf16 %v559_v8, %v558_v7  ;;  %v439_v14 = vpop.f32.mrf.mxu1  ;;  %v487_v15 = vadd.f32 %v486_v11, %v438_v9 }
  0xc8   :  { %v440_v17 = vadd.f32 %v439_v14, %v390_v13 }
  0xc9   :  { %888 = vst [vmem:[%s1288_s4 + $0x8] sm:$0xff] %v856_v12   ;;  %v524_v16 = vmul.f32 %v1211_v40, %v487_v15 }
  0xcb   :  { %v544_v23 = vadd.f32 %v1217_v42, %v524_v16 }
  0xcc   :  { %v459_v18 = vpop.f32.mrf.mxu3 }
  0xcd   :  { %v560_v26 = vmax.f32 %v544_v23, 0.0  ;;  %v460_v61 = vadd.f32 %v459_v18, %v1219_v44 }
  0xce   :  { %v488_v19 = vpop.f32.mrf.mxu2  ;;  %v393_v21 = vpop.f32.mrf.mxu0 }
  0xcf   :  { %v489_v20 = vadd.f32 %v488_v19, %v440_v17  ;;  %v442_v22 = vpop.f32.mrf.mxu1 }
  0xd0   :  { %v443_v28 = vadd.f32 %v442_v22, %v393_v21 }
  0xd1   :  { %v525_v24 = vmul.f32 %v1211_v40, %v489_v20 }
  0xd3   :  { %v545_v25 = vadd.f32 %v1217_v42, %v525_v24 }
  0xd4   :  { %v462_v29 = vpop.f32.mrf.mxu3 }
  0xd5   :  { %v561_v27 = vmax.f32 %v545_v25, 0.0  ;;  %v463_v18 = vadd.f32 %v462_v29, %v1224_v55 }
  0xd6   :  { %v491_v30 = vpop.f32.mrf.mxu2  ;;  %v395_v32 = vpop.f32.mrf.mxu0 }
  0xd7   :  { %v861_v31 = vpack.c.bf16 %v561_v27, %v560_v26  ;;  %v444_v33 = vpop.f32.mrf.mxu1  ;;  %v492_v34 = vadd.f32 %v491_v30, %v443_v28 }
  0xd8   :  { %v445_v37 = vadd.f32 %v444_v33, %v395_v32 }
  0xd9   :  { %889 = vst [vmem:[%s1288_s4 + $0x10] sm:$0xff] %v861_v31   ;;  %v526_v36 = vmul.f32 %v1211_v40, %v492_v34 }
  0xdb   :  { %v546_v46 = vadd.f32 %v1217_v42, %v526_v36 }
  0xdc   :  { %v464_v38 = vpop.f32.mrf.mxu3 }
  0xdd   :  { %v562_v49 = vmax.f32 %v546_v46, 0.0  ;;  %v465_v26 = vadd.f32 %v464_v38, %v1230_v63 }
  0xde   :  { %v493_v39 = vpop.f32.mrf.mxu2  ;;  %v398_v43 = vpop.f32.mrf.mxu0 }
  0xdf   :  { %v494_v41 = vadd.f32 %v493_v39, %v445_v37  ;;  %v447_v45 = vpop.f32.mrf.mxu1 }
  0xe0   :  { %v448_v51 = vadd.f32 %v447_v45, %v398_v43 }
  0xe1   :  { %v527_v47 = vmul.f32 %v1211_v40, %v494_v41 }
  0xe3   :  { %v547_v48 = vadd.f32 %v1217_v42, %v527_v47 }
  0xe4   :  { %v506_v52 = vpop.f32.mrf.mxu3 }
  0xe5   :  { %v563_v50 = vmax.f32 %v547_v48, 0.0  ;;  %v507_v58 = vadd.f32 %v506_v52, %v458_v53 }
  0xe6   :  { %v496_v54 = vpop.f32.mrf.mxu2  ;;  %v400_v57 = vpop.f32.mrf.mxu0 }
  0xe7   :  { %v866_v56 = vpack.c.bf16 %v563_v50, %v562_v49  ;;  %v449_v59 = vpop.f32.mrf.mxu1  ;;  %v497_v60 = vadd.f32 %v496_v54, %v448_v51  ;;  %v532_v62 = vmul.f32 %v1211_v40, %v507_v58 }
  0xe8   :  { %v450_v1 = vadd.f32 %v449_v59, %v400_v57 }
  0xe9   :  { %890 = vst [vmem:[%s1288_s4 + $0x18] sm:$0xff] %v866_v56   ;;  %v528_v0 = vmul.f32 %v1211_v40, %v497_v60  ;;  %v552_v5 = vadd.f32 %v1217_v42, %v532_v62 }
  0xeb   :  { %v548_v9 = vadd.f32 %v1217_v42, %v528_v0  ;;  %v568_v12 = vmax.f32 %v552_v5, 0.0 }
  0xec   :  { %v508_v2 = vpop.f32.mrf.mxu3 }
  0xed   :  { %v509_v35 = vadd.f32 %v508_v2, %v460_v61  ;;  %v564_v14 = vmax.f32 %v548_v9, 0.0 }
  0xee   :  { %v498_v3 = vpop.f32.mrf.mxu2  ;;  %v403_v7 = vpop.f32.mrf.mxu0 }
  0xef   :  { %v499_v4 = vadd.f32 %v498_v3, %v450_v1  ;;  %v533_v6 = vmul.f32 %v1211_v40, %v509_v35  ;;  %v452_v8 = vpop.f32.mrf.mxu1 }
  0xf0   :  { %v453_v16 = vadd.f32 %v452_v8, %v403_v7 }
  0xf1   :  { %v529_v10 = vmul.f32 %v1211_v40, %v499_v4  ;;  %v553_v44 = vadd.f32 %v1217_v42, %v533_v6 }
  0xf3   :  { %v549_v11 = vadd.f32 %v1217_v42, %v529_v10  ;;  %v569_v13 = vmax.f32 %v553_v44, 0.0 }
  0xf4   :  { %v511_v17 = vpop.f32.mrf.mxu3 }
  0xf5   :  { %v565_v15 = vmax.f32 %v549_v11, 0.0  ;;  %v881_v19 = vpack.c.bf16 %v569_v13, %v568_v12  ;;  %v512_v22 = vadd.f32 %v511_v17, %v463_v18 }
  0xf6   :  { %v501_v20 = vpop.f32.mrf.mxu2  ;;  %v405_v24 = vpop.f32.mrf.mxu0 }
  0xf7   :  { %v871_v21 = vpack.c.bf16 %v565_v15, %v564_v14  ;;  %893 = vst [vmem:[%s1288_s4 + $0x30] sm:$0xff] %v881_v19   ;;  %v502_v23 = vadd.f32 %v501_v20, %v453_v16  ;;  %v454_v25 = vpop.f32.mrf.mxu1  ;;  %v534_v27 = vmul.f32 %v1211_v40, %v512_v22 }
  0xf8   :  { %v455_v28 = vadd.f32 %v454_v25, %v405_v24 }
  0xf9   :  { %891 = vst [vmem:[%s1288_s4 + $0x20] sm:$0xff] %v871_v21   ;;  %v530_v55 = vmul.f32 %v1211_v40, %v502_v23  ;;  %v554_v33 = vadd.f32 %v1217_v42, %v534_v27 }
  0xfb   :  { %v550_v36 = vadd.f32 %v1217_v42, %v530_v55  ;;  %v570_v38 = vmax.f32 %v554_v33, 0.0 }
  0xfc   :  { %v513_v29 = vpop.f32.mrf.mxu3 }
  0xfd   :  { %v514_v31 = vadd.f32 %v513_v29, %v465_v26  ;;  %v566_v43 = vmax.f32 %v550_v36, 0.0 }
  0xfe   :  { %v503_v30 = vpop.f32.mrf.mxu2 }
  0xff   :  { %v504_v32 = vadd.f32 %v503_v30, %v455_v28  ;;  %v535_v34 = vmul.f32 %v1211_v40, %v514_v31 }
 0x101   :  { %v531_v37 = vmul.f32 %v1211_v40, %v504_v32  ;;  %v555_v39 = vadd.f32 %v1217_v42, %v535_v34 }
 0x103   :  { %v551_v63 = vadd.f32 %v1217_v42, %v531_v37  ;;  %v571_v41 = vmax.f32 %v555_v39, 0.0 }
 0x105   :  { %v567_v45 = vmax.f32 %v551_v63, 0.0  ;;  %v886_v46 = vpack.c.bf16 %v571_v41, %v570_v38 }
 0x107   :  { %v876_v47 = vpack.c.bf16 %v567_v45, %v566_v43  ;;  %894 = vst [vmem:[%s1288_s4 + $0x38] sm:$0xff] %v886_v46  }
 0x109   :  { %892 = vst [vmem:[%s1288_s4 + $0x28] sm:$0xff] %v876_v47  }

// kernel: autoencoder_forward.14
= control target key start
LH: loop header
LB: loop body
LE: loop exit
PB: predicated region body
PF: predicated region fallthrough
CT: control target
= control target key end

     0   :  { %s1016_s1 = inlined_call_operand.vmem [shape: bf16[640,128], index: 1, kind: input, shape index: {}]   ;;  %s1017_s0 = inlined_call_operand.vmem [shape: bf16[32,640], index: 0, kind: input, shape index: {}]   ;;  %s1018_s2 = inlined_call_operand.vmem [shape: f32[1,128], index: 2, kind: input, shape index: {}]   ;;  %s1019_s3 = inlined_call_operand.vmem [shape: f32[1,128], index: 3, kind: input, shape index: {}]   ;;  %s1020_s4 = inlined_call_operand.vmem [shape: bf16[32,128], index: 4, kind: output, shape index: {}]  }
   0x1   :  { %v745_v0 = vld [vmem:[%s1016_s1 + $0x38] sm:$0xff]  ;;  %v744_v4 = vld [vmem:[%s1016_s1 + $0x30] sm:$0xff]  ;;  %v743_v8 = vld [vmem:[%s1016_s1 + $0x28] sm:$0xff] }
   0x2   :  { %v753_v1 = vld [vmem:[%s1016_s1 + $0x78] sm:$0xff]  ;;  %401 = vmatpush.bf16.msra.mxu0 %v745_v0  ;;  %v752_v5 = vld [vmem:[%s1016_s1 + $0x70] sm:$0xff]  ;;  %v751_v9 = vld [vmem:[%s1016_s1 + $0x68] sm:$0xff] }
   0x3   :  { %v761_v2 = vld [vmem:[%s1016_s1 + $0xb8] sm:$0xff]  ;;  %420 = vmatpush.bf16.msra.mxu1 %v753_v1  ;;  %v760_v6 = vld [vmem:[%s1016_s1 + $0xb0] sm:$0xff]  ;;  %v759_v10 = vld [vmem:[%s1016_s1 + $0xa8] sm:$0xff] }
   0x4   :  { %v769_v3 = vld [vmem:[%s1016_s1 + $0xf8] sm:$0xff]  ;;  %439 = vmatpush.bf16.msra.mxu2 %v761_v2  ;;  %v768_v7 = vld [vmem:[%s1016_s1 + $0xf0] sm:$0xff]  ;;  %v767_v11 = vld [vmem:[%s1016_s1 + $0xe8] sm:$0xff] }
   0x5   :  { %458 = vmatpush.bf16.msra.mxu3 %v769_v3  ;;  %v742_v12 = vld [vmem:[%s1016_s1 + $0x20] sm:$0xff]  ;;  %v741_v16 = vld [vmem:[%s1016_s1 + $0x18] sm:$0xff]  ;;  %v740_v20 = vld [vmem:[%s1016_s1 + $0x10] sm:$0xff] }
   0x6   :  { %402 = vmatpush.bf16.msra.mxu0 %v744_v4  ;;  %v750_v13 = vld [vmem:[%s1016_s1 + $0x60] sm:$0xff]  ;;  %v749_v17 = vld [vmem:[%s1016_s1 + $0x58] sm:$0xff]  ;;  %v748_v21 = vld [vmem:[%s1016_s1 + $0x50] sm:$0xff] }
   0x7   :  { %421 = vmatpush.bf16.msra.mxu1 %v752_v5  ;;  %v758_v14 = vld [vmem:[%s1016_s1 + $0xa0] sm:$0xff]  ;;  %v757_v18 = vld [vmem:[%s1016_s1 + $0x98] sm:$0xff]  ;;  %v756_v22 = vld [vmem:[%s1016_s1 + $0x90] sm:$0xff] }
   0x8   :  { %440 = vmatpush.bf16.msra.mxu2 %v760_v6  ;;  %v766_v15 = vld [vmem:[%s1016_s1 + $0xe0] sm:$0xff]  ;;  %v765_v19 = vld [vmem:[%s1016_s1 + $0xd8] sm:$0xff]  ;;  %v764_v23 = vld [vmem:[%s1016_s1 + $0xd0] sm:$0xff] }
   0x9   :  { %459 = vmatpush.bf16.msra.mxu3 %v768_v7  ;;  %v739_v24 = vld [vmem:[%s1016_s1 + $0x8] sm:$0xff]  ;;  %v738_v28 = vld [vmem:[%s1016_s1] sm:$0xff]  ;;  %v730_v33 = vld [vmem:[%s1017_s0 + $0x10] sm:$0xf0] }
   0xa   :  { %403 = vmatpush.bf16.msra.mxu0 %v743_v8  ;;  %v747_v25 = vld [vmem:[%s1016_s1 + $0x48] sm:$0xff]  ;;  %v746_v29 = vld [vmem:[%s1016_s1 + $0x40] sm:$0xff]  ;;  %v532_v35 = vld [vmem:[%s1017_s0 + $0x14] sm:$0xf0] }
   0xb   :  { %422 = vmatpush.bf16.msra.mxu1 %v751_v9  ;;  %v755_v26 = vld [vmem:[%s1016_s1 + $0x88] sm:$0xff]  ;;  %v754_v30 = vld [vmem:[%s1016_s1 + $0x80] sm:$0xff]  ;;  %v731_v37 = vld [vmem:[%s1017_s0 + $0x18] sm:$0xf0] }
   0xc   :  { %441 = vmatpush.bf16.msra.mxu2 %v759_v10  ;;  %v763_v27 = vld [vmem:[%s1016_s1 + $0xc8] sm:$0xff]  ;;  %v762_v31 = vld [vmem:[%s1016_s1 + $0xc0] sm:$0xff]  ;;  %v777_v40 = vld [vmem:[%s1016_s1 + $0x138] sm:$0xff] }
   0xd   :  { %460 = vmatpush.bf16.msra.mxu3 %v767_v11  ;;  %v530_v32 = vld [vmem:[%s1017_s0] sm:$0xf]  ;;  %v728_v34 = vld [vmem:[%s1017_s0 + $0x4] sm:$0xf]  ;;  %v538_v36 = vld [vmem:[%s1017_s0 + $0x8] sm:$0xf] }
   0xe   :  { %404 = vmatpush.bf16.msra.mxu0 %v742_v12  ;;  %v729_v38 = vld [vmem:[%s1017_s0 + $0xc] sm:$0xf]  ;;  %v540_v39 = vld [vmem:[%s1017_s0 + $0x1c] sm:$0xf0]  ;;  %v531_v41 = vor.u32 %v730_v33, %v530_v32  ;;  %v535_v42 = vor.u32 %v728_v34, %v532_v35  ;;  %v539_v43 = vor.u32 %v731_v37, %v538_v36  ;;  %v776_v45 = vld [vmem:[%s1016_s1 + $0x130] sm:$0xff] }
   0xf   :  { %423 = vmatpush.bf16.msra.mxu1 %v750_v13  ;;  %v543_v44 = vor.u32 %v729_v38, %v540_v39  ;;  %v775_v46 = vld [vmem:[%s1016_s1 + $0x128] sm:$0xff]  ;;  %v774_v47 = vld [vmem:[%s1016_s1 + $0x120] sm:$0xff]  ;;  %v735_v49 = vld [vmem:[%s1017_s0 + $0x38] sm:$0xf0] }
  0x10   :  { %442 = vmatpush.bf16.msra.mxu2 %v758_v14  ;;  %v550_v48 = vld [vmem:[%s1017_s0 + $0x28] sm:$0xf]  ;;  %v733_v50 = vld [vmem:[%s1017_s0 + $0x2c] sm:$0xf]  ;;  %v552_v51 = vld [vmem:[%s1017_s0 + $0x3c] sm:$0xf0] }
  0x11   :  { %461 = vmatpush.bf16.msra.mxu3 %v766_v15  ;;  %v558_v52 = vld [vmem:[%s1017_s0 + $0x30] sm:$0xf]  ;;  %v736_v53 = vld [vmem:[%s1017_s0 + $0x40] sm:$0xf0]  ;;  %v734_v54 = vld [vmem:[%s1017_s0 + $0x34] sm:$0xf]  ;;  %v551_v57 = vor.u32 %v735_v49, %v550_v48  ;;  %v555_v58 = vor.u32 %v733_v50, %v552_v51 }
  0x12   :  { %405 = vmatpush.bf16.msra.mxu0 %v741_v16  ;;  %v560_v55 = vld [vmem:[%s1017_s0 + $0x44] sm:$0xf0]  ;;  %v773_v56 = vld [vmem:[%s1016_s1 + $0x118] sm:$0xff]  ;;  %v559_v59 = vor.u32 %v736_v53, %v558_v52  ;;  %v772_v61 = vld [vmem:[%s1016_s1 + $0x110] sm:$0xff] }
  0x13   :  { %424 = vmatpush.bf16.msra.mxu1 %v749_v17  ;;  %v563_v60 = vor.u32 %v734_v54, %v560_v55  ;;  %v771_v62 = vld [vmem:[%s1016_s1 + $0x108] sm:$0xff]  ;;  %v770_v63 = vld [vmem:[%s1016_s1 + $0x100] sm:$0xff]  ;;  %v546_v0 = vld [vmem:[%s1017_s0 + $0x10] sm:$0xf] }
  0x14   :  { %443 = vmatpush.bf16.msra.mxu2 %v757_v18  ;;  %v732_v1 = vld [vmem:[%s1017_s0 + $0x20] sm:$0xf0]  ;;  %v566_v2 = vld [vmem:[%s1017_s0 + $0x38] sm:$0xf]  ;;  %v737_v3 = vld [vmem:[%s1017_s0 + $0x48] sm:$0xf0] }
  0x15   :  { %462 = vmatpush.bf16.msra.mxu3 %v765_v19  ;;  %v547_v4 = vor.u32 %v732_v1, %v546_v0  ;;  %v567_v5 = vor.u32 %v737_v3, %v566_v2  ;;  %v797_v34 = vld [vmem:[%s1018_s2] ss:$0 sm:$0xff] }
  0x16   :  { %406 = vmatpush.bf16.msra.mxu0 %v740_v20 }
  0x17   :  { %425 = vmatpush.bf16.msra.mxu1 %v748_v21 }
  0x18   :  { %444 = vmatpush.bf16.msra.mxu2 %v756_v22 }
  0x19   :  { %463 = vmatpush.bf16.msra.mxu3 %v764_v23 }
  0x1a   :  { %407 = vmatpush.bf16.msra.mxu0 %v739_v24 }
  0x1b   :  { %426 = vmatpush.bf16.msra.mxu1 %v747_v25 }
  0x1c   :  { %445 = vmatpush.bf16.msra.mxu2 %v755_v26 }
  0x1d   :  { %464 = vmatpush.bf16.msra.mxu3 %v763_v27 }
  0x1e   :  { %408 = vmatpush.bf16.msra.mxu0 %v738_v28 }
  0x1f   :  { %427 = vmatpush.bf16.msra.mxu1 %v746_v29 }
  0x20   :  { %446 = vmatpush.bf16.msra.mxu2 %v754_v30 }
  0x21   :  { %465 = vmatpush.bf16.msra.mxu3 %v762_v31  ;;  %409 = vmatmul.bf16.vlgmr.msra.gmra.mxu0 %v531_v41 }
  0x22   :  { %477 = vmatpush.bf16.msrb.mxu0 %v777_v40  ;;  %428 = vmatmul.bf16.vlgmr.msra.gmra.mxu1 %v535_v42 }
  0x23   :  { %789 = vmatpush.bf16.msrb.mxu1 %v777_v40  ;;  %447 = vmatmul.bf16.vlgmr.msra.gmra.mxu2 %v539_v43  ;;  %v798_v40 = vld [vmem:[%s1019_s3] ss:$0 sm:$0xff] }
  0x24   :  { %466 = vmatmul.bf16.vlgmr.msra.gmra.mxu3 %v543_v44 }
  0x26   :  { %478 = vmatpush.bf16.msrb.mxu0 %v776_v45 }
  0x27   :  { %790 = vmatpush.bf16.msrb.mxu1 %v776_v45 }
  0x2a   :  { %479 = vmatpush.bf16.msrb.mxu0 %v775_v46 }
  0x2b   :  { %791 = vmatpush.bf16.msrb.mxu1 %v775_v46 }
  0x2e   :  { %480 = vmatpush.bf16.msrb.mxu0 %v774_v47 }
  0x2f   :  { %792 = vmatpush.bf16.msrb.mxu1 %v774_v47 }
  0x31   :  { %414 = vmatmul.bf16.gmra.mxu0 %v551_v57 }
  0x32   :  { %481 = vmatpush.bf16.msrb.mxu0 %v773_v56  ;;  %433 = vmatmul.bf16.gmra.mxu1 %v555_v58 }
  0x33   :  { %793 = vmatpush.bf16.msrb.mxu1 %v773_v56  ;;  %452 = vmatmul.bf16.gmra.mxu2 %v559_v59 }
  0x34   :  { %471 = vmatmul.bf16.gmra.mxu3 %v563_v60 }
  0x36   :  { %482 = vmatpush.bf16.msrb.mxu0 %v772_v61 }
  0x37   :  { %794 = vmatpush.bf16.msrb.mxu1 %v772_v61 }
  0x3a   :  { %483 = vmatpush.bf16.msrb.mxu0 %v771_v62 }
  0x3b   :  { %795 = vmatpush.bf16.msrb.mxu1 %v771_v62 }
  0x3e   :  { %484 = vmatpush.bf16.msrb.mxu0 %v770_v63 }
  0x3f   :  { %796 = vmatpush.bf16.msrb.mxu1 %v770_v63 }
  0x41   :  { %485 = vmatmul.bf16.vlgmr.msrb.gmra.mxu0 %v547_v4 }
  0x42   :  { %490 = vmatmul.bf16.vlgmr.msrb.gmra.mxu1 %v567_v5 }
  0x9e   :  { %v410_v6 = vpop.f32.mrf.mxu0 }
  0x9f   :  { %v429_v7 = vpop.f32.mrf.mxu1 }
  0xa0   :  { %v430_v19 = vadd.f32 %v429_v7, %v410_v6 }
  0xa6   :  { %v448_v8 = vpop.f32.mrf.mxu2  ;;  %v412_v10 = vpop.f32.mrf.mxu0 }
  0xa7   :  { %v467_v9 = vpop.f32.mrf.mxu3  ;;  %v431_v11 = vpop.f32.mrf.mxu1  ;;  %v449_v22 = vadd.f32 %v448_v8, %v430_v19 }
  0xa8   :  { %v432_v28 = vadd.f32 %v431_v11, %v412_v10 }
  0xa9   :  { %v468_v27 = vadd.f32 %v467_v9, %v449_v22 }
  0xae   :  { %v450_v12 = vpop.f32.mrf.mxu2  ;;  %v415_v13 = vpop.f32.mrf.mxu0 }
  0xaf   :  { %v434_v14 = vpop.f32.mrf.mxu1  ;;  %v469_v15 = vpop.f32.mrf.mxu3  ;;  %v451_v31 = vadd.f32 %v450_v12, %v432_v28 }
  0xb0   :  { %v435_v20 = vadd.f32 %v434_v14, %v415_v13 }
  0xb1   :  { %v470_v37 = vadd.f32 %v469_v15, %v451_v31 }
  0xb6   :  { %v453_v16 = vpop.f32.mrf.mxu2  ;;  %v417_v17 = vpop.f32.mrf.mxu0 }
  0xb7   :  { %v436_v18 = vpop.f32.mrf.mxu1  ;;  %v472_v21 = vpop.f32.mrf.mxu3  ;;  %v454_v23 = vadd.f32 %v453_v16, %v435_v20 }
  0xb8   :  { %v437_v30 = vadd.f32 %v436_v18, %v417_v17 }
  0xb9   :  { %v473_v29 = vadd.f32 %v472_v21, %v454_v23 }
  0xbe   :  { %v455_v24 = vpop.f32.mrf.mxu2  ;;  %v486_v25 = vpop.f32.mrf.mxu0 }
  0xbf   :  { %v491_v26 = vpop.f32.mrf.mxu1  ;;  %v456_v32 = vadd.f32 %v455_v24, %v437_v30  ;;  %v487_v33 = vadd.f32 %v486_v25, %v468_v27  ;;  %v474_v36 = vpop.f32.mrf.mxu3 }
  0xc0   :  { %v492_v35 = vadd.f32 %v491_v26, %v473_v29 }
  0xc1   :  { %v475_v38 = vadd.f32 %v474_v36, %v456_v32  ;;  %v500_v39 = vmul.f32 %v797_v34, %v487_v33 }
  0xc2   :  { %v502_v41 = vmul.f32 %v797_v34, %v492_v35 }
  0xc3   :  { %v508_v46 = vadd.f32 %v798_v40, %v500_v39 }
  0xc4   :  { %v510_v47 = vadd.f32 %v798_v40, %v502_v41 }
  0xc5   :  { %v512_v52 = vmax.f32 %v508_v46, 0.0 }
  0xc6   :  { %v488_v42 = vpop.f32.mrf.mxu0  ;;  %v514_v53 = vmax.f32 %v510_v47, 0.0 }
  0xc7   :  { %v493_v43 = vpop.f32.mrf.mxu1  ;;  %v489_v44 = vadd.f32 %v488_v42, %v470_v37 }
  0xc8   :  { %v494_v45 = vadd.f32 %v493_v43, %v475_v38 }
  0xc9   :  { %v501_v48 = vmul.f32 %v797_v34, %v489_v44 }
  0xca   :  { %v503_v49 = vmul.f32 %v797_v34, %v494_v45 }
  0xcb   :  { %v509_v50 = vadd.f32 %v798_v40, %v501_v48 }
  0xcc   :  { %v511_v51 = vadd.f32 %v798_v40, %v503_v49 }
  0xcd   :  { %v513_v54 = vmax.f32 %v509_v50, 0.0 }
  0xce   :  { %v515_v55 = vmax.f32 %v511_v51, 0.0 }
  0xcf   :  { %v781_v56 = vpack.c.bf16 %v513_v54, %v512_v52 }
  0xd0   :  { %v786_v57 = vpack.c.bf16 %v515_v55, %v514_v53 }
  0xd1   :  { %782 = vst [vmem:[%s1020_s4] sm:$0xff] %v781_v56  }
  0xd2   :  { %788 = vst [vmem:[%s1020_s4 + $0x8] sm:$0xff] %v786_v57  }

// kernel: autoencoder_forward.15
= control target key start
LH: loop header
LB: loop body
LE: loop exit
PB: predicated region body
PF: predicated region fallthrough
CT: control target
= control target key end

     0   :  { %s2977_s1 = inlined_call_operand.vmem [shape: bf16[1152,256], index: 1, kind: input, shape index: {}]   ;;  %s2978_s0 = inlined_call_operand.vmem [shape: bf16[16,1152], index: 0, kind: input, shape index: {}]   ;;  %s2979_s2 = inlined_call_operand.vmem [shape: f32[1,256], index: 2, kind: input, shape index: {}]   ;;  %s2980_s3 = inlined_call_operand.vmem [shape: f32[1,256], index: 3, kind: input, shape index: {}]   ;;  %s2981_s4 = inlined_call_operand.vmem [shape: bf16[16,256], index: 4, kind: output, shape index: {}]  }
   0x1   :  { %v1315_v0 = vld [vmem:[%s2977_s1 + $0x70] sm:$0xf]  ;;  %v1857_v1 = vld [vmem:[%s2977_s1 + $0x74] sm:$0xf0]  ;;  %v1307_v11 = vld [vmem:[%s2977_s1 + $0x60] sm:$0xf] }
   0x2   :  { %v1379_v2 = vld [vmem:[%s2977_s1 + $0xf0] sm:$0xf]  ;;  %v1316_v3 = vor.u32 %v1857_v1, %v1315_v0  ;;  %v1873_v4 = vld [vmem:[%s2977_s1 + $0xf4] sm:$0xf0]  ;;  %v1855_v13 = vld [vmem:[%s2977_s1 + $0x64] sm:$0xf0] }
   0x3   :  { %v1443_v5 = vld [vmem:[%s2977_s1 + $0x170] sm:$0xf]  ;;  %v1889_v6 = vld [vmem:[%s2977_s1 + $0x174] sm:$0xf0]  ;;  %v1380_v7 = vor.u32 %v1873_v4, %v1379_v2  ;;  %v1371_v14 = vld [vmem:[%s2977_s1 + $0xe0] sm:$0xf]  ;;  %v1308_v16 = vor.u32 %v1855_v13, %v1307_v11 }
   0x4   :  { %v1444_v8 = vor.u32 %v1889_v6, %v1443_v5  ;;  %v1507_v9 = vld [vmem:[%s2977_s1 + $0x1f0] sm:$0xf]  ;;  %v1905_v10 = vld [vmem:[%s2977_s1 + $0x1f4] sm:$0xf0]  ;;  %937 = vmatpush.bf16.msra.mxu0 %v1316_v3  ;;  %v1871_v15 = vld [vmem:[%s2977_s1 + $0xe4] sm:$0xf0] }
   0x5   :  { %v1508_v12 = vor.u32 %v1905_v10, %v1507_v9  ;;  %951 = vmatpush.bf16.msra.mxu1 %v1380_v7  ;;  %v1372_v17 = vor.u32 %v1871_v15, %v1371_v14  ;;  %v1435_v18 = vld [vmem:[%s2977_s1 + $0x160] sm:$0xf]  ;;  %v1887_v19 = vld [vmem:[%s2977_s1 + $0x164] sm:$0xf0]  ;;  %v1299_v23 = vld [vmem:[%s2977_s1 + $0x50] sm:$0xf] }
   0x6   :  { %965 = vmatpush.bf16.msra.mxu2 %v1444_v8  ;;  %v1499_v20 = vld [vmem:[%s2977_s1 + $0x1e0] sm:$0xf]  ;;  %v1436_v21 = vor.u32 %v1887_v19, %v1435_v18  ;;  %v1903_v22 = vld [vmem:[%s2977_s1 + $0x1e4] sm:$0xf0]  ;;  %v1853_v24 = vld [vmem:[%s2977_s1 + $0x54] sm:$0xf0] }
   0x7   :  { %979 = vmatpush.bf16.msra.mxu3 %v1508_v12  ;;  %v1500_v25 = vor.u32 %v1903_v22, %v1499_v20  ;;  %v1363_v26 = vld [vmem:[%s2977_s1 + $0xd0] sm:$0xf]  ;;  %v1869_v27 = vld [vmem:[%s2977_s1 + $0xd4] sm:$0xf0]  ;;  %v1300_v29 = vor.u32 %v1853_v24, %v1299_v23  ;;  %v1291_v35 = vld [vmem:[%s2977_s1 + $0x40] sm:$0xf] }
   0x8   :  { %v1427_v28 = vld [vmem:[%s2977_s1 + $0x150] sm:$0xf]  ;;  %938 = vmatpush.bf16.msra.mxu0 %v1308_v16  ;;  %v1885_v30 = vld [vmem:[%s2977_s1 + $0x154] sm:$0xf0]  ;;  %v1364_v33 = vor.u32 %v1869_v27, %v1363_v26  ;;  %v1851_v36 = vld [vmem:[%s2977_s1 + $0x44] sm:$0xf0] }
   0x9   :  { %v1491_v31 = vld [vmem:[%s2977_s1 + $0x1d0] sm:$0xf]  ;;  %v1901_v32 = vld [vmem:[%s2977_s1 + $0x1d4] sm:$0xf0]  ;;  %952 = vmatpush.bf16.msra.mxu1 %v1372_v17  ;;  %v1428_v34 = vor.u32 %v1885_v30, %v1427_v28  ;;  %v1355_v37 = vld [vmem:[%s2977_s1 + $0xc0] sm:$0xf]  ;;  %v1292_v44 = vor.u32 %v1851_v36, %v1291_v35 }
   0xa   :  { %966 = vmatpush.bf16.msra.mxu2 %v1436_v21  ;;  %v1492_v38 = vor.u32 %v1901_v32, %v1491_v31  ;;  %v1867_v39 = vld [vmem:[%s2977_s1 + $0xc4] sm:$0xf0]  ;;  %v1419_v40 = vld [vmem:[%s2977_s1 + $0x140] sm:$0xf]  ;;  %v1283_v47 = vld [vmem:[%s2977_s1 + $0x30] sm:$0xf] }
   0xb   :  { %980 = vmatpush.bf16.msra.mxu3 %v1500_v25  ;;  %v1883_v41 = vld [vmem:[%s2977_s1 + $0x144] sm:$0xf0]  ;;  %v1483_v42 = vld [vmem:[%s2977_s1 + $0x1c0] sm:$0xf]  ;;  %v1356_v45 = vor.u32 %v1867_v39, %v1355_v37  ;;  %v1849_v48 = vld [vmem:[%s2977_s1 + $0x34] sm:$0xf0] }
   0xc   :  { %v1899_v43 = vld [vmem:[%s2977_s1 + $0x1c4] sm:$0xf0]  ;;  %939 = vmatpush.bf16.msra.mxu0 %v1300_v29  ;;  %v1420_v46 = vor.u32 %v1883_v41, %v1419_v40  ;;  %v1347_v49 = vld [vmem:[%s2977_s1 + $0xb0] sm:$0xf]  ;;  %v1865_v51 = vld [vmem:[%s2977_s1 + $0xb4] sm:$0xf0]  ;;  %v1284_v56 = vor.u32 %v1849_v48, %v1283_v47 }
   0xd   :  { %953 = vmatpush.bf16.msra.mxu1 %v1364_v33  ;;  %v1484_v50 = vor.u32 %v1899_v43, %v1483_v42  ;;  %v1411_v52 = vld [vmem:[%s2977_s1 + $0x130] sm:$0xf]  ;;  %v1881_v53 = vld [vmem:[%s2977_s1 + $0x134] sm:$0xf0]  ;;  %v1348_v57 = vor.u32 %v1865_v51, %v1347_v49  ;;  %v1275_v59 = vld [vmem:[%s2977_s1 + $0x20] sm:$0xf] }
   0xe   :  { %967 = vmatpush.bf16.msra.mxu2 %v1428_v34  ;;  %v1475_v54 = vld [vmem:[%s2977_s1 + $0x1b0] sm:$0xf]  ;;  %v1897_v55 = vld [vmem:[%s2977_s1 + $0x1b4] sm:$0xf0]  ;;  %v1412_v58 = vor.u32 %v1881_v53, %v1411_v52  ;;  %v1847_v60 = vld [vmem:[%s2977_s1 + $0x24] sm:$0xf0] }
   0xf   :  { %981 = vmatpush.bf16.msra.mxu3 %v1492_v38  ;;  %v1339_v61 = vld [vmem:[%s2977_s1 + $0xa0] sm:$0xf]  ;;  %v1476_v62 = vor.u32 %v1897_v55, %v1475_v54  ;;  %v1863_v63 = vld [vmem:[%s2977_s1 + $0xa4] sm:$0xf0]  ;;  %v1276_v4 = vor.u32 %v1847_v60, %v1275_v59  ;;  %v1267_v7 = vld [vmem:[%s2977_s1 + $0x10] sm:$0xf] }
  0x10   :  { %940 = vmatpush.bf16.msra.mxu0 %v1292_v44  ;;  %v1403_v0 = vld [vmem:[%s2977_s1 + $0x120] sm:$0xf]  ;;  %v1879_v1 = vld [vmem:[%s2977_s1 + $0x124] sm:$0xf0]  ;;  %v1340_v5 = vor.u32 %v1863_v63, %v1339_v61  ;;  %v1845_v8 = vld [vmem:[%s2977_s1 + $0x14] sm:$0xf0] }
  0x11   :  { %954 = vmatpush.bf16.msra.mxu1 %v1356_v45  ;;  %v1467_v2 = vld [vmem:[%s2977_s1 + $0x1a0] sm:$0xf]  ;;  %v1895_v3 = vld [vmem:[%s2977_s1 + $0x1a4] sm:$0xf0]  ;;  %v1404_v6 = vor.u32 %v1879_v1, %v1403_v0  ;;  %v1331_v9 = vld [vmem:[%s2977_s1 + $0x90] sm:$0xf]  ;;  %v1268_v16 = vor.u32 %v1845_v8, %v1267_v7 }
  0x12   :  { %968 = vmatpush.bf16.msra.mxu2 %v1420_v46  ;;  %v1468_v10 = vor.u32 %v1895_v3, %v1467_v2  ;;  %v1861_v11 = vld [vmem:[%s2977_s1 + $0x94] sm:$0xf0]  ;;  %v1395_v12 = vld [vmem:[%s2977_s1 + $0x110] sm:$0xf]  ;;  %v1259_v17 = vld [vmem:[%s2977_s1] sm:$0xf] }
  0x13   :  { %982 = vmatpush.bf16.msra.mxu3 %v1484_v50  ;;  %v1877_v13 = vld [vmem:[%s2977_s1 + $0x114] sm:$0xf0]  ;;  %v1459_v14 = vld [vmem:[%s2977_s1 + $0x190] sm:$0xf]  ;;  %v1843_v18 = vld [vmem:[%s2977_s1 + $0x4] sm:$0xf0]  ;;  %v1332_v19 = vor.u32 %v1861_v11, %v1331_v9 }
  0x14   :  { %941 = vmatpush.bf16.msra.mxu0 %v1284_v56  ;;  %v1893_v15 = vld [vmem:[%s2977_s1 + $0x194] sm:$0xf0]  ;;  %v1396_v20 = vor.u32 %v1877_v13, %v1395_v12  ;;  %v1323_v21 = vld [vmem:[%s2977_s1 + $0x80] sm:$0xf]  ;;  %v1859_v22 = vld [vmem:[%s2977_s1 + $0x84] sm:$0xf0]  ;;  %v1260_v31 = vor.u32 %v1843_v18, %v1259_v17 }
  0x15   :  { %955 = vmatpush.bf16.msra.mxu1 %v1348_v57  ;;  %v1387_v23 = vld [vmem:[%s2977_s1 + $0x100] sm:$0xf]  ;;  %v1460_v24 = vor.u32 %v1893_v15, %v1459_v14  ;;  %v1875_v25 = vld [vmem:[%s2977_s1 + $0x104] sm:$0xf0]  ;;  %v1571_v26 = vld [vmem:[%s2977_s1 + $0x270] sm:$0xf]  ;;  %v1324_v35 = vor.u32 %v1859_v22, %v1323_v21 }
  0x16   :  { %969 = vmatpush.bf16.msra.mxu2 %v1412_v58  ;;  %v1921_v27 = vld [vmem:[%s2977_s1 + $0x274] sm:$0xf0]  ;;  %v1635_v28 = vld [vmem:[%s2977_s1 + $0x2f0] sm:$0xf]  ;;  %v1451_v33 = vld [vmem:[%s2977_s1 + $0x180] sm:$0xf]  ;;  %v1388_v36 = vor.u32 %v1875_v25, %v1387_v23 }
  0x17   :  { %983 = vmatpush.bf16.msra.mxu3 %v1476_v62  ;;  %v1937_v29 = vld [vmem:[%s2977_s1 + $0x2f4] sm:$0xf0]  ;;  %v1699_v30 = vld [vmem:[%s2977_s1 + $0x370] sm:$0xf]  ;;  %v1891_v34 = vld [vmem:[%s2977_s1 + $0x184] sm:$0xf0]  ;;  %v1572_v39 = vor.u32 %v1921_v27, %v1571_v26 }
  0x18   :  { %942 = vmatpush.bf16.msra.mxu0 %v1276_v4  ;;  %v1953_v32 = vld [vmem:[%s2977_s1 + $0x374] sm:$0xf0]  ;;  %v1763_v37 = vld [vmem:[%s2977_s1 + $0x3f0] sm:$0xf]  ;;  %v1636_v40 = vor.u32 %v1937_v29, %v1635_v28  ;;  %v1563_v41 = vld [vmem:[%s2977_s1 + $0x260] sm:$0xf]  ;;  %v1452_v44 = vor.u32 %v1891_v34, %v1451_v33 }
  0x19   :  { %956 = vmatpush.bf16.msra.mxu1 %v1340_v5  ;;  %v1969_v38 = vld [vmem:[%s2977_s1 + $0x3f4] sm:$0xf0]  ;;  %v1919_v42 = vld [vmem:[%s2977_s1 + $0x264] sm:$0xf0]  ;;  %v1700_v43 = vor.u32 %v1953_v32, %v1699_v30  ;;  %v1627_v45 = vld [vmem:[%s2977_s1 + $0x2e0] sm:$0xf] }
  0x1a   :  { %970 = vmatpush.bf16.msra.mxu2 %v1404_v6  ;;  %v1935_v46 = vld [vmem:[%s2977_s1 + $0x2e4] sm:$0xf0]  ;;  %v1691_v47 = vld [vmem:[%s2977_s1 + $0x360] sm:$0xf]  ;;  %v1764_v48 = vor.u32 %v1969_v38, %v1763_v37  ;;  %v1555_v52 = vld [vmem:[%s2977_s1 + $0x250] sm:$0xf]  ;;  %v1564_v56 = vor.u32 %v1919_v42, %v1563_v41 }
  0x1b   :  { %984 = vmatpush.bf16.msra.mxu3 %v1468_v10  ;;  %v1951_v49 = vld [vmem:[%s2977_s1 + $0x364] sm:$0xf0]  ;;  %v1755_v50 = vld [vmem:[%s2977_s1 + $0x3e0] sm:$0xf]  ;;  %v1837_v54 = vld [vmem:[%s2978_s0 + $0x20] sm:$0xf0]  ;;  %v1628_v57 = vor.u32 %v1935_v46, %v1627_v45 }
  0x1c   :  { %943 = vmatpush.bf16.msra.mxu0 %v1268_v16  ;;  %v1967_v51 = vld [vmem:[%s2977_s1 + $0x3e4] sm:$0xf0]  ;;  %v1223_v53 = vld [vmem:[%s2978_s0] sm:$0xf]  ;;  %v1917_v58 = vld [vmem:[%s2977_s1 + $0x254] sm:$0xf0]  ;;  %v1692_v62 = vor.u32 %v1951_v49, %v1691_v47 }
  0x1d   :  { %957 = vmatpush.bf16.msra.mxu1 %v1332_v19  ;;  %v1231_v55 = vld [vmem:[%s2978_s0 + $0x8] sm:$0xf]  ;;  %v1619_v59 = vld [vmem:[%s2977_s1 + $0x2d0] sm:$0xf]  ;;  %v2269_v60 = vor.u32 %v1837_v54, %v1223_v53  ;;  %v1838_v61 = vld [vmem:[%s2978_s0 + $0x28] sm:$0xf0]  ;;  %v1756_v3 = vor.u32 %v1967_v51, %v1755_v50  ;;  %v1556_v11 = vor.u32 %v1917_v58, %v1555_v52 }
  0x1e   :  { %971 = vmatpush.bf16.msra.mxu2 %v1396_v20  ;;  %v1933_v63 = vld [vmem:[%s2977_s1 + $0x2d4] sm:$0xf0]  ;;  %v1683_v0 = vld [vmem:[%s2977_s1 + $0x350] sm:$0xf]  ;;  %v2283_v2 = vor.u32 %v1838_v61, %v1231_v55  ;;  %v1833_v5 = vld [vmem:[%s2978_s0 + $0x4] sm:$0xf] }
  0x1f   :  { %985 = vmatpush.bf16.msra.mxu3 %v1460_v24  ;;  %v1949_v1 = vld [vmem:[%s2977_s1 + $0x354] sm:$0xf0]  ;;  %v1747_v4 = vld [vmem:[%s2977_s1 + $0x3d0] sm:$0xf]  ;;  %v1225_v6 = vld [vmem:[%s2978_s0 + $0x24] sm:$0xf0]  ;;  %v1620_v12 = vor.u32 %v1933_v63, %v1619_v59 }
  0x20   :  { %944 = vmatpush.bf16.msra.mxu0 %v1260_v31  ;;  %v1965_v7 = vld [vmem:[%s2977_s1 + $0x3d4] sm:$0xf0]  ;;  %v2299_v8 = vor.u32 %v1833_v5, %v1225_v6  ;;  %v1834_v9 = vld [vmem:[%s2978_s0 + $0xc] sm:$0xf]  ;;  %v1233_v10 = vld [vmem:[%s2978_s0 + $0x2c] sm:$0xf0]  ;;  %v1684_v15 = vor.u32 %v1949_v1, %v1683_v0 }
  0x21   :  { %958 = vmatpush.bf16.msra.mxu1 %v1324_v35  ;;  %v1547_v13 = vld [vmem:[%s2977_s1 + $0x240] sm:$0xf]  ;;  %v2310_v14 = vor.u32 %v1834_v9, %v1233_v10  ;;  %v1915_v16 = vld [vmem:[%s2977_s1 + $0x244] sm:$0xf0]  ;;  %v1748_v19 = vor.u32 %v1965_v7, %v1747_v4  ;;  %v1539_v26 = vld [vmem:[%s2977_s1 + $0x230] sm:$0xf] }
  0x22   :  { %972 = vmatpush.bf16.msra.mxu2 %v1388_v36  ;;  %v1611_v17 = vld [vmem:[%s2977_s1 + $0x2c0] sm:$0xf]  ;;  %v1931_v18 = vld [vmem:[%s2977_s1 + $0x2c4] sm:$0xf0]  ;;  %v1548_v24 = vor.u32 %v1915_v16, %v1547_v13  ;;  %v1913_v28 = vld [vmem:[%s2977_s1 + $0x234] sm:$0xf0] }
  0x23   :  { %986 = vmatpush.bf16.msra.mxu3 %v1452_v44  ;;  %945 = vmatmul.bf16.vlgmr.msra.gmra.mxu0 %v2269_v60  ;;  %v1675_v20 = vld [vmem:[%s2977_s1 + $0x340] sm:$0xf]  ;;  %v1947_v21 = vld [vmem:[%s2977_s1 + $0x344] sm:$0xf0]  ;;  %v1612_v25 = vor.u32 %v1931_v18, %v1611_v17  ;;  %v1603_v29 = vld [vmem:[%s2977_s1 + $0x2b0] sm:$0xf]  ;;  %v1540_v36 = vor.u32 %v1913_v28, %v1539_v26 }
  0x24   :  { %993 = vmatpush.bf16.msrb.mxu0 %v1572_v39  ;;  %959 = vmatmul.bf16.vlgmr.msra.gmra.mxu1 %v2299_v8  ;;  %v1739_v22 = vld [vmem:[%s2977_s1 + $0x3c0] sm:$0xf]  ;;  %v1963_v23 = vld [vmem:[%s2977_s1 + $0x3c4] sm:$0xf0]  ;;  %v1676_v27 = vor.u32 %v1947_v21, %v1675_v20  ;;  %v1929_v30 = vld [vmem:[%s2977_s1 + $0x2b4] sm:$0xf0] }
  0x25   :  { %1007 = vmatpush.bf16.msrb.mxu1 %v1636_v40  ;;  %973 = vmatmul.bf16.vlgmr.msra.gmra.mxu2 %v2283_v2  ;;  %v1740_v31 = vor.u32 %v1963_v23, %v1739_v22  ;;  %v1667_v32 = vld [vmem:[%s2977_s1 + $0x330] sm:$0xf]  ;;  %v1945_v33 = vld [vmem:[%s2977_s1 + $0x334] sm:$0xf0]  ;;  %v1604_v37 = vor.u32 %v1929_v30, %v1603_v29  ;;  %v1531_v38 = vld [vmem:[%s2977_s1 + $0x220] sm:$0xf] }
  0x26   :  { %1021 = vmatpush.bf16.msrb.mxu2 %v1700_v43  ;;  %987 = vmatmul.bf16.vlgmr.msra.gmra.mxu3 %v2310_v14  ;;  %v1731_v34 = vld [vmem:[%s2977_s1 + $0x3b0] sm:$0xf]  ;;  %v1961_v35 = vld [vmem:[%s2977_s1 + $0x3b4] sm:$0xf0]  ;;  %v1668_v39 = vor.u32 %v1945_v33, %v1667_v32  ;;  %v1911_v40 = vld [vmem:[%s2977_s1 + $0x224] sm:$0xf0] }
  0x27   :  { %1035 = vmatpush.bf16.msrb.mxu3 %v1764_v48  ;;  %v1595_v41 = vld [vmem:[%s2977_s1 + $0x2a0] sm:$0xf]  ;;  %v1927_v42 = vld [vmem:[%s2977_s1 + $0x2a4] sm:$0xf0]  ;;  %v1732_v43 = vor.u32 %v1961_v35, %v1731_v34  ;;  %v1532_v48 = vor.u32 %v1911_v40, %v1531_v38  ;;  %v1523_v50 = vld [vmem:[%s2977_s1 + $0x210] sm:$0xf] }
  0x28   :  { %994 = vmatpush.bf16.msrb.mxu0 %v1564_v56  ;;  %v1659_v44 = vld [vmem:[%s2977_s1 + $0x320] sm:$0xf]  ;;  %v1943_v45 = vld [vmem:[%s2977_s1 + $0x324] sm:$0xf0]  ;;  %v1596_v49 = vor.u32 %v1927_v42, %v1595_v41  ;;  %v1909_v51 = vld [vmem:[%s2977_s1 + $0x214] sm:$0xf0] }
  0x29   :  { %1008 = vmatpush.bf16.msrb.mxu1 %v1628_v57  ;;  %v1723_v46 = vld [vmem:[%s2977_s1 + $0x3a0] sm:$0xf]  ;;  %v1959_v47 = vld [vmem:[%s2977_s1 + $0x3a4] sm:$0xf0]  ;;  %v1660_v52 = vor.u32 %v1943_v45, %v1659_v44  ;;  %v1587_v53 = vld [vmem:[%s2977_s1 + $0x290] sm:$0xf]  ;;  %v1524_v1 = vor.u32 %v1909_v51, %v1523_v50 }
  0x2a   :  { %1022 = vmatpush.bf16.msrb.mxu2 %v1692_v62  ;;  %v1925_v54 = vld [vmem:[%s2977_s1 + $0x294] sm:$0xf0]  ;;  %v1651_v55 = vld [vmem:[%s2977_s1 + $0x310] sm:$0xf]  ;;  %v1724_v56 = vor.u32 %v1959_v47, %v1723_v46  ;;  %v1515_v61 = vld [vmem:[%s2977_s1 + $0x200] sm:$0xf] }
  0x2b   :  { %1036 = vmatpush.bf16.msrb.mxu3 %v1756_v3  ;;  %v1941_v57 = vld [vmem:[%s2977_s1 + $0x314] sm:$0xf0]  ;;  %v1715_v58 = vld [vmem:[%s2977_s1 + $0x390] sm:$0xf]  ;;  %v1907_v62 = vld [vmem:[%s2977_s1 + $0x204] sm:$0xf0]  ;;  %v1588_v3 = vor.u32 %v1925_v54, %v1587_v53 }
  0x2c   :  { %995 = vmatpush.bf16.msrb.mxu0 %v1556_v11  ;;  %v1957_v59 = vld [vmem:[%s2977_s1 + $0x394] sm:$0xf0]  ;;  %v1579_v63 = vld [vmem:[%s2977_s1 + $0x280] sm:$0xf]  ;;  %v1923_v0 = vld [vmem:[%s2977_s1 + $0x284] sm:$0xf0]  ;;  %v1652_v7 = vor.u32 %v1941_v57, %v1651_v55  ;;  %v1516_v20 = vor.u32 %v1907_v62, %v1515_v61 }
  0x2d   :  { %1009 = vmatpush.bf16.msrb.mxu1 %v1620_v12  ;;  %v1643_v4 = vld [vmem:[%s2977_s1 + $0x300] sm:$0xf]  ;;  %v1939_v5 = vld [vmem:[%s2977_s1 + $0x304] sm:$0xf0]  ;;  %v1827_v6 = vld [vmem:[%s2977_s1 + $0x470] sm:$0xf]  ;;  %v1716_v12 = vor.u32 %v1957_v59, %v1715_v58  ;;  %v1580_v21 = vor.u32 %v1923_v0, %v1579_v63 }
  0x2e   :  { %1023 = vmatpush.bf16.msrb.mxu2 %v1684_v15  ;;  %v1985_v9 = vld [vmem:[%s2977_s1 + $0x474] sm:$0xf0]  ;;  %v1856_v10 = vld [vmem:[%s2977_s1 + $0x74] sm:$0xf]  ;;  %v1317_v11 = vld [vmem:[%s2977_s1 + $0x78] sm:$0xf0] }
  0x2f   :  { %1037 = vmatpush.bf16.msrb.mxu3 %v1748_v19  ;;  %v1872_v13 = vld [vmem:[%s2977_s1 + $0xf4] sm:$0xf]  ;;  %v1381_v15 = vld [vmem:[%s2977_s1 + $0xf8] sm:$0xf0]  ;;  %v1707_v16 = vld [vmem:[%s2977_s1 + $0x380] sm:$0xf]  ;;  %v1828_v26 = vor.u32 %v1985_v9, %v1827_v6  ;;  %v1320_v30 = vor.u32 %v1856_v10, %v1317_v11 }
  0x30   :  { %996 = vmatpush.bf16.msrb.mxu0 %v1548_v24  ;;  %v1955_v17 = vld [vmem:[%s2977_s1 + $0x384] sm:$0xf0]  ;;  %v1239_v18 = vld [vmem:[%s2978_s0 + $0x10] sm:$0xf]  ;;  %v1839_v19 = vld [vmem:[%s2978_s0 + $0x30] sm:$0xf0] }
  0x31   :  { %1010 = vmatpush.bf16.msrb.mxu1 %v1612_v25  ;;  %v1247_v22 = vld [vmem:[%s2978_s0 + $0x18] sm:$0xf]  ;;  %v1840_v23 = vld [vmem:[%s2978_s0 + $0x38] sm:$0xf0]  ;;  %v1888_v24 = vld [vmem:[%s2977_s1 + $0x174] sm:$0xf]  ;;  %v1644_v25 = vor.u32 %v1939_v5, %v1643_v4  ;;  %v1708_v35 = vor.u32 %v1955_v17, %v1707_v16 }
  0x32   :  { %1024 = vmatpush.bf16.msrb.mxu2 %v1676_v27  ;;  %v1445_v27 = vld [vmem:[%s2977_s1 + $0x178] sm:$0xf0]  ;;  %v1835_v28 = vld [vmem:[%s2978_s0 + $0x14] sm:$0xf]  ;;  %v1241_v29 = vld [vmem:[%s2978_s0 + $0x34] sm:$0xf0]  ;;  %v2493_v40 = vor.u32 %v1840_v23, %v1247_v22 }
  0x33   :  { %1038 = vmatpush.bf16.msrb.mxu3 %v1740_v31  ;;  %v1384_v31 = vor.u32 %v1872_v13, %v1381_v15  ;;  %v1836_v32 = vld [vmem:[%s2978_s0 + $0x1c] sm:$0xf]  ;;  %v1819_v33 = vld [vmem:[%s2977_s1 + $0x460] sm:$0xf]  ;;  %v1983_v34 = vld [vmem:[%s2977_s1 + $0x464] sm:$0xf0]  ;;  %v1448_v41 = vor.u32 %v1888_v24, %v1445_v27  ;;  %v2501_v44 = vor.u32 %v1835_v28, %v1241_v29 }
  0x34   :  { %997 = vmatpush.bf16.msrb.mxu0 %v1540_v36  ;;  %v2482_v36 = vor.u32 %v1839_v19, %v1239_v18  ;;  %v1854_v38 = vld [vmem:[%s2977_s1 + $0x64] sm:$0xf]  ;;  %v1820_v45 = vor.u32 %v1983_v34, %v1819_v33  ;;  %v1437_v47 = vld [vmem:[%s2977_s1 + $0x168] sm:$0xf0]  ;;  %v1811_v50 = vld [vmem:[%s2977_s1 + $0x450] sm:$0xf] }
  0x35   :  { %1011 = vmatpush.bf16.msrb.mxu1 %v1604_v37  ;;  %v1249_v37 = vld [vmem:[%s2978_s0 + $0x3c] sm:$0xf0]  ;;  %v1870_v42 = vld [vmem:[%s2977_s1 + $0xe4] sm:$0xf]  ;;  %v1981_v51 = vld [vmem:[%s2977_s1 + $0x454] sm:$0xf0] }
  0x36   :  { %1025 = vmatpush.bf16.msrb.mxu2 %v1668_v39  ;;  %v1309_v39 = vld [vmem:[%s2977_s1 + $0x68] sm:$0xf0]  ;;  %v1886_v46 = vld [vmem:[%s2977_s1 + $0x164] sm:$0xf]  ;;  %v1852_v53 = vld [vmem:[%s2977_s1 + $0x54] sm:$0xf]  ;;  %v1812_v58 = vor.u32 %v1981_v51, %v1811_v50 }
  0x37   :  { %1039 = vmatpush.bf16.msrb.mxu3 %v1732_v43  ;;  %v1373_v43 = vld [vmem:[%s2977_s1 + $0xe8] sm:$0xf0]  ;;  %v1301_v54 = vld [vmem:[%s2977_s1 + $0x58] sm:$0xf0]  ;;  %v1440_v55 = vor.u32 %v1886_v46, %v1437_v47  ;;  %v1884_v59 = vld [vmem:[%s2977_s1 + $0x154] sm:$0xf] }
  0x38   :  { %998 = vmatpush.bf16.msrb.mxu0 %v1532_v48  ;;  %v2509_v48 = vor.u32 %v1836_v32, %v1249_v37  ;;  %v1365_v57 = vld [vmem:[%s2977_s1 + $0xd8] sm:$0xf0]  ;;  %v1304_v62 = vor.u32 %v1852_v53, %v1301_v54  ;;  %v1803_v63 = vld [vmem:[%s2977_s1 + $0x440] sm:$0xf]  ;;  %v1979_v0 = vld [vmem:[%s2977_s1 + $0x444] sm:$0xf0] }
  0x39   :  { %1012 = vmatpush.bf16.msrb.mxu1 %v1596_v49  ;;  %v1312_v49 = vor.u32 %v1854_v38, %v1309_v39  ;;  %v1429_v61 = vld [vmem:[%s2977_s1 + $0x158] sm:$0xf0]  ;;  %v1293_v4 = vld [vmem:[%s2977_s1 + $0x48] sm:$0xf0]  ;;  %v1866_v6 = vld [vmem:[%s2977_s1 + $0xc4] sm:$0xf]  ;;  %v1804_v9 = vor.u32 %v1979_v0, %v1803_v63 }
  0x3a   :  { %1026 = vmatpush.bf16.msrb.mxu2 %v1660_v52  ;;  %v1376_v52 = vor.u32 %v1870_v42, %v1373_v43  ;;  %v1432_v5 = vor.u32 %v1884_v59, %v1429_v61  ;;  %v1882_v10 = vld [vmem:[%s2977_s1 + $0x144] sm:$0xf]  ;;  %v1421_v11 = vld [vmem:[%s2977_s1 + $0x148] sm:$0xf0]  ;;  %v1795_v13 = vld [vmem:[%s2977_s1 + $0x430] sm:$0xf] }
  0x3b   :  { %1040 = vmatpush.bf16.msrb.mxu3 %v1724_v56  ;;  %v1868_v56 = vld [vmem:[%s2977_s1 + $0xd4] sm:$0xf]  ;;  %v1977_v15 = vld [vmem:[%s2977_s1 + $0x434] sm:$0xf0]  ;;  %v1285_v18 = vld [vmem:[%s2977_s1 + $0x38] sm:$0xf0]  ;;  %v1424_v19 = vor.u32 %v1882_v10, %v1421_v11 }
  0x3c   :  { %999 = vmatpush.bf16.msrb.mxu0 %v1524_v1  ;;  %v1368_v1 = vor.u32 %v1868_v56, %v1365_v57  ;;  %v1848_v17 = vld [vmem:[%s2977_s1 + $0x34] sm:$0xf]  ;;  %v1796_v22 = vor.u32 %v1977_v15, %v1795_v13  ;;  %v1413_v24 = vld [vmem:[%s2977_s1 + $0x138] sm:$0xf0]  ;;  %v1975_v27 = vld [vmem:[%s2977_s1 + $0x424] sm:$0xf0] }
  0x3d   :  { %1013 = vmatpush.bf16.msrb.mxu1 %v1588_v3  ;;  %v1850_v3 = vld [vmem:[%s2977_s1 + $0x44] sm:$0xf]  ;;  %v1880_v23 = vld [vmem:[%s2977_s1 + $0x134] sm:$0xf]  ;;  %v1341_v33 = vld [vmem:[%s2977_s1 + $0xa8] sm:$0xf0] }
  0x3e   :  { %1027 = vmatpush.bf16.msrb.mxu2 %v1652_v7  ;;  %v1357_v7 = vld [vmem:[%s2977_s1 + $0xc8] sm:$0xf0]  ;;  %v1846_v29 = vld [vmem:[%s2977_s1 + $0x24] sm:$0xf]  ;;  %v1779_v39 = vld [vmem:[%s2977_s1 + $0x410] sm:$0xf] }
  0x3f   :  { %1041 = vmatpush.bf16.msrb.mxu3 %v1716_v12  ;;  %v1296_v12 = vor.u32 %v1850_v3, %v1293_v4  ;;  %v1360_v16 = vor.u32 %v1866_v6, %v1357_v7  ;;  %v1862_v32 = vld [vmem:[%s2977_s1 + $0xa4] sm:$0xf]  ;;  %v1405_v37 = vld [vmem:[%s2977_s1 + $0x128] sm:$0xf0]  ;;  %v1844_v43 = vld [vmem:[%s2977_s1 + $0x14] sm:$0xf] }
  0x40   :  { %1000 = vmatpush.bf16.msrb.mxu0 %v1516_v20  ;;  %v1864_v20 = vld [vmem:[%s2977_s1 + $0xb4] sm:$0xf]  ;;  %v1344_v42 = vor.u32 %v1862_v32, %v1341_v33  ;;  %v1397_v51 = vld [vmem:[%s2977_s1 + $0x118] sm:$0xf0]  ;;  %v1771_v53 = vld [vmem:[%s2977_s1 + $0x400] sm:$0xf] }
  0x41   :  { %1014 = vmatpush.bf16.msrb.mxu1 %v1580_v21  ;;  %v1349_v21 = vld [vmem:[%s2977_s1 + $0xb8] sm:$0xf0]  ;;  %v1860_v46 = vld [vmem:[%s2977_s1 + $0x94] sm:$0xf]  ;;  %v1971_v54 = vld [vmem:[%s2977_s1 + $0x404] sm:$0xf0] }
  0x42   :  { %1028 = vmatpush.bf16.msrb.mxu2 %v1644_v25  ;;  %v1288_v25 = vor.u32 %v1848_v17, %v1285_v18  ;;  %v1352_v28 = vor.u32 %v1864_v20, %v1349_v21  ;;  %v1876_v50 = vld [vmem:[%s2977_s1 + $0x114] sm:$0xf]  ;;  %v1261_v57 = vld [vmem:[%s2977_s1 + $0x8] sm:$0xf0]  ;;  %v1509_v63 = vld [vmem:[%s2977_s1 + $0x1f8] sm:$0xf0]  ;;  %v1772_v6 = vor.u32 %v1971_v54, %v1771_v53 }
  0x43   :  { %1042 = vmatpush.bf16.msrb.mxu3 %v1708_v35  ;;  %1001 = vmatmul.bf16.vlgmr.msrb.gmra.mxu0 %v2482_v36  ;;  %v1878_v35 = vld [vmem:[%s2977_s1 + $0x124] sm:$0xf]  ;;  %v1325_v59 = vld [vmem:[%s2977_s1 + $0x88] sm:$0xf0]  ;;  %v1920_v0 = vld [vmem:[%s2977_s1 + $0x274] sm:$0xf] }
  0x44   :  { %1049 = vmatpush.bf16.msra.mxu0 %v1828_v26  ;;  %1015 = vmatmul.bf16.vlgmr.msrb.gmra.mxu1 %v2501_v44  ;;  %v1787_v26 = vld [vmem:[%s2977_s1 + $0x420] sm:$0xf]  ;;  %v1408_v47 = vor.u32 %v1878_v35, %v1405_v37  ;;  %v1573_v3 = vld [vmem:[%s2977_s1 + $0x278] sm:$0xf0]  ;;  %v1936_v4 = vld [vmem:[%s2977_s1 + $0x2f4] sm:$0xf] }
  0x45   :  { %1063 = vmatpush.bf16.msra.mxu1 %v1320_v30  ;;  %1029 = vmatmul.bf16.vlgmr.msrb.gmra.mxu2 %v2493_v40  ;;  %v1277_v30 = vld [vmem:[%s2977_s1 + $0x28] sm:$0xf0]  ;;  %v1788_v34 = vor.u32 %v1975_v27, %v1787_v26  ;;  %v1874_v7 = vld [vmem:[%s2977_s1 + $0x104] sm:$0xf]  ;;  %v1255_v10 = vld [vmem:[%s2978_s0 + $0x20] sm:$0xf]  ;;  %v1576_v18 = vor.u32 %v1920_v0, %v1573_v3 }
  0x46   :  { %1077 = vmatpush.bf16.msra.mxu2 %v1384_v31  ;;  %1043 = vmatmul.bf16.vlgmr.msrb.gmra.mxu3 %v2509_v48  ;;  %v1416_v31 = vor.u32 %v1880_v23, %v1413_v24  ;;  %v1280_v38 = vor.u32 %v1846_v29, %v1277_v30  ;;  %v1841_v13 = vld [vmem:[%s2978_s0 + $0x40] sm:$0xf0]  ;;  %v1952_v15 = vld [vmem:[%s2977_s1 + $0x374] sm:$0xf]  ;;  %v1501_v20 = vld [vmem:[%s2977_s1 + $0x1e8] sm:$0xf0] }
  0x47   :  { %1091 = vmatpush.bf16.msra.mxu3 %v1448_v41  ;;  %v1973_v41 = vld [vmem:[%s2977_s1 + $0x414] sm:$0xf0]  ;;  %v1918_v23 = vld [vmem:[%s2977_s1 + $0x264] sm:$0xf]  ;;  %v1565_v24 = vld [vmem:[%s2977_s1 + $0x268] sm:$0xf0] }
  0x48   :  { %1050 = vmatpush.bf16.msra.mxu0 %v1820_v45  ;;  %v1269_v45 = vld [vmem:[%s2977_s1 + $0x18] sm:$0xf0]  ;;  %v1934_v27 = vld [vmem:[%s2977_s1 + $0x2e4] sm:$0xf]  ;;  %v1568_v32 = vor.u32 %v1918_v23, %v1565_v24  ;;  %v1900_v33 = vld [vmem:[%s2977_s1 + $0x1d4] sm:$0xf] }
  0x49   :  { %1064 = vmatpush.bf16.msra.mxu1 %v1312_v49  ;;  %v1333_v49 = vld [vmem:[%s2977_s1 + $0x98] sm:$0xf0]  ;;  %v1272_v56 = vor.u32 %v1844_v43, %v1269_v45  ;;  %v1950_v30 = vld [vmem:[%s2977_s1 + $0x364] sm:$0xf]  ;;  %v1916_v37 = vld [vmem:[%s2977_s1 + $0x254] sm:$0xf] }
  0x4a   :  { %1078 = vmatpush.bf16.msra.mxu2 %v1376_v52  ;;  %v1780_v52 = vor.u32 %v1973_v41, %v1779_v39  ;;  %v1336_v61 = vor.u32 %v1860_v46, %v1333_v49  ;;  %v1932_v41 = vld [vmem:[%s2977_s1 + $0x2d4] sm:$0xf]  ;;  %v1685_v46 = vld [vmem:[%s2977_s1 + $0x358] sm:$0xf0]  ;;  %v1898_v49 = vld [vmem:[%s2977_s1 + $0x1c4] sm:$0xf] }
  0x4b   :  { %1092 = vmatpush.bf16.msra.mxu3 %v1440_v55  ;;  %v1842_v55 = vld [vmem:[%s2977_s1 + $0x4] sm:$0xf]  ;;  %v1948_v45 = vld [vmem:[%s2977_s1 + $0x354] sm:$0xf]  ;;  %v1605_v3 = vld [vmem:[%s2977_s1 + $0x2b8] sm:$0xf0] }
  0x4c   :  { %1051 = vmatpush.bf16.msra.mxu0 %v1812_v58  ;;  %v1858_v58 = vld [vmem:[%s2977_s1 + $0x84] sm:$0xf]  ;;  %v1264_v11 = vor.u32 %v1842_v55, %v1261_v57  ;;  %v1688_v53 = vor.u32 %v1948_v45, %v1685_v46  ;;  %v1461_v23 = vld [vmem:[%s2977_s1 + $0x198] sm:$0xf0] }
  0x4d   :  { %1065 = vmatpush.bf16.msra.mxu1 %v1304_v62  ;;  %v1904_v62 = vld [vmem:[%s2977_s1 + $0x1f4] sm:$0xf]  ;;  %v1328_v17 = vor.u32 %v1858_v58, %v1325_v59  ;;  %v1930_v54 = vld [vmem:[%s2977_s1 + $0x2c4] sm:$0xf]  ;;  %v1477_v59 = vld [vmem:[%s2977_s1 + $0x1b8] sm:$0xf0] }
  0x4e   :  { %1079 = vmatpush.bf16.msra.mxu2 %v1368_v1  ;;  %v1400_v1 = vor.u32 %v1876_v50, %v1397_v51  ;;  %v1485_v50 = vld [vmem:[%s2977_s1 + $0x1c8] sm:$0xf0]  ;;  %v1896_v58 = vld [vmem:[%s2977_s1 + $0x1b4] sm:$0xf]  ;;  %v1765_v45 = vld [vmem:[%s2977_s1 + $0x3f8] sm:$0xf0] }
  0x4f   :  { %1093 = vmatpush.bf16.msra.mxu3 %v1432_v5  ;;  %v1637_v5 = vld [vmem:[%s2977_s1 + $0x2f8] sm:$0xf0]  ;;  %v1488_v55 = vor.u32 %v1898_v49, %v1485_v50  ;;  %v1984_v49 = vld [vmem:[%s2977_s1 + $0x474] sm:$0xf] }
  0x50   :  { %1052 = vmatpush.bf16.msra.mxu0 %v1804_v9  ;;  %v1389_v9 = vld [vmem:[%s2977_s1 + $0x108] sm:$0xf0]  ;;  %v1640_v21 = vor.u32 %v1936_v4, %v1637_v5  ;;  %v1480_v4 = vor.u32 %v1896_v58, %v1477_v59  ;;  %v1944_v5 = vld [vmem:[%s2977_s1 + $0x334] sm:$0xf]  ;;  %v1829_v50 = vld [vmem:[%s2977_s1 + $0x478] sm:$0xf0] }
  0x51   :  { %1066 = vmatpush.bf16.msra.mxu1 %v1296_v12  ;;  %v1512_v12 = vor.u32 %v1904_v62, %v1509_v63  ;;  %v1912_v62 = vld [vmem:[%s2977_s1 + $0x234] sm:$0xf]  ;;  %v1541_v63 = vld [vmem:[%s2977_s1 + $0x238] sm:$0xf0]  ;;  %v1982_v58 = vld [vmem:[%s2977_s1 + $0x464] sm:$0xf] }
  0x52   :  { %1080 = vmatpush.bf16.msra.mxu2 %v1360_v16  ;;  %v1701_v16 = vld [vmem:[%s2977_s1 + $0x378] sm:$0xf0]  ;;  %v1821_v59 = vld [vmem:[%s2977_s1 + $0x468] sm:$0xf0] }
  0x53   :  { %1094 = vmatpush.bf16.msra.mxu3 %v1424_v19  ;;  %v1902_v19 = vld [vmem:[%s2977_s1 + $0x1e4] sm:$0xf]  ;;  %v1704_v26 = vor.u32 %v1952_v15, %v1701_v16 }
  0x54   :  { %1053 = vmatpush.bf16.msra.mxu0 %v1796_v22  ;;  %v1392_v22 = vor.u32 %v1874_v7, %v1389_v9  ;;  %v1504_v29 = vor.u32 %v1902_v19, %v1501_v20  ;;  %v1544_v7 = vor.u32 %v1912_v62, %v1541_v63  ;;  %v1894_v9 = vld [vmem:[%s2977_s1 + $0x1a4] sm:$0xf]  ;;  %v1661_v20 = vld [vmem:[%s2977_s1 + $0x328] sm:$0xf0]  ;;  %v1824_v62 = vor.u32 %v1982_v58, %v1821_v59  ;;  %v1964_v63 = vld [vmem:[%s2977_s1 + $0x3d4] sm:$0xf] }
  0x55   :  { %1067 = vmatpush.bf16.msra.mxu1 %v1288_v25  ;;  %v2701_v25 = vor.u32 %v1841_v13, %v1255_v10  ;;  %v1469_v10 = vld [vmem:[%s2977_s1 + $0x1a8] sm:$0xf0]  ;;  %v1926_v16 = vld [vmem:[%s2977_s1 + $0x2a4] sm:$0xf] }
  0x56   :  { %1081 = vmatpush.bf16.msra.mxu2 %v1352_v28  ;;  %v1629_v28 = vld [vmem:[%s2977_s1 + $0x2e8] sm:$0xf0]  ;;  %v1942_v19 = vld [vmem:[%s2977_s1 + $0x324] sm:$0xf] }
  0x57   :  { %1095 = vmatpush.bf16.msra.mxu3 %v1416_v31  ;;  %v1693_v31 = vld [vmem:[%s2977_s1 + $0x368] sm:$0xf0]  ;;  %v1632_v35 = vor.u32 %v1934_v27, %v1629_v28  ;;  %v1525_v27 = vld [vmem:[%s2977_s1 + $0x218] sm:$0xf0]  ;;  %v1664_v28 = vor.u32 %v1942_v19, %v1661_v20 }
  0x58   :  { %1054 = vmatpush.bf16.msra.mxu0 %v1788_v34  ;;  %v1493_v34 = vld [vmem:[%s2977_s1 + $0x1d8] sm:$0xf0]  ;;  %v1696_v39 = vor.u32 %v1950_v30, %v1693_v31  ;;  %v1533_v13 = vld [vmem:[%s2977_s1 + $0x228] sm:$0xf0] }
  0x59   :  { %1068 = vmatpush.bf16.msra.mxu1 %v1280_v38  ;;  %v1557_v38 = vld [vmem:[%s2977_s1 + $0x258] sm:$0xf0]  ;;  %v1496_v43 = vor.u32 %v1900_v33, %v1493_v34  ;;  %v1890_v34 = vld [vmem:[%s2977_s1 + $0x184] sm:$0xf]  ;;  %v1789_v19 = vld [vmem:[%s2977_s1 + $0x428] sm:$0xf0] }
  0x5a   :  { %1082 = vmatpush.bf16.msra.mxu2 %v1344_v42  ;;  %v1621_v42 = vld [vmem:[%s2977_s1 + $0x2d8] sm:$0xf0] }
  0x5b   :  { %1096 = vmatpush.bf16.msra.mxu3 %v1408_v47  ;;  %v1560_v47 = vor.u32 %v1916_v37, %v1557_v38  ;;  %v1624_v51 = vor.u32 %v1932_v41, %v1621_v42  ;;  %v1589_v30 = vld [vmem:[%s2977_s1 + $0x298] sm:$0xf0]  ;;  %v1453_v37 = vld [vmem:[%s2977_s1 + $0x188] sm:$0xf0]  ;;  %v1906_v38 = vld [vmem:[%s2977_s1 + $0x204] sm:$0xf] }
  0x5c   :  { %1055 = vmatpush.bf16.msra.mxu0 %v1780_v52  ;;  %v1914_v52 = vld [vmem:[%s2977_s1 + $0x244] sm:$0xf]  ;;  %v1653_v33 = vld [vmem:[%s2977_s1 + $0x318] sm:$0xf0] }
  0x5d   :  { %1069 = vmatpush.bf16.msra.mxu1 %v1272_v56  ;;  %v1946_v56 = vld [vmem:[%s2977_s1 + $0x344] sm:$0xf] }
  0x5e   :  { %1083 = vmatpush.bf16.msra.mxu2 %v1336_v61  ;;  %v1922_v42 = vld [vmem:[%s2977_s1 + $0x284] sm:$0xf] }
  0x5f   :  { %1097 = vmatpush.bf16.msra.mxu3 %v1400_v1  ;;  %v1928_v1 = vld [vmem:[%s2977_s1 + $0x2b4] sm:$0xf] }
  0x60   :  { %1056 = vmatpush.bf16.msra.mxu0 %v1772_v6  ;;  %v1669_v6 = vld [vmem:[%s2977_s1 + $0x338] sm:$0xf0] }
  0x61   :  { %1070 = vmatpush.bf16.msra.mxu1 %v1264_v11  ;;  %v1608_v11 = vor.u32 %v1928_v1, %v1605_v3  ;;  %v1672_v15 = vor.u32 %v1944_v5, %v1669_v6  ;;  %v1980_v1 = vld [vmem:[%s2977_s1 + $0x454] sm:$0xf]  ;;  %v1813_v3 = vld [vmem:[%s2977_s1 + $0x458] sm:$0xf0]  ;;  %v1741_v6 = vld [vmem:[%s2977_s1 + $0x3c8] sm:$0xf0] }
  0x62   :  { %1084 = vmatpush.bf16.msra.mxu2 %v1328_v17  ;;  %v1597_v17 = vld [vmem:[%s2977_s1 + $0x2a8] sm:$0xf0]  ;;  %v1816_v5 = vor.u32 %v1980_v1, %v1813_v3 }
  0x63   :  { %1098 = vmatpush.bf16.msra.mxu3 %v1392_v22  ;;  %1057 = vmatmul.bf16.vlgmr.msra.gmra.mxu0 %v2701_v25  ;;  %v1892_v22 = vld [vmem:[%s2977_s1 + $0x194] sm:$0xf]  ;;  %v1600_v24 = vor.u32 %v1926_v16, %v1597_v17  ;;  %v1958_v16 = vld [vmem:[%s2977_s1 + $0x3a4] sm:$0xf]  ;;  %v1725_v17 = vld [vmem:[%s2977_s1 + $0x3a8] sm:$0xf0] }
  0x64   :  { %1105 = vmatpush.bf16.msrb.mxu0 %v1512_v12  ;;  %1071 = vmatmul.bf16.vlgmr.msra.gmra.mxu1 %v2269_v60  ;;  %v1677_v60 = vld [vmem:[%s2977_s1 + $0x348] sm:$0xf0]  ;;  %v1910_v12 = vld [vmem:[%s2977_s1 + $0x224] sm:$0xf]  ;;  %v1464_v31 = vor.u32 %v1892_v22, %v1461_v23  ;;  %v1728_v20 = vor.u32 %v1958_v16, %v1725_v17  ;;  %v1956_v22 = vld [vmem:[%s2977_s1 + $0x394] sm:$0xf] }
  0x65   :  { %1119 = vmatpush.bf16.msrb.mxu1 %v1576_v18  ;;  %1085 = vmatmul.bf16.vlgmr.msra.gmra.mxu2 %v2299_v8  ;;  %v1549_v8 = vld [vmem:[%s2977_s1 + $0x248] sm:$0xf0]  ;;  %v1680_v0 = vor.u32 %v1946_v56, %v1677_v60  ;;  %v1472_v18 = vor.u32 %v1894_v9, %v1469_v10  ;;  %v1966_v56 = vld [vmem:[%s2977_s1 + $0x3e4] sm:$0xf]  ;;  %v1960_v9 = vld [vmem:[%s2977_s1 + $0x3b4] sm:$0xf] }
  0x66   :  { %1133 = vmatpush.bf16.msrb.mxu2 %v1640_v21  ;;  %1099 = vmatmul.bf16.vlgmr.msra.gmra.mxu3 %v2283_v2  ;;  %v1613_v2 = vld [vmem:[%s2977_s1 + $0x2c8] sm:$0xf0]  ;;  %v1552_v57 = vor.u32 %v1914_v52, %v1549_v8  ;;  %v1536_v21 = vor.u32 %v1910_v12, %v1533_v13  ;;  %v1938_v52 = vld [vmem:[%s2977_s1 + $0x304] sm:$0xf]  ;;  %v1733_v10 = vld [vmem:[%s2977_s1 + $0x3b8] sm:$0xf0] }
  0x67   :  { %1147 = vmatpush.bf16.msrb.mxu3 %v1704_v26  ;;  %v1616_v61 = vor.u32 %v1930_v54, %v1613_v2  ;;  %v1908_v26 = vld [vmem:[%s2977_s1 + $0x214] sm:$0xf]  ;;  %v1645_v8 = vld [vmem:[%s2977_s1 + $0x308] sm:$0xf0]  ;;  %v1797_v12 = vld [vmem:[%s2977_s1 + $0x438] sm:$0xf0]  ;;  %v1736_v13 = vor.u32 %v1960_v9, %v1733_v10 }
  0x68   :  { %1106 = vmatpush.bf16.msrb.mxu0 %v1504_v29  ;;  %v1924_v29 = vld [vmem:[%s2977_s1 + $0x294] sm:$0xf]  ;;  %v1757_v60 = vld [vmem:[%s2977_s1 + $0x3e8] sm:$0xf0]  ;;  %v1717_v23 = vld [vmem:[%s2977_s1 + $0x398] sm:$0xf0] }
  0x69   :  { %1120 = vmatpush.bf16.msrb.mxu1 %v1568_v32  ;;  %v1940_v32 = vld [vmem:[%s2977_s1 + $0x314] sm:$0xf]  ;;  %v1592_v41 = vor.u32 %v1924_v29, %v1589_v30  ;;  %v1954_v29 = vld [vmem:[%s2977_s1 + $0x384] sm:$0xf]  ;;  %v1709_v30 = vld [vmem:[%s2977_s1 + $0x388] sm:$0xf0] }
  0x6a   :  { %1134 = vmatpush.bf16.msrb.mxu2 %v1632_v35  ;;  %v1528_v35 = vor.u32 %v1908_v26, %v1525_v27  ;;  %v1656_v46 = vor.u32 %v1940_v32, %v1653_v33  ;;  %v1781_v26 = vld [vmem:[%s2977_s1 + $0x418] sm:$0xf0]  ;;  %v1720_v27 = vor.u32 %v1956_v22, %v1717_v23  ;;  %v1773_v32 = vld [vmem:[%s2977_s1 + $0x408] sm:$0xf0]  ;;  %v1712_v33 = vor.u32 %v1954_v29, %v1709_v30  ;;  %v1199_v22 = vld [vmem:[%s2980_s3] sm:$0x3] }
  0x6b   :  { %1148 = vmatpush.bf16.msrb.mxu3 %v1696_v39  ;;  %v1517_v39 = vld [vmem:[%s2977_s1 + $0x208] sm:$0xf0] }
  0x6c   :  { %1107 = vmatpush.bf16.msrb.mxu0 %v1496_v43  ;;  %v1968_v43 = vld [vmem:[%s2977_s1 + $0x3f4] sm:$0xf] }
  0x6d   :  { %1121 = vmatpush.bf16.msrb.mxu1 %v1560_v47  ;;  %v1581_v47 = vld [vmem:[%s2977_s1 + $0x288] sm:$0xf0]  ;;  %v1768_v54 = vor.u32 %v1968_v43, %v1765_v45 }
  0x6e   :  { %1135 = vmatpush.bf16.msrb.mxu2 %v1624_v51  ;;  %v1456_v51 = vor.u32 %v1890_v34, %v1453_v37  ;;  %v1584_v2 = vor.u32 %v1922_v42, %v1581_v47 }
  0x6f   :  { %1149 = vmatpush.bf16.msrb.mxu3 %v1688_v53  ;;  %v1520_v53 = vor.u32 %v1906_v38, %v1517_v39 }
  0x70   :  { %1108 = vmatpush.bf16.msrb.mxu0 %v1488_v55  ;;  %v1832_v55 = vor.u32 %v1984_v49, %v1829_v50 }
  0x71   :  { %1122 = vmatpush.bf16.msrb.mxu1 %v1552_v57  ;;  %v1648_v57 = vor.u32 %v1938_v52, %v1645_v8 }
  0x72   :  { %1136 = vmatpush.bf16.msrb.mxu2 %v1616_v61  ;;  %v1760_v61 = vor.u32 %v1966_v56, %v1757_v60 }
  0x73   :  { %1150 = vmatpush.bf16.msrb.mxu3 %v1680_v0  ;;  %v1749_v0 = vld [vmem:[%s2977_s1 + $0x3d8] sm:$0xf0] }
  0x74   :  { %1109 = vmatpush.bf16.msrb.mxu0 %v1480_v4  ;;  %v1752_v4 = vor.u32 %v1964_v63, %v1749_v0 }
  0x75   :  { %1123 = vmatpush.bf16.msrb.mxu1 %v1544_v7 }
  0x76   :  { %1137 = vmatpush.bf16.msrb.mxu2 %v1608_v11  ;;  %v1976_v11 = vld [vmem:[%s2977_s1 + $0x434] sm:$0xf] }
  0x77   :  { %1151 = vmatpush.bf16.msrb.mxu3 %v1672_v15  ;;  %v1800_v15 = vor.u32 %v1976_v11, %v1797_v12 }
  0x78   :  { %1110 = vmatpush.bf16.msrb.mxu0 %v1472_v18  ;;  %v1974_v18 = vld [vmem:[%s2977_s1 + $0x424] sm:$0xf] }
  0x79   :  { %1124 = vmatpush.bf16.msrb.mxu1 %v1536_v21  ;;  %v1792_v21 = vor.u32 %v1974_v18, %v1789_v19 }
  0x7a   :  { %1138 = vmatpush.bf16.msrb.mxu2 %v1600_v24  ;;  %v1972_v24 = vld [vmem:[%s2977_s1 + $0x414] sm:$0xf] }
  0x7b   :  { %1152 = vmatpush.bf16.msrb.mxu3 %v1664_v28  ;;  %v1784_v28 = vor.u32 %v1972_v24, %v1781_v26 }
  0x7c   :  { %1111 = vmatpush.bf16.msrb.mxu0 %v1464_v31  ;;  %v1970_v31 = vld [vmem:[%s2977_s1 + $0x404] sm:$0xf] }
  0x7d   :  { %1125 = vmatpush.bf16.msrb.mxu1 %v1528_v35  ;;  %v1776_v34 = vor.u32 %v1970_v31, %v1773_v32 }
  0x7e   :  { %1139 = vmatpush.bf16.msrb.mxu2 %v1592_v41 }
  0x7f   :  { %1153 = vmatpush.bf16.msrb.mxu3 %v1656_v46 }
  0x80   :  { %1112 = vmatpush.bf16.msrb.mxu0 %v1456_v51 }
  0x81   :  { %1126 = vmatpush.bf16.msrb.mxu1 %v1520_v53 }
  0x82   :  { %1140 = vmatpush.bf16.msrb.mxu2 %v1584_v2 }
  0x83   :  { %1154 = vmatpush.bf16.msrb.mxu3 %v1648_v57  ;;  %1113 = vmatmul.bf16.vlgmr.msrb.gmra.mxu0 %v2310_v14  ;;  %v1962_v14 = vld [vmem:[%s2977_s1 + $0x3c4] sm:$0xf] }
  0x84   :  { %1161 = vmatpush.bf16.msra.mxu0 %v1768_v54  ;;  %1127 = vmatmul.bf16.vlgmr.msrb.gmra.mxu1 %v2482_v36  ;;  %v1978_v36 = vld [vmem:[%s2977_s1 + $0x444] sm:$0xf] }
  0x85   :  { %1175 = vmatpush.bf16.msra.mxu1 %v1832_v55  ;;  %1141 = vmatmul.bf16.vlgmr.msrb.gmra.mxu2 %v2501_v44  ;;  %v1805_v44 = vld [vmem:[%s2977_s1 + $0x448] sm:$0xf0] }
  0x86   :  { %1155 = vmatmul.bf16.vlgmr.msrb.gmra.mxu3 %v2493_v40  ;;  %v1744_v40 = vor.u32 %v1962_v14, %v1741_v6  ;;  %v1808_v7 = vor.u32 %v1978_v36, %v1805_v44 }
  0x88   :  { %1162 = vmatpush.bf16.msra.mxu0 %v1760_v61 }
  0x89   :  { %1176 = vmatpush.bf16.msra.mxu1 %v1824_v62 }
  0x8c   :  { %1163 = vmatpush.bf16.msra.mxu0 %v1752_v4 }
  0x8d   :  { %1177 = vmatpush.bf16.msra.mxu1 %v1816_v5 }
  0x90   :  { %1164 = vmatpush.bf16.msra.mxu0 %v1744_v40 }
  0x91   :  { %1178 = vmatpush.bf16.msra.mxu1 %v1808_v7 }
  0x94   :  { %1165 = vmatpush.bf16.msra.mxu0 %v1736_v13  ;;  %v1189_v13 = vld [vmem:[%s2979_s2] sm:$0x3] }
  0x95   :  { %1179 = vmatpush.bf16.msra.mxu1 %v1800_v15 }
  0x98   :  { %1166 = vmatpush.bf16.msra.mxu0 %v1728_v20 }
  0x99   :  { %1180 = vmatpush.bf16.msra.mxu1 %v1792_v21  ;;  %v1191_v21 = vperm.slane %v1189_v13, 0 }
  0x9c   :  { %1167 = vmatpush.bf16.msra.mxu0 %v1720_v27  ;;  %v1201_v27 = vperm.slane %v1199_v22, 0 }
  0x9d   :  { %1181 = vmatpush.bf16.msra.mxu1 %v1784_v28 }
  0xa0   :  { %1168 = vmatpush.bf16.msra.mxu0 %v1712_v33  ;;  %v946_v37 = vpop.f32.mrf.mxu0 }
  0xa1   :  { %1182 = vmatpush.bf16.msra.mxu1 %v1776_v34  ;;  %v960_v35 = vpop.f32.mrf.mxu1  ;;  %v1192_v34 = vperm.slane %v1189_v13, 1 }
  0xa3   :  { %1169 = vmatmul.bf16.vlgmr.msra.gmra.mxu0 %v2509_v48 }
  0xa4   :  { %1183 = vmatmul.bf16.vlgmr.msra.gmra.mxu1 %v2701_v25  ;;  %v961_v25 = vadd.f32 %v960_v35, %v946_v37 }
  0xa8   :  { %v974_v38 = vpop.f32.mrf.mxu2  ;;  %v948_v41 = vpop.f32.mrf.mxu0 }
  0xa9   :  { %v962_v39 = vpop.f32.mrf.mxu1  ;;  %v988_v42 = vpop.f32.mrf.mxu3  ;;  %v975_v57 = vadd.f32 %v974_v38, %v961_v25 }
  0xaa   :  { %v963_v63 = vadd.f32 %v962_v39, %v948_v41  ;;  %v1202_v39 = vperm.slane %v1199_v22, 1 }
  0xab   :  { %v989_v58 = vadd.f32 %v988_v42, %v975_v57 }
  0xb0   :  { %v976_v43 = vpop.f32.mrf.mxu2 }
  0xb1   :  { %v990_v46 = vpop.f32.mrf.mxu3  ;;  %v977_v5 = vadd.f32 %v976_v43, %v963_v63 }
  0xb3   :  { %v991_v44 = vadd.f32 %v990_v46, %v977_v5 }
  0xc0   :  { %v1002_v47 = vpop.f32.mrf.mxu0 }
  0xc1   :  { %v1016_v45 = vpop.f32.mrf.mxu1  ;;  %v1003_v0 = vadd.f32 %v1002_v47, %v989_v58 }
  0xc3   :  { %v1017_v14 = vadd.f32 %v1016_v45, %v1003_v0 }
  0xc8   :  { %v1030_v49 = vpop.f32.mrf.mxu2  ;;  %v1004_v51 = vpop.f32.mrf.mxu0 }
  0xc9   :  { %v1018_v50 = vpop.f32.mrf.mxu1  ;;  %v1044_v52 = vpop.f32.mrf.mxu3  ;;  %v1031_v40 = vadd.f32 %v1030_v49, %v1017_v14  ;;  %v1005_v11 = vadd.f32 %v1004_v51, %v991_v44 }
  0xcb   :  { %v1045_v16 = vadd.f32 %v1044_v52, %v1031_v40  ;;  %v1019_v19 = vadd.f32 %v1018_v50, %v1005_v11 }
  0xd0   :  { %v1032_v8 = vpop.f32.mrf.mxu2 }
  0xd1   :  { %v1046_v48 = vpop.f32.mrf.mxu3  ;;  %v1033_v24 = vadd.f32 %v1032_v8, %v1019_v19 }
  0xd3   :  { %v1047_v35 = vadd.f32 %v1046_v48, %v1033_v24 }
  0xe0   :  { %v1058_v54 = vpop.f32.mrf.mxu0 }
  0xe1   :  { %v1072_v53 = vpop.f32.mrf.mxu1  ;;  %v1059_v20 = vadd.f32 %v1058_v54, %v1045_v16 }
  0xe3   :  { %v1195_v30 = vmul.f32 %v1191_v21, %v1059_v20 }
  0xe5   :  { %v1205_v42 = vadd.f32 %v1201_v27, %v1195_v30 }
  0xe7   :  { %v1209_v50 = vmax.f32 %v1205_v42, 0.0 }
  0xe8   :  { %v1086_v2 = vpop.f32.mrf.mxu2  ;;  %v1060_v56 = vpop.f32.mrf.mxu0 }
  0xe9   :  { %v1074_v55 = vpop.f32.mrf.mxu1  ;;  %v1100_v60 = vpop.f32.mrf.mxu3  ;;  %v1087_v59 = vadd.f32 %v1086_v2, %v1072_v53  ;;  %v1061_v43 = vadd.f32 %v1060_v56, %v1047_v35 }
  0xeb   :  { %v1101_v1 = vadd.f32 %v1100_v60, %v1087_v59  ;;  %v1197_v51 = vmul.f32 %v1191_v21, %v1061_v43 }
  0xed   :  { %v1207_v25 = vadd.f32 %v1201_v27, %v1197_v51 }
  0xef   :  { %v1211_v60 = vmax.f32 %v1207_v25, 0.0 }
  0xf0   :  { %v1088_v61 = vpop.f32.mrf.mxu2 }
  0xf1   :  { %v1102_v4 = vpop.f32.mrf.mxu3  ;;  %v1089_v7 = vadd.f32 %v1088_v61, %v1074_v55 }
  0xf3   :  { %v1103_v17 = vadd.f32 %v1102_v4, %v1089_v7 }
 0x100   :  { %v1114_v62 = vpop.f32.mrf.mxu0 }
 0x101   :  { %v1128_v3 = vpop.f32.mrf.mxu1  ;;  %v1115_v6 = vadd.f32 %v1114_v62, %v1101_v1 }
 0x103   :  { %v1129_v9 = vadd.f32 %v1128_v3, %v1115_v6 }
 0x108   :  { %v1142_v36 = vpop.f32.mrf.mxu2  ;;  %v1116_v10 = vpop.f32.mrf.mxu0 }
 0x109   :  { %v1130_v12 = vpop.f32.mrf.mxu1  ;;  %v1156_v15 = vpop.f32.mrf.mxu3  ;;  %v1143_v18 = vadd.f32 %v1142_v36, %v1129_v9  ;;  %v1117_v23 = vadd.f32 %v1116_v10, %v1103_v17 }
 0x10b   :  { %v1157_v26 = vadd.f32 %v1156_v15, %v1143_v18  ;;  %v1131_v31 = vadd.f32 %v1130_v12, %v1117_v23 }
 0x110   :  { %v1144_v28 = vpop.f32.mrf.mxu2 }
 0x111   :  { %v1145_v37 = vadd.f32 %v1144_v28, %v1131_v31  ;;  %v1158_v41 = vpop.f32.mrf.mxu3 }
 0x113   :  { %v1159_v46 = vadd.f32 %v1158_v41, %v1145_v37 }
 0x120   :  { %v1170_v29 = vpop.f32.mrf.mxu0 }
 0x121   :  { %v1171_v32 = vadd.f32 %v1170_v29, %v1157_v26  ;;  %v1184_v33 = vpop.f32.mrf.mxu1 }
 0x123   :  { %v1185_v38 = vadd.f32 %v1184_v33, %v1171_v32 }
 0x125   :  { %v1196_v45 = vmul.f32 %v1192_v34, %v1185_v38 }
 0x127   :  { %v1206_v47 = vadd.f32 %v1202_v39, %v1196_v45 }
 0x128   :  { %v1172_v49 = vpop.f32.mrf.mxu0 }
 0x129   :  { %v1210_v52 = vmax.f32 %v1206_v47, 0.0  ;;  %v1173_v8 = vadd.f32 %v1172_v49, %v1159_v46  ;;  %v1186_v53 = vpop.f32.mrf.mxu1 }
 0x12b   :  { %v1213_v54 = vpack.c.bf16 %v1210_v52, %v1209_v50  ;;  %v1187_v2 = vadd.f32 %v1186_v53, %v1173_v8 }
 0x12d   :  { %1215 = vst [vmem:[%s2981_s4] sm:$0xff] %v1213_v54  ;;  %v1198_v48 = vmul.f32 %v1192_v34, %v1187_v2 }
 0x12f   :  { %v1208_v55 = vadd.f32 %v1202_v39, %v1198_v48 }
 0x131   :  { %v1212_v56 = vmax.f32 %v1208_v55, 0.0 }
 0x133   :  { %v1214_v57 = vpack.c.bf16 %v1212_v56, %v1211_v60 }
 0x135   :  { %1216 = vst [vmem:[%s2981_s4 + $0x8] sm:$0xff] %v1214_v57 }

// kernel: autoencoder_forward.18
= control target key start
LH: loop header
LB: loop body
LE: loop exit
PB: predicated region body
PF: predicated region fallthrough
CT: control target
= control target key end

     0   :  { %s2840_s15 = smov 0   ;;  %s2842_s16 = smov 0   ;;  %s3521_s0 = inlined_call_operand.vmem [shape: bf16[16,1024], index: 0, kind: input, shape index: {}]   ;;  %s3522_s1 = inlined_call_operand.vmem [shape: bf16[1024,512], index: 1, kind: input, shape index: {}]   ;;  %s3523_s2 = inlined_call_operand.vmem [shape: f32[1,512], index: 2, kind: input, shape index: {}]   ;;  %s3524_s3 = inlined_call_operand.vmem [shape: f32[1,512], index: 3, kind: input, shape index: {}]   ;;  %s3525_s4 = inlined_call_operand.vmem [shape: bf16[16,512], index: 4, kind: output, shape index: {}]  }
   0x1   :  { %s2844_s17 = smov 0   ;;  %s2846_s18 = smov 0  }
   0x2   :  { %s2848_s19 = smov 0  }
   0x3 LB: > { %s23_s20 = sadd.s32 1, %s2809_s18  ;;  %s2035_s21 = sadd.s32 4294967295, %s2813_s19   ;;  %s2813_s19 = sphi %s2848_s19, %s14_s19   ;;  %s2809_s18 = sphi %s2846_s18, %s3530_s18   ;;  %s2805_s17 = sphi %s2844_s17, %s3529_s17   ;;  %s2801_s16 = sphi %s2842_s16, %s3528_s16   ;;  %s2797_s15 = sphi %s2840_s15, %s3527_s15  }
   0x4   : > { %p24_p0 = scmp.ge.s32.totalorder %s23_s20, 2  ;;  %p66_p1 = scmp.ne.s32.totalorder %s2801_s16, %s2797_s15 }
   0x5   : > { %p67_p2 = scmp.eq.s32.totalorder %s2813_s19, 0  ;;  %p150_p4 = scmp.eq.s32.totalorder %s2035_s21, 1 }
   0x6   : > { %s3532_s20 = smov (%p24_p0, %s23_s20), 0  ;;  %s59_s23 = sadd.s32 1, %s2801_s16 }
   0x7   : > { %p68_p3 = por %p67_p2, %p66_p1  ;;  %s56_s22 = ssub.s32 %s2809_s18, %s3532_s20 }
   0x8   : > { %p57_p5 = scmp.eq.s32.totalorder %s56_s22, 0  ;;  %p2875_p6 = por %p150_p4, %p66_p1 }
   0x9   : > { %p2039_p7 = scmp.ge.s32.totalorder %s2813_s19, 2 }
   0xa   : > { %s2880_s25 = scalar_select %p57_p5, %s2801_s16, %s59_s23  }
   0xb   : > { %182 = sbr.rel (%p2039_p7) target bundleno = 148 (0x94), region = 20 }
  0x10   : > { %185 = sbr.rel (!%p68_p3) target bundleno = 148 (0x94), region = 24  ;;  %s187_s26 = sand.u32 (%p68_p3), 1, %s2801_s16  }
  0x11   : > { %s2597_s27 = sshll.u32 (%p68_p3), %s2809_s18, 3  ;;  %s2040_s28 = sshll.u32 (%p68_p3), %s187_s26, 10 }
  0x12   : > { %s2888_s5 = scalar_lea.vmem (%p68_p3), %s3522_s1, %s2597_s27  ;;  %s2893_s6 = scalar_lea.vmem (%p68_p3), [#allocation2], %s2040_s28 }
  0x13   : > { %v475_v0 = vld [vmem:[%s2888_s5] sm:$0xff] (%p68_p3)  ;;  %v477_v1 = vld [vmem:[%s2888_s5 + $0x10] sm:$0xff] (%p68_p3) }
  0x14   : > { %v479_v2 = vld [vmem:[%s2888_s5 + $0x20] sm:$0xff] (%p68_p3)  ;;  %476 = vst [vmem:[%s2893_s6] sm:$0xff] (%p68_p3), %v475_v0  ;;  %v481_v3 = vld [vmem:[%s2888_s5 + $0x30] sm:$0xff] (%p68_p3) }
  0x15   : > { %478 = vst [vmem:[%s2893_s6 + $0x8] sm:$0xff] %v477_v1  ;;  %v483_v4 = vld [vmem:[%s2888_s5 + $0x40] sm:$0xff]  ;;  %v485_v5 = vld [vmem:[%s2888_s5 + $0x50] sm:$0xff] }
  0x16   : > { %480 = vst [vmem:[%s2893_s6 + $0x10] sm:$0xff] %v479_v2  ;;  %v487_v6 = vld [vmem:[%s2888_s5 + $0x60] sm:$0xff]  ;;  %v489_v7 = vld [vmem:[%s2888_s5 + $0x70] sm:$0xff] }
  0x17   : > { %482 = vst [vmem:[%s2893_s6 + $0x18] sm:$0xff] %v481_v3  ;;  %v491_v8 = vld [vmem:[%s2888_s5 + $0x80] sm:$0xff]  ;;  %v493_v9 = vld [vmem:[%s2888_s5 + $0x90] sm:$0xff] }
  0x18   : > { %484 = vst [vmem:[%s2893_s6 + $0x20] sm:$0xff] %v483_v4  ;;  %v495_v10 = vld [vmem:[%s2888_s5 + $0xa0] sm:$0xff]  ;;  %v497_v11 = vld [vmem:[%s2888_s5 + $0xb0] sm:$0xff] }
  0x19   : > { %486 = vst [vmem:[%s2893_s6 + $0x28] sm:$0xff] %v485_v5  ;;  %v499_v12 = vld [vmem:[%s2888_s5 + $0xc0] sm:$0xff]  ;;  %v501_v13 = vld [vmem:[%s2888_s5 + $0xd0] sm:$0xff] }
  0x1a   : > { %488 = vst [vmem:[%s2893_s6 + $0x30] sm:$0xff] %v487_v6  ;;  %v503_v14 = vld [vmem:[%s2888_s5 + $0xe0] sm:$0xff]  ;;  %v505_v15 = vld [vmem:[%s2888_s5 + $0xf0] sm:$0xff] }
  0x1b   : > { %490 = vst [vmem:[%s2893_s6 + $0x38] sm:$0xff] %v489_v7  ;;  %v507_v16 = vld [vmem:[%s2888_s5 + $0x100] sm:$0xff]  ;;  %v509_v17 = vld [vmem:[%s2888_s5 + $0x110] sm:$0xff] }
  0x1c   : > { %492 = vst [vmem:[%s2893_s6 + $0x40] sm:$0xff] %v491_v8  ;;  %v511_v18 = vld [vmem:[%s2888_s5 + $0x120] sm:$0xff]  ;;  %v513_v19 = vld [vmem:[%s2888_s5 + $0x130] sm:$0xff] }
  0x1d   : > { %494 = vst [vmem:[%s2893_s6 + $0x48] sm:$0xff] %v493_v9  ;;  %v515_v20 = vld [vmem:[%s2888_s5 + $0x140] sm:$0xff]  ;;  %v517_v21 = vld [vmem:[%s2888_s5 + $0x150] sm:$0xff] }
  0x1e   : > { %496 = vst [vmem:[%s2893_s6 + $0x50] sm:$0xff] %v495_v10  ;;  %v519_v22 = vld [vmem:[%s2888_s5 + $0x160] sm:$0xff]  ;;  %v521_v23 = vld [vmem:[%s2888_s5 + $0x170] sm:$0xff] }
  0x1f   : > { %498 = vst [vmem:[%s2893_s6 + $0x58] sm:$0xff] %v497_v11  ;;  %v523_v24 = vld [vmem:[%s2888_s5 + $0x180] sm:$0xff]  ;;  %v525_v25 = vld [vmem:[%s2888_s5 + $0x190] sm:$0xff] }
  0x20   : > { %500 = vst [vmem:[%s2893_s6 + $0x60] sm:$0xff] %v499_v12  ;;  %v527_v26 = vld [vmem:[%s2888_s5 + $0x1a0] sm:$0xff]  ;;  %v529_v27 = vld [vmem:[%s2888_s5 + $0x1b0] sm:$0xff] }
  0x21   : > { %502 = vst [vmem:[%s2893_s6 + $0x68] sm:$0xff] %v501_v13  ;;  %v531_v28 = vld [vmem:[%s2888_s5 + $0x1c0] sm:$0xff]  ;;  %v533_v29 = vld [vmem:[%s2888_s5 + $0x1d0] sm:$0xff] }
  0x22   : > { %504 = vst [vmem:[%s2893_s6 + $0x70] sm:$0xff] %v503_v14  ;;  %v535_v30 = vld [vmem:[%s2888_s5 + $0x1e0] sm:$0xff]  ;;  %v537_v31 = vld [vmem:[%s2888_s5 + $0x1f0] sm:$0xff] }
  0x23   : > { %506 = vst [vmem:[%s2893_s6 + $0x78] sm:$0xff] %v505_v15  ;;  %v539_v32 = vld [vmem:[%s2888_s5 + $0x200] sm:$0xff]  ;;  %v541_v33 = vld [vmem:[%s2888_s5 + $0x210] sm:$0xff] }
  0x24   : > { %508 = vst [vmem:[%s2893_s6 + $0x80] sm:$0xff] %v507_v16  ;;  %v543_v34 = vld [vmem:[%s2888_s5 + $0x220] sm:$0xff]  ;;  %v545_v35 = vld [vmem:[%s2888_s5 + $0x230] sm:$0xff] }
  0x25   : > { %510 = vst [vmem:[%s2893_s6 + $0x88] sm:$0xff] %v509_v17  ;;  %v547_v36 = vld [vmem:[%s2888_s5 + $0x240] sm:$0xff]  ;;  %v549_v37 = vld [vmem:[%s2888_s5 + $0x250] sm:$0xff] }
  0x26   : > { %512 = vst [vmem:[%s2893_s6 + $0x90] sm:$0xff] %v511_v18  ;;  %v551_v38 = vld [vmem:[%s2888_s5 + $0x260] sm:$0xff]  ;;  %v553_v39 = vld [vmem:[%s2888_s5 + $0x270] sm:$0xff] }
  0x27   : > { %514 = vst [vmem:[%s2893_s6 + $0x98] sm:$0xff] %v513_v19  ;;  %v555_v40 = vld [vmem:[%s2888_s5 + $0x280] sm:$0xff]  ;;  %v557_v41 = vld [vmem:[%s2888_s5 + $0x290] sm:$0xff] }
  0x28   : > { %516 = vst [vmem:[%s2893_s6 + $0xa0] sm:$0xff] %v515_v20  ;;  %v559_v42 = vld [vmem:[%s2888_s5 + $0x2a0] sm:$0xff]  ;;  %v561_v43 = vld [vmem:[%s2888_s5 + $0x2b0] sm:$0xff] }
  0x29   : > { %518 = vst [vmem:[%s2893_s6 + $0xa8] sm:$0xff] %v517_v21  ;;  %v563_v44 = vld [vmem:[%s2888_s5 + $0x2c0] sm:$0xff]  ;;  %v565_v45 = vld [vmem:[%s2888_s5 + $0x2d0] sm:$0xff] }
  0x2a   : > { %520 = vst [vmem:[%s2893_s6 + $0xb0] sm:$0xff] %v519_v22  ;;  %v567_v46 = vld [vmem:[%s2888_s5 + $0x2e0] sm:$0xff]  ;;  %v569_v47 = vld [vmem:[%s2888_s5 + $0x2f0] sm:$0xff] }
  0x2b   : > { %522 = vst [vmem:[%s2893_s6 + $0xb8] sm:$0xff] %v521_v23  ;;  %v571_v48 = vld [vmem:[%s2888_s5 + $0x300] sm:$0xff]  ;;  %v573_v49 = vld [vmem:[%s2888_s5 + $0x310] sm:$0xff] }
  0x2c   : > { %524 = vst [vmem:[%s2893_s6 + $0xc0] sm:$0xff] %v523_v24  ;;  %v575_v50 = vld [vmem:[%s2888_s5 + $0x320] sm:$0xff]  ;;  %v577_v51 = vld [vmem:[%s2888_s5 + $0x330] sm:$0xff] }
  0x2d   : > { %526 = vst [vmem:[%s2893_s6 + $0xc8] sm:$0xff] %v525_v25  ;;  %v579_v52 = vld [vmem:[%s2888_s5 + $0x340] sm:$0xff]  ;;  %v581_v53 = vld [vmem:[%s2888_s5 + $0x350] sm:$0xff] }
  0x2e   : > { %528 = vst [vmem:[%s2893_s6 + $0xd0] sm:$0xff] %v527_v26  ;;  %v583_v54 = vld [vmem:[%s2888_s5 + $0x360] sm:$0xff]  ;;  %v585_v55 = vld [vmem:[%s2888_s5 + $0x370] sm:$0xff] }
  0x2f   : > { %530 = vst [vmem:[%s2893_s6 + $0xd8] sm:$0xff] %v529_v27  ;;  %v587_v56 = vld [vmem:[%s2888_s5 + $0x380] sm:$0xff]  ;;  %v589_v57 = vld [vmem:[%s2888_s5 + $0x390] sm:$0xff] }
  0x30   : > { %532 = vst [vmem:[%s2893_s6 + $0xe0] sm:$0xff] %v531_v28  ;;  %v591_v58 = vld [vmem:[%s2888_s5 + $0x3a0] sm:$0xff]  ;;  %v593_v59 = vld [vmem:[%s2888_s5 + $0x3b0] sm:$0xff] }
  0x31   : > { %534 = vst [vmem:[%s2893_s6 + $0xe8] sm:$0xff] %v533_v29  ;;  %v595_v60 = vld [vmem:[%s2888_s5 + $0x3c0] sm:$0xff]  ;;  %v597_v61 = vld [vmem:[%s2888_s5 + $0x3d0] sm:$0xff] }
  0x32   : > { %536 = vst [vmem:[%s2893_s6 + $0xf0] sm:$0xff] %v535_v30  ;;  %v599_v62 = vld [vmem:[%s2888_s5 + $0x3e0] sm:$0xff]  ;;  %v601_v63 = vld [vmem:[%s2888_s5 + $0x3f0] sm:$0xff] }
  0x33   : > { %538 = vst [vmem:[%s2893_s6 + $0xf8] sm:$0xff] %v537_v31  ;;  %v603_v0 = vld [vmem:[%s2888_s5 + $0x400] sm:$0xff]  ;;  %v605_v1 = vld [vmem:[%s2888_s5 + $0x410] sm:$0xff] }
  0x34   : > { %540 = vst [vmem:[%s2893_s6 + $0x100] sm:$0xff] %v539_v32  ;;  %v607_v2 = vld [vmem:[%s2888_s5 + $0x420] sm:$0xff]  ;;  %v609_v3 = vld [vmem:[%s2888_s5 + $0x430] sm:$0xff] }
  0x35   : > { %542 = vst [vmem:[%s2893_s6 + $0x108] sm:$0xff] %v541_v33  ;;  %v611_v4 = vld [vmem:[%s2888_s5 + $0x440] sm:$0xff]  ;;  %v613_v5 = vld [vmem:[%s2888_s5 + $0x450] sm:$0xff] }
  0x36   : > { %544 = vst [vmem:[%s2893_s6 + $0x110] sm:$0xff] %v543_v34  ;;  %v615_v6 = vld [vmem:[%s2888_s5 + $0x460] sm:$0xff]  ;;  %v617_v7 = vld [vmem:[%s2888_s5 + $0x470] sm:$0xff] }
  0x37   : > { %546 = vst [vmem:[%s2893_s6 + $0x118] sm:$0xff] %v545_v35  ;;  %v619_v8 = vld [vmem:[%s2888_s5 + $0x480] sm:$0xff]  ;;  %v621_v9 = vld [vmem:[%s2888_s5 + $0x490] sm:$0xff] }
  0x38   : > { %548 = vst [vmem:[%s2893_s6 + $0x120] sm:$0xff] %v547_v36  ;;  %v623_v10 = vld [vmem:[%s2888_s5 + $0x4a0] sm:$0xff]  ;;  %v625_v11 = vld [vmem:[%s2888_s5 + $0x4b0] sm:$0xff] }
  0x39   : > { %550 = vst [vmem:[%s2893_s6 + $0x128] sm:$0xff] %v549_v37  ;;  %v627_v12 = vld [vmem:[%s2888_s5 + $0x4c0] sm:$0xff]  ;;  %v629_v13 = vld [vmem:[%s2888_s5 + $0x4d0] sm:$0xff] }
  0x3a   : > { %552 = vst [vmem:[%s2893_s6 + $0x130] sm:$0xff] %v551_v38  ;;  %v631_v14 = vld [vmem:[%s2888_s5 + $0x4e0] sm:$0xff]  ;;  %v633_v15 = vld [vmem:[%s2888_s5 + $0x4f0] sm:$0xff] }
  0x3b   : > { %554 = vst [vmem:[%s2893_s6 + $0x138] sm:$0xff] %v553_v39  ;;  %v635_v16 = vld [vmem:[%s2888_s5 + $0x500] sm:$0xff]  ;;  %v637_v17 = vld [vmem:[%s2888_s5 + $0x510] sm:$0xff] }
  0x3c   : > { %556 = vst [vmem:[%s2893_s6 + $0x140] sm:$0xff] %v555_v40  ;;  %v639_v18 = vld [vmem:[%s2888_s5 + $0x520] sm:$0xff]  ;;  %v641_v19 = vld [vmem:[%s2888_s5 + $0x530] sm:$0xff] }
  0x3d   : > { %558 = vst [vmem:[%s2893_s6 + $0x148] sm:$0xff] %v557_v41  ;;  %v643_v20 = vld [vmem:[%s2888_s5 + $0x540] sm:$0xff]  ;;  %v645_v21 = vld [vmem:[%s2888_s5 + $0x550] sm:$0xff] }
  0x3e   : > { %560 = vst [vmem:[%s2893_s6 + $0x150] sm:$0xff] %v559_v42  ;;  %v647_v22 = vld [vmem:[%s2888_s5 + $0x560] sm:$0xff]  ;;  %v649_v23 = vld [vmem:[%s2888_s5 + $0x570] sm:$0xff] }
  0x3f   : > { %562 = vst [vmem:[%s2893_s6 + $0x158] sm:$0xff] %v561_v43  ;;  %v651_v24 = vld [vmem:[%s2888_s5 + $0x580] sm:$0xff]  ;;  %v653_v25 = vld [vmem:[%s2888_s5 + $0x590] sm:$0xff] }
  0x40   : > { %564 = vst [vmem:[%s2893_s6 + $0x160] sm:$0xff] %v563_v44  ;;  %v655_v26 = vld [vmem:[%s2888_s5 + $0x5a0] sm:$0xff]  ;;  %v657_v27 = vld [vmem:[%s2888_s5 + $0x5b0] sm:$0xff] }
  0x41   : > { %566 = vst [vmem:[%s2893_s6 + $0x168] sm:$0xff] %v565_v45  ;;  %v659_v28 = vld [vmem:[%s2888_s5 + $0x5c0] sm:$0xff]  ;;  %v661_v29 = vld [vmem:[%s2888_s5 + $0x5d0] sm:$0xff] }
  0x42   : > { %568 = vst [vmem:[%s2893_s6 + $0x170] sm:$0xff] %v567_v46  ;;  %v663_v30 = vld [vmem:[%s2888_s5 + $0x5e0] sm:$0xff]  ;;  %v665_v31 = vld [vmem:[%s2888_s5 + $0x5f0] sm:$0xff] }
  0x43   : > { %570 = vst [vmem:[%s2893_s6 + $0x178] sm:$0xff] %v569_v47  ;;  %v667_v32 = vld [vmem:[%s2888_s5 + $0x600] sm:$0xff]  ;;  %v669_v33 = vld [vmem:[%s2888_s5 + $0x610] sm:$0xff] }
  0x44   : > { %572 = vst [vmem:[%s2893_s6 + $0x180] sm:$0xff] %v571_v48  ;;  %v671_v34 = vld [vmem:[%s2888_s5 + $0x620] sm:$0xff]  ;;  %v673_v35 = vld [vmem:[%s2888_s5 + $0x630] sm:$0xff] }
  0x45   : > { %574 = vst [vmem:[%s2893_s6 + $0x188] sm:$0xff] %v573_v49  ;;  %v675_v36 = vld [vmem:[%s2888_s5 + $0x640] sm:$0xff]  ;;  %v677_v37 = vld [vmem:[%s2888_s5 + $0x650] sm:$0xff] }
  0x46   : > { %576 = vst [vmem:[%s2893_s6 + $0x190] sm:$0xff] %v575_v50  ;;  %v679_v38 = vld [vmem:[%s2888_s5 + $0x660] sm:$0xff]  ;;  %v681_v39 = vld [vmem:[%s2888_s5 + $0x670] sm:$0xff] }
  0x47   : > { %578 = vst [vmem:[%s2893_s6 + $0x198] sm:$0xff] %v577_v51  ;;  %v683_v40 = vld [vmem:[%s2888_s5 + $0x680] sm:$0xff]  ;;  %v685_v41 = vld [vmem:[%s2888_s5 + $0x690] sm:$0xff] }
  0x48   : > { %580 = vst [vmem:[%s2893_s6 + $0x1a0] sm:$0xff] %v579_v52  ;;  %v687_v42 = vld [vmem:[%s2888_s5 + $0x6a0] sm:$0xff]  ;;  %v689_v43 = vld [vmem:[%s2888_s5 + $0x6b0] sm:$0xff] }
  0x49   : > { %582 = vst [vmem:[%s2893_s6 + $0x1a8] sm:$0xff] %v581_v53  ;;  %v691_v44 = vld [vmem:[%s2888_s5 + $0x6c0] sm:$0xff]  ;;  %v693_v45 = vld [vmem:[%s2888_s5 + $0x6d0] sm:$0xff] }
  0x4a   : > { %584 = vst [vmem:[%s2893_s6 + $0x1b0] sm:$0xff] %v583_v54  ;;  %v695_v46 = vld [vmem:[%s2888_s5 + $0x6e0] sm:$0xff]  ;;  %v697_v47 = vld [vmem:[%s2888_s5 + $0x6f0] sm:$0xff] }
  0x4b   : > { %586 = vst [vmem:[%s2893_s6 + $0x1b8] sm:$0xff] %v585_v55  ;;  %v699_v48 = vld [vmem:[%s2888_s5 + $0x700] sm:$0xff]  ;;  %v701_v49 = vld [vmem:[%s2888_s5 + $0x710] sm:$0xff] }
  0x4c   : > { %588 = vst [vmem:[%s2893_s6 + $0x1c0] sm:$0xff] %v587_v56  ;;  %v703_v50 = vld [vmem:[%s2888_s5 + $0x720] sm:$0xff]  ;;  %v705_v51 = vld [vmem:[%s2888_s5 + $0x730] sm:$0xff] }
  0x4d   : > { %590 = vst [vmem:[%s2893_s6 + $0x1c8] sm:$0xff] %v589_v57  ;;  %v707_v52 = vld [vmem:[%s2888_s5 + $0x740] sm:$0xff]  ;;  %v709_v53 = vld [vmem:[%s2888_s5 + $0x750] sm:$0xff] }
  0x4e   : > { %592 = vst [vmem:[%s2893_s6 + $0x1d0] sm:$0xff] %v591_v58  ;;  %v711_v54 = vld [vmem:[%s2888_s5 + $0x760] sm:$0xff]  ;;  %v713_v55 = vld [vmem:[%s2888_s5 + $0x770] sm:$0xff] }
  0x4f   : > { %594 = vst [vmem:[%s2893_s6 + $0x1d8] sm:$0xff] %v593_v59  ;;  %v715_v56 = vld [vmem:[%s2888_s5 + $0x780] sm:$0xff]  ;;  %v717_v57 = vld [vmem:[%s2888_s5 + $0x790] sm:$0xff] }
  0x50   : > { %596 = vst [vmem:[%s2893_s6 + $0x1e0] sm:$0xff] %v595_v60  ;;  %v719_v58 = vld [vmem:[%s2888_s5 + $0x7a0] sm:$0xff]  ;;  %v721_v59 = vld [vmem:[%s2888_s5 + $0x7b0] sm:$0xff] }
  0x51   : > { %598 = vst [vmem:[%s2893_s6 + $0x1e8] sm:$0xff] %v597_v61  ;;  %v723_v60 = vld [vmem:[%s2888_s5 + $0x7c0] sm:$0xff]  ;;  %v725_v61 = vld [vmem:[%s2888_s5 + $0x7d0] sm:$0xff] }
  0x52   : > { %600 = vst [vmem:[%s2893_s6 + $0x1f0] sm:$0xff] %v599_v62  ;;  %v727_v62 = vld [vmem:[%s2888_s5 + $0x7e0] sm:$0xff] }
  0x53   : > { %602 = vst [vmem:[%s2893_s6 + $0x1f8] sm:$0xff] %v601_v63  ;;  %v729_v63 = vld [vmem:[%s2888_s5 + $0x7f0] sm:$0xff] }
  0x54   : > { %604 = vst [vmem:[%s2893_s6 + $0x200] sm:$0xff] %v603_v0 }
  0x55   : > { %606 = vst [vmem:[%s2893_s6 + $0x208] sm:$0xff] %v605_v1 }
  0x56   : > { %608 = vst [vmem:[%s2893_s6 + $0x210] sm:$0xff] %v607_v2 }
  0x57   : > { %610 = vst [vmem:[%s2893_s6 + $0x218] sm:$0xff] %v609_v3 }
  0x58   : > { %612 = vst [vmem:[%s2893_s6 + $0x220] sm:$0xff] %v611_v4 }
  0x59   : > { %614 = vst [vmem:[%s2893_s6 + $0x228] sm:$0xff] %v613_v5 }
  0x5a   : > { %616 = vst [vmem:[%s2893_s6 + $0x230] sm:$0xff] %v615_v6 }
  0x5b   : > { %618 = vst [vmem:[%s2893_s6 + $0x238] sm:$0xff] %v617_v7 }
  0x5c   : > { %620 = vst [vmem:[%s2893_s6 + $0x240] sm:$0xff] %v619_v8 }
  0x5d   : > { %622 = vst [vmem:[%s2893_s6 + $0x248] sm:$0xff] %v621_v9 }
  0x5e   : > { %624 = vst [vmem:[%s2893_s6 + $0x250] sm:$0xff] %v623_v10 }
  0x5f   : > { %626 = vst [vmem:[%s2893_s6 + $0x258] sm:$0xff] %v625_v11 }
  0x60   : > { %628 = vst [vmem:[%s2893_s6 + $0x260] sm:$0xff] %v627_v12 }
  0x61   : > { %630 = vst [vmem:[%s2893_s6 + $0x268] sm:$0xff] %v629_v13 }
  0x62   : > { %632 = vst [vmem:[%s2893_s6 + $0x270] sm:$0xff] %v631_v14 }
  0x63   : > { %634 = vst [vmem:[%s2893_s6 + $0x278] sm:$0xff] %v633_v15 }
  0x64   : > { %636 = vst [vmem:[%s2893_s6 + $0x280] sm:$0xff] %v635_v16 }
  0x65   : > { %638 = vst [vmem:[%s2893_s6 + $0x288] sm:$0xff] %v637_v17 }
  0x66   : > { %640 = vst [vmem:[%s2893_s6 + $0x290] sm:$0xff] %v639_v18 }
  0x67   : > { %642 = vst [vmem:[%s2893_s6 + $0x298] sm:$0xff] %v641_v19 }
  0x68   : > { %644 = vst [vmem:[%s2893_s6 + $0x2a0] sm:$0xff] %v643_v20 }
  0x69   : > { %646 = vst [vmem:[%s2893_s6 + $0x2a8] sm:$0xff] %v645_v21 }
  0x6a   : > { %648 = vst [vmem:[%s2893_s6 + $0x2b0] sm:$0xff] %v647_v22 }
  0x6b   : > { %650 = vst [vmem:[%s2893_s6 + $0x2b8] sm:$0xff] %v649_v23 }
  0x6c   : > { %652 = vst [vmem:[%s2893_s6 + $0x2c0] sm:$0xff] %v651_v24 }
  0x6d   : > { %654 = vst [vmem:[%s2893_s6 + $0x2c8] sm:$0xff] %v653_v25 }
  0x6e   : > { %656 = vst [vmem:[%s2893_s6 + $0x2d0] sm:$0xff] %v655_v26 }
  0x6f   : > { %658 = vst [vmem:[%s2893_s6 + $0x2d8] sm:$0xff] %v657_v27 }
  0x70   : > { %660 = vst [vmem:[%s2893_s6 + $0x2e0] sm:$0xff] %v659_v28 }
  0x71   : > { %662 = vst [vmem:[%s2893_s6 + $0x2e8] sm:$0xff] %v661_v29 }
  0x72   : > { %664 = vst [vmem:[%s2893_s6 + $0x2f0] sm:$0xff] %v663_v30 }
  0x73   : > { %666 = vst [vmem:[%s2893_s6 + $0x2f8] sm:$0xff] %v665_v31 }
  0x74   : > { %668 = vst [vmem:[%s2893_s6 + $0x300] sm:$0xff] %v667_v32 }
  0x75   : > { %670 = vst [vmem:[%s2893_s6 + $0x308] sm:$0xff] %v669_v33 }
  0x76   : > { %672 = vst [vmem:[%s2893_s6 + $0x310] sm:$0xff] %v671_v34 }
  0x77   : > { %674 = vst [vmem:[%s2893_s6 + $0x318] sm:$0xff] %v673_v35 }
  0x78   : > { %676 = vst [vmem:[%s2893_s6 + $0x320] sm:$0xff] %v675_v36 }
  0x79   : > { %678 = vst [vmem:[%s2893_s6 + $0x328] sm:$0xff] %v677_v37 }
  0x7a   : > { %680 = vst [vmem:[%s2893_s6 + $0x330] sm:$0xff] %v679_v38 }
  0x7b   : > { %682 = vst [vmem:[%s2893_s6 + $0x338] sm:$0xff] %v681_v39 }
  0x7c   : > { %684 = vst [vmem:[%s2893_s6 + $0x340] sm:$0xff] %v683_v40 }
  0x7d   : > { %686 = vst [vmem:[%s2893_s6 + $0x348] sm:$0xff] %v685_v41 }
  0x7e   : > { %688 = vst [vmem:[%s2893_s6 + $0x350] sm:$0xff] %v687_v42 }
  0x7f   : > { %690 = vst [vmem:[%s2893_s6 + $0x358] sm:$0xff] %v689_v43 }
  0x80   : > { %692 = vst [vmem:[%s2893_s6 + $0x360] sm:$0xff] %v691_v44 }
  0x81   : > { %694 = vst [vmem:[%s2893_s6 + $0x368] sm:$0xff] %v693_v45 }
  0x82   : > { %696 = vst [vmem:[%s2893_s6 + $0x370] sm:$0xff] %v695_v46 }
  0x83   : > { %698 = vst [vmem:[%s2893_s6 + $0x378] sm:$0xff] %v697_v47 }
  0x84   : > { %700 = vst [vmem:[%s2893_s6 + $0x380] sm:$0xff] %v699_v48 }
  0x85   : > { %702 = vst [vmem:[%s2893_s6 + $0x388] sm:$0xff] %v701_v49 }
  0x86   : > { %704 = vst [vmem:[%s2893_s6 + $0x390] sm:$0xff] %v703_v50 }
  0x87   : > { %706 = vst [vmem:[%s2893_s6 + $0x398] sm:$0xff] %v705_v51 }
  0x88   : > { %708 = vst [vmem:[%s2893_s6 + $0x3a0] sm:$0xff] %v707_v52 }
  0x89   : > { %710 = vst [vmem:[%s2893_s6 + $0x3a8] sm:$0xff] %v709_v53 }
  0x8a   : > { %712 = vst [vmem:[%s2893_s6 + $0x3b0] sm:$0xff] %v711_v54 }
  0x8b   : > { %714 = vst [vmem:[%s2893_s6 + $0x3b8] sm:$0xff] %v713_v55 }
  0x8c   : > { %716 = vst [vmem:[%s2893_s6 + $0x3c0] sm:$0xff] %v715_v56 }
  0x8d   : > { %718 = vst [vmem:[%s2893_s6 + $0x3c8] sm:$0xff] %v717_v57 }
  0x8e   : > { %720 = vst [vmem:[%s2893_s6 + $0x3d0] sm:$0xff] %v719_v58 }
  0x8f   : > { %722 = vst [vmem:[%s2893_s6 + $0x3d8] sm:$0xff] %v721_v59 }
  0x90   : > { %724 = vst [vmem:[%s2893_s6 + $0x3e0] sm:$0xff] %v723_v60 }
  0x91   : > { %726 = vst [vmem:[%s2893_s6 + $0x3e8] sm:$0xff] %v725_v61 }
  0x92   : > { %728 = vst [vmem:[%s2893_s6 + $0x3f0] sm:$0xff] %v727_v62 }
  0x93   : > { %730 = vst [vmem:[%s2893_s6 + $0x3f8] sm:$0xff] %v729_v63 }
  0x94 PF: > { %p2043_p8 = scmp.ge.s32.totalorder %s2813_s19, 1  ;;  %p751_p9 = scmp.lt.s32.totalorder %s2813_s19, 3 }
  0x96   : > { %p752_p10 = pnand %p2043_p8, %p751_p9 }
  0x97   : > { %s758_s7 = sand.u32 (!%p752_p10), 1, %s2797_s15  }
  0x98   : > { %755 = sbr.rel (%p752_p10) target bundleno = 450 (0x1c2), region = 70  ;;  %s2044_s8 = sshll.u32 (!%p752_p10), %s758_s7, 10 }
  0x99   : > { %s3153_s9 = scalar_lea.vmem (!%p752_p10), [#allocation2], %s2044_s8  ;;  %s2045_s22 = sshll.u32 (!%p752_p10), %s758_s7, 4 }
  0x9a   : > { %s795_s23 = scalar_lea.vmem (!%p752_p10), [#allocation3], %s2045_s22 }
  0x9d   : > { %v2138_v0 = vld [vmem:[%s3153_s9 + $0x70] sm:$0xf]  ;;  %v2621_v1 = vld [vmem:[%s3153_s9 + $0x74] sm:$0xf0]  ;;  %v2130_v11 = vld [vmem:[%s3153_s9 + $0x60] sm:$0xf] }
  0x9e   : > { %v2202_v2 = vld [vmem:[%s3153_s9 + $0xf0] sm:$0xf]  ;;  %v2139_v3 = vor.u32 %v2621_v1, %v2138_v0  ;;  %v2637_v4 = vld [vmem:[%s3153_s9 + $0xf4] sm:$0xf0]  ;;  %v2619_v13 = vld [vmem:[%s3153_s9 + $0x64] sm:$0xf0] }
  0x9f   : > { %v2266_v5 = vld [vmem:[%s3153_s9 + $0x170] sm:$0xf]  ;;  %v2653_v6 = vld [vmem:[%s3153_s9 + $0x174] sm:$0xf0]  ;;  %v2203_v7 = vor.u32 %v2637_v4, %v2202_v2  ;;  %v2194_v14 = vld [vmem:[%s3153_s9 + $0xe0] sm:$0xf]  ;;  %v2131_v16 = vor.u32 %v2619_v13, %v2130_v11 }
  0xa0   : > { %v2267_v8 = vor.u32 %v2653_v6, %v2266_v5  ;;  %v2330_v9 = vld [vmem:[%s3153_s9 + $0x1f0] sm:$0xf]  ;;  %v2669_v10 = vld [vmem:[%s3153_s9 + $0x1f4] sm:$0xf0]  ;;  %1632 = vmatpush.bf16.msra.mxu0 %v2139_v3  ;;  %v2635_v15 = vld [vmem:[%s3153_s9 + $0xe4] sm:$0xf0] }
  0xa1   : > { %v2331_v12 = vor.u32 %v2669_v10, %v2330_v9  ;;  %1646 = vmatpush.bf16.msra.mxu1 %v2203_v7  ;;  %v2195_v17 = vor.u32 %v2635_v15, %v2194_v14  ;;  %v2258_v18 = vld [vmem:[%s3153_s9 + $0x160] sm:$0xf]  ;;  %v2651_v19 = vld [vmem:[%s3153_s9 + $0x164] sm:$0xf0]  ;;  %v2122_v23 = vld [vmem:[%s3153_s9 + $0x50] sm:$0xf] }
  0xa2   : > { %1660 = vmatpush.bf16.msra.mxu2 %v2267_v8  ;;  %v2322_v20 = vld [vmem:[%s3153_s9 + $0x1e0] sm:$0xf]  ;;  %v2259_v21 = vor.u32 %v2651_v19, %v2258_v18  ;;  %v2667_v22 = vld [vmem:[%s3153_s9 + $0x1e4] sm:$0xf0]  ;;  %v2617_v24 = vld [vmem:[%s3153_s9 + $0x54] sm:$0xf0] }
  0xa3   : > { %1674 = vmatpush.bf16.msra.mxu3 %v2331_v12  ;;  %v2323_v25 = vor.u32 %v2667_v22, %v2322_v20  ;;  %v2186_v26 = vld [vmem:[%s3153_s9 + $0xd0] sm:$0xf]  ;;  %v2633_v27 = vld [vmem:[%s3153_s9 + $0xd4] sm:$0xf0]  ;;  %v2123_v29 = vor.u32 %v2617_v24, %v2122_v23  ;;  %v2114_v35 = vld [vmem:[%s3153_s9 + $0x40] sm:$0xf] }
  0xa4   : > { %v2250_v28 = vld [vmem:[%s3153_s9 + $0x150] sm:$0xf]  ;;  %1633 = vmatpush.bf16.msra.mxu0 %v2131_v16  ;;  %v2649_v30 = vld [vmem:[%s3153_s9 + $0x154] sm:$0xf0]  ;;  %v2187_v33 = vor.u32 %v2633_v27, %v2186_v26  ;;  %v2615_v36 = vld [vmem:[%s3153_s9 + $0x44] sm:$0xf0] }
  0xa5   : > { %v2314_v31 = vld [vmem:[%s3153_s9 + $0x1d0] sm:$0xf]  ;;  %v2665_v32 = vld [vmem:[%s3153_s9 + $0x1d4] sm:$0xf0]  ;;  %1647 = vmatpush.bf16.msra.mxu1 %v2195_v17  ;;  %v2251_v34 = vor.u32 %v2649_v30, %v2250_v28  ;;  %v2178_v37 = vld [vmem:[%s3153_s9 + $0xc0] sm:$0xf]  ;;  %v2115_v44 = vor.u32 %v2615_v36, %v2114_v35 }
  0xa6   : > { %1661 = vmatpush.bf16.msra.mxu2 %v2259_v21  ;;  %v2315_v38 = vor.u32 %v2665_v32, %v2314_v31  ;;  %v2631_v39 = vld [vmem:[%s3153_s9 + $0xc4] sm:$0xf0]  ;;  %v2242_v40 = vld [vmem:[%s3153_s9 + $0x140] sm:$0xf]  ;;  %v2106_v47 = vld [vmem:[%s3153_s9 + $0x30] sm:$0xf] }
  0xa7   : > { %1675 = vmatpush.bf16.msra.mxu3 %v2323_v25  ;;  %v2647_v41 = vld [vmem:[%s3153_s9 + $0x144] sm:$0xf0]  ;;  %v2306_v42 = vld [vmem:[%s3153_s9 + $0x1c0] sm:$0xf]  ;;  %v2179_v45 = vor.u32 %v2631_v39, %v2178_v37  ;;  %v2613_v48 = vld [vmem:[%s3153_s9 + $0x34] sm:$0xf0] }
  0xa8   : > { %v2663_v43 = vld [vmem:[%s3153_s9 + $0x1c4] sm:$0xf0]  ;;  %1634 = vmatpush.bf16.msra.mxu0 %v2123_v29  ;;  %v2243_v46 = vor.u32 %v2647_v41, %v2242_v40  ;;  %v2170_v49 = vld [vmem:[%s3153_s9 + $0xb0] sm:$0xf]  ;;  %v2629_v51 = vld [vmem:[%s3153_s9 + $0xb4] sm:$0xf0]  ;;  %v2107_v56 = vor.u32 %v2613_v48, %v2106_v47 }
  0xa9   : > { %1648 = vmatpush.bf16.msra.mxu1 %v2187_v33  ;;  %v2307_v50 = vor.u32 %v2663_v43, %v2306_v42  ;;  %v2234_v52 = vld [vmem:[%s3153_s9 + $0x130] sm:$0xf]  ;;  %v2645_v53 = vld [vmem:[%s3153_s9 + $0x134] sm:$0xf0]  ;;  %v2171_v57 = vor.u32 %v2629_v51, %v2170_v49  ;;  %v2098_v59 = vld [vmem:[%s3153_s9 + $0x20] sm:$0xf] }
  0xaa   : > { %1662 = vmatpush.bf16.msra.mxu2 %v2251_v34  ;;  %v2298_v54 = vld [vmem:[%s3153_s9 + $0x1b0] sm:$0xf]  ;;  %v2661_v55 = vld [vmem:[%s3153_s9 + $0x1b4] sm:$0xf0]  ;;  %v2235_v58 = vor.u32 %v2645_v53, %v2234_v52  ;;  %v2611_v60 = vld [vmem:[%s3153_s9 + $0x24] sm:$0xf0] }
  0xab   : > { %1676 = vmatpush.bf16.msra.mxu3 %v2315_v38  ;;  %v2162_v61 = vld [vmem:[%s3153_s9 + $0xa0] sm:$0xf]  ;;  %v2299_v62 = vor.u32 %v2661_v55, %v2298_v54  ;;  %v2627_v63 = vld [vmem:[%s3153_s9 + $0xa4] sm:$0xf0]  ;;  %v2099_v4 = vor.u32 %v2611_v60, %v2098_v59  ;;  %v2090_v7 = vld [vmem:[%s3153_s9 + $0x10] sm:$0xf] }
  0xac   : > { %1635 = vmatpush.bf16.msra.mxu0 %v2115_v44  ;;  %v2226_v0 = vld [vmem:[%s3153_s9 + $0x120] sm:$0xf]  ;;  %v2643_v1 = vld [vmem:[%s3153_s9 + $0x124] sm:$0xf0]  ;;  %v2163_v5 = vor.u32 %v2627_v63, %v2162_v61  ;;  %v2609_v8 = vld [vmem:[%s3153_s9 + $0x14] sm:$0xf0] }
  0xad   : > { %1649 = vmatpush.bf16.msra.mxu1 %v2179_v45  ;;  %v2290_v2 = vld [vmem:[%s3153_s9 + $0x1a0] sm:$0xf]  ;;  %v2659_v3 = vld [vmem:[%s3153_s9 + $0x1a4] sm:$0xf0]  ;;  %v2227_v6 = vor.u32 %v2643_v1, %v2226_v0  ;;  %v2154_v9 = vld [vmem:[%s3153_s9 + $0x90] sm:$0xf]  ;;  %v2091_v16 = vor.u32 %v2609_v8, %v2090_v7 }
  0xae   : > { %1663 = vmatpush.bf16.msra.mxu2 %v2243_v46  ;;  %v2291_v10 = vor.u32 %v2659_v3, %v2290_v2  ;;  %v2625_v11 = vld [vmem:[%s3153_s9 + $0x94] sm:$0xf0]  ;;  %v2218_v12 = vld [vmem:[%s3153_s9 + $0x110] sm:$0xf]  ;;  %v2082_v17 = vld [vmem:[%s3153_s9] sm:$0xf] }
  0xaf   : > { %1677 = vmatpush.bf16.msra.mxu3 %v2307_v50  ;;  %v2641_v13 = vld [vmem:[%s3153_s9 + $0x114] sm:$0xf0]  ;;  %v2282_v14 = vld [vmem:[%s3153_s9 + $0x190] sm:$0xf]  ;;  %v2607_v18 = vld [vmem:[%s3153_s9 + $0x4] sm:$0xf0]  ;;  %v2155_v19 = vor.u32 %v2625_v11, %v2154_v9 }
  0xb0   : > { %1636 = vmatpush.bf16.msra.mxu0 %v2107_v56  ;;  %v2657_v15 = vld [vmem:[%s3153_s9 + $0x194] sm:$0xf0]  ;;  %v2219_v20 = vor.u32 %v2641_v13, %v2218_v12  ;;  %v2146_v21 = vld [vmem:[%s3153_s9 + $0x80] sm:$0xf]  ;;  %v2623_v22 = vld [vmem:[%s3153_s9 + $0x84] sm:$0xf0]  ;;  %v2083_v31 = vor.u32 %v2607_v18, %v2082_v17 }
  0xb1   : > { %1650 = vmatpush.bf16.msra.mxu1 %v2171_v57  ;;  %v2210_v23 = vld [vmem:[%s3153_s9 + $0x100] sm:$0xf]  ;;  %v2283_v24 = vor.u32 %v2657_v15, %v2282_v14  ;;  %v2639_v25 = vld [vmem:[%s3153_s9 + $0x104] sm:$0xf0]  ;;  %v2394_v28 = vld [vmem:[%s3153_s9 + $0x270] sm:$0xf]  ;;  %v2147_v35 = vor.u32 %v2623_v22, %v2146_v21 }
  0xb2   : > { %1664 = vmatpush.bf16.msra.mxu2 %v2235_v58  ;;  %v2274_v26 = vld [vmem:[%s3153_s9 + $0x180] sm:$0xf]  ;;  %v2655_v27 = vld [vmem:[%s3153_s9 + $0x184] sm:$0xf0]  ;;  %v2685_v29 = vld [vmem:[%s3153_s9 + $0x274] sm:$0xf0]  ;;  %v2211_v36 = vor.u32 %v2639_v25, %v2210_v23 }
  0xb3   : > { %1678 = vmatpush.bf16.msra.mxu3 %v2299_v62  ;;  %v2458_v30 = vld [vmem:[%s3153_s9 + $0x2f0] sm:$0xf]  ;;  %v2701_v32 = vld [vmem:[%s3153_s9 + $0x2f4] sm:$0xf0]  ;;  %v2275_v39 = vor.u32 %v2655_v27, %v2274_v26  ;;  %v2395_v40 = vor.u32 %v2685_v29, %v2394_v28  ;;  %v2386_v41 = vld [vmem:[%s3153_s9 + $0x260] sm:$0xf] }
  0xb4   : > { %1637 = vmatpush.bf16.msra.mxu0 %v2099_v4  ;;  %v2522_v33 = vld [vmem:[%s3153_s9 + $0x370] sm:$0xf]  ;;  %v2717_v34 = vld [vmem:[%s3153_s9 + $0x374] sm:$0xf0]  ;;  %v2683_v42 = vld [vmem:[%s3153_s9 + $0x264] sm:$0xf0]  ;;  %v2459_v43 = vor.u32 %v2701_v32, %v2458_v30 }
  0xb5   : > { %1651 = vmatpush.bf16.msra.mxu1 %v2163_v5  ;;  %v2586_v37 = vld [vmem:[%s3153_s9 + $0x3f0] sm:$0xf]  ;;  %v2733_v38 = vld [vmem:[%s3153_s9 + $0x3f4] sm:$0xf0]  ;;  %v2523_v44 = vor.u32 %v2717_v34, %v2522_v33  ;;  %v2450_v45 = vld [vmem:[%s3153_s9 + $0x2e0] sm:$0xf]  ;;  %v2387_v55 = vor.u32 %v2683_v42, %v2386_v41 }
  0xb6   : > { %1665 = vmatpush.bf16.msra.mxu2 %v2227_v6  ;;  %v2699_v46 = vld [vmem:[%s3153_s9 + $0x2e4] sm:$0xf0]  ;;  %v2514_v47 = vld [vmem:[%s3153_s9 + $0x360] sm:$0xf]  ;;  %v2587_v48 = vor.u32 %v2733_v38, %v2586_v37  ;;  %v2378_v56 = vld [vmem:[%s3153_s9 + $0x250] sm:$0xf] }
  0xb7   : > { %1679 = vmatpush.bf16.msra.mxu3 %v2291_v10  ;;  %v2715_v49 = vld [vmem:[%s3153_s9 + $0x364] sm:$0xf0]  ;;  %v2578_v50 = vld [vmem:[%s3153_s9 + $0x3e0] sm:$0xf]  ;;  %v2681_v57 = vld [vmem:[%s3153_s9 + $0x254] sm:$0xf0]  ;;  %v2451_v60 = vor.u32 %v2699_v46, %v2450_v45 }
  0xb8   : > { %1638 = vmatpush.bf16.msra.mxu0 %v2091_v16  ;;  %v2731_v51 = vld [vmem:[%s3153_s9 + $0x3e4] sm:$0xf0]  ;;  %v2050_v52 = vld [vmem:[%s3521_s0] sm:$0xf]  ;;  %v2515_v61 = vor.u32 %v2715_v49, %v2514_v47  ;;  %v2442_v62 = vld [vmem:[%s3153_s9 + $0x2d0] sm:$0xf]  ;;  %v2379_v9 = vor.u32 %v2681_v57, %v2378_v56 }
  0xb9   : > { %1652 = vmatpush.bf16.msra.mxu1 %v2155_v19  ;;  %v2602_v53 = vld [vmem:[%s3521_s0 + $0x1c] sm:$0xf0]  ;;  %v2058_v54 = vld [vmem:[%s3521_s0 + $0x8] sm:$0xf]  ;;  %v2697_v63 = vld [vmem:[%s3153_s9 + $0x2d4] sm:$0xf0]  ;;  %v2579_v2 = vor.u32 %v2731_v51, %v2578_v50 }
  0xba   : > { %1666 = vmatpush.bf16.msra.mxu2 %v2219_v20  ;;  %v3246_v58 = vor.u32 %v2602_v53, %v2050_v52  ;;  %v2603_v59 = vld [vmem:[%s3521_s0 + $0x24] sm:$0xf0]  ;;  %v2506_v0 = vld [vmem:[%s3153_s9 + $0x350] sm:$0xf]  ;;  %v2713_v3 = vld [vmem:[%s3153_s9 + $0x354] sm:$0xf0]  ;;  %v2443_v12 = vor.u32 %v2697_v63, %v2442_v62 }
  0xbb   : > { %1680 = vmatpush.bf16.msra.mxu3 %v2283_v24  ;;  %v3254_v1 = vor.u32 %v2603_v59, %v2058_v54  ;;  %v2570_v4 = vld [vmem:[%s3153_s9 + $0x3d0] sm:$0xf]  ;;  %v2729_v5 = vld [vmem:[%s3153_s9 + $0x3d4] sm:$0xf0]  ;;  %v2598_v6 = vld [vmem:[%s3521_s0 + $0x4] sm:$0xf]  ;;  %v2507_v13 = vor.u32 %v2713_v3, %v2506_v0 }
  0xbc   : > { %1639 = vmatpush.bf16.msra.mxu0 %v2083_v31  ;;  %v2052_v7 = vld [vmem:[%s3521_s0 + $0x20] sm:$0xf0]  ;;  %v2599_v8 = vld [vmem:[%s3521_s0 + $0xc] sm:$0xf]  ;;  %v2370_v14 = vld [vmem:[%s3153_s9 + $0x240] sm:$0xf]  ;;  %v2571_v18 = vor.u32 %v2729_v5, %v2570_v4 }
  0xbd   : > { %1653 = vmatpush.bf16.msra.mxu1 %v2147_v35  ;;  %v3270_v10 = vor.u32 %v2598_v6, %v2052_v7  ;;  %v2060_v11 = vld [vmem:[%s3521_s0 + $0x28] sm:$0xf0]  ;;  %v2679_v15 = vld [vmem:[%s3153_s9 + $0x244] sm:$0xf0]  ;;  %v2434_v16 = vld [vmem:[%s3153_s9 + $0x2c0] sm:$0xf] }
  0xbe   : > { %1667 = vmatpush.bf16.msra.mxu2 %v2211_v36  ;;  %v3278_v17 = vor.u32 %v2599_v8, %v2060_v11  ;;  %v2695_v19 = vld [vmem:[%s3153_s9 + $0x2c4] sm:$0xf0]  ;;  %v2498_v20 = vld [vmem:[%s3153_s9 + $0x340] sm:$0xf]  ;;  %v2371_v24 = vor.u32 %v2679_v15, %v2370_v14  ;;  %v2362_v27 = vld [vmem:[%s3153_s9 + $0x230] sm:$0xf] }
  0xbf   : > { %1681 = vmatpush.bf16.msra.mxu3 %v2275_v39  ;;  %1640 = vmatmul.bf16.vlgmr.msra.gmra.mxu0 %v3246_v58  ;;  %v2711_v21 = vld [vmem:[%s3153_s9 + $0x344] sm:$0xf0]  ;;  %v2562_v22 = vld [vmem:[%s3153_s9 + $0x3c0] sm:$0xf]  ;;  %v2435_v25 = vor.u32 %v2695_v19, %v2434_v16  ;;  %v2677_v28 = vld [vmem:[%s3153_s9 + $0x234] sm:$0xf0] }
  0xc0   : > { %1688 = vmatpush.bf16.msrb.mxu0 %v2395_v40  ;;  %1654 = vmatmul.bf16.vlgmr.msra.gmra.mxu1 %v3270_v10  ;;  %v2727_v23 = vld [vmem:[%s3153_s9 + $0x3c4] sm:$0xf0]  ;;  %v2499_v26 = vor.u32 %v2711_v21, %v2498_v20  ;;  %v2426_v29 = vld [vmem:[%s3153_s9 + $0x2b0] sm:$0xf]  ;;  %v2693_v31 = vld [vmem:[%s3153_s9 + $0x2b4] sm:$0xf0]  ;;  %v2363_v36 = vor.u32 %v2677_v28, %v2362_v27 }
  0xc1   : > { %1702 = vmatpush.bf16.msrb.mxu1 %v2459_v43  ;;  %1668 = vmatmul.bf16.vlgmr.msra.gmra.mxu2 %v3254_v1  ;;  %v2563_v30 = vor.u32 %v2727_v23, %v2562_v22  ;;  %v2490_v32 = vld [vmem:[%s3153_s9 + $0x330] sm:$0xf]  ;;  %v2709_v33 = vld [vmem:[%s3153_s9 + $0x334] sm:$0xf0]  ;;  %v2427_v37 = vor.u32 %v2693_v31, %v2426_v29  ;;  %v2354_v39 = vld [vmem:[%s3153_s9 + $0x220] sm:$0xf] }
  0xc2   : > { %1716 = vmatpush.bf16.msrb.mxu2 %v2523_v44  ;;  %1682 = vmatmul.bf16.vlgmr.msra.gmra.mxu3 %v3278_v17  ;;  %v2554_v34 = vld [vmem:[%s3153_s9 + $0x3b0] sm:$0xf]  ;;  %v2725_v35 = vld [vmem:[%s3153_s9 + $0x3b4] sm:$0xf0]  ;;  %v2491_v38 = vor.u32 %v2709_v33, %v2490_v32  ;;  %v2675_v40 = vld [vmem:[%s3153_s9 + $0x224] sm:$0xf0] }
  0xc3   : > { %1730 = vmatpush.bf16.msrb.mxu3 %v2587_v48  ;;  %v2418_v41 = vld [vmem:[%s3153_s9 + $0x2a0] sm:$0xf]  ;;  %v2555_v42 = vor.u32 %v2725_v35, %v2554_v34  ;;  %v2691_v43 = vld [vmem:[%s3153_s9 + $0x2a4] sm:$0xf0]  ;;  %v2355_v48 = vor.u32 %v2675_v40, %v2354_v39  ;;  %v2346_v49 = vld [vmem:[%s3153_s9 + $0x210] sm:$0xf] }
  0xc4   : > { %1689 = vmatpush.bf16.msrb.mxu0 %v2387_v55  ;;  %v2482_v44 = vld [vmem:[%s3153_s9 + $0x320] sm:$0xf]  ;;  %v2707_v45 = vld [vmem:[%s3153_s9 + $0x324] sm:$0xf0]  ;;  %v2419_v50 = vor.u32 %v2691_v43, %v2418_v41  ;;  %v2673_v52 = vld [vmem:[%s3153_s9 + $0x214] sm:$0xf0] }
  0xc5   : > { %1703 = vmatpush.bf16.msrb.mxu1 %v2451_v60  ;;  %v2546_v46 = vld [vmem:[%s3153_s9 + $0x3a0] sm:$0xf]  ;;  %v2723_v47 = vld [vmem:[%s3153_s9 + $0x3a4] sm:$0xf0]  ;;  %v2483_v51 = vor.u32 %v2707_v45, %v2482_v44  ;;  %v2410_v53 = vld [vmem:[%s3153_s9 + $0x290] sm:$0xf]  ;;  %v2347_v63 = vor.u32 %v2673_v52, %v2346_v49 }
  0xc6   : > { %1717 = vmatpush.bf16.msrb.mxu2 %v2515_v61  ;;  %v2689_v54 = vld [vmem:[%s3153_s9 + $0x294] sm:$0xf0]  ;;  %v2547_v55 = vor.u32 %v2723_v47, %v2546_v46  ;;  %v2474_v56 = vld [vmem:[%s3153_s9 + $0x310] sm:$0xf]  ;;  %v2338_v61 = vld [vmem:[%s3153_s9 + $0x200] sm:$0xf] }
  0xc7   : > { %1731 = vmatpush.bf16.msrb.mxu3 %v2579_v2  ;;  %v2705_v57 = vld [vmem:[%s3153_s9 + $0x314] sm:$0xf0]  ;;  %v2538_v59 = vld [vmem:[%s3153_s9 + $0x390] sm:$0xf]  ;;  %v2671_v62 = vld [vmem:[%s3153_s9 + $0x204] sm:$0xf0]  ;;  %v2411_v5 = vor.u32 %v2689_v54, %v2410_v53 }
  0xc8   : > { %1690 = vmatpush.bf16.msrb.mxu0 %v2379_v9  ;;  %v2721_v60 = vld [vmem:[%s3153_s9 + $0x394] sm:$0xf0]  ;;  %v2402_v0 = vld [vmem:[%s3153_s9 + $0x280] sm:$0xf]  ;;  %v2687_v2 = vld [vmem:[%s3153_s9 + $0x284] sm:$0xf0]  ;;  %v2475_v6 = vor.u32 %v2705_v57, %v2474_v56  ;;  %v2339_v19 = vor.u32 %v2671_v62, %v2338_v61 }
  0xc9   : > { %1704 = vmatpush.bf16.msrb.mxu1 %v2443_v12  ;;  %v2466_v3 = vld [vmem:[%s3153_s9 + $0x300] sm:$0xf]  ;;  %v2703_v4 = vld [vmem:[%s3153_s9 + $0x304] sm:$0xf0]  ;;  %v2620_v9 = vld [vmem:[%s3153_s9 + $0x74] sm:$0xf]  ;;  %v2539_v11 = vor.u32 %v2721_v60, %v2538_v59  ;;  %v2403_v23 = vor.u32 %v2687_v2, %v2402_v0 }
  0xca   : > { %1718 = vmatpush.bf16.msrb.mxu2 %v2507_v13  ;;  %v2530_v7 = vld [vmem:[%s3153_s9 + $0x380] sm:$0xf]  ;;  %v2719_v8 = vld [vmem:[%s3153_s9 + $0x384] sm:$0xf0]  ;;  %v2140_v12 = vld [vmem:[%s3153_s9 + $0x78] sm:$0xf0] }
  0xcb   : > { %1732 = vmatpush.bf16.msrb.mxu3 %v2571_v18  ;;  %v2636_v13 = vld [vmem:[%s3153_s9 + $0xf4] sm:$0xf]  ;;  %v2204_v14 = vld [vmem:[%s3153_s9 + $0xf8] sm:$0xf0]  ;;  %v2066_v21 = vld [vmem:[%s3521_s0 + $0x10] sm:$0xf]  ;;  %v2531_v28 = vor.u32 %v2719_v8, %v2530_v7  ;;  %v2143_v29 = vor.u32 %v2620_v9, %v2140_v12 }
  0xcc   : > { %1691 = vmatpush.bf16.msrb.mxu0 %v2371_v24  ;;  %v2652_v15 = vld [vmem:[%s3153_s9 + $0x174] sm:$0xf]  ;;  %v2268_v16 = vld [vmem:[%s3153_s9 + $0x178] sm:$0xf0]  ;;  %v2604_v22 = vld [vmem:[%s3521_s0 + $0x2c] sm:$0xf0]  ;;  %v2467_v24 = vor.u32 %v2703_v4, %v2466_v3  ;;  %v2207_v33 = vor.u32 %v2636_v13, %v2204_v14 }
  0xcd   : > { %1705 = vmatpush.bf16.msrb.mxu1 %v2435_v25  ;;  %v2668_v18 = vld [vmem:[%s3153_s9 + $0x1f4] sm:$0xf]  ;;  %v2332_v20 = vld [vmem:[%s3153_s9 + $0x1f8] sm:$0xf0]  ;;  %v2074_v25 = vld [vmem:[%s3521_s0 + $0x18] sm:$0xf]  ;;  %v2271_v34 = vor.u32 %v2652_v15, %v2268_v16  ;;  %v3354_v39 = vor.u32 %v2604_v22, %v2066_v21 }
  0xce   : > { %1719 = vmatpush.bf16.msrb.mxu2 %v2499_v26  ;;  %v2605_v26 = vld [vmem:[%s3521_s0 + $0x34] sm:$0xf0]  ;;  %v2600_v27 = vld [vmem:[%s3521_s0 + $0x14] sm:$0xf]  ;;  %v2601_v31 = vld [vmem:[%s3521_s0 + $0x1c] sm:$0xf] }
  0xcf   : > { %1733 = vmatpush.bf16.msrb.mxu3 %v2563_v30  ;;  %v2068_v30 = vld [vmem:[%s3521_s0 + $0x30] sm:$0xf0]  ;;  %v2076_v32 = vld [vmem:[%s3521_s0 + $0x38] sm:$0xf0]  ;;  %v2618_v35 = vld [vmem:[%s3153_s9 + $0x64] sm:$0xf]  ;;  %v3359_v43 = vor.u32 %v2605_v26, %v2074_v25 }
  0xd0   : > { %1692 = vmatpush.bf16.msrb.mxu0 %v2363_v36  ;;  %v2132_v36 = vld [vmem:[%s3153_s9 + $0x68] sm:$0xf0]  ;;  %v2650_v41 = vld [vmem:[%s3153_s9 + $0x164] sm:$0xf]  ;;  %v3361_v44 = vor.u32 %v2600_v27, %v2068_v30  ;;  %v3365_v47 = vor.u32 %v2601_v31, %v2076_v32  ;;  %v2124_v52 = vld [vmem:[%s3153_s9 + $0x58] sm:$0xf0] }
  0xd1   : > { %1706 = vmatpush.bf16.msrb.mxu1 %v2427_v37  ;;  %v2634_v37 = vld [vmem:[%s3153_s9 + $0xe4] sm:$0xf]  ;;  %v2196_v40 = vld [vmem:[%s3153_s9 + $0xe8] sm:$0xf0]  ;;  %v2632_v53 = vld [vmem:[%s3153_s9 + $0xd4] sm:$0xf] }
  0xd2   : > { %1720 = vmatpush.bf16.msrb.mxu2 %v2491_v38  ;;  %v2335_v38 = vor.u32 %v2668_v18, %v2332_v20  ;;  %v2666_v45 = vld [vmem:[%s3153_s9 + $0x1e4] sm:$0xf]  ;;  %v2324_v46 = vld [vmem:[%s3153_s9 + $0x1e8] sm:$0xf0]  ;;  %v2199_v49 = vor.u32 %v2634_v37, %v2196_v40  ;;  %v2648_v56 = vld [vmem:[%s3153_s9 + $0x154] sm:$0xf] }
  0xd3   : > { %1734 = vmatpush.bf16.msrb.mxu3 %v2555_v42  ;;  %v2260_v42 = vld [vmem:[%s3153_s9 + $0x168] sm:$0xf0]  ;;  %v2327_v54 = vor.u32 %v2666_v45, %v2324_v46  ;;  %v2252_v57 = vld [vmem:[%s3153_s9 + $0x158] sm:$0xf0]  ;;  %v2664_v59 = vld [vmem:[%s3153_s9 + $0x1d4] sm:$0xf] }
  0xd4   : > { %1693 = vmatpush.bf16.msrb.mxu0 %v2355_v48  ;;  %v2135_v48 = vor.u32 %v2618_v35, %v2132_v36  ;;  %v2316_v60 = vld [vmem:[%s3153_s9 + $0x1d8] sm:$0xf0]  ;;  %v2614_v0 = vld [vmem:[%s3153_s9 + $0x44] sm:$0xf]  ;;  %v2116_v2 = vld [vmem:[%s3153_s9 + $0x48] sm:$0xf0] }
  0xd5   : > { %1707 = vmatpush.bf16.msrb.mxu1 %v2419_v50  ;;  %v2263_v50 = vor.u32 %v2650_v41, %v2260_v42  ;;  %v2630_v3 = vld [vmem:[%s3153_s9 + $0xc4] sm:$0xf]  ;;  %v2319_v4 = vor.u32 %v2664_v59, %v2316_v60  ;;  %v2244_v7 = vld [vmem:[%s3153_s9 + $0x148] sm:$0xf0]  ;;  %v2612_v14 = vld [vmem:[%s3153_s9 + $0x34] sm:$0xf] }
  0xd6   : > { %1721 = vmatpush.bf16.msrb.mxu2 %v2483_v51  ;;  %v2616_v51 = vld [vmem:[%s3153_s9 + $0x54] sm:$0xf]  ;;  %v2662_v8 = vld [vmem:[%s3153_s9 + $0x1c4] sm:$0xf]  ;;  %v2308_v9 = vld [vmem:[%s3153_s9 + $0x1c8] sm:$0xf0] }
  0xd7   : > { %1735 = vmatpush.bf16.msrb.mxu3 %v2547_v55  ;;  %v2188_v55 = vld [vmem:[%s3153_s9 + $0xd8] sm:$0xf0]  ;;  %v2127_v61 = vor.u32 %v2616_v51, %v2124_v52  ;;  %v2628_v16 = vld [vmem:[%s3153_s9 + $0xb4] sm:$0xf]  ;;  %v2311_v18 = vor.u32 %v2662_v8, %v2308_v9  ;;  %v2610_v27 = vld [vmem:[%s3153_s9 + $0x24] sm:$0xf] }
  0xd8   : > { %1694 = vmatpush.bf16.msrb.mxu0 %v2347_v63  ;;  %v2191_v62 = vor.u32 %v2632_v53, %v2188_v55  ;;  %v2255_v63 = vor.u32 %v2648_v56, %v2252_v57  ;;  %v2108_v15 = vld [vmem:[%s3153_s9 + $0x38] sm:$0xf0]  ;;  %v2644_v20 = vld [vmem:[%s3153_s9 + $0x134] sm:$0xf]  ;;  %v2164_v31 = vld [vmem:[%s3153_s9 + $0xa8] sm:$0xf0] }
  0xd9   : > { %1708 = vmatpush.bf16.msrb.mxu1 %v2411_v5  ;;  %v2180_v5 = vld [vmem:[%s3153_s9 + $0xc8] sm:$0xf0]  ;;  %v2236_v21 = vld [vmem:[%s3153_s9 + $0x138] sm:$0xf0]  ;;  %v2660_v22 = vld [vmem:[%s3153_s9 + $0x1b4] sm:$0xf] }
  0xda   : > { %1722 = vmatpush.bf16.msrb.mxu2 %v2475_v6  ;;  %v2646_v6 = vld [vmem:[%s3153_s9 + $0x144] sm:$0xf]  ;;  %v2183_v12 = vor.u32 %v2630_v3, %v2180_v5  ;;  %v2239_v26 = vor.u32 %v2644_v20, %v2236_v21  ;;  %v2292_v35 = vld [vmem:[%s3153_s9 + $0x1a8] sm:$0xf0]  ;;  %v2608_v40 = vld [vmem:[%s3153_s9 + $0x14] sm:$0xf] }
  0xdb   : > { %1736 = vmatpush.bf16.msrb.mxu3 %v2539_v11  ;;  %v2119_v11 = vor.u32 %v2614_v0, %v2116_v2  ;;  %v2247_v13 = vor.u32 %v2646_v6, %v2244_v7  ;;  %v2642_v32 = vld [vmem:[%s3153_s9 + $0x124] sm:$0xf]  ;;  %v2092_v41 = vld [vmem:[%s3153_s9 + $0x18] sm:$0xf0]  ;;  %v2624_v42 = vld [vmem:[%s3153_s9 + $0x94] sm:$0xf] }
  0xdc   : > { %1695 = vmatpush.bf16.msrb.mxu0 %v2339_v19  ;;  %v2172_v19 = vld [vmem:[%s3153_s9 + $0xb8] sm:$0xf0]  ;;  %v2095_v52 = vor.u32 %v2608_v40, %v2092_v41  ;;  %v2606_v53 = vld [vmem:[%s3153_s9 + $0x4] sm:$0xf]  ;;  %v2148_v59 = vld [vmem:[%s3153_s9 + $0x88] sm:$0xf0] }
  0xdd   : > { %1709 = vmatpush.bf16.msrb.mxu1 %v2403_v23  ;;  %v2300_v23 = vld [vmem:[%s3153_s9 + $0x1b8] sm:$0xf0]  ;;  %v2175_v25 = vor.u32 %v2628_v16, %v2172_v19  ;;  %v2622_v57 = vld [vmem:[%s3153_s9 + $0x84] sm:$0xf]  ;;  %v2276_v0 = vld [vmem:[%s3153_s9 + $0x188] sm:$0xf0] }
  0xde   : > { %1723 = vmatpush.bf16.msrb.mxu2 %v2467_v24  ;;  %v2111_v24 = vor.u32 %v2612_v14, %v2108_v15  ;;  %v2303_v30 = vor.u32 %v2660_v22, %v2300_v23  ;;  %v2156_v46 = vld [vmem:[%s3153_s9 + $0x98] sm:$0xf0]  ;;  %v2638_v60 = vld [vmem:[%s3153_s9 + $0x104] sm:$0xf]  ;;  %v2684_v2 = vld [vmem:[%s3153_s9 + $0x274] sm:$0xf]  ;;  %v2151_v9 = vor.u32 %v2622_v57, %v2148_v59 }
  0xdf   : > { %1737 = vmatpush.bf16.msrb.mxu3 %v2531_v28  ;;  %1696 = vmatmul.bf16.vlgmr.msrb.gmra.mxu0 %v3354_v39  ;;  %v2100_v28 = vld [vmem:[%s3153_s9 + $0x28] sm:$0xf0]  ;;  %v2284_v51 = vld [vmem:[%s3153_s9 + $0x198] sm:$0xf0]  ;;  %v2159_v55 = vor.u32 %v2624_v42, %v2156_v46  ;;  %v2716_v7 = vld [vmem:[%s3153_s9 + $0x374] sm:$0xf] }
  0xe0   : > { %1744 = vmatpush.bf16.msra.mxu0 %v2143_v29  ;;  %1710 = vmatmul.bf16.vlgmr.msrb.gmra.mxu1 %v3361_v44  ;;  %v2626_v29 = vld [vmem:[%s3153_s9 + $0xa4] sm:$0xf]  ;;  %v2103_v36 = vor.u32 %v2610_v27, %v2100_v28  ;;  %v2396_v3 = vld [vmem:[%s3153_s9 + $0x278] sm:$0xf0]  ;;  %v2388_v20 = vld [vmem:[%s3153_s9 + $0x268] sm:$0xf0] }
  0xe1   : > { %1758 = vmatpush.bf16.msra.mxu1 %v2207_v33  ;;  %1724 = vmatmul.bf16.vlgmr.msrb.gmra.mxu2 %v3359_v43  ;;  %v2228_v33 = vld [vmem:[%s3153_s9 + $0x128] sm:$0xf0]  ;;  %v2167_v37 = vor.u32 %v2626_v29, %v2164_v31  ;;  %v2460_v6 = vld [vmem:[%s3153_s9 + $0x2f8] sm:$0xf0]  ;;  %v2399_v15 = vor.u32 %v2684_v2, %v2396_v3  ;;  %v2682_v19 = vld [vmem:[%s3153_s9 + $0x264] sm:$0xf] }
  0xe2   : > { %1772 = vmatpush.bf16.msra.mxu2 %v2271_v34  ;;  %1738 = vmatmul.bf16.vlgmr.msrb.gmra.mxu3 %v3365_v47  ;;  %v2658_v34 = vld [vmem:[%s3153_s9 + $0x1a4] sm:$0xf]  ;;  %v2524_v8 = vld [vmem:[%s3153_s9 + $0x378] sm:$0xf0]  ;;  %v2452_v23 = vld [vmem:[%s3153_s9 + $0x2e8] sm:$0xf0]  ;;  %v2391_v28 = vor.u32 %v2682_v19, %v2388_v20 }
  0xe3   : > { %1786 = vmatpush.bf16.msra.mxu3 %v2335_v38  ;;  %v2231_v38 = vor.u32 %v2642_v32, %v2228_v33  ;;  %v2295_v45 = vor.u32 %v2658_v34, %v2292_v35  ;;  %v2698_v21 = vld [vmem:[%s3153_s9 + $0x2e4] sm:$0xf]  ;;  %v2580_v27 = vld [vmem:[%s3153_s9 + $0x3e8] sm:$0xf0]  ;;  %v2680_v31 = vld [vmem:[%s3153_s9 + $0x254] sm:$0xf] }
  0xe4   : > { %1745 = vmatpush.bf16.msra.mxu0 %v2135_v48  ;;  %v2640_v48 = vld [vmem:[%s3153_s9 + $0x114] sm:$0xf]  ;;  %v2455_v29 = vor.u32 %v2698_v21, %v2452_v23  ;;  %v2380_v32 = vld [vmem:[%s3153_s9 + $0x258] sm:$0xf0]  ;;  %v2694_v46 = vld [vmem:[%s3153_s9 + $0x2c4] sm:$0xf] }
  0xe5   : > { %1759 = vmatpush.bf16.msra.mxu1 %v2199_v49  ;;  %v2220_v49 = vld [vmem:[%s3153_s9 + $0x118] sm:$0xf0]  ;;  %v2696_v33 = vld [vmem:[%s3153_s9 + $0x2d4] sm:$0xf]  ;;  %v2383_v41 = vor.u32 %v2680_v31, %v2380_v32  ;;  %v2670_v31 = vld [vmem:[%s3153_s9 + $0x204] sm:$0xf] }
  0xe6   : > { %1773 = vmatpush.bf16.msra.mxu2 %v2263_v50  ;;  %v2656_v50 = vld [vmem:[%s3153_s9 + $0x194] sm:$0xf]  ;;  %v2223_v56 = vor.u32 %v2640_v48, %v2220_v49  ;;  %v2444_v35 = vld [vmem:[%s3153_s9 + $0x2d8] sm:$0xf0]  ;;  %v2436_v49 = vld [vmem:[%s3153_s9 + $0x2c8] sm:$0xf0] }
  0xe7   : > { %1787 = vmatpush.bf16.msra.mxu3 %v2327_v54  ;;  %v2084_v54 = vld [vmem:[%s3153_s9 + $0x8] sm:$0xf0]  ;;  %v2572_v40 = vld [vmem:[%s3153_s9 + $0x3d8] sm:$0xf0]  ;;  %v2692_v57 = vld [vmem:[%s3153_s9 + $0x2b4] sm:$0xf] }
  0xe8   : > { %1746 = vmatpush.bf16.msra.mxu0 %v2127_v61  ;;  %v2287_v61 = vor.u32 %v2656_v50, %v2284_v51  ;;  %v2087_v5 = vor.u32 %v2606_v53, %v2084_v54  ;;  %v2500_v50 = vld [vmem:[%s3153_s9 + $0x348] sm:$0xf0]  ;;  %v2726_v51 = vld [vmem:[%s3153_s9 + $0x3c4] sm:$0xf]  ;;  %v2439_v53 = vor.u32 %v2694_v46, %v2436_v49  ;;  %v2672_v19 = vld [vmem:[%s3153_s9 + $0x214] sm:$0xf] }
  0xe9   : > { %1760 = vmatpush.bf16.msra.mxu1 %v2191_v62  ;;  %v2212_v62 = vld [vmem:[%s3153_s9 + $0x108] sm:$0xf0]  ;;  %v2348_v20 = vld [vmem:[%s3153_s9 + $0x218] sm:$0xf0]  ;;  %v2688_v21 = vld [vmem:[%s3153_s9 + $0x294] sm:$0xf] }
  0xea   : > { %1774 = vmatpush.bf16.msra.mxu2 %v2255_v63  ;;  %v2654_v63 = vld [vmem:[%s3153_s9 + $0x184] sm:$0xf]  ;;  %v2412_v23 = vld [vmem:[%s3153_s9 + $0x298] sm:$0xf0]  ;;  %v2340_v32 = vld [vmem:[%s3153_s9 + $0x208] sm:$0xf0] }
  0xeb   : > { %1788 = vmatpush.bf16.msra.mxu3 %v2319_v4  ;;  %v2700_v4 = vld [vmem:[%s3153_s9 + $0x2f4] sm:$0xf]  ;;  %v2279_v14 = vor.u32 %v2654_v63, %v2276_v0  ;;  %v2556_v0 = vld [vmem:[%s3153_s9 + $0x3b8] sm:$0xf0]  ;;  %s2734_s15 = sshll.u32 (%p2875_p6), %s2805_s17, 3 }
  0xec   : > { %1747 = vmatpush.bf16.msra.mxu0 %v2119_v11  ;;  %v2215_v11 = vor.u32 %v2638_v60, %v2212_v62  ;;  %v2463_v16 = vor.u32 %v2700_v4, %v2460_v6  ;;  %v2428_v60 = vld [vmem:[%s3153_s9 + $0x2b8] sm:$0xf0]  ;;  %v2724_v63 = vld [vmem:[%s3153_s9 + $0x3b4] sm:$0xf]  ;;  %v2356_v6 = vld [vmem:[%s3153_s9 + $0x228] sm:$0xf0]  ;;  %s1896_s27 = scalar_lea.vmem (%p2875_p6), %s3525_s4, %s2734_s15 }
  0xed   : > { %1761 = vmatpush.bf16.msra.mxu1 %v2183_v12  ;;  %v2732_v12 = vld [vmem:[%s3153_s9 + $0x3f4] sm:$0xf]  ;;  %v2492_v62 = vld [vmem:[%s3153_s9 + $0x338] sm:$0xf0]  ;;  %v2431_v3 = vor.u32 %v2692_v57, %v2428_v60 }
  0xee   : > { %1775 = vmatpush.bf16.msra.mxu2 %v2247_v13  ;;  %v2588_v13 = vld [vmem:[%s3153_s9 + $0x3f8] sm:$0xf0] }
  0xef   : > { %1789 = vmatpush.bf16.msra.mxu3 %v2311_v18  ;;  %v2527_v18 = vor.u32 %v2716_v7, %v2524_v8  ;;  %v2591_v22 = vor.u32 %v2732_v12, %v2588_v13  ;;  %v2690_v7 = vld [vmem:[%s3153_s9 + $0x2a4] sm:$0xf]  ;;  %v2559_v8 = vor.u32 %v2724_v63, %v2556_v0  ;;  %v2484_v12 = vld [vmem:[%s3153_s9 + $0x328] sm:$0xf0] }
  0xf0   : > { %1748 = vmatpush.bf16.msra.mxu0 %v2111_v24  ;;  %v2714_v24 = vld [vmem:[%s3153_s9 + $0x364] sm:$0xf] }
  0xf1   : > { %1762 = vmatpush.bf16.msra.mxu1 %v2175_v25  ;;  %v2516_v25 = vld [vmem:[%s3153_s9 + $0x368] sm:$0xf0]  ;;  %v2722_v13 = vld [vmem:[%s3153_s9 + $0x3a4] sm:$0xf] }
  0xf2   : > { %1776 = vmatpush.bf16.msra.mxu2 %v2239_v26  ;;  %v2730_v26 = vld [vmem:[%s3153_s9 + $0x3e4] sm:$0xf] }
  0xf3   : > { %1790 = vmatpush.bf16.msra.mxu3 %v2303_v30  ;;  %v2519_v30 = vor.u32 %v2714_v24, %v2516_v25  ;;  %v2583_v34 = vor.u32 %v2730_v26, %v2580_v27  ;;  %v2704_v24 = vld [vmem:[%s3153_s9 + $0x314] sm:$0xf]  ;;  %v2476_v25 = vld [vmem:[%s3153_s9 + $0x318] sm:$0xf0] }
  0xf4   : > { %1749 = vmatpush.bf16.msra.mxu0 %v2103_v36  ;;  %v2712_v36 = vld [vmem:[%s3153_s9 + $0x354] sm:$0xf]  ;;  %v2540_v27 = vld [vmem:[%s3153_s9 + $0x398] sm:$0xf0] }
  0xf5   : > { %1763 = vmatpush.bf16.msra.mxu1 %v2167_v37  ;;  %v2508_v37 = vld [vmem:[%s3153_s9 + $0x358] sm:$0xf0]  ;;  %v2720_v26 = vld [vmem:[%s3153_s9 + $0x394] sm:$0xf] }
  0xf6   : > { %1777 = vmatpush.bf16.msra.mxu2 %v2231_v38  ;;  %v2728_v38 = vld [vmem:[%s3153_s9 + $0x3d4] sm:$0xf]  ;;  %v2511_v42 = vor.u32 %v2712_v36, %v2508_v37  ;;  %v2702_v36 = vld [vmem:[%s3153_s9 + $0x304] sm:$0xf]  ;;  %v2468_v37 = vld [vmem:[%s3153_s9 + $0x308] sm:$0xf0] }
  0xf7   : > { %1791 = vmatpush.bf16.msra.mxu3 %v2295_v45  ;;  %v2678_v45 = vld [vmem:[%s3153_s9 + $0x244] sm:$0xf]  ;;  %v2575_v48 = vor.u32 %v2728_v38, %v2572_v40  ;;  %v2532_v40 = vld [vmem:[%s3153_s9 + $0x388] sm:$0xf0] }
  0xf8   : > { %1750 = vmatpush.bf16.msra.mxu0 %v2095_v52  ;;  %v2718_v38 = vld [vmem:[%s3153_s9 + $0x384] sm:$0xf] }
  0xf9   : > { %1764 = vmatpush.bf16.msra.mxu1 %v2159_v55  ;;  %v2676_v55 = vld [vmem:[%s3153_s9 + $0x234] sm:$0xf] }
  0xfa   : > { %1778 = vmatpush.bf16.msra.mxu2 %v2223_v56  ;;  %v2364_v56 = vld [vmem:[%s3153_s9 + $0x238] sm:$0xf0] }
  0xfb   : > { %1792 = vmatpush.bf16.msra.mxu3 %v2287_v61  ;;  %v2708_v61 = vld [vmem:[%s3153_s9 + $0x334] sm:$0xf]  ;;  %v2367_v2 = vor.u32 %v2676_v55, %v2364_v56 }
  0xfc   : > { %1751 = vmatpush.bf16.msra.mxu0 %v2087_v5  ;;  %v2495_v4 = vor.u32 %v2708_v61, %v2492_v62  ;;  %v2674_v5 = vld [vmem:[%s3153_s9 + $0x224] sm:$0xf] }
  0xfd   : > { %1765 = vmatpush.bf16.msra.mxu1 %v2151_v9  ;;  %v2420_v9 = vld [vmem:[%s3153_s9 + $0x2a8] sm:$0xf0] }
  0xfe   : > { %1779 = vmatpush.bf16.msra.mxu2 %v2215_v11  ;;  %v2706_v11 = vld [vmem:[%s3153_s9 + $0x324] sm:$0xf] }
  0xff   : > { %1793 = vmatpush.bf16.msra.mxu3 %v2279_v14  ;;  %1752 = vmatmul.bf16.vlgmr.msra.gmra.mxu0 %v3246_v58  ;;  %v2710_v58 = vld [vmem:[%s3153_s9 + $0x344] sm:$0xf]  ;;  %v2548_v14 = vld [vmem:[%s3153_s9 + $0x3a8] sm:$0xf0] }
 0x100   : > { %1800 = vmatpush.bf16.msrb.mxu0 %v2399_v15  ;;  %1766 = vmatmul.bf16.vlgmr.msra.gmra.mxu1 %v3270_v10  ;;  %v2564_v10 = vld [vmem:[%s3153_s9 + $0x3c8] sm:$0xf0]  ;;  %v2503_v54 = vor.u32 %v2710_v58, %v2500_v50  ;;  %v2359_v15 = vor.u32 %v2674_v5, %v2356_v6 }
 0x101   : > { %1814 = vmatpush.bf16.msrb.mxu1 %v2463_v16  ;;  %1780 = vmatmul.bf16.vlgmr.msra.gmra.mxu2 %v3254_v1  ;;  %v2447_v1 = vor.u32 %v2696_v33, %v2444_v35  ;;  %v2567_v59 = vor.u32 %v2726_v51, %v2564_v10  ;;  %v2423_v16 = vor.u32 %v2690_v7, %v2420_v9  ;;  %v2686_v33 = vld [vmem:[%s3153_s9 + $0x284] sm:$0xf]  ;;  %v2404_v35 = vld [vmem:[%s3153_s9 + $0x288] sm:$0xf0] }
 0x102   : > { %1828 = vmatpush.bf16.msrb.mxu2 %v2527_v18  ;;  %1794 = vmatmul.bf16.vlgmr.msra.gmra.mxu3 %v3278_v17  ;;  %v2372_v17 = vld [vmem:[%s3153_s9 + $0x248] sm:$0xf0]  ;;  %v2487_v18 = vor.u32 %v2706_v11, %v2484_v12  ;;  %s2046_s9 = sshll.u32 %s2805_s17, 1 }
 0x103   : > { %1842 = vmatpush.bf16.msrb.mxu3 %v2591_v22  ;;  %v2375_v52 = vor.u32 %v2678_v45, %v2372_v17  ;;  %v2551_v22 = vor.u32 %v2722_v13, %v2548_v14  ;;  %v2535_v45 = vor.u32 %v2718_v38, %v2532_v40  ;;  %p805_p11 = scmp.lt.s32.totalorder %s2046_s9, 3 }
 0x104   : > { %1801 = vmatpush.bf16.msrb.mxu0 %v2391_v28  ;;  %v2351_v28 = vor.u32 %v2672_v19, %v2348_v20 }
 0x105   : > { %1815 = vmatpush.bf16.msrb.mxu1 %v2455_v29  ;;  %v2415_v29 = vor.u32 %v2688_v21, %v2412_v23  ;;  %s3534_s9 = smov (!%p805_p11, %s2046_s9), 3 }
 0x106   : > { %1829 = vmatpush.bf16.msrb.mxu2 %v2519_v30  ;;  %v2479_v30 = vor.u32 %v2704_v24, %v2476_v25  ;;  %s807_s12 = scalar_lea.vmem %s3523_s2, %s3534_s9  ;;  %s812_s21 = scalar_lea.vmem %s3524_s3, %s3534_s9 }
 0x107   : > { %1843 = vmatpush.bf16.msrb.mxu3 %v2583_v34  ;;  %v2543_v34 = vor.u32 %v2720_v26, %v2540_v27  ;;  %v1856_v13 = vld [vmem:[%s807_s12] sm:$0x3] }
 0x108   : > { %1802 = vmatpush.bf16.msrb.mxu0 %v2383_v41  ;;  %v2343_v41 = vor.u32 %v2670_v31, %v2340_v32  ;;  %v1866_v24 = vld [vmem:[%s812_s21] sm:$0x3] }
 0x109   : > { %1816 = vmatpush.bf16.msrb.mxu1 %v2447_v1  ;;  %v2407_v1 = vor.u32 %v2686_v33, %v2404_v35  ;;  %v1859_v35 = vperm.slane %v1856_v13, 1  ;;  %v1869_v38 = vperm.slane %v1866_v24, 1 }
 0x10a   : > { %1830 = vmatpush.bf16.msrb.mxu2 %v2511_v42  ;;  %v2471_v42 = vor.u32 %v2702_v36, %v2468_v37 }
 0x10b   : > { %1844 = vmatpush.bf16.msrb.mxu3 %v2575_v48 }
 0x10c   : > { %1803 = vmatpush.bf16.msrb.mxu0 %v2375_v52 }
 0x10d   : > { %1817 = vmatpush.bf16.msrb.mxu1 %v2439_v53 }
 0x10e   : > { %1831 = vmatpush.bf16.msrb.mxu2 %v2503_v54 }
 0x10f   : > { %1845 = vmatpush.bf16.msrb.mxu3 %v2567_v59 }
 0x110   : > { %1804 = vmatpush.bf16.msrb.mxu0 %v2367_v2 }
 0x111   : > { %1818 = vmatpush.bf16.msrb.mxu1 %v2431_v3 }
 0x112   : > { %1832 = vmatpush.bf16.msrb.mxu2 %v2495_v4 }
 0x113   : > { %1846 = vmatpush.bf16.msrb.mxu3 %v2559_v8 }
 0x114   : > { %1805 = vmatpush.bf16.msrb.mxu0 %v2359_v15 }
 0x115   : > { %1819 = vmatpush.bf16.msrb.mxu1 %v2423_v16 }
 0x116   : > { %1833 = vmatpush.bf16.msrb.mxu2 %v2487_v18 }
 0x117   : > { %1847 = vmatpush.bf16.msrb.mxu3 %v2551_v22  ;;  %v1858_v22 = vperm.slane %v1856_v13, 0 }
 0x118   : > { %1806 = vmatpush.bf16.msrb.mxu0 %v2351_v28 }
 0x119   : > { %1820 = vmatpush.bf16.msrb.mxu1 %v2415_v29  ;;  %v1868_v29 = vperm.slane %v1866_v24, 0 }
 0x11a   : > { %1834 = vmatpush.bf16.msrb.mxu2 %v2479_v30 }
 0x11b   : > { %1848 = vmatpush.bf16.msrb.mxu3 %v2543_v34 }
 0x11c   : > { %1807 = vmatpush.bf16.msrb.mxu0 %v2343_v41 }
 0x11d   : > { %1821 = vmatpush.bf16.msrb.mxu1 %v2407_v1 }
 0x11e   : > { %1835 = vmatpush.bf16.msrb.mxu2 %v2471_v42 }
 0x11f   : > { %1849 = vmatpush.bf16.msrb.mxu3 %v2535_v45  ;;  %1808 = vmatmul.bf16.vlgmr.msrb.gmra.mxu0 %v3354_v39 }
 0x120   : > { %1822 = vmatmul.bf16.vlgmr.msrb.gmra.mxu1 %v3361_v44 }
 0x121   : > { %1836 = vmatmul.bf16.vlgmr.msrb.gmra.mxu2 %v3359_v43 }
 0x122   : > { %1850 = vmatmul.bf16.vlgmr.msrb.gmra.mxu3 %v3365_v47 }
 0x13c   : > { %v1641_v17 = vpop.f32.mrf.mxu0 }
 0x13d   : > { %v1655_v46 = vpop.f32.mrf.mxu1 }
 0x13e   : > { %v1656_v44 = vadd.f32 %v1655_v46, %v1641_v17 }
 0x144   : > { %v1669_v48 = vpop.f32.mrf.mxu2  ;;  %v1643_v58 = vpop.f32.mrf.mxu0 }
 0x145   : > { %v1683_v49 = vpop.f32.mrf.mxu3  ;;  %v1657_v50 = vpop.f32.mrf.mxu1  ;;  %v1670_v47 = vadd.f32 %v1669_v48, %v1656_v44 }
 0x146   : > { %v1658_v2 = vadd.f32 %v1657_v50, %v1643_v58 }
 0x147   : > { %v1684_v61 = vadd.f32 %v1683_v49, %v1670_v47 }
 0x14c   : > { %v1671_v51 = vpop.f32.mrf.mxu2 }
 0x14d   : > { %v1685_v10 = vpop.f32.mrf.mxu3  ;;  %v1672_v7 = vadd.f32 %v1671_v51, %v1658_v2 }
 0x14f   : > { %v1686_v12 = vadd.f32 %v1685_v10, %v1672_v7 }
 0x15c   : > { %v1697_v52 = vpop.f32.mrf.mxu0 }
 0x15d   : > { %v1711_v53 = vpop.f32.mrf.mxu1  ;;  %v1698_v0 = vadd.f32 %v1697_v52, %v1684_v61 }
 0x15f   : > { %v1712_v5 = vadd.f32 %v1711_v53, %v1698_v0 }
 0x164   : > { %v1725_v54 = vpop.f32.mrf.mxu2  ;;  %v1699_v39 = vpop.f32.mrf.mxu0 }
 0x165   : > { %v1739_v55 = vpop.f32.mrf.mxu3  ;;  %v1713_v56 = vpop.f32.mrf.mxu1  ;;  %v1726_v9 = vadd.f32 %v1725_v54, %v1712_v5  ;;  %v1700_v19 = vadd.f32 %v1699_v39, %v1686_v12 }
 0x167   : > { %v1740_v21 = vadd.f32 %v1739_v55, %v1726_v9  ;;  %v1714_v26 = vadd.f32 %v1713_v56, %v1700_v19 }
 0x169   : > { %v1862_v28 = vmul.f32 %v1858_v22, %v1740_v21 }
 0x16b   : > { %v1872_v41 = vadd.f32 %v1868_v29, %v1862_v28 }
 0x16c   : > { %v1727_v57 = vpop.f32.mrf.mxu2 }
 0x16d   : > { %v1741_v43 = vpop.f32.mrf.mxu3  ;;  %v1728_v31 = vadd.f32 %v1727_v57, %v1714_v26  ;;  %v1876_v49 = vmax.f32 %v1872_v41, 0.0 }
 0x16f   : > { %v1742_v1 = vadd.f32 %v1741_v43, %v1728_v31 }
 0x171   : > { %v1864_v58 = vmul.f32 %v1858_v22, %v1742_v1 }
 0x173   : > { %v1874_v54 = vadd.f32 %v1868_v29, %v1864_v58 }
 0x175   : > { %v1878_v56 = vmax.f32 %v1874_v54, 0.0 }
 0x17c   : > { %v1753_v59 = vpop.f32.mrf.mxu0 }
 0x17d   : > { %v1767_v60 = vpop.f32.mrf.mxu1 }
 0x17e   : > { %v1768_v3 = vadd.f32 %v1767_v60, %v1753_v59 }
 0x184   : > { %v1781_v62 = vpop.f32.mrf.mxu2  ;;  %v1755_v4 = vpop.f32.mrf.mxu0 }
 0x185   : > { %v1795_v63 = vpop.f32.mrf.mxu3  ;;  %v1769_v6 = vpop.f32.mrf.mxu1  ;;  %v1782_v8 = vadd.f32 %v1781_v62, %v1768_v3 }
 0x186   : > { %v1770_v15 = vadd.f32 %v1769_v6, %v1755_v4 }
 0x187   : > { %v1796_v14 = vadd.f32 %v1795_v63, %v1782_v8 }
 0x18c   : > { %v1783_v11 = vpop.f32.mrf.mxu2 }
 0x18d   : > { %v1797_v16 = vpop.f32.mrf.mxu3  ;;  %v1784_v25 = vadd.f32 %v1783_v11, %v1770_v15 }
 0x18f   : > { %v1798_v32 = vadd.f32 %v1797_v16, %v1784_v25 }
 0x19c   : > { %v1809_v18 = vpop.f32.mrf.mxu0 }
 0x19d   : > { %v1810_v20 = vadd.f32 %v1809_v18, %v1796_v14  ;;  %v1823_v23 = vpop.f32.mrf.mxu1 }
 0x19f   : > { %v1824_v27 = vadd.f32 %v1823_v23, %v1810_v20 }
 0x1a4   : > { %v1837_v30 = vpop.f32.mrf.mxu2  ;;  %v1811_v36 = vpop.f32.mrf.mxu0 }
 0x1a5   : > { %v1838_v33 = vadd.f32 %v1837_v30, %v1824_v27  ;;  %v1851_v34 = vpop.f32.mrf.mxu3  ;;  %v1812_v40 = vadd.f32 %v1811_v36, %v1798_v32  ;;  %v1825_v45 = vpop.f32.mrf.mxu1 }
 0x1a7   : > { %v1852_v37 = vadd.f32 %v1851_v34, %v1838_v33  ;;  %v1826_v46 = vadd.f32 %v1825_v45, %v1812_v40 }
 0x1a9   : > { %v1863_v42 = vmul.f32 %v1859_v35, %v1852_v37 }
 0x1ab   : > { %v1873_v17 = vadd.f32 %v1869_v38, %v1863_v42 }
 0x1ac   : > { %v1839_v48 = vpop.f32.mrf.mxu2 }
 0x1ad   : > { %v1877_v50 = vmax.f32 %v1873_v17, 0.0  ;;  %v1840_v51 = vadd.f32 %v1839_v48, %v1826_v46  ;;  %v1853_v10 = vpop.f32.mrf.mxu3 }
 0x1af   : > { %v1880_v52 = vpack.c.bf16 %v1877_v50, %v1876_v49  ;;  %v1854_v53 = vadd.f32 %v1853_v10, %v1840_v51 }
 0x1b1   : > { %1882 = vst [vmem:[%s795_s23] sm:$0xff] %v1880_v52  ;;  %v1865_v55 = vmul.f32 %v1859_v35, %v1854_v53 }
 0x1b3   : > { %v1875_v39 = vadd.f32 %v1869_v38, %v1865_v55 }
 0x1b5   : > { %v1879_v44 = vmax.f32 %v1875_v39, 0.0  ;;  %1890 = sbr.rel (!%p2875_p6) target bundleno = 450 (0x1c2), region = 78 }
 0x1b7   : > { %v1881_v57 = vpack.c.bf16 %v1879_v44, %v1878_v56 }
 0x1b8   : > { %v1927_v43 = vld [vmem:[%s795_s23] sm:$0xff] (%p2875_p6) }
 0x1b9   : > { %1883 = vst [vmem:[%s795_s23 + $0x8] sm:$0xff] %v1881_v57 }
 0x1ba   : > { %1928 = vst [vmem:[%s1896_s27] sm:$0xff] %v1927_v43 }
 0x1c0   : > { %v1929_v59 = vld [vmem:[%s795_s23 + $0x8] sm:$0xff] }
 0x1c1   : > { %1930 = vst [vmem:[%s1896_s27 + $0x10] sm:$0xff] %v1929_v59 }
 0x1c2 PF: > { %s14_s19 = sadd.s32 1, %s2813_s19   ;;  %s3527_s15 = smov %s2801_s16 }
 0x1c3   : > { %p11_p12 = scmp.ge.s32.totalorder %s14_s19, 4   ;;  %s3528_s16 = smov %s2880_s25 }
 0x1c4   : > { %s3529_s17 = smov %s2809_s18  ;;  %s3530_s18 = smov %s3532_s20 }
 0x1c5   :  { %13 = sbr.rel (!%p11_p12) target bundleno = 3 (0x3), region = 156 }

// kernel: autoencoder_forward.17
= control target key start
LH: loop header
LB: loop body
LE: loop exit
PB: predicated region body
PF: predicated region fallthrough
CT: control target
= control target key end

     0   :  { %s2840_s15 = smov 0   ;;  %s2842_s16 = smov 0   ;;  %s3521_s0 = inlined_call_operand.vmem [shape: bf16[16,1024], index: 0, kind: input, shape index: {}]   ;;  %s3522_s1 = inlined_call_operand.vmem [shape: bf16[1024,1024], index: 1, kind: input, shape index: {}]   ;;  %s3523_s2 = inlined_call_operand.vmem [shape: f32[1,1024], index: 2, kind: input, shape index: {}]   ;;  %s3524_s3 = inlined_call_operand.vmem [shape: f32[1,1024], index: 3, kind: input, shape index: {}]   ;;  %s3525_s4 = inlined_call_operand.vmem [shape: bf16[16,1024], index: 4, kind: output, shape index: {}]  }
   0x1   :  { %s2844_s17 = smov 0   ;;  %s2846_s18 = smov 0  }
   0x2   :  { %s2848_s19 = smov 0  }
   0x3 LB: > { %s23_s20 = sadd.s32 1, %s2809_s18  ;;  %s2035_s21 = sadd.s32 4294967295, %s2813_s19   ;;  %s2813_s19 = sphi %s2848_s19, %s14_s19   ;;  %s2809_s18 = sphi %s2846_s18, %s3530_s18   ;;  %s2805_s17 = sphi %s2844_s17, %s3529_s17   ;;  %s2801_s16 = sphi %s2842_s16, %s3528_s16   ;;  %s2797_s15 = sphi %s2840_s15, %s3527_s15  }
   0x4   : > { %p24_p0 = scmp.ge.s32.totalorder %s23_s20, 4  ;;  %p66_p1 = scmp.ne.s32.totalorder %s2801_s16, %s2797_s15 }
   0x5   : > { %p67_p2 = scmp.eq.s32.totalorder %s2813_s19, 0  ;;  %p150_p4 = scmp.eq.s32.totalorder %s2035_s21, 3 }
   0x6   : > { %s3532_s20 = smov (%p24_p0, %s23_s20), 0  ;;  %s59_s23 = sadd.s32 1, %s2801_s16 }
   0x7   : > { %p68_p3 = por %p67_p2, %p66_p1  ;;  %s56_s22 = ssub.s32 %s2809_s18, %s3532_s20 }
   0x8   : > { %p57_p5 = scmp.eq.s32.totalorder %s56_s22, 0  ;;  %p2875_p6 = por %p150_p4, %p66_p1 }
   0x9   : > { %p2039_p7 = scmp.ge.s32.totalorder %s2813_s19, 4 }
   0xa   : > { %s2880_s25 = scalar_select %p57_p5, %s2801_s16, %s59_s23  }
   0xb   : > { %182 = sbr.rel (%p2039_p7) target bundleno = 148 (0x94), region = 20 }
  0x10   : > { %185 = sbr.rel (!%p68_p3) target bundleno = 148 (0x94), region = 24  ;;  %s187_s26 = sand.u32 (%p68_p3), 1, %s2801_s16  }
  0x11   : > { %s2597_s27 = sshll.u32 (%p68_p3), %s2809_s18, 3  ;;  %s2040_s28 = sshll.u32 (%p68_p3), %s187_s26, 10 }
  0x12   : > { %s2888_s5 = scalar_lea.vmem (%p68_p3), %s3522_s1, %s2597_s27  ;;  %s2893_s6 = scalar_lea.vmem (%p68_p3), [#allocation2], %s2040_s28 }
  0x13   : > { %v475_v0 = vld [vmem:[%s2888_s5] sm:$0xff] (%p68_p3) }
  0x14   : > { %v477_v1 = vld [vmem:[%s2888_s5 + $0x20] sm:$0xff] (%p68_p3)  ;;  %476 = vst [vmem:[%s2893_s6] sm:$0xff] (%p68_p3), %v475_v0 }
  0x15   : > { %v479_v2 = vld [vmem:[%s2888_s5 + $0x40] sm:$0xff]  ;;  %478 = vst [vmem:[%s2893_s6 + $0x8] sm:$0xff] %v477_v1 }
  0x16   : > { %v481_v3 = vld [vmem:[%s2888_s5 + $0x60] sm:$0xff]  ;;  %480 = vst [vmem:[%s2893_s6 + $0x10] sm:$0xff] %v479_v2 }
  0x17   : > { %v483_v4 = vld [vmem:[%s2888_s5 + $0x80] sm:$0xff]  ;;  %482 = vst [vmem:[%s2893_s6 + $0x18] sm:$0xff] %v481_v3 }
  0x18   : > { %v485_v5 = vld [vmem:[%s2888_s5 + $0xa0] sm:$0xff]  ;;  %484 = vst [vmem:[%s2893_s6 + $0x20] sm:$0xff] %v483_v4 }
  0x19   : > { %v487_v6 = vld [vmem:[%s2888_s5 + $0xc0] sm:$0xff]  ;;  %486 = vst [vmem:[%s2893_s6 + $0x28] sm:$0xff] %v485_v5 }
  0x1a   : > { %v489_v7 = vld [vmem:[%s2888_s5 + $0xe0] sm:$0xff]  ;;  %488 = vst [vmem:[%s2893_s6 + $0x30] sm:$0xff] %v487_v6 }
  0x1b   : > { %v491_v8 = vld [vmem:[%s2888_s5 + $0x100] sm:$0xff]  ;;  %490 = vst [vmem:[%s2893_s6 + $0x38] sm:$0xff] %v489_v7 }
  0x1c   : > { %v493_v9 = vld [vmem:[%s2888_s5 + $0x120] sm:$0xff]  ;;  %492 = vst [vmem:[%s2893_s6 + $0x40] sm:$0xff] %v491_v8 }
  0x1d   : > { %v495_v10 = vld [vmem:[%s2888_s5 + $0x140] sm:$0xff]  ;;  %494 = vst [vmem:[%s2893_s6 + $0x48] sm:$0xff] %v493_v9 }
  0x1e   : > { %v497_v11 = vld [vmem:[%s2888_s5 + $0x160] sm:$0xff]  ;;  %496 = vst [vmem:[%s2893_s6 + $0x50] sm:$0xff] %v495_v10 }
  0x1f   : > { %v499_v12 = vld [vmem:[%s2888_s5 + $0x180] sm:$0xff]  ;;  %498 = vst [vmem:[%s2893_s6 + $0x58] sm:$0xff] %v497_v11 }
  0x20   : > { %v501_v13 = vld [vmem:[%s2888_s5 + $0x1a0] sm:$0xff]  ;;  %500 = vst [vmem:[%s2893_s6 + $0x60] sm:$0xff] %v499_v12 }
  0x21   : > { %v503_v14 = vld [vmem:[%s2888_s5 + $0x1c0] sm:$0xff]  ;;  %502 = vst [vmem:[%s2893_s6 + $0x68] sm:$0xff] %v501_v13 }
  0x22   : > { %v505_v15 = vld [vmem:[%s2888_s5 + $0x1e0] sm:$0xff]  ;;  %504 = vst [vmem:[%s2893_s6 + $0x70] sm:$0xff] %v503_v14 }
  0x23   : > { %v507_v16 = vld [vmem:[%s2888_s5 + $0x200] sm:$0xff]  ;;  %506 = vst [vmem:[%s2893_s6 + $0x78] sm:$0xff] %v505_v15 }
  0x24   : > { %v509_v17 = vld [vmem:[%s2888_s5 + $0x220] sm:$0xff]  ;;  %508 = vst [vmem:[%s2893_s6 + $0x80] sm:$0xff] %v507_v16 }
  0x25   : > { %v511_v18 = vld [vmem:[%s2888_s5 + $0x240] sm:$0xff]  ;;  %510 = vst [vmem:[%s2893_s6 + $0x88] sm:$0xff] %v509_v17 }
  0x26   : > { %v513_v19 = vld [vmem:[%s2888_s5 + $0x260] sm:$0xff]  ;;  %512 = vst [vmem:[%s2893_s6 + $0x90] sm:$0xff] %v511_v18 }
  0x27   : > { %v515_v20 = vld [vmem:[%s2888_s5 + $0x280] sm:$0xff]  ;;  %514 = vst [vmem:[%s2893_s6 + $0x98] sm:$0xff] %v513_v19 }
  0x28   : > { %v517_v21 = vld [vmem:[%s2888_s5 + $0x2a0] sm:$0xff]  ;;  %516 = vst [vmem:[%s2893_s6 + $0xa0] sm:$0xff] %v515_v20 }
  0x29   : > { %v519_v22 = vld [vmem:[%s2888_s5 + $0x2c0] sm:$0xff]  ;;  %518 = vst [vmem:[%s2893_s6 + $0xa8] sm:$0xff] %v517_v21 }
  0x2a   : > { %v521_v23 = vld [vmem:[%s2888_s5 + $0x2e0] sm:$0xff]  ;;  %520 = vst [vmem:[%s2893_s6 + $0xb0] sm:$0xff] %v519_v22 }
  0x2b   : > { %v523_v24 = vld [vmem:[%s2888_s5 + $0x300] sm:$0xff]  ;;  %522 = vst [vmem:[%s2893_s6 + $0xb8] sm:$0xff] %v521_v23 }
  0x2c   : > { %v525_v25 = vld [vmem:[%s2888_s5 + $0x320] sm:$0xff]  ;;  %524 = vst [vmem:[%s2893_s6 + $0xc0] sm:$0xff] %v523_v24 }
  0x2d   : > { %v527_v26 = vld [vmem:[%s2888_s5 + $0x340] sm:$0xff]  ;;  %526 = vst [vmem:[%s2893_s6 + $0xc8] sm:$0xff] %v525_v25 }
  0x2e   : > { %v529_v27 = vld [vmem:[%s2888_s5 + $0x360] sm:$0xff]  ;;  %528 = vst [vmem:[%s2893_s6 + $0xd0] sm:$0xff] %v527_v26 }
  0x2f   : > { %v531_v28 = vld [vmem:[%s2888_s5 + $0x380] sm:$0xff]  ;;  %530 = vst [vmem:[%s2893_s6 + $0xd8] sm:$0xff] %v529_v27 }
  0x30   : > { %v533_v29 = vld [vmem:[%s2888_s5 + $0x3a0] sm:$0xff]  ;;  %532 = vst [vmem:[%s2893_s6 + $0xe0] sm:$0xff] %v531_v28 }
  0x31   : > { %v535_v30 = vld [vmem:[%s2888_s5 + $0x3c0] sm:$0xff]  ;;  %534 = vst [vmem:[%s2893_s6 + $0xe8] sm:$0xff] %v533_v29 }
  0x32   : > { %v537_v31 = vld [vmem:[%s2888_s5 + $0x3e0] sm:$0xff]  ;;  %536 = vst [vmem:[%s2893_s6 + $0xf0] sm:$0xff] %v535_v30 }
  0x33   : > { %v539_v32 = vld [vmem:[%s2888_s5 + $0x400] sm:$0xff]  ;;  %538 = vst [vmem:[%s2893_s6 + $0xf8] sm:$0xff] %v537_v31 }
  0x34   : > { %v541_v33 = vld [vmem:[%s2888_s5 + $0x420] sm:$0xff]  ;;  %540 = vst [vmem:[%s2893_s6 + $0x100] sm:$0xff] %v539_v32 }
  0x35   : > { %v543_v34 = vld [vmem:[%s2888_s5 + $0x440] sm:$0xff]  ;;  %542 = vst [vmem:[%s2893_s6 + $0x108] sm:$0xff] %v541_v33 }
  0x36   : > { %v545_v35 = vld [vmem:[%s2888_s5 + $0x460] sm:$0xff]  ;;  %544 = vst [vmem:[%s2893_s6 + $0x110] sm:$0xff] %v543_v34 }
  0x37   : > { %v547_v36 = vld [vmem:[%s2888_s5 + $0x480] sm:$0xff]  ;;  %546 = vst [vmem:[%s2893_s6 + $0x118] sm:$0xff] %v545_v35 }
  0x38   : > { %v549_v37 = vld [vmem:[%s2888_s5 + $0x4a0] sm:$0xff]  ;;  %548 = vst [vmem:[%s2893_s6 + $0x120] sm:$0xff] %v547_v36 }
  0x39   : > { %v551_v38 = vld [vmem:[%s2888_s5 + $0x4c0] sm:$0xff]  ;;  %550 = vst [vmem:[%s2893_s6 + $0x128] sm:$0xff] %v549_v37 }
  0x3a   : > { %v553_v39 = vld [vmem:[%s2888_s5 + $0x4e0] sm:$0xff]  ;;  %552 = vst [vmem:[%s2893_s6 + $0x130] sm:$0xff] %v551_v38 }
  0x3b   : > { %v555_v40 = vld [vmem:[%s2888_s5 + $0x500] sm:$0xff]  ;;  %554 = vst [vmem:[%s2893_s6 + $0x138] sm:$0xff] %v553_v39 }
  0x3c   : > { %v557_v41 = vld [vmem:[%s2888_s5 + $0x520] sm:$0xff]  ;;  %556 = vst [vmem:[%s2893_s6 + $0x140] sm:$0xff] %v555_v40 }
  0x3d   : > { %v559_v42 = vld [vmem:[%s2888_s5 + $0x540] sm:$0xff]  ;;  %558 = vst [vmem:[%s2893_s6 + $0x148] sm:$0xff] %v557_v41 }
  0x3e   : > { %v561_v43 = vld [vmem:[%s2888_s5 + $0x560] sm:$0xff]  ;;  %560 = vst [vmem:[%s2893_s6 + $0x150] sm:$0xff] %v559_v42 }
  0x3f   : > { %v563_v44 = vld [vmem:[%s2888_s5 + $0x580] sm:$0xff]  ;;  %562 = vst [vmem:[%s2893_s6 + $0x158] sm:$0xff] %v561_v43 }
  0x40   : > { %v565_v45 = vld [vmem:[%s2888_s5 + $0x5a0] sm:$0xff]  ;;  %564 = vst [vmem:[%s2893_s6 + $0x160] sm:$0xff] %v563_v44 }
  0x41   : > { %v567_v46 = vld [vmem:[%s2888_s5 + $0x5c0] sm:$0xff]  ;;  %566 = vst [vmem:[%s2893_s6 + $0x168] sm:$0xff] %v565_v45 }
  0x42   : > { %v569_v47 = vld [vmem:[%s2888_s5 + $0x5e0] sm:$0xff]  ;;  %568 = vst [vmem:[%s2893_s6 + $0x170] sm:$0xff] %v567_v46 }
  0x43   : > { %v571_v48 = vld [vmem:[%s2888_s5 + $0x600] sm:$0xff]  ;;  %570 = vst [vmem:[%s2893_s6 + $0x178] sm:$0xff] %v569_v47 }
  0x44   : > { %v573_v49 = vld [vmem:[%s2888_s5 + $0x620] sm:$0xff]  ;;  %572 = vst [vmem:[%s2893_s6 + $0x180] sm:$0xff] %v571_v48 }
  0x45   : > { %v575_v50 = vld [vmem:[%s2888_s5 + $0x640] sm:$0xff]  ;;  %574 = vst [vmem:[%s2893_s6 + $0x188] sm:$0xff] %v573_v49 }
  0x46   : > { %v577_v51 = vld [vmem:[%s2888_s5 + $0x660] sm:$0xff]  ;;  %576 = vst [vmem:[%s2893_s6 + $0x190] sm:$0xff] %v575_v50 }
  0x47   : > { %v579_v52 = vld [vmem:[%s2888_s5 + $0x680] sm:$0xff]  ;;  %578 = vst [vmem:[%s2893_s6 + $0x198] sm:$0xff] %v577_v51 }
  0x48   : > { %v581_v53 = vld [vmem:[%s2888_s5 + $0x6a0] sm:$0xff]  ;;  %580 = vst [vmem:[%s2893_s6 + $0x1a0] sm:$0xff] %v579_v52 }
  0x49   : > { %v583_v54 = vld [vmem:[%s2888_s5 + $0x6c0] sm:$0xff]  ;;  %582 = vst [vmem:[%s2893_s6 + $0x1a8] sm:$0xff] %v581_v53 }
  0x4a   : > { %v585_v55 = vld [vmem:[%s2888_s5 + $0x6e0] sm:$0xff]  ;;  %584 = vst [vmem:[%s2893_s6 + $0x1b0] sm:$0xff] %v583_v54 }
  0x4b   : > { %v587_v56 = vld [vmem:[%s2888_s5 + $0x700] sm:$0xff]  ;;  %586 = vst [vmem:[%s2893_s6 + $0x1b8] sm:$0xff] %v585_v55 }
  0x4c   : > { %v589_v57 = vld [vmem:[%s2888_s5 + $0x720] sm:$0xff]  ;;  %588 = vst [vmem:[%s2893_s6 + $0x1c0] sm:$0xff] %v587_v56 }
  0x4d   : > { %v591_v58 = vld [vmem:[%s2888_s5 + $0x740] sm:$0xff]  ;;  %590 = vst [vmem:[%s2893_s6 + $0x1c8] sm:$0xff] %v589_v57 }
  0x4e   : > { %v593_v59 = vld [vmem:[%s2888_s5 + $0x760] sm:$0xff]  ;;  %592 = vst [vmem:[%s2893_s6 + $0x1d0] sm:$0xff] %v591_v58 }
  0x4f   : > { %v595_v60 = vld [vmem:[%s2888_s5 + $0x780] sm:$0xff]  ;;  %594 = vst [vmem:[%s2893_s6 + $0x1d8] sm:$0xff] %v593_v59 }
  0x50   : > { %v597_v61 = vld [vmem:[%s2888_s5 + $0x7a0] sm:$0xff]  ;;  %596 = vst [vmem:[%s2893_s6 + $0x1e0] sm:$0xff] %v595_v60 }
  0x51   : > { %v599_v62 = vld [vmem:[%s2888_s5 + $0x7c0] sm:$0xff]  ;;  %598 = vst [vmem:[%s2893_s6 + $0x1e8] sm:$0xff] %v597_v61 }
  0x52   : > { %v601_v63 = vld [vmem:[%s2888_s5 + $0x7e0] sm:$0xff]  ;;  %600 = vst [vmem:[%s2893_s6 + $0x1f0] sm:$0xff] %v599_v62 }
  0x53   : > { %v603_v0 = vld [vmem:[%s2888_s5 + $0x800] sm:$0xff]  ;;  %602 = vst [vmem:[%s2893_s6 + $0x1f8] sm:$0xff] %v601_v63 }
  0x54   : > { %v605_v1 = vld [vmem:[%s2888_s5 + $0x820] sm:$0xff]  ;;  %604 = vst [vmem:[%s2893_s6 + $0x200] sm:$0xff] %v603_v0 }
  0x55   : > { %v607_v2 = vld [vmem:[%s2888_s5 + $0x840] sm:$0xff]  ;;  %606 = vst [vmem:[%s2893_s6 + $0x208] sm:$0xff] %v605_v1 }
  0x56   : > { %v609_v3 = vld [vmem:[%s2888_s5 + $0x860] sm:$0xff]  ;;  %608 = vst [vmem:[%s2893_s6 + $0x210] sm:$0xff] %v607_v2 }
  0x57   : > { %v611_v4 = vld [vmem:[%s2888_s5 + $0x880] sm:$0xff]  ;;  %610 = vst [vmem:[%s2893_s6 + $0x218] sm:$0xff] %v609_v3 }
  0x58   : > { %v613_v5 = vld [vmem:[%s2888_s5 + $0x8a0] sm:$0xff]  ;;  %612 = vst [vmem:[%s2893_s6 + $0x220] sm:$0xff] %v611_v4 }
  0x59   : > { %v615_v6 = vld [vmem:[%s2888_s5 + $0x8c0] sm:$0xff]  ;;  %614 = vst [vmem:[%s2893_s6 + $0x228] sm:$0xff] %v613_v5 }
  0x5a   : > { %v617_v7 = vld [vmem:[%s2888_s5 + $0x8e0] sm:$0xff]  ;;  %616 = vst [vmem:[%s2893_s6 + $0x230] sm:$0xff] %v615_v6 }
  0x5b   : > { %v619_v8 = vld [vmem:[%s2888_s5 + $0x900] sm:$0xff]  ;;  %618 = vst [vmem:[%s2893_s6 + $0x238] sm:$0xff] %v617_v7 }
  0x5c   : > { %v621_v9 = vld [vmem:[%s2888_s5 + $0x920] sm:$0xff]  ;;  %620 = vst [vmem:[%s2893_s6 + $0x240] sm:$0xff] %v619_v8 }
  0x5d   : > { %v623_v10 = vld [vmem:[%s2888_s5 + $0x940] sm:$0xff]  ;;  %622 = vst [vmem:[%s2893_s6 + $0x248] sm:$0xff] %v621_v9 }
  0x5e   : > { %v625_v11 = vld [vmem:[%s2888_s5 + $0x960] sm:$0xff]  ;;  %624 = vst [vmem:[%s2893_s6 + $0x250] sm:$0xff] %v623_v10 }
  0x5f   : > { %v627_v12 = vld [vmem:[%s2888_s5 + $0x980] sm:$0xff]  ;;  %626 = vst [vmem:[%s2893_s6 + $0x258] sm:$0xff] %v625_v11 }
  0x60   : > { %v629_v13 = vld [vmem:[%s2888_s5 + $0x9a0] sm:$0xff]  ;;  %628 = vst [vmem:[%s2893_s6 + $0x260] sm:$0xff] %v627_v12 }
  0x61   : > { %v631_v14 = vld [vmem:[%s2888_s5 + $0x9c0] sm:$0xff]  ;;  %630 = vst [vmem:[%s2893_s6 + $0x268] sm:$0xff] %v629_v13 }
  0x62   : > { %v633_v15 = vld [vmem:[%s2888_s5 + $0x9e0] sm:$0xff]  ;;  %632 = vst [vmem:[%s2893_s6 + $0x270] sm:$0xff] %v631_v14 }
  0x63   : > { %v635_v16 = vld [vmem:[%s2888_s5 + $0xa00] sm:$0xff]  ;;  %634 = vst [vmem:[%s2893_s6 + $0x278] sm:$0xff] %v633_v15 }
  0x64   : > { %v637_v17 = vld [vmem:[%s2888_s5 + $0xa20] sm:$0xff]  ;;  %636 = vst [vmem:[%s2893_s6 + $0x280] sm:$0xff] %v635_v16 }
  0x65   : > { %v639_v18 = vld [vmem:[%s2888_s5 + $0xa40] sm:$0xff]  ;;  %638 = vst [vmem:[%s2893_s6 + $0x288] sm:$0xff] %v637_v17 }
  0x66   : > { %v641_v19 = vld [vmem:[%s2888_s5 + $0xa60] sm:$0xff]  ;;  %640 = vst [vmem:[%s2893_s6 + $0x290] sm:$0xff] %v639_v18 }
  0x67   : > { %v643_v20 = vld [vmem:[%s2888_s5 + $0xa80] sm:$0xff]  ;;  %642 = vst [vmem:[%s2893_s6 + $0x298] sm:$0xff] %v641_v19 }
  0x68   : > { %v645_v21 = vld [vmem:[%s2888_s5 + $0xaa0] sm:$0xff]  ;;  %644 = vst [vmem:[%s2893_s6 + $0x2a0] sm:$0xff] %v643_v20 }
  0x69   : > { %v647_v22 = vld [vmem:[%s2888_s5 + $0xac0] sm:$0xff]  ;;  %646 = vst [vmem:[%s2893_s6 + $0x2a8] sm:$0xff] %v645_v21 }
  0x6a   : > { %v649_v23 = vld [vmem:[%s2888_s5 + $0xae0] sm:$0xff]  ;;  %648 = vst [vmem:[%s2893_s6 + $0x2b0] sm:$0xff] %v647_v22 }
  0x6b   : > { %v651_v24 = vld [vmem:[%s2888_s5 + $0xb00] sm:$0xff]  ;;  %650 = vst [vmem:[%s2893_s6 + $0x2b8] sm:$0xff] %v649_v23 }
  0x6c   : > { %v653_v25 = vld [vmem:[%s2888_s5 + $0xb20] sm:$0xff]  ;;  %652 = vst [vmem:[%s2893_s6 + $0x2c0] sm:$0xff] %v651_v24 }
  0x6d   : > { %v655_v26 = vld [vmem:[%s2888_s5 + $0xb40] sm:$0xff]  ;;  %654 = vst [vmem:[%s2893_s6 + $0x2c8] sm:$0xff] %v653_v25 }
  0x6e   : > { %v657_v27 = vld [vmem:[%s2888_s5 + $0xb60] sm:$0xff]  ;;  %656 = vst [vmem:[%s2893_s6 + $0x2d0] sm:$0xff] %v655_v26 }
  0x6f   : > { %v659_v28 = vld [vmem:[%s2888_s5 + $0xb80] sm:$0xff]  ;;  %658 = vst [vmem:[%s2893_s6 + $0x2d8] sm:$0xff] %v657_v27 }
  0x70   : > { %v661_v29 = vld [vmem:[%s2888_s5 + $0xba0] sm:$0xff]  ;;  %660 = vst [vmem:[%s2893_s6 + $0x2e0] sm:$0xff] %v659_v28 }
  0x71   : > { %v663_v30 = vld [vmem:[%s2888_s5 + $0xbc0] sm:$0xff]  ;;  %662 = vst [vmem:[%s2893_s6 + $0x2e8] sm:$0xff] %v661_v29 }
  0x72   : > { %v665_v31 = vld [vmem:[%s2888_s5 + $0xbe0] sm:$0xff]  ;;  %664 = vst [vmem:[%s2893_s6 + $0x2f0] sm:$0xff] %v663_v30 }
  0x73   : > { %v667_v32 = vld [vmem:[%s2888_s5 + $0xc00] sm:$0xff]  ;;  %666 = vst [vmem:[%s2893_s6 + $0x2f8] sm:$0xff] %v665_v31 }
  0x74   : > { %v669_v33 = vld [vmem:[%s2888_s5 + $0xc20] sm:$0xff]  ;;  %668 = vst [vmem:[%s2893_s6 + $0x300] sm:$0xff] %v667_v32 }
  0x75   : > { %v671_v34 = vld [vmem:[%s2888_s5 + $0xc40] sm:$0xff]  ;;  %670 = vst [vmem:[%s2893_s6 + $0x308] sm:$0xff] %v669_v33 }
  0x76   : > { %v673_v35 = vld [vmem:[%s2888_s5 + $0xc60] sm:$0xff]  ;;  %672 = vst [vmem:[%s2893_s6 + $0x310] sm:$0xff] %v671_v34 }
  0x77   : > { %v675_v36 = vld [vmem:[%s2888_s5 + $0xc80] sm:$0xff]  ;;  %674 = vst [vmem:[%s2893_s6 + $0x318] sm:$0xff] %v673_v35 }
  0x78   : > { %v677_v37 = vld [vmem:[%s2888_s5 + $0xca0] sm:$0xff]  ;;  %676 = vst [vmem:[%s2893_s6 + $0x320] sm:$0xff] %v675_v36 }
  0x79   : > { %v679_v38 = vld [vmem:[%s2888_s5 + $0xcc0] sm:$0xff]  ;;  %678 = vst [vmem:[%s2893_s6 + $0x328] sm:$0xff] %v677_v37 }
  0x7a   : > { %v681_v39 = vld [vmem:[%s2888_s5 + $0xce0] sm:$0xff]  ;;  %680 = vst [vmem:[%s2893_s6 + $0x330] sm:$0xff] %v679_v38 }
  0x7b   : > { %v683_v40 = vld [vmem:[%s2888_s5 + $0xd00] sm:$0xff]  ;;  %682 = vst [vmem:[%s2893_s6 + $0x338] sm:$0xff] %v681_v39 }
  0x7c   : > { %v685_v41 = vld [vmem:[%s2888_s5 + $0xd20] sm:$0xff]  ;;  %684 = vst [vmem:[%s2893_s6 + $0x340] sm:$0xff] %v683_v40 }
  0x7d   : > { %v687_v42 = vld [vmem:[%s2888_s5 + $0xd40] sm:$0xff]  ;;  %686 = vst [vmem:[%s2893_s6 + $0x348] sm:$0xff] %v685_v41 }
  0x7e   : > { %v689_v43 = vld [vmem:[%s2888_s5 + $0xd60] sm:$0xff]  ;;  %688 = vst [vmem:[%s2893_s6 + $0x350] sm:$0xff] %v687_v42 }
  0x7f   : > { %v691_v44 = vld [vmem:[%s2888_s5 + $0xd80] sm:$0xff]  ;;  %690 = vst [vmem:[%s2893_s6 + $0x358] sm:$0xff] %v689_v43 }
  0x80   : > { %v693_v45 = vld [vmem:[%s2888_s5 + $0xda0] sm:$0xff]  ;;  %692 = vst [vmem:[%s2893_s6 + $0x360] sm:$0xff] %v691_v44 }
  0x81   : > { %v695_v46 = vld [vmem:[%s2888_s5 + $0xdc0] sm:$0xff]  ;;  %694 = vst [vmem:[%s2893_s6 + $0x368] sm:$0xff] %v693_v45 }
  0x82   : > { %v697_v47 = vld [vmem:[%s2888_s5 + $0xde0] sm:$0xff]  ;;  %696 = vst [vmem:[%s2893_s6 + $0x370] sm:$0xff] %v695_v46 }
  0x83   : > { %v699_v48 = vld [vmem:[%s2888_s5 + $0xe00] sm:$0xff]  ;;  %698 = vst [vmem:[%s2893_s6 + $0x378] sm:$0xff] %v697_v47 }
  0x84   : > { %v701_v49 = vld [vmem:[%s2888_s5 + $0xe20] sm:$0xff]  ;;  %700 = vst [vmem:[%s2893_s6 + $0x380] sm:$0xff] %v699_v48 }
  0x85   : > { %v703_v50 = vld [vmem:[%s2888_s5 + $0xe40] sm:$0xff]  ;;  %702 = vst [vmem:[%s2893_s6 + $0x388] sm:$0xff] %v701_v49 }
  0x86   : > { %v705_v51 = vld [vmem:[%s2888_s5 + $0xe60] sm:$0xff]  ;;  %704 = vst [vmem:[%s2893_s6 + $0x390] sm:$0xff] %v703_v50 }
  0x87   : > { %v707_v52 = vld [vmem:[%s2888_s5 + $0xe80] sm:$0xff]  ;;  %706 = vst [vmem:[%s2893_s6 + $0x398] sm:$0xff] %v705_v51 }
  0x88   : > { %v709_v53 = vld [vmem:[%s2888_s5 + $0xea0] sm:$0xff]  ;;  %708 = vst [vmem:[%s2893_s6 + $0x3a0] sm:$0xff] %v707_v52 }
  0x89   : > { %v711_v54 = vld [vmem:[%s2888_s5 + $0xec0] sm:$0xff]  ;;  %710 = vst [vmem:[%s2893_s6 + $0x3a8] sm:$0xff] %v709_v53 }
  0x8a   : > { %v713_v55 = vld [vmem:[%s2888_s5 + $0xee0] sm:$0xff]  ;;  %712 = vst [vmem:[%s2893_s6 + $0x3b0] sm:$0xff] %v711_v54 }
  0x8b   : > { %v715_v56 = vld [vmem:[%s2888_s5 + $0xf00] sm:$0xff]  ;;  %714 = vst [vmem:[%s2893_s6 + $0x3b8] sm:$0xff] %v713_v55 }
  0x8c   : > { %v717_v57 = vld [vmem:[%s2888_s5 + $0xf20] sm:$0xff]  ;;  %716 = vst [vmem:[%s2893_s6 + $0x3c0] sm:$0xff] %v715_v56 }
  0x8d   : > { %v719_v58 = vld [vmem:[%s2888_s5 + $0xf40] sm:$0xff]  ;;  %718 = vst [vmem:[%s2893_s6 + $0x3c8] sm:$0xff] %v717_v57 }
  0x8e   : > { %v721_v59 = vld [vmem:[%s2888_s5 + $0xf60] sm:$0xff]  ;;  %720 = vst [vmem:[%s2893_s6 + $0x3d0] sm:$0xff] %v719_v58 }
  0x8f   : > { %v723_v60 = vld [vmem:[%s2888_s5 + $0xf80] sm:$0xff]  ;;  %722 = vst [vmem:[%s2893_s6 + $0x3d8] sm:$0xff] %v721_v59 }
  0x90   : > { %v725_v61 = vld [vmem:[%s2888_s5 + $0xfa0] sm:$0xff]  ;;  %724 = vst [vmem:[%s2893_s6 + $0x3e0] sm:$0xff] %v723_v60 }
  0x91   : > { %v727_v62 = vld [vmem:[%s2888_s5 + $0xfc0] sm:$0xff]  ;;  %726 = vst [vmem:[%s2893_s6 + $0x3e8] sm:$0xff] %v725_v61 }
  0x92   : > { %v729_v63 = vld [vmem:[%s2888_s5 + $0xfe0] sm:$0xff]  ;;  %728 = vst [vmem:[%s2893_s6 + $0x3f0] sm:$0xff] %v727_v62 }
  0x93   : > { %730 = vst [vmem:[%s2893_s6 + $0x3f8] sm:$0xff] %v729_v63 }
  0x94 PF: > { %p2043_p8 = scmp.ge.s32.totalorder %s2813_s19, 1  ;;  %p751_p9 = scmp.lt.s32.totalorder %s2813_s19, 5 }
  0x96   : > { %p752_p10 = pnand %p2043_p8, %p751_p9 }
  0x97   : > { %s758_s7 = sand.u32 (!%p752_p10), 1, %s2797_s15  }
  0x98   : > { %755 = sbr.rel (%p752_p10) target bundleno = 450 (0x1c2), region = 70  ;;  %s2044_s8 = sshll.u32 (!%p752_p10), %s758_s7, 10 }
  0x99   : > { %s3153_s9 = scalar_lea.vmem (!%p752_p10), [#allocation2], %s2044_s8  ;;  %s2045_s22 = sshll.u32 (!%p752_p10), %s758_s7, 4 }
  0x9a   : > { %s795_s23 = scalar_lea.vmem (!%p752_p10), [#allocation3], %s2045_s22 }
  0x9d   : > { %v2138_v0 = vld [vmem:[%s3153_s9 + $0x70] sm:$0xf]  ;;  %v2621_v1 = vld [vmem:[%s3153_s9 + $0x74] sm:$0xf0]  ;;  %v2130_v11 = vld [vmem:[%s3153_s9 + $0x60] sm:$0xf] }
  0x9e   : > { %v2202_v2 = vld [vmem:[%s3153_s9 + $0xf0] sm:$0xf]  ;;  %v2139_v3 = vor.u32 %v2621_v1, %v2138_v0  ;;  %v2637_v4 = vld [vmem:[%s3153_s9 + $0xf4] sm:$0xf0]  ;;  %v2619_v13 = vld [vmem:[%s3153_s9 + $0x64] sm:$0xf0] }
  0x9f   : > { %v2266_v5 = vld [vmem:[%s3153_s9 + $0x170] sm:$0xf]  ;;  %v2653_v6 = vld [vmem:[%s3153_s9 + $0x174] sm:$0xf0]  ;;  %v2203_v7 = vor.u32 %v2637_v4, %v2202_v2  ;;  %v2194_v14 = vld [vmem:[%s3153_s9 + $0xe0] sm:$0xf]  ;;  %v2131_v16 = vor.u32 %v2619_v13, %v2130_v11 }
  0xa0   : > { %v2267_v8 = vor.u32 %v2653_v6, %v2266_v5  ;;  %v2330_v9 = vld [vmem:[%s3153_s9 + $0x1f0] sm:$0xf]  ;;  %v2669_v10 = vld [vmem:[%s3153_s9 + $0x1f4] sm:$0xf0]  ;;  %1632 = vmatpush.bf16.msra.mxu0 %v2139_v3  ;;  %v2635_v15 = vld [vmem:[%s3153_s9 + $0xe4] sm:$0xf0] }
  0xa1   : > { %v2331_v12 = vor.u32 %v2669_v10, %v2330_v9  ;;  %1646 = vmatpush.bf16.msra.mxu1 %v2203_v7  ;;  %v2195_v17 = vor.u32 %v2635_v15, %v2194_v14  ;;  %v2258_v18 = vld [vmem:[%s3153_s9 + $0x160] sm:$0xf]  ;;  %v2651_v19 = vld [vmem:[%s3153_s9 + $0x164] sm:$0xf0]  ;;  %v2122_v23 = vld [vmem:[%s3153_s9 + $0x50] sm:$0xf] }
  0xa2   : > { %1660 = vmatpush.bf16.msra.mxu2 %v2267_v8  ;;  %v2322_v20 = vld [vmem:[%s3153_s9 + $0x1e0] sm:$0xf]  ;;  %v2259_v21 = vor.u32 %v2651_v19, %v2258_v18  ;;  %v2667_v22 = vld [vmem:[%s3153_s9 + $0x1e4] sm:$0xf0]  ;;  %v2617_v24 = vld [vmem:[%s3153_s9 + $0x54] sm:$0xf0] }
  0xa3   : > { %1674 = vmatpush.bf16.msra.mxu3 %v2331_v12  ;;  %v2323_v25 = vor.u32 %v2667_v22, %v2322_v20  ;;  %v2186_v26 = vld [vmem:[%s3153_s9 + $0xd0] sm:$0xf]  ;;  %v2633_v27 = vld [vmem:[%s3153_s9 + $0xd4] sm:$0xf0]  ;;  %v2123_v29 = vor.u32 %v2617_v24, %v2122_v23  ;;  %v2114_v35 = vld [vmem:[%s3153_s9 + $0x40] sm:$0xf] }
  0xa4   : > { %v2250_v28 = vld [vmem:[%s3153_s9 + $0x150] sm:$0xf]  ;;  %1633 = vmatpush.bf16.msra.mxu0 %v2131_v16  ;;  %v2649_v30 = vld [vmem:[%s3153_s9 + $0x154] sm:$0xf0]  ;;  %v2187_v33 = vor.u32 %v2633_v27, %v2186_v26  ;;  %v2615_v36 = vld [vmem:[%s3153_s9 + $0x44] sm:$0xf0] }
  0xa5   : > { %v2314_v31 = vld [vmem:[%s3153_s9 + $0x1d0] sm:$0xf]  ;;  %v2665_v32 = vld [vmem:[%s3153_s9 + $0x1d4] sm:$0xf0]  ;;  %1647 = vmatpush.bf16.msra.mxu1 %v2195_v17  ;;  %v2251_v34 = vor.u32 %v2649_v30, %v2250_v28  ;;  %v2178_v37 = vld [vmem:[%s3153_s9 + $0xc0] sm:$0xf]  ;;  %v2115_v44 = vor.u32 %v2615_v36, %v2114_v35 }
  0xa6   : > { %1661 = vmatpush.bf16.msra.mxu2 %v2259_v21  ;;  %v2315_v38 = vor.u32 %v2665_v32, %v2314_v31  ;;  %v2631_v39 = vld [vmem:[%s3153_s9 + $0xc4] sm:$0xf0]  ;;  %v2242_v40 = vld [vmem:[%s3153_s9 + $0x140] sm:$0xf]  ;;  %v2106_v47 = vld [vmem:[%s3153_s9 + $0x30] sm:$0xf] }
  0xa7   : > { %1675 = vmatpush.bf16.msra.mxu3 %v2323_v25  ;;  %v2647_v41 = vld [vmem:[%s3153_s9 + $0x144] sm:$0xf0]  ;;  %v2306_v42 = vld [vmem:[%s3153_s9 + $0x1c0] sm:$0xf]  ;;  %v2179_v45 = vor.u32 %v2631_v39, %v2178_v37  ;;  %v2613_v48 = vld [vmem:[%s3153_s9 + $0x34] sm:$0xf0] }
  0xa8   : > { %v2663_v43 = vld [vmem:[%s3153_s9 + $0x1c4] sm:$0xf0]  ;;  %1634 = vmatpush.bf16.msra.mxu0 %v2123_v29  ;;  %v2243_v46 = vor.u32 %v2647_v41, %v2242_v40  ;;  %v2170_v49 = vld [vmem:[%s3153_s9 + $0xb0] sm:$0xf]  ;;  %v2629_v51 = vld [vmem:[%s3153_s9 + $0xb4] sm:$0xf0]  ;;  %v2107_v56 = vor.u32 %v2613_v48, %v2106_v47 }
  0xa9   : > { %1648 = vmatpush.bf16.msra.mxu1 %v2187_v33  ;;  %v2307_v50 = vor.u32 %v2663_v43, %v2306_v42  ;;  %v2234_v52 = vld [vmem:[%s3153_s9 + $0x130] sm:$0xf]  ;;  %v2645_v53 = vld [vmem:[%s3153_s9 + $0x134] sm:$0xf0]  ;;  %v2171_v57 = vor.u32 %v2629_v51, %v2170_v49  ;;  %v2098_v59 = vld [vmem:[%s3153_s9 + $0x20] sm:$0xf] }
  0xaa   : > { %1662 = vmatpush.bf16.msra.mxu2 %v2251_v34  ;;  %v2298_v54 = vld [vmem:[%s3153_s9 + $0x1b0] sm:$0xf]  ;;  %v2661_v55 = vld [vmem:[%s3153_s9 + $0x1b4] sm:$0xf0]  ;;  %v2235_v58 = vor.u32 %v2645_v53, %v2234_v52  ;;  %v2611_v60 = vld [vmem:[%s3153_s9 + $0x24] sm:$0xf0] }
  0xab   : > { %1676 = vmatpush.bf16.msra.mxu3 %v2315_v38  ;;  %v2162_v61 = vld [vmem:[%s3153_s9 + $0xa0] sm:$0xf]  ;;  %v2299_v62 = vor.u32 %v2661_v55, %v2298_v54  ;;  %v2627_v63 = vld [vmem:[%s3153_s9 + $0xa4] sm:$0xf0]  ;;  %v2099_v4 = vor.u32 %v2611_v60, %v2098_v59  ;;  %v2090_v7 = vld [vmem:[%s3153_s9 + $0x10] sm:$0xf] }
  0xac   : > { %1635 = vmatpush.bf16.msra.mxu0 %v2115_v44  ;;  %v2226_v0 = vld [vmem:[%s3153_s9 + $0x120] sm:$0xf]  ;;  %v2643_v1 = vld [vmem:[%s3153_s9 + $0x124] sm:$0xf0]  ;;  %v2163_v5 = vor.u32 %v2627_v63, %v2162_v61  ;;  %v2609_v8 = vld [vmem:[%s3153_s9 + $0x14] sm:$0xf0] }
  0xad   : > { %1649 = vmatpush.bf16.msra.mxu1 %v2179_v45  ;;  %v2290_v2 = vld [vmem:[%s3153_s9 + $0x1a0] sm:$0xf]  ;;  %v2659_v3 = vld [vmem:[%s3153_s9 + $0x1a4] sm:$0xf0]  ;;  %v2227_v6 = vor.u32 %v2643_v1, %v2226_v0  ;;  %v2154_v9 = vld [vmem:[%s3153_s9 + $0x90] sm:$0xf]  ;;  %v2091_v16 = vor.u32 %v2609_v8, %v2090_v7 }
  0xae   : > { %1663 = vmatpush.bf16.msra.mxu2 %v2243_v46  ;;  %v2291_v10 = vor.u32 %v2659_v3, %v2290_v2  ;;  %v2625_v11 = vld [vmem:[%s3153_s9 + $0x94] sm:$0xf0]  ;;  %v2218_v12 = vld [vmem:[%s3153_s9 + $0x110] sm:$0xf]  ;;  %v2082_v17 = vld [vmem:[%s3153_s9] sm:$0xf] }
  0xaf   : > { %1677 = vmatpush.bf16.msra.mxu3 %v2307_v50  ;;  %v2641_v13 = vld [vmem:[%s3153_s9 + $0x114] sm:$0xf0]  ;;  %v2282_v14 = vld [vmem:[%s3153_s9 + $0x190] sm:$0xf]  ;;  %v2607_v18 = vld [vmem:[%s3153_s9 + $0x4] sm:$0xf0]  ;;  %v2155_v19 = vor.u32 %v2625_v11, %v2154_v9 }
  0xb0   : > { %1636 = vmatpush.bf16.msra.mxu0 %v2107_v56  ;;  %v2657_v15 = vld [vmem:[%s3153_s9 + $0x194] sm:$0xf0]  ;;  %v2219_v20 = vor.u32 %v2641_v13, %v2218_v12  ;;  %v2146_v21 = vld [vmem:[%s3153_s9 + $0x80] sm:$0xf]  ;;  %v2623_v22 = vld [vmem:[%s3153_s9 + $0x84] sm:$0xf0]  ;;  %v2083_v31 = vor.u32 %v2607_v18, %v2082_v17 }
  0xb1   : > { %1650 = vmatpush.bf16.msra.mxu1 %v2171_v57  ;;  %v2210_v23 = vld [vmem:[%s3153_s9 + $0x100] sm:$0xf]  ;;  %v2283_v24 = vor.u32 %v2657_v15, %v2282_v14  ;;  %v2639_v25 = vld [vmem:[%s3153_s9 + $0x104] sm:$0xf0]  ;;  %v2394_v28 = vld [vmem:[%s3153_s9 + $0x270] sm:$0xf]  ;;  %v2147_v35 = vor.u32 %v2623_v22, %v2146_v21 }
  0xb2   : > { %1664 = vmatpush.bf16.msra.mxu2 %v2235_v58  ;;  %v2274_v26 = vld [vmem:[%s3153_s9 + $0x180] sm:$0xf]  ;;  %v2655_v27 = vld [vmem:[%s3153_s9 + $0x184] sm:$0xf0]  ;;  %v2685_v29 = vld [vmem:[%s3153_s9 + $0x274] sm:$0xf0]  ;;  %v2211_v36 = vor.u32 %v2639_v25, %v2210_v23 }
  0xb3   : > { %1678 = vmatpush.bf16.msra.mxu3 %v2299_v62  ;;  %v2458_v30 = vld [vmem:[%s3153_s9 + $0x2f0] sm:$0xf]  ;;  %v2701_v32 = vld [vmem:[%s3153_s9 + $0x2f4] sm:$0xf0]  ;;  %v2275_v39 = vor.u32 %v2655_v27, %v2274_v26  ;;  %v2395_v40 = vor.u32 %v2685_v29, %v2394_v28  ;;  %v2386_v41 = vld [vmem:[%s3153_s9 + $0x260] sm:$0xf] }
  0xb4   : > { %1637 = vmatpush.bf16.msra.mxu0 %v2099_v4  ;;  %v2522_v33 = vld [vmem:[%s3153_s9 + $0x370] sm:$0xf]  ;;  %v2717_v34 = vld [vmem:[%s3153_s9 + $0x374] sm:$0xf0]  ;;  %v2683_v42 = vld [vmem:[%s3153_s9 + $0x264] sm:$0xf0]  ;;  %v2459_v43 = vor.u32 %v2701_v32, %v2458_v30 }
  0xb5   : > { %1651 = vmatpush.bf16.msra.mxu1 %v2163_v5  ;;  %v2586_v37 = vld [vmem:[%s3153_s9 + $0x3f0] sm:$0xf]  ;;  %v2733_v38 = vld [vmem:[%s3153_s9 + $0x3f4] sm:$0xf0]  ;;  %v2523_v44 = vor.u32 %v2717_v34, %v2522_v33  ;;  %v2450_v45 = vld [vmem:[%s3153_s9 + $0x2e0] sm:$0xf]  ;;  %v2387_v55 = vor.u32 %v2683_v42, %v2386_v41 }
  0xb6   : > { %1665 = vmatpush.bf16.msra.mxu2 %v2227_v6  ;;  %v2699_v46 = vld [vmem:[%s3153_s9 + $0x2e4] sm:$0xf0]  ;;  %v2514_v47 = vld [vmem:[%s3153_s9 + $0x360] sm:$0xf]  ;;  %v2587_v48 = vor.u32 %v2733_v38, %v2586_v37  ;;  %v2378_v56 = vld [vmem:[%s3153_s9 + $0x250] sm:$0xf] }
  0xb7   : > { %1679 = vmatpush.bf16.msra.mxu3 %v2291_v10  ;;  %v2715_v49 = vld [vmem:[%s3153_s9 + $0x364] sm:$0xf0]  ;;  %v2578_v50 = vld [vmem:[%s3153_s9 + $0x3e0] sm:$0xf]  ;;  %v2681_v57 = vld [vmem:[%s3153_s9 + $0x254] sm:$0xf0]  ;;  %v2451_v60 = vor.u32 %v2699_v46, %v2450_v45 }
  0xb8   : > { %1638 = vmatpush.bf16.msra.mxu0 %v2091_v16  ;;  %v2731_v51 = vld [vmem:[%s3153_s9 + $0x3e4] sm:$0xf0]  ;;  %v2050_v52 = vld [vmem:[%s3521_s0] sm:$0xf]  ;;  %v2515_v61 = vor.u32 %v2715_v49, %v2514_v47  ;;  %v2442_v62 = vld [vmem:[%s3153_s9 + $0x2d0] sm:$0xf]  ;;  %v2379_v9 = vor.u32 %v2681_v57, %v2378_v56 }
  0xb9   : > { %1652 = vmatpush.bf16.msra.mxu1 %v2155_v19  ;;  %v2602_v53 = vld [vmem:[%s3521_s0 + $0x1c] sm:$0xf0]  ;;  %v2058_v54 = vld [vmem:[%s3521_s0 + $0x8] sm:$0xf]  ;;  %v2697_v63 = vld [vmem:[%s3153_s9 + $0x2d4] sm:$0xf0]  ;;  %v2579_v2 = vor.u32 %v2731_v51, %v2578_v50 }
  0xba   : > { %1666 = vmatpush.bf16.msra.mxu2 %v2219_v20  ;;  %v3246_v58 = vor.u32 %v2602_v53, %v2050_v52  ;;  %v2603_v59 = vld [vmem:[%s3521_s0 + $0x24] sm:$0xf0]  ;;  %v2506_v0 = vld [vmem:[%s3153_s9 + $0x350] sm:$0xf]  ;;  %v2713_v3 = vld [vmem:[%s3153_s9 + $0x354] sm:$0xf0]  ;;  %v2443_v12 = vor.u32 %v2697_v63, %v2442_v62 }
  0xbb   : > { %1680 = vmatpush.bf16.msra.mxu3 %v2283_v24  ;;  %v3254_v1 = vor.u32 %v2603_v59, %v2058_v54  ;;  %v2570_v4 = vld [vmem:[%s3153_s9 + $0x3d0] sm:$0xf]  ;;  %v2729_v5 = vld [vmem:[%s3153_s9 + $0x3d4] sm:$0xf0]  ;;  %v2598_v6 = vld [vmem:[%s3521_s0 + $0x4] sm:$0xf]  ;;  %v2507_v13 = vor.u32 %v2713_v3, %v2506_v0 }
  0xbc   : > { %1639 = vmatpush.bf16.msra.mxu0 %v2083_v31  ;;  %v2052_v7 = vld [vmem:[%s3521_s0 + $0x20] sm:$0xf0]  ;;  %v2599_v8 = vld [vmem:[%s3521_s0 + $0xc] sm:$0xf]  ;;  %v2370_v14 = vld [vmem:[%s3153_s9 + $0x240] sm:$0xf]  ;;  %v2571_v18 = vor.u32 %v2729_v5, %v2570_v4 }
  0xbd   : > { %1653 = vmatpush.bf16.msra.mxu1 %v2147_v35  ;;  %v3270_v10 = vor.u32 %v2598_v6, %v2052_v7  ;;  %v2060_v11 = vld [vmem:[%s3521_s0 + $0x28] sm:$0xf0]  ;;  %v2679_v15 = vld [vmem:[%s3153_s9 + $0x244] sm:$0xf0]  ;;  %v2434_v16 = vld [vmem:[%s3153_s9 + $0x2c0] sm:$0xf] }
  0xbe   : > { %1667 = vmatpush.bf16.msra.mxu2 %v2211_v36  ;;  %v3278_v17 = vor.u32 %v2599_v8, %v2060_v11  ;;  %v2695_v19 = vld [vmem:[%s3153_s9 + $0x2c4] sm:$0xf0]  ;;  %v2498_v20 = vld [vmem:[%s3153_s9 + $0x340] sm:$0xf]  ;;  %v2371_v24 = vor.u32 %v2679_v15, %v2370_v14  ;;  %v2362_v27 = vld [vmem:[%s3153_s9 + $0x230] sm:$0xf] }
  0xbf   : > { %1681 = vmatpush.bf16.msra.mxu3 %v2275_v39  ;;  %1640 = vmatmul.bf16.vlgmr.msra.gmra.mxu0 %v3246_v58  ;;  %v2711_v21 = vld [vmem:[%s3153_s9 + $0x344] sm:$0xf0]  ;;  %v2562_v22 = vld [vmem:[%s3153_s9 + $0x3c0] sm:$0xf]  ;;  %v2435_v25 = vor.u32 %v2695_v19, %v2434_v16  ;;  %v2677_v28 = vld [vmem:[%s3153_s9 + $0x234] sm:$0xf0] }
  0xc0   : > { %1688 = vmatpush.bf16.msrb.mxu0 %v2395_v40  ;;  %1654 = vmatmul.bf16.vlgmr.msra.gmra.mxu1 %v3270_v10  ;;  %v2727_v23 = vld [vmem:[%s3153_s9 + $0x3c4] sm:$0xf0]  ;;  %v2499_v26 = vor.u32 %v2711_v21, %v2498_v20  ;;  %v2426_v29 = vld [vmem:[%s3153_s9 + $0x2b0] sm:$0xf]  ;;  %v2693_v31 = vld [vmem:[%s3153_s9 + $0x2b4] sm:$0xf0]  ;;  %v2363_v36 = vor.u32 %v2677_v28, %v2362_v27 }
  0xc1   : > { %1702 = vmatpush.bf16.msrb.mxu1 %v2459_v43  ;;  %1668 = vmatmul.bf16.vlgmr.msra.gmra.mxu2 %v3254_v1  ;;  %v2563_v30 = vor.u32 %v2727_v23, %v2562_v22  ;;  %v2490_v32 = vld [vmem:[%s3153_s9 + $0x330] sm:$0xf]  ;;  %v2709_v33 = vld [vmem:[%s3153_s9 + $0x334] sm:$0xf0]  ;;  %v2427_v37 = vor.u32 %v2693_v31, %v2426_v29  ;;  %v2354_v39 = vld [vmem:[%s3153_s9 + $0x220] sm:$0xf] }
  0xc2   : > { %1716 = vmatpush.bf16.msrb.mxu2 %v2523_v44  ;;  %1682 = vmatmul.bf16.vlgmr.msra.gmra.mxu3 %v3278_v17  ;;  %v2554_v34 = vld [vmem:[%s3153_s9 + $0x3b0] sm:$0xf]  ;;  %v2725_v35 = vld [vmem:[%s3153_s9 + $0x3b4] sm:$0xf0]  ;;  %v2491_v38 = vor.u32 %v2709_v33, %v2490_v32  ;;  %v2675_v40 = vld [vmem:[%s3153_s9 + $0x224] sm:$0xf0] }
  0xc3   : > { %1730 = vmatpush.bf16.msrb.mxu3 %v2587_v48  ;;  %v2418_v41 = vld [vmem:[%s3153_s9 + $0x2a0] sm:$0xf]  ;;  %v2555_v42 = vor.u32 %v2725_v35, %v2554_v34  ;;  %v2691_v43 = vld [vmem:[%s3153_s9 + $0x2a4] sm:$0xf0]  ;;  %v2355_v48 = vor.u32 %v2675_v40, %v2354_v39  ;;  %v2346_v49 = vld [vmem:[%s3153_s9 + $0x210] sm:$0xf] }
  0xc4   : > { %1689 = vmatpush.bf16.msrb.mxu0 %v2387_v55  ;;  %v2482_v44 = vld [vmem:[%s3153_s9 + $0x320] sm:$0xf]  ;;  %v2707_v45 = vld [vmem:[%s3153_s9 + $0x324] sm:$0xf0]  ;;  %v2419_v50 = vor.u32 %v2691_v43, %v2418_v41  ;;  %v2673_v52 = vld [vmem:[%s3153_s9 + $0x214] sm:$0xf0] }
  0xc5   : > { %1703 = vmatpush.bf16.msrb.mxu1 %v2451_v60  ;;  %v2546_v46 = vld [vmem:[%s3153_s9 + $0x3a0] sm:$0xf]  ;;  %v2723_v47 = vld [vmem:[%s3153_s9 + $0x3a4] sm:$0xf0]  ;;  %v2483_v51 = vor.u32 %v2707_v45, %v2482_v44  ;;  %v2410_v53 = vld [vmem:[%s3153_s9 + $0x290] sm:$0xf]  ;;  %v2347_v63 = vor.u32 %v2673_v52, %v2346_v49 }
  0xc6   : > { %1717 = vmatpush.bf16.msrb.mxu2 %v2515_v61  ;;  %v2689_v54 = vld [vmem:[%s3153_s9 + $0x294] sm:$0xf0]  ;;  %v2547_v55 = vor.u32 %v2723_v47, %v2546_v46  ;;  %v2474_v56 = vld [vmem:[%s3153_s9 + $0x310] sm:$0xf]  ;;  %v2338_v61 = vld [vmem:[%s3153_s9 + $0x200] sm:$0xf] }
  0xc7   : > { %1731 = vmatpush.bf16.msrb.mxu3 %v2579_v2  ;;  %v2705_v57 = vld [vmem:[%s3153_s9 + $0x314] sm:$0xf0]  ;;  %v2538_v59 = vld [vmem:[%s3153_s9 + $0x390] sm:$0xf]  ;;  %v2671_v62 = vld [vmem:[%s3153_s9 + $0x204] sm:$0xf0]  ;;  %v2411_v5 = vor.u32 %v2689_v54, %v2410_v53 }
  0xc8   : > { %1690 = vmatpush.bf16.msrb.mxu0 %v2379_v9  ;;  %v2721_v60 = vld [vmem:[%s3153_s9 + $0x394] sm:$0xf0]  ;;  %v2402_v0 = vld [vmem:[%s3153_s9 + $0x280] sm:$0xf]  ;;  %v2687_v2 = vld [vmem:[%s3153_s9 + $0x284] sm:$0xf0]  ;;  %v2475_v6 = vor.u32 %v2705_v57, %v2474_v56  ;;  %v2339_v19 = vor.u32 %v2671_v62, %v2338_v61 }
  0xc9   : > { %1704 = vmatpush.bf16.msrb.mxu1 %v2443_v12  ;;  %v2466_v3 = vld [vmem:[%s3153_s9 + $0x300] sm:$0xf]  ;;  %v2703_v4 = vld [vmem:[%s3153_s9 + $0x304] sm:$0xf0]  ;;  %v2620_v9 = vld [vmem:[%s3153_s9 + $0x74] sm:$0xf]  ;;  %v2539_v11 = vor.u32 %v2721_v60, %v2538_v59  ;;  %v2403_v23 = vor.u32 %v2687_v2, %v2402_v0 }
  0xca   : > { %1718 = vmatpush.bf16.msrb.mxu2 %v2507_v13  ;;  %v2530_v7 = vld [vmem:[%s3153_s9 + $0x380] sm:$0xf]  ;;  %v2719_v8 = vld [vmem:[%s3153_s9 + $0x384] sm:$0xf0]  ;;  %v2140_v12 = vld [vmem:[%s3153_s9 + $0x78] sm:$0xf0] }
  0xcb   : > { %1732 = vmatpush.bf16.msrb.mxu3 %v2571_v18  ;;  %v2636_v13 = vld [vmem:[%s3153_s9 + $0xf4] sm:$0xf]  ;;  %v2204_v14 = vld [vmem:[%s3153_s9 + $0xf8] sm:$0xf0]  ;;  %v2066_v21 = vld [vmem:[%s3521_s0 + $0x10] sm:$0xf]  ;;  %v2531_v28 = vor.u32 %v2719_v8, %v2530_v7  ;;  %v2143_v29 = vor.u32 %v2620_v9, %v2140_v12 }
  0xcc   : > { %1691 = vmatpush.bf16.msrb.mxu0 %v2371_v24  ;;  %v2652_v15 = vld [vmem:[%s3153_s9 + $0x174] sm:$0xf]  ;;  %v2268_v16 = vld [vmem:[%s3153_s9 + $0x178] sm:$0xf0]  ;;  %v2604_v22 = vld [vmem:[%s3521_s0 + $0x2c] sm:$0xf0]  ;;  %v2467_v24 = vor.u32 %v2703_v4, %v2466_v3  ;;  %v2207_v33 = vor.u32 %v2636_v13, %v2204_v14 }
  0xcd   : > { %1705 = vmatpush.bf16.msrb.mxu1 %v2435_v25  ;;  %v2668_v18 = vld [vmem:[%s3153_s9 + $0x1f4] sm:$0xf]  ;;  %v2332_v20 = vld [vmem:[%s3153_s9 + $0x1f8] sm:$0xf0]  ;;  %v2074_v25 = vld [vmem:[%s3521_s0 + $0x18] sm:$0xf]  ;;  %v2271_v34 = vor.u32 %v2652_v15, %v2268_v16  ;;  %v3354_v39 = vor.u32 %v2604_v22, %v2066_v21 }
  0xce   : > { %1719 = vmatpush.bf16.msrb.mxu2 %v2499_v26  ;;  %v2605_v26 = vld [vmem:[%s3521_s0 + $0x34] sm:$0xf0]  ;;  %v2600_v27 = vld [vmem:[%s3521_s0 + $0x14] sm:$0xf]  ;;  %v2601_v31 = vld [vmem:[%s3521_s0 + $0x1c] sm:$0xf] }
  0xcf   : > { %1733 = vmatpush.bf16.msrb.mxu3 %v2563_v30  ;;  %v2068_v30 = vld [vmem:[%s3521_s0 + $0x30] sm:$0xf0]  ;;  %v2076_v32 = vld [vmem:[%s3521_s0 + $0x38] sm:$0xf0]  ;;  %v2618_v35 = vld [vmem:[%s3153_s9 + $0x64] sm:$0xf]  ;;  %v3359_v43 = vor.u32 %v2605_v26, %v2074_v25 }
  0xd0   : > { %1692 = vmatpush.bf16.msrb.mxu0 %v2363_v36  ;;  %v2132_v36 = vld [vmem:[%s3153_s9 + $0x68] sm:$0xf0]  ;;  %v2650_v41 = vld [vmem:[%s3153_s9 + $0x164] sm:$0xf]  ;;  %v3361_v44 = vor.u32 %v2600_v27, %v2068_v30  ;;  %v3365_v47 = vor.u32 %v2601_v31, %v2076_v32  ;;  %v2124_v52 = vld [vmem:[%s3153_s9 + $0x58] sm:$0xf0] }
  0xd1   : > { %1706 = vmatpush.bf16.msrb.mxu1 %v2427_v37  ;;  %v2634_v37 = vld [vmem:[%s3153_s9 + $0xe4] sm:$0xf]  ;;  %v2196_v40 = vld [vmem:[%s3153_s9 + $0xe8] sm:$0xf0]  ;;  %v2632_v53 = vld [vmem:[%s3153_s9 + $0xd4] sm:$0xf] }
  0xd2   : > { %1720 = vmatpush.bf16.msrb.mxu2 %v2491_v38  ;;  %v2335_v38 = vor.u32 %v2668_v18, %v2332_v20  ;;  %v2666_v45 = vld [vmem:[%s3153_s9 + $0x1e4] sm:$0xf]  ;;  %v2324_v46 = vld [vmem:[%s3153_s9 + $0x1e8] sm:$0xf0]  ;;  %v2199_v49 = vor.u32 %v2634_v37, %v2196_v40  ;;  %v2648_v56 = vld [vmem:[%s3153_s9 + $0x154] sm:$0xf] }
  0xd3   : > { %1734 = vmatpush.bf16.msrb.mxu3 %v2555_v42  ;;  %v2260_v42 = vld [vmem:[%s3153_s9 + $0x168] sm:$0xf0]  ;;  %v2327_v54 = vor.u32 %v2666_v45, %v2324_v46  ;;  %v2252_v57 = vld [vmem:[%s3153_s9 + $0x158] sm:$0xf0]  ;;  %v2664_v59 = vld [vmem:[%s3153_s9 + $0x1d4] sm:$0xf] }
  0xd4   : > { %1693 = vmatpush.bf16.msrb.mxu0 %v2355_v48  ;;  %v2135_v48 = vor.u32 %v2618_v35, %v2132_v36  ;;  %v2316_v60 = vld [vmem:[%s3153_s9 + $0x1d8] sm:$0xf0]  ;;  %v2614_v0 = vld [vmem:[%s3153_s9 + $0x44] sm:$0xf]  ;;  %v2116_v2 = vld [vmem:[%s3153_s9 + $0x48] sm:$0xf0] }
  0xd5   : > { %1707 = vmatpush.bf16.msrb.mxu1 %v2419_v50  ;;  %v2263_v50 = vor.u32 %v2650_v41, %v2260_v42  ;;  %v2630_v3 = vld [vmem:[%s3153_s9 + $0xc4] sm:$0xf]  ;;  %v2319_v4 = vor.u32 %v2664_v59, %v2316_v60  ;;  %v2244_v7 = vld [vmem:[%s3153_s9 + $0x148] sm:$0xf0]  ;;  %v2612_v14 = vld [vmem:[%s3153_s9 + $0x34] sm:$0xf] }
  0xd6   : > { %1721 = vmatpush.bf16.msrb.mxu2 %v2483_v51  ;;  %v2616_v51 = vld [vmem:[%s3153_s9 + $0x54] sm:$0xf]  ;;  %v2662_v8 = vld [vmem:[%s3153_s9 + $0x1c4] sm:$0xf]  ;;  %v2308_v9 = vld [vmem:[%s3153_s9 + $0x1c8] sm:$0xf0] }
  0xd7   : > { %1735 = vmatpush.bf16.msrb.mxu3 %v2547_v55  ;;  %v2188_v55 = vld [vmem:[%s3153_s9 + $0xd8] sm:$0xf0]  ;;  %v2127_v61 = vor.u32 %v2616_v51, %v2124_v52  ;;  %v2628_v16 = vld [vmem:[%s3153_s9 + $0xb4] sm:$0xf]  ;;  %v2311_v18 = vor.u32 %v2662_v8, %v2308_v9  ;;  %v2610_v27 = vld [vmem:[%s3153_s9 + $0x24] sm:$0xf] }
  0xd8   : > { %1694 = vmatpush.bf16.msrb.mxu0 %v2347_v63  ;;  %v2191_v62 = vor.u32 %v2632_v53, %v2188_v55  ;;  %v2255_v63 = vor.u32 %v2648_v56, %v2252_v57  ;;  %v2108_v15 = vld [vmem:[%s3153_s9 + $0x38] sm:$0xf0]  ;;  %v2644_v20 = vld [vmem:[%s3153_s9 + $0x134] sm:$0xf]  ;;  %v2164_v31 = vld [vmem:[%s3153_s9 + $0xa8] sm:$0xf0] }
  0xd9   : > { %1708 = vmatpush.bf16.msrb.mxu1 %v2411_v5  ;;  %v2180_v5 = vld [vmem:[%s3153_s9 + $0xc8] sm:$0xf0]  ;;  %v2236_v21 = vld [vmem:[%s3153_s9 + $0x138] sm:$0xf0]  ;;  %v2660_v22 = vld [vmem:[%s3153_s9 + $0x1b4] sm:$0xf] }
  0xda   : > { %1722 = vmatpush.bf16.msrb.mxu2 %v2475_v6  ;;  %v2646_v6 = vld [vmem:[%s3153_s9 + $0x144] sm:$0xf]  ;;  %v2183_v12 = vor.u32 %v2630_v3, %v2180_v5  ;;  %v2239_v26 = vor.u32 %v2644_v20, %v2236_v21  ;;  %v2292_v35 = vld [vmem:[%s3153_s9 + $0x1a8] sm:$0xf0]  ;;  %v2608_v40 = vld [vmem:[%s3153_s9 + $0x14] sm:$0xf] }
  0xdb   : > { %1736 = vmatpush.bf16.msrb.mxu3 %v2539_v11  ;;  %v2119_v11 = vor.u32 %v2614_v0, %v2116_v2  ;;  %v2247_v13 = vor.u32 %v2646_v6, %v2244_v7  ;;  %v2642_v32 = vld [vmem:[%s3153_s9 + $0x124] sm:$0xf]  ;;  %v2092_v41 = vld [vmem:[%s3153_s9 + $0x18] sm:$0xf0]  ;;  %v2624_v42 = vld [vmem:[%s3153_s9 + $0x94] sm:$0xf] }
  0xdc   : > { %1695 = vmatpush.bf16.msrb.mxu0 %v2339_v19  ;;  %v2172_v19 = vld [vmem:[%s3153_s9 + $0xb8] sm:$0xf0]  ;;  %v2095_v52 = vor.u32 %v2608_v40, %v2092_v41  ;;  %v2606_v53 = vld [vmem:[%s3153_s9 + $0x4] sm:$0xf]  ;;  %v2148_v59 = vld [vmem:[%s3153_s9 + $0x88] sm:$0xf0] }
  0xdd   : > { %1709 = vmatpush.bf16.msrb.mxu1 %v2403_v23  ;;  %v2300_v23 = vld [vmem:[%s3153_s9 + $0x1b8] sm:$0xf0]  ;;  %v2175_v25 = vor.u32 %v2628_v16, %v2172_v19  ;;  %v2622_v57 = vld [vmem:[%s3153_s9 + $0x84] sm:$0xf]  ;;  %v2276_v0 = vld [vmem:[%s3153_s9 + $0x188] sm:$0xf0] }
  0xde   : > { %1723 = vmatpush.bf16.msrb.mxu2 %v2467_v24  ;;  %v2111_v24 = vor.u32 %v2612_v14, %v2108_v15  ;;  %v2303_v30 = vor.u32 %v2660_v22, %v2300_v23  ;;  %v2156_v46 = vld [vmem:[%s3153_s9 + $0x98] sm:$0xf0]  ;;  %v2638_v60 = vld [vmem:[%s3153_s9 + $0x104] sm:$0xf]  ;;  %v2684_v2 = vld [vmem:[%s3153_s9 + $0x274] sm:$0xf]  ;;  %v2151_v9 = vor.u32 %v2622_v57, %v2148_v59 }
  0xdf   : > { %1737 = vmatpush.bf16.msrb.mxu3 %v2531_v28  ;;  %1696 = vmatmul.bf16.vlgmr.msrb.gmra.mxu0 %v3354_v39  ;;  %v2100_v28 = vld [vmem:[%s3153_s9 + $0x28] sm:$0xf0]  ;;  %v2284_v51 = vld [vmem:[%s3153_s9 + $0x198] sm:$0xf0]  ;;  %v2159_v55 = vor.u32 %v2624_v42, %v2156_v46  ;;  %v2716_v7 = vld [vmem:[%s3153_s9 + $0x374] sm:$0xf] }
  0xe0   : > { %1744 = vmatpush.bf16.msra.mxu0 %v2143_v29  ;;  %1710 = vmatmul.bf16.vlgmr.msrb.gmra.mxu1 %v3361_v44  ;;  %v2626_v29 = vld [vmem:[%s3153_s9 + $0xa4] sm:$0xf]  ;;  %v2103_v36 = vor.u32 %v2610_v27, %v2100_v28  ;;  %v2396_v3 = vld [vmem:[%s3153_s9 + $0x278] sm:$0xf0]  ;;  %v2388_v20 = vld [vmem:[%s3153_s9 + $0x268] sm:$0xf0] }
  0xe1   : > { %1758 = vmatpush.bf16.msra.mxu1 %v2207_v33  ;;  %1724 = vmatmul.bf16.vlgmr.msrb.gmra.mxu2 %v3359_v43  ;;  %v2228_v33 = vld [vmem:[%s3153_s9 + $0x128] sm:$0xf0]  ;;  %v2167_v37 = vor.u32 %v2626_v29, %v2164_v31  ;;  %v2460_v6 = vld [vmem:[%s3153_s9 + $0x2f8] sm:$0xf0]  ;;  %v2399_v15 = vor.u32 %v2684_v2, %v2396_v3  ;;  %v2682_v19 = vld [vmem:[%s3153_s9 + $0x264] sm:$0xf] }
  0xe2   : > { %1772 = vmatpush.bf16.msra.mxu2 %v2271_v34  ;;  %1738 = vmatmul.bf16.vlgmr.msrb.gmra.mxu3 %v3365_v47  ;;  %v2658_v34 = vld [vmem:[%s3153_s9 + $0x1a4] sm:$0xf]  ;;  %v2524_v8 = vld [vmem:[%s3153_s9 + $0x378] sm:$0xf0]  ;;  %v2452_v23 = vld [vmem:[%s3153_s9 + $0x2e8] sm:$0xf0]  ;;  %v2391_v28 = vor.u32 %v2682_v19, %v2388_v20 }
  0xe3   : > { %1786 = vmatpush.bf16.msra.mxu3 %v2335_v38  ;;  %v2231_v38 = vor.u32 %v2642_v32, %v2228_v33  ;;  %v2295_v45 = vor.u32 %v2658_v34, %v2292_v35  ;;  %v2698_v21 = vld [vmem:[%s3153_s9 + $0x2e4] sm:$0xf]  ;;  %v2580_v27 = vld [vmem:[%s3153_s9 + $0x3e8] sm:$0xf0]  ;;  %v2680_v31 = vld [vmem:[%s3153_s9 + $0x254] sm:$0xf] }
  0xe4   : > { %1745 = vmatpush.bf16.msra.mxu0 %v2135_v48  ;;  %v2640_v48 = vld [vmem:[%s3153_s9 + $0x114] sm:$0xf]  ;;  %v2455_v29 = vor.u32 %v2698_v21, %v2452_v23  ;;  %v2380_v32 = vld [vmem:[%s3153_s9 + $0x258] sm:$0xf0]  ;;  %v2694_v46 = vld [vmem:[%s3153_s9 + $0x2c4] sm:$0xf] }
  0xe5   : > { %1759 = vmatpush.bf16.msra.mxu1 %v2199_v49  ;;  %v2220_v49 = vld [vmem:[%s3153_s9 + $0x118] sm:$0xf0]  ;;  %v2696_v33 = vld [vmem:[%s3153_s9 + $0x2d4] sm:$0xf]  ;;  %v2383_v41 = vor.u32 %v2680_v31, %v2380_v32  ;;  %v2670_v31 = vld [vmem:[%s3153_s9 + $0x204] sm:$0xf] }
  0xe6   : > { %1773 = vmatpush.bf16.msra.mxu2 %v2263_v50  ;;  %v2656_v50 = vld [vmem:[%s3153_s9 + $0x194] sm:$0xf]  ;;  %v2223_v56 = vor.u32 %v2640_v48, %v2220_v49  ;;  %v2444_v35 = vld [vmem:[%s3153_s9 + $0x2d8] sm:$0xf0]  ;;  %v2436_v49 = vld [vmem:[%s3153_s9 + $0x2c8] sm:$0xf0] }
  0xe7   : > { %1787 = vmatpush.bf16.msra.mxu3 %v2327_v54  ;;  %v2084_v54 = vld [vmem:[%s3153_s9 + $0x8] sm:$0xf0]  ;;  %v2572_v40 = vld [vmem:[%s3153_s9 + $0x3d8] sm:$0xf0]  ;;  %v2692_v57 = vld [vmem:[%s3153_s9 + $0x2b4] sm:$0xf] }
  0xe8   : > { %1746 = vmatpush.bf16.msra.mxu0 %v2127_v61  ;;  %v2287_v61 = vor.u32 %v2656_v50, %v2284_v51  ;;  %v2087_v5 = vor.u32 %v2606_v53, %v2084_v54  ;;  %v2500_v50 = vld [vmem:[%s3153_s9 + $0x348] sm:$0xf0]  ;;  %v2726_v51 = vld [vmem:[%s3153_s9 + $0x3c4] sm:$0xf]  ;;  %v2439_v53 = vor.u32 %v2694_v46, %v2436_v49  ;;  %v2672_v19 = vld [vmem:[%s3153_s9 + $0x214] sm:$0xf] }
  0xe9   : > { %1760 = vmatpush.bf16.msra.mxu1 %v2191_v62  ;;  %v2212_v62 = vld [vmem:[%s3153_s9 + $0x108] sm:$0xf0]  ;;  %v2348_v20 = vld [vmem:[%s3153_s9 + $0x218] sm:$0xf0]  ;;  %v2688_v21 = vld [vmem:[%s3153_s9 + $0x294] sm:$0xf] }
  0xea   : > { %1774 = vmatpush.bf16.msra.mxu2 %v2255_v63  ;;  %v2654_v63 = vld [vmem:[%s3153_s9 + $0x184] sm:$0xf]  ;;  %v2412_v23 = vld [vmem:[%s3153_s9 + $0x298] sm:$0xf0]  ;;  %v2340_v32 = vld [vmem:[%s3153_s9 + $0x208] sm:$0xf0] }
  0xeb   : > { %1788 = vmatpush.bf16.msra.mxu3 %v2319_v4  ;;  %v2700_v4 = vld [vmem:[%s3153_s9 + $0x2f4] sm:$0xf]  ;;  %v2279_v14 = vor.u32 %v2654_v63, %v2276_v0  ;;  %v2556_v0 = vld [vmem:[%s3153_s9 + $0x3b8] sm:$0xf0]  ;;  %s2734_s15 = sshll.u32 (%p2875_p6), %s2805_s17, 3 }
  0xec   : > { %1747 = vmatpush.bf16.msra.mxu0 %v2119_v11  ;;  %v2215_v11 = vor.u32 %v2638_v60, %v2212_v62  ;;  %v2463_v16 = vor.u32 %v2700_v4, %v2460_v6  ;;  %v2428_v60 = vld [vmem:[%s3153_s9 + $0x2b8] sm:$0xf0]  ;;  %v2724_v63 = vld [vmem:[%s3153_s9 + $0x3b4] sm:$0xf]  ;;  %v2356_v6 = vld [vmem:[%s3153_s9 + $0x228] sm:$0xf0]  ;;  %s1896_s27 = scalar_lea.vmem (%p2875_p6), %s3525_s4, %s2734_s15 }
  0xed   : > { %1761 = vmatpush.bf16.msra.mxu1 %v2183_v12  ;;  %v2732_v12 = vld [vmem:[%s3153_s9 + $0x3f4] sm:$0xf]  ;;  %v2492_v62 = vld [vmem:[%s3153_s9 + $0x338] sm:$0xf0]  ;;  %v2431_v3 = vor.u32 %v2692_v57, %v2428_v60 }
  0xee   : > { %1775 = vmatpush.bf16.msra.mxu2 %v2247_v13  ;;  %v2588_v13 = vld [vmem:[%s3153_s9 + $0x3f8] sm:$0xf0] }
  0xef   : > { %1789 = vmatpush.bf16.msra.mxu3 %v2311_v18  ;;  %v2527_v18 = vor.u32 %v2716_v7, %v2524_v8  ;;  %v2591_v22 = vor.u32 %v2732_v12, %v2588_v13  ;;  %v2690_v7 = vld [vmem:[%s3153_s9 + $0x2a4] sm:$0xf]  ;;  %v2559_v8 = vor.u32 %v2724_v63, %v2556_v0  ;;  %v2484_v12 = vld [vmem:[%s3153_s9 + $0x328] sm:$0xf0] }
  0xf0   : > { %1748 = vmatpush.bf16.msra.mxu0 %v2111_v24  ;;  %v2714_v24 = vld [vmem:[%s3153_s9 + $0x364] sm:$0xf] }
  0xf1   : > { %1762 = vmatpush.bf16.msra.mxu1 %v2175_v25  ;;  %v2516_v25 = vld [vmem:[%s3153_s9 + $0x368] sm:$0xf0]  ;;  %v2722_v13 = vld [vmem:[%s3153_s9 + $0x3a4] sm:$0xf] }
  0xf2   : > { %1776 = vmatpush.bf16.msra.mxu2 %v2239_v26  ;;  %v2730_v26 = vld [vmem:[%s3153_s9 + $0x3e4] sm:$0xf] }
  0xf3   : > { %1790 = vmatpush.bf16.msra.mxu3 %v2303_v30  ;;  %v2519_v30 = vor.u32 %v2714_v24, %v2516_v25  ;;  %v2583_v34 = vor.u32 %v2730_v26, %v2580_v27  ;;  %v2704_v24 = vld [vmem:[%s3153_s9 + $0x314] sm:$0xf]  ;;  %v2476_v25 = vld [vmem:[%s3153_s9 + $0x318] sm:$0xf0] }
  0xf4   : > { %1749 = vmatpush.bf16.msra.mxu0 %v2103_v36  ;;  %v2712_v36 = vld [vmem:[%s3153_s9 + $0x354] sm:$0xf]  ;;  %v2540_v27 = vld [vmem:[%s3153_s9 + $0x398] sm:$0xf0] }
  0xf5   : > { %1763 = vmatpush.bf16.msra.mxu1 %v2167_v37  ;;  %v2508_v37 = vld [vmem:[%s3153_s9 + $0x358] sm:$0xf0]  ;;  %v2720_v26 = vld [vmem:[%s3153_s9 + $0x394] sm:$0xf] }
  0xf6   : > { %1777 = vmatpush.bf16.msra.mxu2 %v2231_v38  ;;  %v2728_v38 = vld [vmem:[%s3153_s9 + $0x3d4] sm:$0xf]  ;;  %v2511_v42 = vor.u32 %v2712_v36, %v2508_v37  ;;  %v2702_v36 = vld [vmem:[%s3153_s9 + $0x304] sm:$0xf]  ;;  %v2468_v37 = vld [vmem:[%s3153_s9 + $0x308] sm:$0xf0] }
  0xf7   : > { %1791 = vmatpush.bf16.msra.mxu3 %v2295_v45  ;;  %v2678_v45 = vld [vmem:[%s3153_s9 + $0x244] sm:$0xf]  ;;  %v2575_v48 = vor.u32 %v2728_v38, %v2572_v40  ;;  %v2532_v40 = vld [vmem:[%s3153_s9 + $0x388] sm:$0xf0] }
  0xf8   : > { %1750 = vmatpush.bf16.msra.mxu0 %v2095_v52  ;;  %v2718_v38 = vld [vmem:[%s3153_s9 + $0x384] sm:$0xf] }
  0xf9   : > { %1764 = vmatpush.bf16.msra.mxu1 %v2159_v55  ;;  %v2676_v55 = vld [vmem:[%s3153_s9 + $0x234] sm:$0xf] }
  0xfa   : > { %1778 = vmatpush.bf16.msra.mxu2 %v2223_v56  ;;  %v2364_v56 = vld [vmem:[%s3153_s9 + $0x238] sm:$0xf0] }
  0xfb   : > { %1792 = vmatpush.bf16.msra.mxu3 %v2287_v61  ;;  %v2708_v61 = vld [vmem:[%s3153_s9 + $0x334] sm:$0xf]  ;;  %v2367_v2 = vor.u32 %v2676_v55, %v2364_v56 }
  0xfc   : > { %1751 = vmatpush.bf16.msra.mxu0 %v2087_v5  ;;  %v2495_v4 = vor.u32 %v2708_v61, %v2492_v62  ;;  %v2674_v5 = vld [vmem:[%s3153_s9 + $0x224] sm:$0xf] }
  0xfd   : > { %1765 = vmatpush.bf16.msra.mxu1 %v2151_v9  ;;  %v2420_v9 = vld [vmem:[%s3153_s9 + $0x2a8] sm:$0xf0] }
  0xfe   : > { %1779 = vmatpush.bf16.msra.mxu2 %v2215_v11  ;;  %v2706_v11 = vld [vmem:[%s3153_s9 + $0x324] sm:$0xf] }
  0xff   : > { %1793 = vmatpush.bf16.msra.mxu3 %v2279_v14  ;;  %1752 = vmatmul.bf16.vlgmr.msra.gmra.mxu0 %v3246_v58  ;;  %v2710_v58 = vld [vmem:[%s3153_s9 + $0x344] sm:$0xf]  ;;  %v2548_v14 = vld [vmem:[%s3153_s9 + $0x3a8] sm:$0xf0] }
 0x100   : > { %1800 = vmatpush.bf16.msrb.mxu0 %v2399_v15  ;;  %1766 = vmatmul.bf16.vlgmr.msra.gmra.mxu1 %v3270_v10  ;;  %v2564_v10 = vld [vmem:[%s3153_s9 + $0x3c8] sm:$0xf0]  ;;  %v2503_v54 = vor.u32 %v2710_v58, %v2500_v50  ;;  %v2359_v15 = vor.u32 %v2674_v5, %v2356_v6 }
 0x101   : > { %1814 = vmatpush.bf16.msrb.mxu1 %v2463_v16  ;;  %1780 = vmatmul.bf16.vlgmr.msra.gmra.mxu2 %v3254_v1  ;;  %v2447_v1 = vor.u32 %v2696_v33, %v2444_v35  ;;  %v2567_v59 = vor.u32 %v2726_v51, %v2564_v10  ;;  %v2423_v16 = vor.u32 %v2690_v7, %v2420_v9  ;;  %v2686_v33 = vld [vmem:[%s3153_s9 + $0x284] sm:$0xf]  ;;  %v2404_v35 = vld [vmem:[%s3153_s9 + $0x288] sm:$0xf0] }
 0x102   : > { %1828 = vmatpush.bf16.msrb.mxu2 %v2527_v18  ;;  %1794 = vmatmul.bf16.vlgmr.msra.gmra.mxu3 %v3278_v17  ;;  %v2372_v17 = vld [vmem:[%s3153_s9 + $0x248] sm:$0xf0]  ;;  %v2487_v18 = vor.u32 %v2706_v11, %v2484_v12  ;;  %s2046_s9 = sshll.u32 %s2805_s17, 1 }
 0x103   : > { %1842 = vmatpush.bf16.msrb.mxu3 %v2591_v22  ;;  %v2375_v52 = vor.u32 %v2678_v45, %v2372_v17  ;;  %v2551_v22 = vor.u32 %v2722_v13, %v2548_v14  ;;  %v2535_v45 = vor.u32 %v2718_v38, %v2532_v40  ;;  %p805_p11 = scmp.lt.s32.totalorder %s2046_s9, 7 }
 0x104   : > { %1801 = vmatpush.bf16.msrb.mxu0 %v2391_v28  ;;  %v2351_v28 = vor.u32 %v2672_v19, %v2348_v20 }
 0x105   : > { %1815 = vmatpush.bf16.msrb.mxu1 %v2455_v29  ;;  %v2415_v29 = vor.u32 %v2688_v21, %v2412_v23  ;;  %s3534_s9 = smov (!%p805_p11, %s2046_s9), 7 }
 0x106   : > { %1829 = vmatpush.bf16.msrb.mxu2 %v2519_v30  ;;  %v2479_v30 = vor.u32 %v2704_v24, %v2476_v25  ;;  %s807_s12 = scalar_lea.vmem %s3523_s2, %s3534_s9  ;;  %s812_s21 = scalar_lea.vmem %s3524_s3, %s3534_s9 }
 0x107   : > { %1843 = vmatpush.bf16.msrb.mxu3 %v2583_v34  ;;  %v2543_v34 = vor.u32 %v2720_v26, %v2540_v27  ;;  %v1856_v13 = vld [vmem:[%s807_s12] sm:$0x3] }
 0x108   : > { %1802 = vmatpush.bf16.msrb.mxu0 %v2383_v41  ;;  %v2343_v41 = vor.u32 %v2670_v31, %v2340_v32  ;;  %v1866_v24 = vld [vmem:[%s812_s21] sm:$0x3] }
 0x109   : > { %1816 = vmatpush.bf16.msrb.mxu1 %v2447_v1  ;;  %v2407_v1 = vor.u32 %v2686_v33, %v2404_v35  ;;  %v1859_v35 = vperm.slane %v1856_v13, 1  ;;  %v1869_v38 = vperm.slane %v1866_v24, 1 }
 0x10a   : > { %1830 = vmatpush.bf16.msrb.mxu2 %v2511_v42  ;;  %v2471_v42 = vor.u32 %v2702_v36, %v2468_v37 }
 0x10b   : > { %1844 = vmatpush.bf16.msrb.mxu3 %v2575_v48 }
 0x10c   : > { %1803 = vmatpush.bf16.msrb.mxu0 %v2375_v52 }
 0x10d   : > { %1817 = vmatpush.bf16.msrb.mxu1 %v2439_v53 }
 0x10e   : > { %1831 = vmatpush.bf16.msrb.mxu2 %v2503_v54 }
 0x10f   : > { %1845 = vmatpush.bf16.msrb.mxu3 %v2567_v59 }
 0x110   : > { %1804 = vmatpush.bf16.msrb.mxu0 %v2367_v2 }
 0x111   : > { %1818 = vmatpush.bf16.msrb.mxu1 %v2431_v3 }
 0x112   : > { %1832 = vmatpush.bf16.msrb.mxu2 %v2495_v4 }
 0x113   : > { %1846 = vmatpush.bf16.msrb.mxu3 %v2559_v8 }
 0x114   : > { %1805 = vmatpush.bf16.msrb.mxu0 %v2359_v15 }
 0x115   : > { %1819 = vmatpush.bf16.msrb.mxu1 %v2423_v16 }
 0x116   : > { %1833 = vmatpush.bf16.msrb.mxu2 %v2487_v18 }
 0x117   : > { %1847 = vmatpush.bf16.msrb.mxu3 %v2551_v22  ;;  %v1858_v22 = vperm.slane %v1856_v13, 0 }
 0x118   : > { %1806 = vmatpush.bf16.msrb.mxu0 %v2351_v28 }
 0x119   : > { %1820 = vmatpush.bf16.msrb.mxu1 %v2415_v29  ;;  %v1868_v29 = vperm.slane %v1866_v24, 0 }
 0x11a   : > { %1834 = vmatpush.bf16.msrb.mxu2 %v2479_v30 }
 0x11b   : > { %1848 = vmatpush.bf16.msrb.mxu3 %v2543_v34 }
 0x11c   : > { %1807 = vmatpush.bf16.msrb.mxu0 %v2343_v41 }
 0x11d   : > { %1821 = vmatpush.bf16.msrb.mxu1 %v2407_v1 }
 0x11e   : > { %1835 = vmatpush.bf16.msrb.mxu2 %v2471_v42 }
 0x11f   : > { %1849 = vmatpush.bf16.msrb.mxu3 %v2535_v45  ;;  %1808 = vmatmul.bf16.vlgmr.msrb.gmra.mxu0 %v3354_v39 }
 0x120   : > { %1822 = vmatmul.bf16.vlgmr.msrb.gmra.mxu1 %v3361_v44 }
 0x121   : > { %1836 = vmatmul.bf16.vlgmr.msrb.gmra.mxu2 %v3359_v43 }
 0x122   : > { %1850 = vmatmul.bf16.vlgmr.msrb.gmra.mxu3 %v3365_v47 }
 0x13c   : > { %v1641_v17 = vpop.f32.mrf.mxu0 }
 0x13d   : > { %v1655_v46 = vpop.f32.mrf.mxu1 }
 0x13e   : > { %v1656_v44 = vadd.f32 %v1655_v46, %v1641_v17 }
 0x144   : > { %v1669_v48 = vpop.f32.mrf.mxu2  ;;  %v1643_v58 = vpop.f32.mrf.mxu0 }
 0x145   : > { %v1683_v49 = vpop.f32.mrf.mxu3  ;;  %v1657_v50 = vpop.f32.mrf.mxu1  ;;  %v1670_v47 = vadd.f32 %v1669_v48, %v1656_v44 }
 0x146   : > { %v1658_v2 = vadd.f32 %v1657_v50, %v1643_v58 }
 0x147   : > { %v1684_v61 = vadd.f32 %v1683_v49, %v1670_v47 }
 0x14c   : > { %v1671_v51 = vpop.f32.mrf.mxu2 }
 0x14d   : > { %v1685_v10 = vpop.f32.mrf.mxu3  ;;  %v1672_v7 = vadd.f32 %v1671_v51, %v1658_v2 }
 0x14f   : > { %v1686_v12 = vadd.f32 %v1685_v10, %v1672_v7 }
 0x15c   : > { %v1697_v52 = vpop.f32.mrf.mxu0 }
 0x15d   : > { %v1711_v53 = vpop.f32.mrf.mxu1  ;;  %v1698_v0 = vadd.f32 %v1697_v52, %v1684_v61 }
 0x15f   : > { %v1712_v5 = vadd.f32 %v1711_v53, %v1698_v0 }
 0x164   : > { %v1725_v54 = vpop.f32.mrf.mxu2  ;;  %v1699_v39 = vpop.f32.mrf.mxu0 }
 0x165   : > { %v1739_v55 = vpop.f32.mrf.mxu3  ;;  %v1713_v56 = vpop.f32.mrf.mxu1  ;;  %v1726_v9 = vadd.f32 %v1725_v54, %v1712_v5  ;;  %v1700_v19 = vadd.f32 %v1699_v39, %v1686_v12 }
 0x167   : > { %v1740_v21 = vadd.f32 %v1739_v55, %v1726_v9  ;;  %v1714_v26 = vadd.f32 %v1713_v56, %v1700_v19 }
 0x169   : > { %v1862_v28 = vmul.f32 %v1858_v22, %v1740_v21 }
 0x16b   : > { %v1872_v41 = vadd.f32 %v1868_v29, %v1862_v28 }
 0x16c   : > { %v1727_v57 = vpop.f32.mrf.mxu2 }
 0x16d   : > { %v1741_v43 = vpop.f32.mrf.mxu3  ;;  %v1728_v31 = vadd.f32 %v1727_v57, %v1714_v26  ;;  %v1876_v49 = vmax.f32 %v1872_v41, 0.0 }
 0x16f   : > { %v1742_v1 = vadd.f32 %v1741_v43, %v1728_v31 }
 0x171   : > { %v1864_v58 = vmul.f32 %v1858_v22, %v1742_v1 }
 0x173   : > { %v1874_v54 = vadd.f32 %v1868_v29, %v1864_v58 }
 0x175   : > { %v1878_v56 = vmax.f32 %v1874_v54, 0.0 }
 0x17c   : > { %v1753_v59 = vpop.f32.mrf.mxu0 }
 0x17d   : > { %v1767_v60 = vpop.f32.mrf.mxu1 }
 0x17e   : > { %v1768_v3 = vadd.f32 %v1767_v60, %v1753_v59 }
 0x184   : > { %v1781_v62 = vpop.f32.mrf.mxu2  ;;  %v1755_v4 = vpop.f32.mrf.mxu0 }
 0x185   : > { %v1795_v63 = vpop.f32.mrf.mxu3  ;;  %v1769_v6 = vpop.f32.mrf.mxu1  ;;  %v1782_v8 = vadd.f32 %v1781_v62, %v1768_v3 }
 0x186   : > { %v1770_v15 = vadd.f32 %v1769_v6, %v1755_v4 }
 0x187   : > { %v1796_v14 = vadd.f32 %v1795_v63, %v1782_v8 }
 0x18c   : > { %v1783_v11 = vpop.f32.mrf.mxu2 }
 0x18d   : > { %v1797_v16 = vpop.f32.mrf.mxu3  ;;  %v1784_v25 = vadd.f32 %v1783_v11, %v1770_v15 }
 0x18f   : > { %v1798_v32 = vadd.f32 %v1797_v16, %v1784_v25 }
 0x19c   : > { %v1809_v18 = vpop.f32.mrf.mxu0 }
 0x19d   : > { %v1810_v20 = vadd.f32 %v1809_v18, %v1796_v14  ;;  %v1823_v23 = vpop.f32.mrf.mxu1 }
 0x19f   : > { %v1824_v27 = vadd.f32 %v1823_v23, %v1810_v20 }
 0x1a4   : > { %v1837_v30 = vpop.f32.mrf.mxu2  ;;  %v1811_v36 = vpop.f32.mrf.mxu0 }
 0x1a5   : > { %v1838_v33 = vadd.f32 %v1837_v30, %v1824_v27  ;;  %v1851_v34 = vpop.f32.mrf.mxu3  ;;  %v1812_v40 = vadd.f32 %v1811_v36, %v1798_v32  ;;  %v1825_v45 = vpop.f32.mrf.mxu1 }
 0x1a7   : > { %v1852_v37 = vadd.f32 %v1851_v34, %v1838_v33  ;;  %v1826_v46 = vadd.f32 %v1825_v45, %v1812_v40 }
 0x1a9   : > { %v1863_v42 = vmul.f32 %v1859_v35, %v1852_v37 }
 0x1ab   : > { %v1873_v17 = vadd.f32 %v1869_v38, %v1863_v42 }
 0x1ac   : > { %v1839_v48 = vpop.f32.mrf.mxu2 }
 0x1ad   : > { %v1877_v50 = vmax.f32 %v1873_v17, 0.0  ;;  %v1840_v51 = vadd.f32 %v1839_v48, %v1826_v46  ;;  %v1853_v10 = vpop.f32.mrf.mxu3 }
 0x1af   : > { %v1880_v52 = vpack.c.bf16 %v1877_v50, %v1876_v49  ;;  %v1854_v53 = vadd.f32 %v1853_v10, %v1840_v51 }
 0x1b1   : > { %1882 = vst [vmem:[%s795_s23] sm:$0xff] %v1880_v52  ;;  %v1865_v55 = vmul.f32 %v1859_v35, %v1854_v53 }
 0x1b3   : > { %v1875_v39 = vadd.f32 %v1869_v38, %v1865_v55 }
 0x1b5   : > { %v1879_v44 = vmax.f32 %v1875_v39, 0.0  ;;  %1890 = sbr.rel (!%p2875_p6) target bundleno = 450 (0x1c2), region = 78 }
 0x1b7   : > { %v1881_v57 = vpack.c.bf16 %v1879_v44, %v1878_v56 }
 0x1b8   : > { %v1927_v43 = vld [vmem:[%s795_s23] sm:$0xff] (%p2875_p6) }
 0x1b9   : > { %1883 = vst [vmem:[%s795_s23 + $0x8] sm:$0xff] %v1881_v57 }
 0x1ba   : > { %1928 = vst [vmem:[%s1896_s27] sm:$0xff] %v1927_v43 }
 0x1c0   : > { %v1929_v59 = vld [vmem:[%s795_s23 + $0x8] sm:$0xff] }
 0x1c1   : > { %1930 = vst [vmem:[%s1896_s27 + $0x20] sm:$0xff] %v1929_v59 }
 0x1c2 PF: > { %s14_s19 = sadd.s32 1, %s2813_s19   ;;  %s3527_s15 = smov %s2801_s16 }
 0x1c3   : > { %p11_p12 = scmp.ge.s32.totalorder %s14_s19, 6   ;;  %s3528_s16 = smov %s2880_s25 }
 0x1c4   : > { %s3529_s17 = smov %s2809_s18  ;;  %s3530_s18 = smov %s3532_s20 }
 0x1c5   :  { %13 = sbr.rel (!%p11_p12) target bundleno = 3 (0x3), region = 156 }

// kernel: autoencoder_forward.19
= control target key start
LH: loop header
LB: loop body
LE: loop exit
PB: predicated region body
PF: predicated region fallthrough
CT: control target
= control target key end

     0   :  { %s1512_s1 = inlined_call_operand.vmem [shape: bf16[512,256], index: 1, kind: input, shape index: {}]   ;;  %s1513_s0 = inlined_call_operand.vmem [shape: bf16[32,512], index: 0, kind: input, shape index: {}]   ;;  %s1514_s2 = inlined_call_operand.vmem [shape: f32[1,256], index: 2, kind: input, shape index: {}]   ;;  %s1515_s3 = inlined_call_operand.vmem [shape: f32[1,256], index: 3, kind: input, shape index: {}]   ;;  %s1516_s4 = inlined_call_operand.vmem [shape: bf16[32,256], index: 4, kind: output, shape index: {}]  }
   0x1   :  { %v739_v0 = vld [vmem:[%s1512_s1 + $0x70] sm:$0xf]  ;;  %v960_v1 = vld [vmem:[%s1512_s1 + $0x74] sm:$0xf0]  ;;  %v731_v11 = vld [vmem:[%s1512_s1 + $0x60] sm:$0xf] }
   0x2   :  { %v803_v2 = vld [vmem:[%s1512_s1 + $0xf0] sm:$0xf]  ;;  %v740_v3 = vor.u32 %v960_v1, %v739_v0  ;;  %v976_v4 = vld [vmem:[%s1512_s1 + $0xf4] sm:$0xf0]  ;;  %v958_v13 = vld [vmem:[%s1512_s1 + $0x64] sm:$0xf0] }
   0x3   :  { %v867_v5 = vld [vmem:[%s1512_s1 + $0x170] sm:$0xf]  ;;  %v992_v6 = vld [vmem:[%s1512_s1 + $0x174] sm:$0xf0]  ;;  %v804_v7 = vor.u32 %v976_v4, %v803_v2  ;;  %v795_v14 = vld [vmem:[%s1512_s1 + $0xe0] sm:$0xf]  ;;  %v732_v16 = vor.u32 %v958_v13, %v731_v11 }
   0x4   :  { %v868_v8 = vor.u32 %v992_v6, %v867_v5  ;;  %v931_v9 = vld [vmem:[%s1512_s1 + $0x1f0] sm:$0xf]  ;;  %v1008_v10 = vld [vmem:[%s1512_s1 + $0x1f4] sm:$0xf0]  ;;  %449 = vmatpush.bf16.msra.mxu0 %v740_v3  ;;  %v974_v15 = vld [vmem:[%s1512_s1 + $0xe4] sm:$0xf0] }
   0x5   :  { %v932_v12 = vor.u32 %v1008_v10, %v931_v9  ;;  %468 = vmatpush.bf16.msra.mxu1 %v804_v7  ;;  %v796_v17 = vor.u32 %v974_v15, %v795_v14  ;;  %v859_v18 = vld [vmem:[%s1512_s1 + $0x160] sm:$0xf]  ;;  %v990_v19 = vld [vmem:[%s1512_s1 + $0x164] sm:$0xf0]  ;;  %v723_v23 = vld [vmem:[%s1512_s1 + $0x50] sm:$0xf] }
   0x6   :  { %487 = vmatpush.bf16.msra.mxu2 %v868_v8  ;;  %v923_v20 = vld [vmem:[%s1512_s1 + $0x1e0] sm:$0xf]  ;;  %v860_v21 = vor.u32 %v990_v19, %v859_v18  ;;  %v1006_v22 = vld [vmem:[%s1512_s1 + $0x1e4] sm:$0xf0]  ;;  %v956_v24 = vld [vmem:[%s1512_s1 + $0x54] sm:$0xf0] }
   0x7   :  { %506 = vmatpush.bf16.msra.mxu3 %v932_v12  ;;  %v924_v25 = vor.u32 %v1006_v22, %v923_v20  ;;  %v787_v26 = vld [vmem:[%s1512_s1 + $0xd0] sm:$0xf]  ;;  %v972_v27 = vld [vmem:[%s1512_s1 + $0xd4] sm:$0xf0]  ;;  %v724_v29 = vor.u32 %v956_v24, %v723_v23  ;;  %v715_v35 = vld [vmem:[%s1512_s1 + $0x40] sm:$0xf] }
   0x8   :  { %v851_v28 = vld [vmem:[%s1512_s1 + $0x150] sm:$0xf]  ;;  %450 = vmatpush.bf16.msra.mxu0 %v732_v16  ;;  %v988_v30 = vld [vmem:[%s1512_s1 + $0x154] sm:$0xf0]  ;;  %v788_v33 = vor.u32 %v972_v27, %v787_v26  ;;  %v954_v36 = vld [vmem:[%s1512_s1 + $0x44] sm:$0xf0] }
   0x9   :  { %v915_v31 = vld [vmem:[%s1512_s1 + $0x1d0] sm:$0xf]  ;;  %v1004_v32 = vld [vmem:[%s1512_s1 + $0x1d4] sm:$0xf0]  ;;  %469 = vmatpush.bf16.msra.mxu1 %v796_v17  ;;  %v852_v34 = vor.u32 %v988_v30, %v851_v28  ;;  %v779_v37 = vld [vmem:[%s1512_s1 + $0xc0] sm:$0xf]  ;;  %v716_v44 = vor.u32 %v954_v36, %v715_v35 }
   0xa   :  { %488 = vmatpush.bf16.msra.mxu2 %v860_v21  ;;  %v916_v38 = vor.u32 %v1004_v32, %v915_v31  ;;  %v970_v39 = vld [vmem:[%s1512_s1 + $0xc4] sm:$0xf0]  ;;  %v843_v40 = vld [vmem:[%s1512_s1 + $0x140] sm:$0xf]  ;;  %v707_v47 = vld [vmem:[%s1512_s1 + $0x30] sm:$0xf] }
   0xb   :  { %507 = vmatpush.bf16.msra.mxu3 %v924_v25  ;;  %v986_v41 = vld [vmem:[%s1512_s1 + $0x144] sm:$0xf0]  ;;  %v907_v42 = vld [vmem:[%s1512_s1 + $0x1c0] sm:$0xf]  ;;  %v780_v45 = vor.u32 %v970_v39, %v779_v37  ;;  %v952_v48 = vld [vmem:[%s1512_s1 + $0x34] sm:$0xf0] }
   0xc   :  { %v1002_v43 = vld [vmem:[%s1512_s1 + $0x1c4] sm:$0xf0]  ;;  %451 = vmatpush.bf16.msra.mxu0 %v724_v29  ;;  %v844_v46 = vor.u32 %v986_v41, %v843_v40  ;;  %v771_v49 = vld [vmem:[%s1512_s1 + $0xb0] sm:$0xf]  ;;  %v968_v51 = vld [vmem:[%s1512_s1 + $0xb4] sm:$0xf0]  ;;  %v708_v56 = vor.u32 %v952_v48, %v707_v47 }
   0xd   :  { %470 = vmatpush.bf16.msra.mxu1 %v788_v33  ;;  %v908_v50 = vor.u32 %v1002_v43, %v907_v42  ;;  %v835_v52 = vld [vmem:[%s1512_s1 + $0x130] sm:$0xf]  ;;  %v984_v53 = vld [vmem:[%s1512_s1 + $0x134] sm:$0xf0]  ;;  %v772_v57 = vor.u32 %v968_v51, %v771_v49  ;;  %v699_v59 = vld [vmem:[%s1512_s1 + $0x20] sm:$0xf] }
   0xe   :  { %489 = vmatpush.bf16.msra.mxu2 %v852_v34  ;;  %v899_v54 = vld [vmem:[%s1512_s1 + $0x1b0] sm:$0xf]  ;;  %v1000_v55 = vld [vmem:[%s1512_s1 + $0x1b4] sm:$0xf0]  ;;  %v836_v58 = vor.u32 %v984_v53, %v835_v52  ;;  %v950_v60 = vld [vmem:[%s1512_s1 + $0x24] sm:$0xf0] }
   0xf   :  { %508 = vmatpush.bf16.msra.mxu3 %v916_v38  ;;  %v763_v61 = vld [vmem:[%s1512_s1 + $0xa0] sm:$0xf]  ;;  %v900_v62 = vor.u32 %v1000_v55, %v899_v54  ;;  %v966_v63 = vld [vmem:[%s1512_s1 + $0xa4] sm:$0xf0]  ;;  %v700_v4 = vor.u32 %v950_v60, %v699_v59  ;;  %v691_v7 = vld [vmem:[%s1512_s1 + $0x10] sm:$0xf] }
  0x10   :  { %452 = vmatpush.bf16.msra.mxu0 %v716_v44  ;;  %v827_v0 = vld [vmem:[%s1512_s1 + $0x120] sm:$0xf]  ;;  %v982_v1 = vld [vmem:[%s1512_s1 + $0x124] sm:$0xf0]  ;;  %v764_v5 = vor.u32 %v966_v63, %v763_v61  ;;  %v948_v8 = vld [vmem:[%s1512_s1 + $0x14] sm:$0xf0] }
  0x11   :  { %471 = vmatpush.bf16.msra.mxu1 %v780_v45  ;;  %v891_v2 = vld [vmem:[%s1512_s1 + $0x1a0] sm:$0xf]  ;;  %v998_v3 = vld [vmem:[%s1512_s1 + $0x1a4] sm:$0xf0]  ;;  %v828_v6 = vor.u32 %v982_v1, %v827_v0  ;;  %v755_v9 = vld [vmem:[%s1512_s1 + $0x90] sm:$0xf]  ;;  %v692_v17 = vor.u32 %v948_v8, %v691_v7 }
  0x12   :  { %490 = vmatpush.bf16.msra.mxu2 %v844_v46  ;;  %v892_v10 = vor.u32 %v998_v3, %v891_v2  ;;  %v964_v11 = vld [vmem:[%s1512_s1 + $0x94] sm:$0xf0]  ;;  %v819_v12 = vld [vmem:[%s1512_s1 + $0x110] sm:$0xf]  ;;  %v683_v16 = vld [vmem:[%s1512_s1] sm:$0xf] }
  0x13   :  { %509 = vmatpush.bf16.msra.mxu3 %v908_v50  ;;  %v980_v13 = vld [vmem:[%s1512_s1 + $0x114] sm:$0xf0]  ;;  %v883_v14 = vld [vmem:[%s1512_s1 + $0x190] sm:$0xf]  ;;  %v946_v18 = vld [vmem:[%s1512_s1 + $0x4] sm:$0xf0]  ;;  %v756_v21 = vor.u32 %v964_v11, %v755_v9 }
  0x14   :  { %453 = vmatpush.bf16.msra.mxu0 %v708_v56  ;;  %v996_v15 = vld [vmem:[%s1512_s1 + $0x194] sm:$0xf0]  ;;  %v747_v19 = vld [vmem:[%s1512_s1 + $0x80] sm:$0xf]  ;;  %v962_v20 = vld [vmem:[%s1512_s1 + $0x84] sm:$0xf0]  ;;  %v820_v22 = vor.u32 %v980_v13, %v819_v12  ;;  %v684_v34 = vor.u32 %v946_v18, %v683_v16 }
  0x15   :  { %472 = vmatpush.bf16.msra.mxu1 %v772_v57  ;;  %v811_v23 = vld [vmem:[%s1512_s1 + $0x100] sm:$0xf]  ;;  %v978_v24 = vld [vmem:[%s1512_s1 + $0x104] sm:$0xf0]  ;;  %v884_v26 = vor.u32 %v996_v15, %v883_v14  ;;  %v939_v29 = vld [vmem:[%s1513_s0 + $0xc] sm:$0xf0]  ;;  %v748_v38 = vor.u32 %v962_v20, %v747_v19 }
  0x16   :  { %491 = vmatpush.bf16.msra.mxu2 %v836_v58  ;;  %v875_v25 = vld [vmem:[%s1512_s1 + $0x180] sm:$0xf]  ;;  %v994_v27 = vld [vmem:[%s1512_s1 + $0x184] sm:$0xf0]  ;;  %v937_v30 = vld [vmem:[%s1513_s0 + $0x4] sm:$0xf]  ;;  %v812_v39 = vor.u32 %v978_v24, %v811_v23 }
  0x17   :  { %510 = vmatpush.bf16.msra.mxu3 %v900_v62  ;;  %v651_v28 = vld [vmem:[%s1513_s0] sm:$0xf]  ;;  %v653_v31 = vld [vmem:[%s1513_s0 + $0x10] sm:$0xf0]  ;;  %v869_v33 = vld [vmem:[%s1512_s1 + $0x178] sm:$0xf0]  ;;  %v876_v43 = vor.u32 %v994_v27, %v875_v25 }
  0x18   :  { %454 = vmatpush.bf16.msra.mxu0 %v700_v4  ;;  %v991_v32 = vld [vmem:[%s1512_s1 + $0x174] sm:$0xf]  ;;  %v659_v35 = vld [vmem:[%s1513_s0 + $0x8] sm:$0xf]  ;;  %v805_v37 = vld [vmem:[%s1512_s1 + $0xf8] sm:$0xf0]  ;;  %v1271_v48 = vor.u32 %v939_v29, %v651_v28  ;;  %v1282_v53 = vor.u32 %v937_v30, %v653_v31 }
  0x19   :  { %473 = vmatpush.bf16.msra.mxu1 %v764_v5  ;;  %v975_v36 = vld [vmem:[%s1512_s1 + $0xf4] sm:$0xf]  ;;  %v940_v40 = vld [vmem:[%s1513_s0 + $0x14] sm:$0xf0]  ;;  %v938_v41 = vld [vmem:[%s1513_s0 + $0xc] sm:$0xf]  ;;  %v872_v44 = vor.u32 %v991_v32, %v869_v33 }
  0x1a   :  { %492 = vmatpush.bf16.msra.mxu2 %v828_v6  ;;  %v661_v42 = vld [vmem:[%s1513_s0 + $0x18] sm:$0xf0]  ;;  %v959_v45 = vld [vmem:[%s1512_s1 + $0x74] sm:$0xf]  ;;  %v808_v49 = vor.u32 %v975_v36, %v805_v37  ;;  %v989_v51 = vld [vmem:[%s1512_s1 + $0x164] sm:$0xf]  ;;  %v1284_v54 = vor.u32 %v940_v40, %v659_v35 }
  0x1b   :  { %511 = vmatpush.bf16.msra.mxu3 %v892_v10  ;;  %v741_v46 = vld [vmem:[%s1512_s1 + $0x78] sm:$0xf0]  ;;  %v1007_v47 = vld [vmem:[%s1512_s1 + $0x1f4] sm:$0xf]  ;;  %v861_v52 = vld [vmem:[%s1512_s1 + $0x168] sm:$0xf0]  ;;  %v1292_v57 = vor.u32 %v938_v41, %v661_v42 }
  0x1c   :  { %455 = vmatpush.bf16.msra.mxu0 %v692_v17  ;;  %v933_v50 = vld [vmem:[%s1512_s1 + $0x1f8] sm:$0xf0]  ;;  %v973_v55 = vld [vmem:[%s1512_s1 + $0xe4] sm:$0xf]  ;;  %v797_v56 = vld [vmem:[%s1512_s1 + $0xe8] sm:$0xf0]  ;;  %v744_v58 = vor.u32 %v959_v45, %v741_v46  ;;  %v864_v60 = vor.u32 %v989_v51, %v861_v52 }
  0x1d   :  { %474 = vmatpush.bf16.msra.mxu1 %v756_v21  ;;  %v936_v59 = vor.u32 %v1007_v47, %v933_v50  ;;  %v957_v61 = vld [vmem:[%s1512_s1 + $0x64] sm:$0xf]  ;;  %v733_v62 = vld [vmem:[%s1512_s1 + $0x68] sm:$0xf0]  ;;  %v800_v0 = vor.u32 %v973_v55, %v797_v56  ;;  %v987_v2 = vld [vmem:[%s1512_s1 + $0x154] sm:$0xf] }
  0x1e   :  { %493 = vmatpush.bf16.msra.mxu2 %v820_v22  ;;  %v1005_v63 = vld [vmem:[%s1512_s1 + $0x1e4] sm:$0xf]  ;;  %v925_v1 = vld [vmem:[%s1512_s1 + $0x1e8] sm:$0xf0]  ;;  %v853_v3 = vld [vmem:[%s1512_s1 + $0x158] sm:$0xf0]  ;;  %v736_v6 = vor.u32 %v957_v61, %v733_v62 }
  0x1f   :  { %512 = vmatpush.bf16.msra.mxu3 %v884_v26  ;;  %v971_v4 = vld [vmem:[%s1512_s1 + $0xd4] sm:$0xf]  ;;  %v789_v5 = vld [vmem:[%s1512_s1 + $0xd8] sm:$0xf0]  ;;  %v928_v7 = vor.u32 %v1005_v63, %v925_v1  ;;  %v856_v8 = vor.u32 %v987_v2, %v853_v3  ;;  %v985_v14 = vld [vmem:[%s1512_s1 + $0x144] sm:$0xf] }
  0x20   :  { %456 = vmatpush.bf16.msra.mxu0 %v684_v34  ;;  %v955_v9 = vld [vmem:[%s1512_s1 + $0x54] sm:$0xf]  ;;  %v725_v10 = vld [vmem:[%s1512_s1 + $0x58] sm:$0xf0]  ;;  %v792_v12 = vor.u32 %v971_v4, %v789_v5  ;;  %v845_v15 = vld [vmem:[%s1512_s1 + $0x148] sm:$0xf0] }
  0x21   :  { %475 = vmatpush.bf16.msra.mxu1 %v748_v38  ;;  %v1003_v11 = vld [vmem:[%s1512_s1 + $0x1d4] sm:$0xf]  ;;  %v917_v13 = vld [vmem:[%s1512_s1 + $0x1d8] sm:$0xf0]  ;;  %v969_v16 = vld [vmem:[%s1512_s1 + $0xc4] sm:$0xf]  ;;  %v728_v18 = vor.u32 %v955_v9, %v725_v10  ;;  %v848_v23 = vor.u32 %v985_v14, %v845_v15 }
  0x22   :  { %494 = vmatpush.bf16.msra.mxu2 %v812_v39  ;;  %v781_v17 = vld [vmem:[%s1512_s1 + $0xc8] sm:$0xf0]  ;;  %v953_v19 = vld [vmem:[%s1512_s1 + $0x44] sm:$0xf]  ;;  %v920_v22 = vor.u32 %v1003_v11, %v917_v13  ;;  %v667_v25 = vld [vmem:[%s1513_s0 + $0x20] sm:$0xf] }
  0x23   :  { %513 = vmatpush.bf16.msra.mxu3 %v876_v43  ;;  %457 = vmatmul.bf16.vlgmr.msra.gmra.mxu0 %v1271_v48  ;;  %v717_v20 = vld [vmem:[%s1512_s1 + $0x48] sm:$0xf0]  ;;  %v1001_v21 = vld [vmem:[%s1512_s1 + $0x1c4] sm:$0xf]  ;;  %v943_v26 = vld [vmem:[%s1513_s0 + $0x2c] sm:$0xf0]  ;;  %v784_v27 = vor.u32 %v969_v16, %v781_v17 }
  0x24   :  { %476 = vmatmul.bf16.vlgmr.msra.gmra.mxu1 %v1282_v53  ;;  %525 = vmatpush.bf16.msrb.mxu0 %v744_v58  ;;  %v909_v24 = vld [vmem:[%s1512_s1 + $0x1c8] sm:$0xf0]  ;;  %v941_v28 = vld [vmem:[%s1513_s0 + $0x24] sm:$0xf]  ;;  %v669_v29 = vld [vmem:[%s1513_s0 + $0x30] sm:$0xf0]  ;;  %v720_v35 = vor.u32 %v953_v19, %v717_v20 }
  0x25   :  { %544 = vmatpush.bf16.msrb.mxu1 %v808_v49  ;;  %495 = vmatmul.bf16.vlgmr.msra.gmra.mxu2 %v1284_v54  ;;  %v983_v30 = vld [vmem:[%s1512_s1 + $0x134] sm:$0xf]  ;;  %v837_v31 = vld [vmem:[%s1512_s1 + $0x138] sm:$0xf0]  ;;  %v675_v32 = vld [vmem:[%s1513_s0 + $0x28] sm:$0xf]  ;;  %v912_v39 = vor.u32 %v1001_v21, %v909_v24  ;;  %v1414_v50 = vor.u32 %v941_v28, %v669_v29 }
  0x26   :  { %563 = vmatpush.bf16.msrb.mxu2 %v872_v44  ;;  %514 = vmatmul.bf16.vlgmr.msra.gmra.mxu3 %v1292_v57  ;;  %v967_v33 = vld [vmem:[%s1512_s1 + $0xb4] sm:$0xf]  ;;  %v773_v34 = vld [vmem:[%s1512_s1 + $0xb8] sm:$0xf0]  ;;  %v944_v36 = vld [vmem:[%s1513_s0 + $0x34] sm:$0xf0]  ;;  %v840_v40 = vor.u32 %v983_v30, %v837_v31  ;;  %v1403_v44 = vor.u32 %v943_v26, %v667_v25 }
  0x27   :  { %582 = vmatpush.bf16.msrb.mxu3 %v936_v59  ;;  %v942_v37 = vld [vmem:[%s1513_s0 + $0x2c] sm:$0xf]  ;;  %v677_v38 = vld [vmem:[%s1513_s0 + $0x38] sm:$0xf0]  ;;  %v951_v41 = vld [vmem:[%s1512_s1 + $0x34] sm:$0xf]  ;;  %v776_v45 = vor.u32 %v967_v33, %v773_v34  ;;  %v1416_v51 = vor.u32 %v944_v36, %v675_v32 }
  0x28   :  { %526 = vmatpush.bf16.msrb.mxu0 %v736_v6  ;;  %v709_v42 = vld [vmem:[%s1512_s1 + $0x38] sm:$0xf0]  ;;  %v999_v43 = vld [vmem:[%s1512_s1 + $0x1b4] sm:$0xf]  ;;  %v981_v47 = vld [vmem:[%s1512_s1 + $0x124] sm:$0xf]  ;;  %v680_v56 = vor.u32 %v942_v37, %v677_v38 }
  0x29   :  { %545 = vmatpush.bf16.msrb.mxu1 %v800_v0  ;;  %v901_v46 = vld [vmem:[%s1512_s1 + $0x1b8] sm:$0xf0]  ;;  %v829_v49 = vld [vmem:[%s1512_s1 + $0x128] sm:$0xf0]  ;;  %v965_v52 = vld [vmem:[%s1512_s1 + $0xa4] sm:$0xf]  ;;  %v712_v58 = vor.u32 %v951_v41, %v709_v42 }
  0x2a   :  { %564 = vmatpush.bf16.msrb.mxu2 %v864_v60  ;;  %v765_v55 = vld [vmem:[%s1512_s1 + $0xa8] sm:$0xf0]  ;;  %v904_v59 = vor.u32 %v999_v43, %v901_v46  ;;  %v832_v60 = vor.u32 %v981_v47, %v829_v49  ;;  %v949_v61 = vld [vmem:[%s1512_s1 + $0x24] sm:$0xf]  ;;  %v979_v2 = vld [vmem:[%s1512_s1 + $0x114] sm:$0xf] }
  0x2b   :  { %583 = vmatpush.bf16.msrb.mxu3 %v928_v7  ;;  %v701_v62 = vld [vmem:[%s1512_s1 + $0x28] sm:$0xf0]  ;;  %v997_v63 = vld [vmem:[%s1512_s1 + $0x1a4] sm:$0xf]  ;;  %v768_v0 = vor.u32 %v965_v52, %v765_v55  ;;  %v821_v3 = vld [vmem:[%s1512_s1 + $0x118] sm:$0xf0] }
  0x2c   :  { %527 = vmatpush.bf16.msrb.mxu0 %v728_v18  ;;  %v893_v1 = vld [vmem:[%s1512_s1 + $0x1a8] sm:$0xf0]  ;;  %v963_v4 = vld [vmem:[%s1512_s1 + $0x94] sm:$0xf]  ;;  %v757_v5 = vld [vmem:[%s1512_s1 + $0x98] sm:$0xf0]  ;;  %v704_v6 = vor.u32 %v949_v61, %v701_v62 }
  0x2d   :  { %546 = vmatpush.bf16.msrb.mxu1 %v792_v12  ;;  %v896_v7 = vor.u32 %v997_v63, %v893_v1  ;;  %v947_v9 = vld [vmem:[%s1512_s1 + $0x14] sm:$0xf]  ;;  %v693_v10 = vld [vmem:[%s1512_s1 + $0x18] sm:$0xf0]  ;;  %v760_v12 = vor.u32 %v963_v4, %v757_v5  ;;  %v977_v14 = vld [vmem:[%s1512_s1 + $0x104] sm:$0xf] }
  0x2e   :  { %565 = vmatpush.bf16.msrb.mxu2 %v856_v8  ;;  %v824_v8 = vor.u32 %v979_v2, %v821_v3  ;;  %v995_v11 = vld [vmem:[%s1512_s1 + $0x194] sm:$0xf]  ;;  %v885_v13 = vld [vmem:[%s1512_s1 + $0x198] sm:$0xf0]  ;;  %v813_v15 = vld [vmem:[%s1512_s1 + $0x108] sm:$0xf0]  ;;  %v696_v18 = vor.u32 %v947_v9, %v693_v10 }
  0x2f   :  { %584 = vmatpush.bf16.msrb.mxu3 %v920_v22  ;;  %v961_v16 = vld [vmem:[%s1512_s1 + $0x84] sm:$0xf]  ;;  %v749_v17 = vld [vmem:[%s1512_s1 + $0x88] sm:$0xf0]  ;;  %v888_v19 = vor.u32 %v995_v11, %v885_v13  ;;  %v816_v20 = vor.u32 %v977_v14, %v813_v15  ;;  %v615_v49 = vld [vmem:[%s1515_s3] sm:$0x3] }
  0x30   :  { %528 = vmatpush.bf16.msrb.mxu0 %v720_v35  ;;  %v945_v21 = vld [vmem:[%s1512_s1 + $0x4] sm:$0xf]  ;;  %v685_v22 = vld [vmem:[%s1512_s1 + $0x8] sm:$0xf0] }
  0x31   :  { %547 = vmatpush.bf16.msrb.mxu1 %v784_v27  ;;  %v993_v24 = vld [vmem:[%s1512_s1 + $0x184] sm:$0xf]  ;;  %v877_v25 = vld [vmem:[%s1512_s1 + $0x188] sm:$0xf0]  ;;  %v688_v26 = vor.u32 %v945_v21, %v685_v22 }
  0x32   :  { %566 = vmatpush.bf16.msrb.mxu2 %v848_v23  ;;  %v752_v23 = vor.u32 %v961_v16, %v749_v17  ;;  %v880_v27 = vor.u32 %v993_v24, %v877_v25 }
  0x33   :  { %585 = vmatpush.bf16.msrb.mxu3 %v912_v39  ;;  %462 = vmatmul.bf16.gmra.mxu0 %v1403_v44 }
  0x34   :  { %481 = vmatmul.bf16.gmra.mxu1 %v1414_v50  ;;  %529 = vmatpush.bf16.msrb.mxu0 %v712_v58  ;;  %v617_v58 = vperm.slane %v615_v49, 0 }
  0x35   :  { %548 = vmatpush.bf16.msrb.mxu1 %v776_v45  ;;  %500 = vmatmul.bf16.gmra.mxu2 %v1416_v51 }
  0x36   :  { %567 = vmatpush.bf16.msrb.mxu2 %v840_v40  ;;  %519 = vmatmul.bf16.gmra.mxu3 %v680_v56 }
  0x37   :  { %586 = vmatpush.bf16.msrb.mxu3 %v904_v59 }
  0x38   :  { %530 = vmatpush.bf16.msrb.mxu0 %v704_v6 }
  0x39   :  { %549 = vmatpush.bf16.msrb.mxu1 %v768_v0  ;;  %v618_v0 = vperm.slane %v615_v49, 1 }
  0x3a   :  { %568 = vmatpush.bf16.msrb.mxu2 %v832_v60 }
  0x3b   :  { %587 = vmatpush.bf16.msrb.mxu3 %v896_v7 }
  0x3c   :  { %531 = vmatpush.bf16.msrb.mxu0 %v696_v18 }
  0x3d   :  { %550 = vmatpush.bf16.msrb.mxu1 %v760_v12 }
  0x3e   :  { %569 = vmatpush.bf16.msrb.mxu2 %v824_v8 }
  0x3f   :  { %588 = vmatpush.bf16.msrb.mxu3 %v888_v19 }
  0x40   :  { %532 = vmatpush.bf16.msrb.mxu0 %v688_v26 }
  0x41   :  { %551 = vmatpush.bf16.msrb.mxu1 %v752_v23 }
  0x42   :  { %570 = vmatpush.bf16.msrb.mxu2 %v816_v20 }
  0x43   :  { %589 = vmatpush.bf16.msrb.mxu3 %v880_v27  ;;  %533 = vmatmul.bf16.vlgmr.msrb.gmra.mxu0 %v1271_v48 }
  0x44   :  { %552 = vmatmul.bf16.vlgmr.msrb.gmra.mxu1 %v1282_v53 }
  0x45   :  { %571 = vmatmul.bf16.vlgmr.msrb.gmra.mxu2 %v1284_v54 }
  0x46   :  { %590 = vmatmul.bf16.vlgmr.msrb.gmra.mxu3 %v1292_v57 }
  0x53   :  { %538 = vmatmul.bf16.gmra.mxu0 %v1403_v44  ;;  %v601_v44 = vld [vmem:[%s1514_s2] sm:$0x3] }
  0x54   :  { %557 = vmatmul.bf16.gmra.mxu1 %v1414_v50  ;;  %v603_v46 = vperm.slane %v601_v44, 0  ;;  %v604_v60 = vperm.slane %v601_v44, 1 }
  0x55   :  { %576 = vmatmul.bf16.gmra.mxu2 %v1416_v51 }
  0x56   :  { %595 = vmatmul.bf16.gmra.mxu3 %v680_v56 }
  0xa0   :  { %v458_v28 = vpop.f32.mrf.mxu0 }
  0xa1   :  { %v477_v29 = vpop.f32.mrf.mxu1 }
  0xa2   :  { %v478_v38 = vadd.f32 %v477_v29, %v458_v28 }
  0xa8   :  { %v496_v30 = vpop.f32.mrf.mxu2  ;;  %v460_v32 = vpop.f32.mrf.mxu0 }
  0xa9   :  { %v515_v31 = vpop.f32.mrf.mxu3  ;;  %v479_v33 = vpop.f32.mrf.mxu1  ;;  %v497_v41 = vadd.f32 %v496_v30, %v478_v38 }
  0xaa   :  { %v480_v50 = vadd.f32 %v479_v33, %v460_v32 }
  0xab   :  { %v516_v45 = vadd.f32 %v515_v31, %v497_v41 }
  0xad   :  { %v607_v56 = vmul.f32 %v603_v46, %v516_v45 }
  0xaf   :  { %v621_v2 = vadd.f32 %v617_v58, %v607_v56 }
  0xb0   :  { %v498_v48 = vpop.f32.mrf.mxu2  ;;  %v463_v53 = vpop.f32.mrf.mxu0 }
  0xb1   :  { %v517_v34 = vpop.f32.mrf.mxu3  ;;  %v482_v35 = vpop.f32.mrf.mxu1  ;;  %v499_v51 = vadd.f32 %v498_v48, %v480_v50  ;;  %v629_v10 = vmax.f32 %v621_v2, 0.0 }
  0xb2   :  { %v483_v3 = vadd.f32 %v482_v35, %v463_v53 }
  0xb3   :  { %v518_v1 = vadd.f32 %v517_v34, %v499_v51 }
  0xb5   :  { %v609_v7 = vmul.f32 %v603_v46, %v518_v1 }
  0xb7   :  { %v623_v18 = vadd.f32 %v617_v58, %v609_v7 }
  0xb8   :  { %v501_v54 = vpop.f32.mrf.mxu2  ;;  %v465_v57 = vpop.f32.mrf.mxu0 }
  0xb9   :  { %v520_v36 = vpop.f32.mrf.mxu3  ;;  %v484_v37 = vpop.f32.mrf.mxu1  ;;  %v502_v11 = vadd.f32 %v501_v54, %v483_v3  ;;  %v631_v24 = vmax.f32 %v623_v18, 0.0 }
  0xba   :  { %v485_v22 = vadd.f32 %v484_v37, %v465_v57 }
  0xbb   :  { %v521_v19 = vadd.f32 %v520_v36, %v502_v11 }
  0xbd   :  { %v611_v27 = vmul.f32 %v603_v46, %v521_v19 }
  0xbf   :  { %v625_v34 = vadd.f32 %v617_v58, %v611_v27 }
  0xc0   :  { %v503_v39 = vpop.f32.mrf.mxu2  ;;  %v534_v42 = vpop.f32.mrf.mxu0 }
  0xc1   :  { %v522_v40 = vpop.f32.mrf.mxu3  ;;  %v553_v43 = vpop.f32.mrf.mxu1  ;;  %v504_v28 = vadd.f32 %v503_v39, %v485_v22  ;;  %v633_v37 = vmax.f32 %v625_v34, 0.0 }
  0xc2   :  { %v554_v47 = vadd.f32 %v553_v43, %v534_v42 }
  0xc3   :  { %v523_v53 = vadd.f32 %v522_v40, %v504_v28 }
  0xc5   :  { %v613_v38 = vmul.f32 %v603_v46, %v523_v53 }
  0xc7   :  { %v627_v45 = vadd.f32 %v617_v58, %v613_v38 }
  0xc8   :  { %v572_v52 = vpop.f32.mrf.mxu2  ;;  %v536_v61 = vpop.f32.mrf.mxu0 }
  0xc9   :  { %v591_v55 = vpop.f32.mrf.mxu3  ;;  %v573_v59 = vadd.f32 %v572_v52, %v554_v47  ;;  %v555_v62 = vpop.f32.mrf.mxu1  ;;  %v635_v49 = vmax.f32 %v627_v45, 0.0 }
  0xca   :  { %v556_v6 = vadd.f32 %v555_v62, %v536_v61 }
  0xcb   :  { %v592_v63 = vadd.f32 %v591_v55, %v573_v59 }
  0xcd   :  { %v608_v4 = vmul.f32 %v604_v60, %v592_v63 }
  0xcf   :  { %v622_v5 = vadd.f32 %v618_v0, %v608_v4 }
  0xd0   :  { %v574_v8 = vpop.f32.mrf.mxu2  ;;  %v539_v14 = vpop.f32.mrf.mxu0 }
  0xd1   :  { %v593_v9 = vpop.f32.mrf.mxu3  ;;  %v630_v12 = vmax.f32 %v622_v5, 0.0  ;;  %v575_v13 = vadd.f32 %v574_v8, %v556_v6  ;;  %v558_v15 = vpop.f32.mrf.mxu1 }
  0xd2   :  { %v559_v21 = vadd.f32 %v558_v15, %v539_v14 }
  0xd3   :  { %v637_v16 = vpack.c.bf16 %v630_v12, %v629_v10  ;;  %v594_v17 = vadd.f32 %v593_v9, %v575_v13 }
  0xd5   :  { %641 = vst [vmem:[%s1516_s4] sm:$0xff] %v637_v16  ;;  %v610_v20 = vmul.f32 %v604_v60, %v594_v17 }
  0xd7   :  { %v624_v23 = vadd.f32 %v618_v0, %v610_v20 }
  0xd8   :  { %v577_v25 = vpop.f32.mrf.mxu2  ;;  %v541_v33 = vpop.f32.mrf.mxu0 }
  0xd9   :  { %v596_v26 = vpop.f32.mrf.mxu3  ;;  %v632_v29 = vmax.f32 %v624_v23, 0.0  ;;  %v578_v30 = vadd.f32 %v577_v25, %v559_v21  ;;  %v560_v48 = vpop.f32.mrf.mxu1 }
  0xda   :  { %v561_v36 = vadd.f32 %v560_v48, %v541_v33 }
  0xdb   :  { %v638_v31 = vpack.c.bf16 %v632_v29, %v631_v24  ;;  %v597_v32 = vadd.f32 %v596_v26, %v578_v30 }
  0xdd   :  { %642 = vst [vmem:[%s1516_s4 + $0x8] sm:$0xff] %v638_v31  ;;  %v612_v35 = vmul.f32 %v604_v60, %v597_v32 }
  0xdf   :  { %v626_v54 = vadd.f32 %v618_v0, %v612_v35 }
  0xe0   :  { %v579_v57 = vpop.f32.mrf.mxu2 }
  0xe1   :  { %v634_v41 = vmax.f32 %v626_v54, 0.0  ;;  %v580_v39 = vadd.f32 %v579_v57, %v561_v36  ;;  %v598_v42 = vpop.f32.mrf.mxu3 }
  0xe3   :  { %v639_v43 = vpack.c.bf16 %v634_v41, %v633_v37  ;;  %v599_v44 = vadd.f32 %v598_v42, %v580_v39 }
  0xe5   :  { %643 = vst [vmem:[%s1516_s4 + $0x10] sm:$0xff] %v639_v43  ;;  %v614_v40 = vmul.f32 %v604_v60, %v599_v44 }
  0xe7   :  { %v628_v47 = vadd.f32 %v618_v0, %v614_v40 }
  0xe9   :  { %v636_v50 = vmax.f32 %v628_v47, 0.0 }
  0xeb   :  { %v640_v51 = vpack.c.bf16 %v636_v50, %v635_v49 }
  0xed   :  { %644 = vst [vmem:[%s1516_s4 + $0x18] sm:$0xff] %v640_v51 }

// kernel: autoencoder_forward.16
= control target key start
LH: loop header
LB: loop body
LE: loop exit
PB: predicated region body
PF: predicated region fallthrough
CT: control target
= control target key end

     0   :  { %s5931_s1 = inlined_call_operand.vmem [shape: bf16[2304,256], index: 1, kind: input, shape index: {}]   ;;  %s5932_s0 = inlined_call_operand.vmem [shape: bf16[16,2304], index: 0, kind: input, shape index: {}]   ;;  %s5933_s2 = inlined_call_operand.vmem [shape: f32[1,256], index: 2, kind: input, shape index: {}]   ;;  %s5934_s3 = inlined_call_operand.vmem [shape: f32[1,256], index: 3, kind: input, shape index: {}]   ;;  %s5935_s4 = inlined_call_operand.vmem [shape: f32[16,256], index: 4, kind: output, shape index: {}]  }
   0x1   :  { %v2515_v0 = vld [vmem:[%s5931_s1 + $0x70] sm:$0xf]  ;;  %v3642_v1 = vld [vmem:[%s5931_s1 + $0x74] sm:$0xf0]  ;;  %v2507_v11 = vld [vmem:[%s5931_s1 + $0x60] sm:$0xf] }
   0x2   :  { %v2579_v2 = vld [vmem:[%s5931_s1 + $0xf0] sm:$0xf]  ;;  %v2516_v3 = vor.u32 %v3642_v1, %v2515_v0  ;;  %v3658_v4 = vld [vmem:[%s5931_s1 + $0xf4] sm:$0xf0]  ;;  %v3640_v13 = vld [vmem:[%s5931_s1 + $0x64] sm:$0xf0] }
   0x3   :  { %v2643_v5 = vld [vmem:[%s5931_s1 + $0x170] sm:$0xf]  ;;  %v3674_v6 = vld [vmem:[%s5931_s1 + $0x174] sm:$0xf0]  ;;  %v2580_v7 = vor.u32 %v3658_v4, %v2579_v2  ;;  %v2571_v14 = vld [vmem:[%s5931_s1 + $0xe0] sm:$0xf]  ;;  %v2508_v16 = vor.u32 %v3640_v13, %v2507_v11 }
   0x4   :  { %v2644_v8 = vor.u32 %v3674_v6, %v2643_v5  ;;  %v2707_v9 = vld [vmem:[%s5931_s1 + $0x1f0] sm:$0xf]  ;;  %v3690_v10 = vld [vmem:[%s5931_s1 + $0x1f4] sm:$0xf0]  ;;  %1853 = vmatpush.bf16.msra.mxu0 %v2516_v3  ;;  %v3656_v15 = vld [vmem:[%s5931_s1 + $0xe4] sm:$0xf0] }
   0x5   :  { %v2708_v12 = vor.u32 %v3690_v10, %v2707_v9  ;;  %1867 = vmatpush.bf16.msra.mxu1 %v2580_v7  ;;  %v2572_v17 = vor.u32 %v3656_v15, %v2571_v14  ;;  %v2635_v18 = vld [vmem:[%s5931_s1 + $0x160] sm:$0xf]  ;;  %v3672_v19 = vld [vmem:[%s5931_s1 + $0x164] sm:$0xf0]  ;;  %v2499_v23 = vld [vmem:[%s5931_s1 + $0x50] sm:$0xf] }
   0x6   :  { %1881 = vmatpush.bf16.msra.mxu2 %v2644_v8  ;;  %v2699_v20 = vld [vmem:[%s5931_s1 + $0x1e0] sm:$0xf]  ;;  %v2636_v21 = vor.u32 %v3672_v19, %v2635_v18  ;;  %v3688_v22 = vld [vmem:[%s5931_s1 + $0x1e4] sm:$0xf0]  ;;  %v3638_v24 = vld [vmem:[%s5931_s1 + $0x54] sm:$0xf0] }
   0x7   :  { %1895 = vmatpush.bf16.msra.mxu3 %v2708_v12  ;;  %v2700_v25 = vor.u32 %v3688_v22, %v2699_v20  ;;  %v2563_v26 = vld [vmem:[%s5931_s1 + $0xd0] sm:$0xf]  ;;  %v3654_v27 = vld [vmem:[%s5931_s1 + $0xd4] sm:$0xf0]  ;;  %v2500_v29 = vor.u32 %v3638_v24, %v2499_v23  ;;  %v2491_v35 = vld [vmem:[%s5931_s1 + $0x40] sm:$0xf] }
   0x8   :  { %v2627_v28 = vld [vmem:[%s5931_s1 + $0x150] sm:$0xf]  ;;  %1854 = vmatpush.bf16.msra.mxu0 %v2508_v16  ;;  %v3670_v30 = vld [vmem:[%s5931_s1 + $0x154] sm:$0xf0]  ;;  %v2564_v33 = vor.u32 %v3654_v27, %v2563_v26  ;;  %v3636_v36 = vld [vmem:[%s5931_s1 + $0x44] sm:$0xf0] }
   0x9   :  { %v2691_v31 = vld [vmem:[%s5931_s1 + $0x1d0] sm:$0xf]  ;;  %v3686_v32 = vld [vmem:[%s5931_s1 + $0x1d4] sm:$0xf0]  ;;  %1868 = vmatpush.bf16.msra.mxu1 %v2572_v17  ;;  %v2628_v34 = vor.u32 %v3670_v30, %v2627_v28  ;;  %v2555_v37 = vld [vmem:[%s5931_s1 + $0xc0] sm:$0xf]  ;;  %v2492_v44 = vor.u32 %v3636_v36, %v2491_v35 }
   0xa   :  { %1882 = vmatpush.bf16.msra.mxu2 %v2636_v21  ;;  %v2692_v38 = vor.u32 %v3686_v32, %v2691_v31  ;;  %v3652_v39 = vld [vmem:[%s5931_s1 + $0xc4] sm:$0xf0]  ;;  %v2619_v40 = vld [vmem:[%s5931_s1 + $0x140] sm:$0xf]  ;;  %v2483_v47 = vld [vmem:[%s5931_s1 + $0x30] sm:$0xf] }
   0xb   :  { %1896 = vmatpush.bf16.msra.mxu3 %v2700_v25  ;;  %v3668_v41 = vld [vmem:[%s5931_s1 + $0x144] sm:$0xf0]  ;;  %v2683_v42 = vld [vmem:[%s5931_s1 + $0x1c0] sm:$0xf]  ;;  %v2556_v45 = vor.u32 %v3652_v39, %v2555_v37  ;;  %v3634_v48 = vld [vmem:[%s5931_s1 + $0x34] sm:$0xf0] }
   0xc   :  { %v3684_v43 = vld [vmem:[%s5931_s1 + $0x1c4] sm:$0xf0]  ;;  %1855 = vmatpush.bf16.msra.mxu0 %v2500_v29  ;;  %v2620_v46 = vor.u32 %v3668_v41, %v2619_v40  ;;  %v2547_v49 = vld [vmem:[%s5931_s1 + $0xb0] sm:$0xf]  ;;  %v3650_v51 = vld [vmem:[%s5931_s1 + $0xb4] sm:$0xf0]  ;;  %v2484_v56 = vor.u32 %v3634_v48, %v2483_v47 }
   0xd   :  { %1869 = vmatpush.bf16.msra.mxu1 %v2564_v33  ;;  %v2684_v50 = vor.u32 %v3684_v43, %v2683_v42  ;;  %v2611_v52 = vld [vmem:[%s5931_s1 + $0x130] sm:$0xf]  ;;  %v3666_v53 = vld [vmem:[%s5931_s1 + $0x134] sm:$0xf0]  ;;  %v2548_v57 = vor.u32 %v3650_v51, %v2547_v49  ;;  %v2475_v59 = vld [vmem:[%s5931_s1 + $0x20] sm:$0xf] }
   0xe   :  { %1883 = vmatpush.bf16.msra.mxu2 %v2628_v34  ;;  %v2675_v54 = vld [vmem:[%s5931_s1 + $0x1b0] sm:$0xf]  ;;  %v3682_v55 = vld [vmem:[%s5931_s1 + $0x1b4] sm:$0xf0]  ;;  %v2612_v58 = vor.u32 %v3666_v53, %v2611_v52  ;;  %v3632_v60 = vld [vmem:[%s5931_s1 + $0x24] sm:$0xf0] }
   0xf   :  { %1897 = vmatpush.bf16.msra.mxu3 %v2692_v38  ;;  %v2539_v61 = vld [vmem:[%s5931_s1 + $0xa0] sm:$0xf]  ;;  %v2676_v62 = vor.u32 %v3682_v55, %v2675_v54  ;;  %v3648_v63 = vld [vmem:[%s5931_s1 + $0xa4] sm:$0xf0]  ;;  %v2476_v4 = vor.u32 %v3632_v60, %v2475_v59  ;;  %v2467_v7 = vld [vmem:[%s5931_s1 + $0x10] sm:$0xf] }
  0x10   :  { %1856 = vmatpush.bf16.msra.mxu0 %v2492_v44  ;;  %v2603_v0 = vld [vmem:[%s5931_s1 + $0x120] sm:$0xf]  ;;  %v3664_v1 = vld [vmem:[%s5931_s1 + $0x124] sm:$0xf0]  ;;  %v2540_v5 = vor.u32 %v3648_v63, %v2539_v61  ;;  %v3630_v8 = vld [vmem:[%s5931_s1 + $0x14] sm:$0xf0] }
  0x11   :  { %1870 = vmatpush.bf16.msra.mxu1 %v2556_v45  ;;  %v2667_v2 = vld [vmem:[%s5931_s1 + $0x1a0] sm:$0xf]  ;;  %v3680_v3 = vld [vmem:[%s5931_s1 + $0x1a4] sm:$0xf0]  ;;  %v2604_v6 = vor.u32 %v3664_v1, %v2603_v0  ;;  %v2531_v9 = vld [vmem:[%s5931_s1 + $0x90] sm:$0xf]  ;;  %v2468_v16 = vor.u32 %v3630_v8, %v2467_v7 }
  0x12   :  { %1884 = vmatpush.bf16.msra.mxu2 %v2620_v46  ;;  %v2668_v10 = vor.u32 %v3680_v3, %v2667_v2  ;;  %v3646_v11 = vld [vmem:[%s5931_s1 + $0x94] sm:$0xf0]  ;;  %v2595_v12 = vld [vmem:[%s5931_s1 + $0x110] sm:$0xf]  ;;  %v2459_v17 = vld [vmem:[%s5931_s1] sm:$0xf] }
  0x13   :  { %1898 = vmatpush.bf16.msra.mxu3 %v2684_v50  ;;  %v3662_v13 = vld [vmem:[%s5931_s1 + $0x114] sm:$0xf0]  ;;  %v2659_v14 = vld [vmem:[%s5931_s1 + $0x190] sm:$0xf]  ;;  %v3628_v18 = vld [vmem:[%s5931_s1 + $0x4] sm:$0xf0]  ;;  %v2532_v19 = vor.u32 %v3646_v11, %v2531_v9 }
  0x14   :  { %1857 = vmatpush.bf16.msra.mxu0 %v2484_v56  ;;  %v3678_v15 = vld [vmem:[%s5931_s1 + $0x194] sm:$0xf0]  ;;  %v2596_v20 = vor.u32 %v3662_v13, %v2595_v12  ;;  %v2523_v21 = vld [vmem:[%s5931_s1 + $0x80] sm:$0xf]  ;;  %v3644_v22 = vld [vmem:[%s5931_s1 + $0x84] sm:$0xf0]  ;;  %v2460_v31 = vor.u32 %v3628_v18, %v2459_v17 }
  0x15   :  { %1871 = vmatpush.bf16.msra.mxu1 %v2548_v57  ;;  %v2587_v23 = vld [vmem:[%s5931_s1 + $0x100] sm:$0xf]  ;;  %v2660_v24 = vor.u32 %v3678_v15, %v2659_v14  ;;  %v3660_v25 = vld [vmem:[%s5931_s1 + $0x104] sm:$0xf0]  ;;  %v2771_v28 = vld [vmem:[%s5931_s1 + $0x270] sm:$0xf]  ;;  %v2524_v35 = vor.u32 %v3644_v22, %v2523_v21 }
  0x16   :  { %1885 = vmatpush.bf16.msra.mxu2 %v2612_v58  ;;  %v2651_v26 = vld [vmem:[%s5931_s1 + $0x180] sm:$0xf]  ;;  %v3676_v27 = vld [vmem:[%s5931_s1 + $0x184] sm:$0xf0]  ;;  %v3706_v29 = vld [vmem:[%s5931_s1 + $0x274] sm:$0xf0]  ;;  %v2588_v36 = vor.u32 %v3660_v25, %v2587_v23 }
  0x17   :  { %1899 = vmatpush.bf16.msra.mxu3 %v2676_v62  ;;  %v2835_v30 = vld [vmem:[%s5931_s1 + $0x2f0] sm:$0xf]  ;;  %v3722_v32 = vld [vmem:[%s5931_s1 + $0x2f4] sm:$0xf0]  ;;  %v2652_v39 = vor.u32 %v3676_v27, %v2651_v26  ;;  %v2772_v40 = vor.u32 %v3706_v29, %v2771_v28  ;;  %v2763_v41 = vld [vmem:[%s5931_s1 + $0x260] sm:$0xf] }
  0x18   :  { %1858 = vmatpush.bf16.msra.mxu0 %v2476_v4  ;;  %v2899_v33 = vld [vmem:[%s5931_s1 + $0x370] sm:$0xf]  ;;  %v3738_v34 = vld [vmem:[%s5931_s1 + $0x374] sm:$0xf0]  ;;  %v3704_v42 = vld [vmem:[%s5931_s1 + $0x264] sm:$0xf0]  ;;  %v2836_v43 = vor.u32 %v3722_v32, %v2835_v30 }
  0x19   :  { %1872 = vmatpush.bf16.msra.mxu1 %v2540_v5  ;;  %v2963_v37 = vld [vmem:[%s5931_s1 + $0x3f0] sm:$0xf]  ;;  %v3754_v38 = vld [vmem:[%s5931_s1 + $0x3f4] sm:$0xf0]  ;;  %v2900_v44 = vor.u32 %v3738_v34, %v2899_v33  ;;  %v2827_v45 = vld [vmem:[%s5931_s1 + $0x2e0] sm:$0xf]  ;;  %v2764_v55 = vor.u32 %v3704_v42, %v2763_v41 }
  0x1a   :  { %1886 = vmatpush.bf16.msra.mxu2 %v2604_v6  ;;  %v3720_v46 = vld [vmem:[%s5931_s1 + $0x2e4] sm:$0xf0]  ;;  %v2891_v47 = vld [vmem:[%s5931_s1 + $0x360] sm:$0xf]  ;;  %v2964_v48 = vor.u32 %v3754_v38, %v2963_v37  ;;  %v2755_v56 = vld [vmem:[%s5931_s1 + $0x250] sm:$0xf] }
  0x1b   :  { %1900 = vmatpush.bf16.msra.mxu3 %v2668_v10  ;;  %v3736_v49 = vld [vmem:[%s5931_s1 + $0x364] sm:$0xf0]  ;;  %v2955_v50 = vld [vmem:[%s5931_s1 + $0x3e0] sm:$0xf]  ;;  %v3702_v57 = vld [vmem:[%s5931_s1 + $0x254] sm:$0xf0]  ;;  %v2828_v60 = vor.u32 %v3720_v46, %v2827_v45 }
  0x1c   :  { %1859 = vmatpush.bf16.msra.mxu0 %v2468_v16  ;;  %v3752_v51 = vld [vmem:[%s5931_s1 + $0x3e4] sm:$0xf0]  ;;  %v2387_v52 = vld [vmem:[%s5932_s0] sm:$0xf]  ;;  %v3619_v59 = vld [vmem:[%s5932_s0 + $0x4c] sm:$0xf0]  ;;  %v2892_v61 = vor.u32 %v3736_v49, %v2891_v47  ;;  %v2756_v9 = vor.u32 %v3702_v57, %v2755_v56 }
  0x1d   :  { %1873 = vmatpush.bf16.msra.mxu1 %v2532_v19  ;;  %v3618_v53 = vld [vmem:[%s5932_s0 + $0x44] sm:$0xf0]  ;;  %v2819_v62 = vld [vmem:[%s5931_s1 + $0x2d0] sm:$0xf]  ;;  %v3718_v63 = vld [vmem:[%s5931_s1 + $0x2d4] sm:$0xf0]  ;;  %v2956_v2 = vor.u32 %v3752_v51, %v2955_v50 }
  0x1e   :  { %1887 = vmatpush.bf16.msra.mxu2 %v2596_v20  ;;  %v2395_v54 = vld [vmem:[%s5932_s0 + $0x8] sm:$0xf]  ;;  %v4195_v58 = vor.u32 %v3618_v53, %v2387_v52  ;;  %v2883_v0 = vld [vmem:[%s5931_s1 + $0x350] sm:$0xf]  ;;  %v3734_v3 = vld [vmem:[%s5931_s1 + $0x354] sm:$0xf0]  ;;  %v2820_v12 = vor.u32 %v3718_v63, %v2819_v62 }
  0x1f   :  { %1901 = vmatpush.bf16.msra.mxu3 %v2660_v24  ;;  %v4209_v1 = vor.u32 %v3619_v59, %v2395_v54  ;;  %v2947_v4 = vld [vmem:[%s5931_s1 + $0x3d0] sm:$0xf]  ;;  %v3750_v5 = vld [vmem:[%s5931_s1 + $0x3d4] sm:$0xf0]  ;;  %v3609_v6 = vld [vmem:[%s5932_s0 + $0x4] sm:$0xf]  ;;  %v2884_v13 = vor.u32 %v3734_v3, %v2883_v0 }
  0x20   :  { %1860 = vmatpush.bf16.msra.mxu0 %v2460_v31  ;;  %v2389_v7 = vld [vmem:[%s5932_s0 + $0x48] sm:$0xf0]  ;;  %v2397_v11 = vld [vmem:[%s5932_s0 + $0x50] sm:$0xf0]  ;;  %v2747_v14 = vld [vmem:[%s5931_s1 + $0x240] sm:$0xf]  ;;  %v2948_v18 = vor.u32 %v3750_v5, %v2947_v4 }
  0x21   :  { %1874 = vmatpush.bf16.msra.mxu1 %v2524_v35  ;;  %v3610_v8 = vld [vmem:[%s5932_s0 + $0xc] sm:$0xf]  ;;  %v4231_v10 = vor.u32 %v3609_v6, %v2389_v7  ;;  %v3700_v15 = vld [vmem:[%s5931_s1 + $0x244] sm:$0xf0]  ;;  %v2811_v16 = vld [vmem:[%s5931_s1 + $0x2c0] sm:$0xf] }
  0x22   :  { %1888 = vmatpush.bf16.msra.mxu2 %v2588_v36  ;;  %v4245_v17 = vor.u32 %v3610_v8, %v2397_v11  ;;  %v3716_v19 = vld [vmem:[%s5931_s1 + $0x2c4] sm:$0xf0]  ;;  %v2875_v20 = vld [vmem:[%s5931_s1 + $0x340] sm:$0xf]  ;;  %v2748_v24 = vor.u32 %v3700_v15, %v2747_v14  ;;  %v2739_v27 = vld [vmem:[%s5931_s1 + $0x230] sm:$0xf] }
  0x23   :  { %1902 = vmatpush.bf16.msra.mxu3 %v2652_v39  ;;  %1861 = vmatmul.bf16.vlgmr.msra.gmra.mxu0 %v4195_v58  ;;  %v3732_v21 = vld [vmem:[%s5931_s1 + $0x344] sm:$0xf0]  ;;  %v2939_v22 = vld [vmem:[%s5931_s1 + $0x3c0] sm:$0xf]  ;;  %v2812_v25 = vor.u32 %v3716_v19, %v2811_v16  ;;  %v3698_v28 = vld [vmem:[%s5931_s1 + $0x234] sm:$0xf0] }
  0x24   :  { %1909 = vmatpush.bf16.msrb.mxu0 %v2772_v40  ;;  %1875 = vmatmul.bf16.vlgmr.msra.gmra.mxu1 %v4231_v10  ;;  %v3748_v23 = vld [vmem:[%s5931_s1 + $0x3c4] sm:$0xf0]  ;;  %v2876_v26 = vor.u32 %v3732_v21, %v2875_v20  ;;  %v2803_v29 = vld [vmem:[%s5931_s1 + $0x2b0] sm:$0xf]  ;;  %v3714_v31 = vld [vmem:[%s5931_s1 + $0x2b4] sm:$0xf0]  ;;  %v2740_v36 = vor.u32 %v3698_v28, %v2739_v27 }
  0x25   :  { %1923 = vmatpush.bf16.msrb.mxu1 %v2836_v43  ;;  %1889 = vmatmul.bf16.vlgmr.msra.gmra.mxu2 %v4209_v1  ;;  %v2940_v30 = vor.u32 %v3748_v23, %v2939_v22  ;;  %v2867_v32 = vld [vmem:[%s5931_s1 + $0x330] sm:$0xf]  ;;  %v3730_v33 = vld [vmem:[%s5931_s1 + $0x334] sm:$0xf0]  ;;  %v2804_v37 = vor.u32 %v3714_v31, %v2803_v29  ;;  %v2731_v39 = vld [vmem:[%s5931_s1 + $0x220] sm:$0xf] }
  0x26   :  { %1937 = vmatpush.bf16.msrb.mxu2 %v2900_v44  ;;  %1903 = vmatmul.bf16.vlgmr.msra.gmra.mxu3 %v4245_v17  ;;  %v2931_v34 = vld [vmem:[%s5931_s1 + $0x3b0] sm:$0xf]  ;;  %v3746_v35 = vld [vmem:[%s5931_s1 + $0x3b4] sm:$0xf0]  ;;  %v2868_v38 = vor.u32 %v3730_v33, %v2867_v32  ;;  %v3696_v40 = vld [vmem:[%s5931_s1 + $0x224] sm:$0xf0] }
  0x27   :  { %1951 = vmatpush.bf16.msrb.mxu3 %v2964_v48  ;;  %v2795_v41 = vld [vmem:[%s5931_s1 + $0x2a0] sm:$0xf]  ;;  %v2932_v42 = vor.u32 %v3746_v35, %v2931_v34  ;;  %v3712_v43 = vld [vmem:[%s5931_s1 + $0x2a4] sm:$0xf0]  ;;  %v2732_v48 = vor.u32 %v3696_v40, %v2731_v39  ;;  %v2723_v49 = vld [vmem:[%s5931_s1 + $0x210] sm:$0xf] }
  0x28   :  { %1910 = vmatpush.bf16.msrb.mxu0 %v2764_v55  ;;  %v2859_v44 = vld [vmem:[%s5931_s1 + $0x320] sm:$0xf]  ;;  %v3728_v45 = vld [vmem:[%s5931_s1 + $0x324] sm:$0xf0]  ;;  %v2796_v50 = vor.u32 %v3712_v43, %v2795_v41  ;;  %v3694_v52 = vld [vmem:[%s5931_s1 + $0x214] sm:$0xf0] }
  0x29   :  { %1924 = vmatpush.bf16.msrb.mxu1 %v2828_v60  ;;  %v2923_v46 = vld [vmem:[%s5931_s1 + $0x3a0] sm:$0xf]  ;;  %v3744_v47 = vld [vmem:[%s5931_s1 + $0x3a4] sm:$0xf0]  ;;  %v2860_v51 = vor.u32 %v3728_v45, %v2859_v44  ;;  %v2787_v53 = vld [vmem:[%s5931_s1 + $0x290] sm:$0xf]  ;;  %v2724_v63 = vor.u32 %v3694_v52, %v2723_v49 }
  0x2a   :  { %1938 = vmatpush.bf16.msrb.mxu2 %v2892_v61  ;;  %v3710_v54 = vld [vmem:[%s5931_s1 + $0x294] sm:$0xf0]  ;;  %v2924_v55 = vor.u32 %v3744_v47, %v2923_v46  ;;  %v2851_v56 = vld [vmem:[%s5931_s1 + $0x310] sm:$0xf]  ;;  %v2715_v61 = vld [vmem:[%s5931_s1 + $0x200] sm:$0xf] }
  0x2b   :  { %1952 = vmatpush.bf16.msrb.mxu3 %v2956_v2  ;;  %v3726_v57 = vld [vmem:[%s5931_s1 + $0x314] sm:$0xf0]  ;;  %v2915_v59 = vld [vmem:[%s5931_s1 + $0x390] sm:$0xf]  ;;  %v3692_v62 = vld [vmem:[%s5931_s1 + $0x204] sm:$0xf0]  ;;  %v2788_v5 = vor.u32 %v3710_v54, %v2787_v53 }
  0x2c   :  { %1911 = vmatpush.bf16.msrb.mxu0 %v2756_v9  ;;  %v3742_v60 = vld [vmem:[%s5931_s1 + $0x394] sm:$0xf0]  ;;  %v2779_v0 = vld [vmem:[%s5931_s1 + $0x280] sm:$0xf]  ;;  %v3708_v2 = vld [vmem:[%s5931_s1 + $0x284] sm:$0xf0]  ;;  %v2852_v6 = vor.u32 %v3726_v57, %v2851_v56  ;;  %v2716_v19 = vor.u32 %v3692_v62, %v2715_v61 }
  0x2d   :  { %1925 = vmatpush.bf16.msrb.mxu1 %v2820_v12  ;;  %v2843_v3 = vld [vmem:[%s5931_s1 + $0x300] sm:$0xf]  ;;  %v3724_v4 = vld [vmem:[%s5931_s1 + $0x304] sm:$0xf0]  ;;  %v3027_v9 = vld [vmem:[%s5931_s1 + $0x470] sm:$0xf]  ;;  %v2916_v11 = vor.u32 %v3742_v60, %v2915_v59  ;;  %v2780_v23 = vor.u32 %v3708_v2, %v2779_v0 }
  0x2e   :  { %1939 = vmatpush.bf16.msrb.mxu2 %v2884_v13  ;;  %v2907_v7 = vld [vmem:[%s5931_s1 + $0x380] sm:$0xf]  ;;  %v3740_v8 = vld [vmem:[%s5931_s1 + $0x384] sm:$0xf0]  ;;  %v3770_v12 = vld [vmem:[%s5931_s1 + $0x474] sm:$0xf0] }
  0x2f   :  { %1953 = vmatpush.bf16.msrb.mxu3 %v2948_v18  ;;  %v3091_v13 = vld [vmem:[%s5931_s1 + $0x4f0] sm:$0xf]  ;;  %v3786_v14 = vld [vmem:[%s5931_s1 + $0x4f4] sm:$0xf0]  ;;  %v3611_v27 = vld [vmem:[%s5932_s0 + $0x14] sm:$0xf]  ;;  %v2908_v28 = vor.u32 %v3740_v8, %v2907_v7  ;;  %v3028_v29 = vor.u32 %v3770_v12, %v3027_v9 }
  0x30   :  { %1912 = vmatpush.bf16.msrb.mxu0 %v2748_v24  ;;  %v3155_v15 = vld [vmem:[%s5931_s1 + $0x570] sm:$0xf]  ;;  %v3802_v16 = vld [vmem:[%s5931_s1 + $0x574] sm:$0xf0]  ;;  %v2844_v24 = vor.u32 %v3724_v4, %v2843_v3  ;;  %v3612_v31 = vld [vmem:[%s5932_s0 + $0x1c] sm:$0xf]  ;;  %v3092_v33 = vor.u32 %v3786_v14, %v3091_v13 }
  0x31   :  { %1926 = vmatpush.bf16.msrb.mxu1 %v2812_v25  ;;  %v3219_v18 = vld [vmem:[%s5931_s1 + $0x5f0] sm:$0xf]  ;;  %v3818_v20 = vld [vmem:[%s5931_s1 + $0x5f4] sm:$0xf0]  ;;  %v2413_v32 = vld [vmem:[%s5932_s0 + $0x60] sm:$0xf0]  ;;  %v3156_v34 = vor.u32 %v3802_v16, %v3155_v15 }
  0x32   :  { %1940 = vmatpush.bf16.msrb.mxu2 %v2876_v26  ;;  %v2403_v21 = vld [vmem:[%s5932_s0 + $0x10] sm:$0xf]  ;;  %v3620_v22 = vld [vmem:[%s5932_s0 + $0x54] sm:$0xf0]  ;;  %v3621_v26 = vld [vmem:[%s5932_s0 + $0x5c] sm:$0xf0]  ;;  %v4438_v47 = vor.u32 %v3612_v31, %v2413_v32 }
  0x33   :  { %1954 = vmatpush.bf16.msrb.mxu3 %v2940_v30  ;;  %v2411_v25 = vld [vmem:[%s5932_s0 + $0x18] sm:$0xf]  ;;  %v2405_v30 = vld [vmem:[%s5932_s0 + $0x58] sm:$0xf0]  ;;  %v3019_v35 = vld [vmem:[%s5931_s1 + $0x460] sm:$0xf]  ;;  %v4417_v39 = vor.u32 %v3620_v22, %v2403_v21 }
  0x34   :  { %1913 = vmatpush.bf16.msrb.mxu0 %v2740_v36  ;;  %v3768_v36 = vld [vmem:[%s5931_s1 + $0x464] sm:$0xf0]  ;;  %v3147_v41 = vld [vmem:[%s5931_s1 + $0x560] sm:$0xf]  ;;  %v4428_v43 = vor.u32 %v3621_v26, %v2411_v25  ;;  %v4430_v44 = vor.u32 %v3611_v27, %v2405_v30  ;;  %v3766_v52 = vld [vmem:[%s5931_s1 + $0x454] sm:$0xf0] }
  0x35   :  { %1927 = vmatpush.bf16.msrb.mxu1 %v2804_v37  ;;  %v3083_v37 = vld [vmem:[%s5931_s1 + $0x4e0] sm:$0xf]  ;;  %v3784_v40 = vld [vmem:[%s5931_s1 + $0x4e4] sm:$0xf0]  ;;  %v3075_v53 = vld [vmem:[%s5931_s1 + $0x4d0] sm:$0xf] }
  0x36   :  { %1941 = vmatpush.bf16.msrb.mxu2 %v2868_v38  ;;  %v3220_v38 = vor.u32 %v3818_v20, %v3219_v18  ;;  %v3211_v45 = vld [vmem:[%s5931_s1 + $0x5e0] sm:$0xf]  ;;  %v3816_v46 = vld [vmem:[%s5931_s1 + $0x5e4] sm:$0xf0]  ;;  %v3084_v49 = vor.u32 %v3784_v40, %v3083_v37  ;;  %v3139_v56 = vld [vmem:[%s5931_s1 + $0x550] sm:$0xf] }
  0x37   :  { %1955 = vmatpush.bf16.msrb.mxu3 %v2932_v42  ;;  %v3800_v42 = vld [vmem:[%s5931_s1 + $0x564] sm:$0xf0]  ;;  %v3212_v54 = vor.u32 %v3816_v46, %v3211_v45  ;;  %v3798_v57 = vld [vmem:[%s5931_s1 + $0x554] sm:$0xf0]  ;;  %v3203_v59 = vld [vmem:[%s5931_s1 + $0x5d0] sm:$0xf] }
  0x38   :  { %1914 = vmatpush.bf16.msrb.mxu0 %v2732_v48  ;;  %v3020_v48 = vor.u32 %v3768_v36, %v3019_v35  ;;  %v3814_v60 = vld [vmem:[%s5931_s1 + $0x5d4] sm:$0xf0]  ;;  %v3003_v0 = vld [vmem:[%s5931_s1 + $0x440] sm:$0xf]  ;;  %v3764_v2 = vld [vmem:[%s5931_s1 + $0x444] sm:$0xf0] }
  0x39   :  { %1928 = vmatpush.bf16.msrb.mxu1 %v2796_v50  ;;  %v3148_v50 = vor.u32 %v3800_v42, %v3147_v41  ;;  %v3067_v3 = vld [vmem:[%s5931_s1 + $0x4c0] sm:$0xf]  ;;  %v3204_v4 = vor.u32 %v3814_v60, %v3203_v59  ;;  %v3796_v7 = vld [vmem:[%s5931_s1 + $0x544] sm:$0xf0]  ;;  %v2995_v14 = vld [vmem:[%s5931_s1 + $0x430] sm:$0xf] }
  0x3a   :  { %1942 = vmatpush.bf16.msrb.mxu2 %v2860_v51  ;;  %v3011_v51 = vld [vmem:[%s5931_s1 + $0x450] sm:$0xf]  ;;  %v3195_v8 = vld [vmem:[%s5931_s1 + $0x5c0] sm:$0xf]  ;;  %v3812_v9 = vld [vmem:[%s5931_s1 + $0x5c4] sm:$0xf0] }
  0x3b   :  { %1956 = vmatpush.bf16.msrb.mxu3 %v2924_v55  ;;  %v3782_v55 = vld [vmem:[%s5931_s1 + $0x4d4] sm:$0xf0]  ;;  %v3012_v61 = vor.u32 %v3766_v52, %v3011_v51  ;;  %v3059_v16 = vld [vmem:[%s5931_s1 + $0x4b0] sm:$0xf]  ;;  %v3196_v18 = vor.u32 %v3812_v9, %v3195_v8  ;;  %v2987_v27 = vld [vmem:[%s5931_s1 + $0x420] sm:$0xf] }
  0x3c   :  { %1915 = vmatpush.bf16.msrb.mxu0 %v2724_v63  ;;  %v3076_v62 = vor.u32 %v3782_v55, %v3075_v53  ;;  %v3140_v63 = vor.u32 %v3798_v57, %v3139_v56  ;;  %v3762_v15 = vld [vmem:[%s5931_s1 + $0x434] sm:$0xf0]  ;;  %v3123_v20 = vld [vmem:[%s5931_s1 + $0x530] sm:$0xf]  ;;  %v3776_v31 = vld [vmem:[%s5931_s1 + $0x4a4] sm:$0xf0] }
  0x3d   :  { %1929 = vmatpush.bf16.msrb.mxu1 %v2788_v5  ;;  %v3780_v5 = vld [vmem:[%s5931_s1 + $0x4c4] sm:$0xf0]  ;;  %v3794_v21 = vld [vmem:[%s5931_s1 + $0x534] sm:$0xf0]  ;;  %v3187_v22 = vld [vmem:[%s5931_s1 + $0x5b0] sm:$0xf] }
  0x3e   :  { %1943 = vmatpush.bf16.msrb.mxu2 %v2852_v6  ;;  %v3131_v6 = vld [vmem:[%s5931_s1 + $0x540] sm:$0xf]  ;;  %v3068_v12 = vor.u32 %v3780_v5, %v3067_v3  ;;  %v3124_v26 = vor.u32 %v3794_v21, %v3123_v20  ;;  %v3808_v35 = vld [vmem:[%s5931_s1 + $0x5a4] sm:$0xf0]  ;;  %v2979_v37 = vld [vmem:[%s5931_s1 + $0x410] sm:$0xf] }
  0x3f   :  { %1957 = vmatpush.bf16.msrb.mxu3 %v2916_v11  ;;  %v3004_v11 = vor.u32 %v3764_v2, %v3003_v0  ;;  %v3132_v13 = vor.u32 %v3796_v7, %v3131_v6  ;;  %v3115_v32 = vld [vmem:[%s5931_s1 + $0x520] sm:$0xf]  ;;  %v3758_v41 = vld [vmem:[%s5931_s1 + $0x414] sm:$0xf0]  ;;  %v3043_v42 = vld [vmem:[%s5931_s1 + $0x490] sm:$0xf] }
  0x40   :  { %1916 = vmatpush.bf16.msrb.mxu0 %v2716_v19  ;;  %v3778_v19 = vld [vmem:[%s5931_s1 + $0x4b4] sm:$0xf0]  ;;  %v2971_v52 = vld [vmem:[%s5931_s1 + $0x400] sm:$0xf]  ;;  %v3756_v53 = vld [vmem:[%s5931_s1 + $0x404] sm:$0xf0] }
  0x41   :  { %1930 = vmatpush.bf16.msrb.mxu1 %v2780_v23  ;;  %v3810_v23 = vld [vmem:[%s5931_s1 + $0x5b4] sm:$0xf0]  ;;  %v3060_v25 = vor.u32 %v3778_v19, %v3059_v16  ;;  %v3035_v55 = vld [vmem:[%s5931_s1 + $0x480] sm:$0xf]  ;;  %v3772_v56 = vld [vmem:[%s5931_s1 + $0x484] sm:$0xf0]  ;;  %v2972_v9 = vor.u32 %v3756_v53, %v2971_v52 }
  0x42   :  { %1944 = vmatpush.bf16.msrb.mxu2 %v2844_v24  ;;  %v2996_v24 = vor.u32 %v3762_v15, %v2995_v14  ;;  %v3188_v30 = vor.u32 %v3810_v23, %v3187_v22  ;;  %v3774_v45 = vld [vmem:[%s5931_s1 + $0x494] sm:$0xf0]  ;;  %v3099_v57 = vld [vmem:[%s5931_s1 + $0x500] sm:$0xf]  ;;  %v3788_v59 = vld [vmem:[%s5931_s1 + $0x504] sm:$0xf0]  ;;  %v3036_v14 = vor.u32 %v3772_v56, %v3035_v55 }
  0x43   :  { %1958 = vmatpush.bf16.msrb.mxu3 %v2908_v28  ;;  %1917 = vmatmul.bf16.vlgmr.msrb.gmra.mxu0 %v4417_v39  ;;  %v3760_v28 = vld [vmem:[%s5931_s1 + $0x424] sm:$0xf0]  ;;  %v3806_v51 = vld [vmem:[%s5931_s1 + $0x594] sm:$0xf0]  ;;  %v3044_v60 = vor.u32 %v3774_v45, %v3043_v42  ;;  %v3283_v0 = vld [vmem:[%s5931_s1 + $0x670] sm:$0xf]  ;;  %v3100_v15 = vor.u32 %v3788_v59, %v3099_v57 }
  0x44   :  { %1965 = vmatpush.bf16.msra.mxu0 %v3028_v29  ;;  %1931 = vmatmul.bf16.vlgmr.msrb.gmra.mxu1 %v4430_v44  ;;  %v3051_v29 = vld [vmem:[%s5931_s1 + $0x4a0] sm:$0xf]  ;;  %v2988_v36 = vor.u32 %v3760_v28, %v2987_v27  ;;  %v3834_v3 = vld [vmem:[%s5931_s1 + $0x674] sm:$0xf0]  ;;  %v3411_v6 = vld [vmem:[%s5931_s1 + $0x770] sm:$0xf] }
  0x45   :  { %1979 = vmatpush.bf16.msra.mxu1 %v3092_v33  ;;  %1945 = vmatmul.bf16.vlgmr.msrb.gmra.mxu2 %v4428_v43  ;;  %v3792_v33 = vld [vmem:[%s5931_s1 + $0x524] sm:$0xf0]  ;;  %v3850_v5 = vld [vmem:[%s5931_s1 + $0x6f4] sm:$0xf0]  ;;  %v3475_v8 = vld [vmem:[%s5931_s1 + $0x7f0] sm:$0xf]  ;;  %v3284_v21 = vor.u32 %v3834_v3, %v3283_v0 }
  0x46   :  { %1993 = vmatpush.bf16.msra.mxu2 %v3156_v34  ;;  %1959 = vmatmul.bf16.vlgmr.msrb.gmra.mxu3 %v4438_v47  ;;  %v3179_v34 = vld [vmem:[%s5931_s1 + $0x5a0] sm:$0xf]  ;;  %v3116_v40 = vor.u32 %v3792_v33, %v3115_v32  ;;  %v3866_v7 = vld [vmem:[%s5931_s1 + $0x774] sm:$0xf0]  ;;  %v2427_v16 = vld [vmem:[%s5932_s0 + $0x28] sm:$0xf] }
  0x47   :  { %2007 = vmatpush.bf16.msra.mxu3 %v3220_v38  ;;  %v3052_v38 = vor.u32 %v3776_v31, %v3051_v29  ;;  %v3180_v46 = vor.u32 %v3808_v35, %v3179_v34  ;;  %v3613_v19 = vld [vmem:[%s5932_s0 + $0x24] sm:$0xf]  ;;  %v2421_v22 = vld [vmem:[%s5932_s0 + $0x68] sm:$0xf0]  ;;  %v3275_v27 = vld [vmem:[%s5931_s1 + $0x660] sm:$0xf] }
  0x48   :  { %1966 = vmatpush.bf16.msra.mxu0 %v3020_v48  ;;  %v3107_v48 = vld [vmem:[%s5931_s1 + $0x510] sm:$0xf]  ;;  %v3614_v23 = vld [vmem:[%s5932_s0 + $0x2c] sm:$0xf]  ;;  %v3832_v28 = vld [vmem:[%s5931_s1 + $0x664] sm:$0xf0] }
  0x49   :  { %1980 = vmatpush.bf16.msra.mxu1 %v3084_v49  ;;  %v3790_v49 = vld [vmem:[%s5931_s1 + $0x514] sm:$0xf0]  ;;  %v3339_v29 = vld [vmem:[%s5931_s1 + $0x6e0] sm:$0xf]  ;;  %v3848_v32 = vld [vmem:[%s5931_s1 + $0x6e4] sm:$0xf0] }
  0x4a   :  { %1994 = vmatpush.bf16.msra.mxu2 %v3148_v50  ;;  %v3171_v50 = vld [vmem:[%s5931_s1 + $0x590] sm:$0xf]  ;;  %v3403_v33 = vld [vmem:[%s5931_s1 + $0x760] sm:$0xf]  ;;  %v3864_v34 = vld [vmem:[%s5931_s1 + $0x764] sm:$0xf0]  ;;  %v3340_v42 = vor.u32 %v3848_v32, %v3339_v29 }
  0x4b   :  { %2008 = vmatpush.bf16.msra.mxu3 %v3212_v54  ;;  %v2980_v54 = vor.u32 %v3758_v41, %v2979_v37  ;;  %v3172_v2 = vor.u32 %v3806_v51, %v3171_v50  ;;  %v3467_v37 = vld [vmem:[%s5931_s1 + $0x7e0] sm:$0xf]  ;;  %v3276_v41 = vor.u32 %v3832_v28, %v3275_v27  ;;  %v3404_v45 = vor.u32 %v3864_v34, %v3403_v33  ;;  %v3846_v51 = vld [vmem:[%s5931_s1 + $0x6d4] sm:$0xf0]  ;;  %v3395_v52 = vld [vmem:[%s5931_s1 + $0x750] sm:$0xf] }
  0x4c   :  { %1967 = vmatpush.bf16.msra.mxu0 %v3012_v61  ;;  %v3108_v61 = vor.u32 %v3790_v49, %v3107_v48  ;;  %v3830_v48 = vld [vmem:[%s5931_s1 + $0x654] sm:$0xf0]  ;;  %v3331_v49 = vld [vmem:[%s5931_s1 + $0x6d0] sm:$0xf]  ;;  %v3844_v0 = vld [vmem:[%s5931_s1 + $0x6c4] sm:$0xf0] }
  0x4d   :  { %1981 = vmatpush.bf16.msra.mxu1 %v3076_v62  ;;  %v3163_v62 = vld [vmem:[%s5931_s1 + $0x580] sm:$0xf]  ;;  %v3862_v53 = vld [vmem:[%s5931_s1 + $0x754] sm:$0xf0]  ;;  %v3332_v57 = vor.u32 %v3846_v51, %v3331_v49  ;;  %v3860_v3 = vld [vmem:[%s5931_s1 + $0x744] sm:$0xf0] }
  0x4e   :  { %1995 = vmatpush.bf16.msra.mxu2 %v3140_v63  ;;  %v3804_v63 = vld [vmem:[%s5931_s1 + $0x584] sm:$0xf0]  ;;  %v3878_v55 = vld [vmem:[%s5931_s1 + $0x7d4] sm:$0xf0]  ;;  %v3396_v59 = vor.u32 %v3862_v53, %v3395_v52  ;;  %v3371_v28 = vld [vmem:[%s5931_s1 + $0x720] sm:$0xf] }
  0x4f   :  { %2009 = vmatpush.bf16.msra.mxu3 %v3204_v4  ;;  %v3347_v4 = vld [vmem:[%s5931_s1 + $0x6f0] sm:$0xf]  ;;  %v3164_v20 = vor.u32 %v3804_v63, %v3163_v62  ;;  %v3323_v62 = vld [vmem:[%s5931_s1 + $0x6c0] sm:$0xf]  ;;  %v3840_v27 = vld [vmem:[%s5931_s1 + $0x6a4] sm:$0xf0] }
  0x50   :  { %1968 = vmatpush.bf16.msra.mxu0 %v3004_v11  ;;  %v3882_v11 = vld [vmem:[%s5931_s1 + $0x7f4] sm:$0xf0]  ;;  %v3856_v29 = vld [vmem:[%s5931_s1 + $0x724] sm:$0xf0]  ;;  %v3235_v34 = vld [vmem:[%s5931_s1 + $0x610] sm:$0xf] }
  0x51   :  { %1982 = vmatpush.bf16.msra.mxu1 %v3068_v12  ;;  %v2419_v12 = vld [vmem:[%s5932_s0 + $0x20] sm:$0xf]  ;;  %v3872_v32 = vld [vmem:[%s5931_s1 + $0x7a4] sm:$0xf0]  ;;  %v3854_v49 = vld [vmem:[%s5931_s1 + $0x714] sm:$0xf0] }
  0x52   :  { %1996 = vmatpush.bf16.msra.mxu2 %v3132_v13  ;;  %v3622_v13 = vld [vmem:[%s5932_s0 + $0x64] sm:$0xf0]  ;;  %v3870_v51 = vld [vmem:[%s5931_s1 + $0x794] sm:$0xf0]  ;;  %v3227_v52 = vld [vmem:[%s5931_s1 + $0x600] sm:$0xf] }
  0x53   :  { %2010 = vmatpush.bf16.msra.mxu3 %v3196_v18  ;;  %v3623_v18 = vld [vmem:[%s5932_s0 + $0x6c] sm:$0xf0]  ;;  %v4645_v31 = vor.u32 %v3622_v13, %v2419_v12  ;;  %v3820_v53 = vld [vmem:[%s5931_s1 + $0x604] sm:$0xf0] }
  0x54   :  { %1969 = vmatpush.bf16.msra.mxu0 %v2996_v24  ;;  %v2429_v24 = vld [vmem:[%s5932_s0 + $0x70] sm:$0xf0]  ;;  %v4656_v35 = vor.u32 %v3623_v18, %v2427_v16  ;;  %v3315_v12 = vld [vmem:[%s5931_s1 + $0x6b0] sm:$0xf]  ;;  %v3858_v16 = vld [vmem:[%s5931_s1 + $0x734] sm:$0xf0] }
  0x55   :  { %1983 = vmatpush.bf16.msra.mxu1 %v3060_v25  ;;  %v3348_v25 = vor.u32 %v3850_v5, %v3347_v4  ;;  %v3451_v4 = vld [vmem:[%s5931_s1 + $0x7c0] sm:$0xf]  ;;  %v3876_v5 = vld [vmem:[%s5931_s1 + $0x7c4] sm:$0xf0]  ;;  %v3443_v18 = vld [vmem:[%s5931_s1 + $0x7b0] sm:$0xf] }
  0x56   :  { %1997 = vmatpush.bf16.msra.mxu2 %v3124_v26  ;;  %v3412_v26 = vor.u32 %v3866_v7, %v3411_v6  ;;  %v3324_v7 = vor.u32 %v3844_v0, %v3323_v62  ;;  %v3452_v13 = vor.u32 %v3876_v5, %v3451_v4  ;;  %v3419_v62 = vld [vmem:[%s5931_s1 + $0x780] sm:$0xf]  ;;  %v3539_v0 = vld [vmem:[%s5931_s1 + $0x870] sm:$0xf]  ;;  %v3914_v5 = vld [vmem:[%s5931_s1 + $0x8f4] sm:$0xf0] }
  0x57   :  { %2011 = vmatpush.bf16.msra.mxu3 %v3188_v30  ;;  %v3476_v30 = vor.u32 %v3882_v11, %v3475_v8  ;;  %v3826_v11 = vld [vmem:[%s5931_s1 + $0x634] sm:$0xf0]  ;;  %v3603_v4 = vld [vmem:[%s5931_s1 + $0x8f0] sm:$0xf] }
  0x58   :  { %1970 = vmatpush.bf16.msra.mxu0 %v2988_v36  ;;  %v4658_v36 = vor.u32 %v3613_v19, %v2421_v22  ;;  %v3874_v19 = vld [vmem:[%s5931_s1 + $0x7b4] sm:$0xf0] }
  0x59   :  { %1984 = vmatpush.bf16.msra.mxu1 %v3052_v38  ;;  %v3880_v38 = vld [vmem:[%s5931_s1 + $0x7e4] sm:$0xf0] }
  0x5a   :  { %1998 = vmatpush.bf16.msra.mxu2 %v3116_v40  ;;  %v4666_v40 = vor.u32 %v3614_v23, %v2429_v24  ;;  %v3468_v50 = vor.u32 %v3880_v38, %v3467_v37  ;;  %v3243_v23 = vld [vmem:[%s5931_s1 + $0x620] sm:$0xf]  ;;  %v3824_v24 = vld [vmem:[%s5931_s1 + $0x624] sm:$0xf0]  ;;  %v3372_v38 = vor.u32 %v3856_v29, %v3371_v28 }
  0x5b   :  { %2012 = vmatpush.bf16.msra.mxu3 %v3180_v46  ;;  %v3267_v46 = vld [vmem:[%s5931_s1 + $0x650] sm:$0xf]  ;;  %v3244_v33 = vor.u32 %v3824_v24, %v3243_v23  ;;  %v3616_v23 = vld [vmem:[%s5932_s0 + $0x3c] sm:$0xf]  ;;  %v2445_v24 = vld [vmem:[%s5932_s0 + $0x80] sm:$0xf0] }
  0x5c   :  { %1971 = vmatpush.bf16.msra.mxu0 %v2980_v54  ;;  %v3459_v54 = vld [vmem:[%s5931_s1 + $0x7d0] sm:$0xf]  ;;  %v3268_v56 = vor.u32 %v3830_v48, %v3267_v46  ;;  %v3896_v28 = vld [vmem:[%s5931_s1 + $0x864] sm:$0xf0]  ;;  %v3595_v29 = vld [vmem:[%s5931_s1 + $0x8e0] sm:$0xf] }
  0x5d   :  { %1985 = vmatpush.bf16.msra.mxu1 %v3044_v60  ;;  %v3259_v60 = vld [vmem:[%s5931_s1 + $0x640] sm:$0xf]  ;;  %v3460_v63 = vor.u32 %v3878_v55, %v3459_v54  ;;  %v3363_v48 = vld [vmem:[%s5931_s1 + $0x710] sm:$0xf] }
  0x5e   :  { %1999 = vmatpush.bf16.msra.mxu2 %v3108_v61  ;;  %v3828_v61 = vld [vmem:[%s5931_s1 + $0x644] sm:$0xf0]  ;;  %v3291_v55 = vld [vmem:[%s5931_s1 + $0x680] sm:$0xf] }
  0x5f   :  { %2013 = vmatpush.bf16.msra.mxu3 %v3172_v2  ;;  %v3387_v2 = vld [vmem:[%s5931_s1 + $0x740] sm:$0xf]  ;;  %v3260_v6 = vor.u32 %v3828_v61, %v3259_v60  ;;  %v3364_v61 = vor.u32 %v3854_v49, %v3363_v48 }
  0x60   :  { %1972 = vmatpush.bf16.msra.mxu0 %v2972_v9  ;;  %v3388_v8 = vor.u32 %v3860_v3, %v3387_v2  ;;  %v3251_v9 = vld [vmem:[%s5931_s1 + $0x630] sm:$0xf]  ;;  %v3898_v3 = vld [vmem:[%s5931_s1 + $0x874] sm:$0xf0] }
  0x61   :  { %1986 = vmatpush.bf16.msra.mxu1 %v3036_v14  ;;  %v3842_v14 = vld [vmem:[%s5931_s1 + $0x6b4] sm:$0xf0] }
  0x62   :  { %2000 = vmatpush.bf16.msra.mxu2 %v3100_v15  ;;  %v3379_v15 = vld [vmem:[%s5931_s1 + $0x730] sm:$0xf] }
  0x63   :  { %2014 = vmatpush.bf16.msra.mxu3 %v3164_v20  ;;  %1973 = vmatmul.bf16.vlgmr.msra.gmra.mxu0 %v4645_v31  ;;  %v3252_v20 = vor.u32 %v3826_v11, %v3251_v9  ;;  %v3380_v22 = vor.u32 %v3858_v16, %v3379_v15  ;;  %v3228_v9 = vor.u32 %v3820_v53, %v3227_v52  ;;  %v2581_v11 = vld [vmem:[%s5931_s1 + $0xf8] sm:$0xf0]  ;;  %v2443_v16 = vld [vmem:[%s5932_s0 + $0x38] sm:$0xf]  ;;  %v3587_v53 = vld [vmem:[%s5931_s1 + $0x8d0] sm:$0xf] }
  0x64   :  { %2021 = vmatpush.bf16.msrb.mxu0 %v3284_v21  ;;  %1987 = vmatmul.bf16.vlgmr.msra.gmra.mxu1 %v4658_v36  ;;  %v3316_v21 = vor.u32 %v3842_v14, %v3315_v12  ;;  %v2435_v12 = vld [vmem:[%s5932_s0 + $0x30] sm:$0xf]  ;;  %v3894_v52 = vld [vmem:[%s5931_s1 + $0x854] sm:$0xf0] }
  0x65   :  { %2035 = vmatpush.bf16.msrb.mxu1 %v3348_v25  ;;  %2001 = vmatmul.bf16.vlgmr.msra.gmra.mxu2 %v4656_v35  ;;  %v3307_v25 = vld [vmem:[%s5931_s1 + $0x6a0] sm:$0xf] }
  0x66   :  { %2049 = vmatpush.bf16.msrb.mxu2 %v3412_v26  ;;  %2015 = vmatmul.bf16.vlgmr.msra.gmra.mxu3 %v4666_v40  ;;  %v3444_v26 = vor.u32 %v3874_v19, %v3443_v18  ;;  %v3308_v37 = vor.u32 %v3840_v27, %v3307_v25  ;;  %v3625_v18 = vld [vmem:[%s5932_s0 + $0x7c] sm:$0xf0]  ;;  %v3615_v19 = vld [vmem:[%s5932_s0 + $0x34] sm:$0xf]  ;;  %v3604_v25 = vor.u32 %v3914_v5, %v3603_v4  ;;  %v3908_v5 = vld [vmem:[%s5931_s1 + $0x8c4] sm:$0xf0] }
  0x67   :  { %2063 = vmatpush.bf16.msrb.mxu3 %v3476_v30  ;;  %v3435_v30 = vld [vmem:[%s5931_s1 + $0x7a0] sm:$0xf] }
  0x68   :  { %2022 = vmatpush.bf16.msrb.mxu0 %v3276_v41  ;;  %v3822_v41 = vld [vmem:[%s5931_s1 + $0x614] sm:$0xf0]  ;;  %v3436_v46 = vor.u32 %v3872_v32, %v3435_v30  ;;  %v3531_v27 = vld [vmem:[%s5931_s1 + $0x860] sm:$0xf] }
  0x69   :  { %2036 = vmatpush.bf16.msrb.mxu1 %v3340_v42  ;;  %v3299_v42 = vld [vmem:[%s5931_s1 + $0x690] sm:$0xf]  ;;  %v3236_v54 = vor.u32 %v3822_v41, %v3235_v34  ;;  %v3639_v34 = vld [vmem:[%s5931_s1 + $0x64] sm:$0xf]  ;;  %v3532_v48 = vor.u32 %v3896_v28, %v3531_v27  ;;  %v3499_v27 = vld [vmem:[%s5931_s1 + $0x820] sm:$0xf] }
  0x6a   :  { %2050 = vmatpush.bf16.msrb.mxu2 %v3404_v45  ;;  %v3838_v45 = vld [vmem:[%s5931_s1 + $0x694] sm:$0xf0]  ;;  %v3888_v28 = vld [vmem:[%s5931_s1 + $0x824] sm:$0xf0] }
  0x6b   :  { %2064 = vmatpush.bf16.msrb.mxu3 %v3468_v50  ;;  %v3427_v50 = vld [vmem:[%s5931_s1 + $0x790] sm:$0xf]  ;;  %v3300_v60 = vor.u32 %v3838_v45, %v3299_v42  ;;  %v3655_v42 = vld [vmem:[%s5931_s1 + $0xe4] sm:$0xf]  ;;  %v2573_v45 = vld [vmem:[%s5931_s1 + $0xe8] sm:$0xf0] }
  0x6c   :  { %2023 = vmatpush.bf16.msrb.mxu0 %v3268_v56  ;;  %v3836_v56 = vld [vmem:[%s5931_s1 + $0x684] sm:$0xf0]  ;;  %v3428_v2 = vor.u32 %v3870_v51, %v3427_v50  ;;  %v3523_v51 = vld [vmem:[%s5931_s1 + $0x850] sm:$0xf] }
  0x6d   :  { %2037 = vmatpush.bf16.msrb.mxu1 %v3332_v57  ;;  %v3355_v57 = vld [vmem:[%s5931_s1 + $0x700] sm:$0xf]  ;;  %v3292_v14 = vor.u32 %v3836_v56, %v3291_v55  ;;  %v3910_v55 = vld [vmem:[%s5931_s1 + $0x8d4] sm:$0xf0]  ;;  %v3637_v56 = vld [vmem:[%s5931_s1 + $0x54] sm:$0xf] }
  0x6e   :  { %2051 = vmatpush.bf16.msrb.mxu2 %v3396_v59  ;;  %v3852_v59 = vld [vmem:[%s5931_s1 + $0x704] sm:$0xf0] }
  0x6f   :  { %2065 = vmatpush.bf16.msrb.mxu3 %v3460_v63  ;;  %v3868_v63 = vld [vmem:[%s5931_s1 + $0x784] sm:$0xf0]  ;;  %v3356_v15 = vor.u32 %v3852_v59, %v3355_v57  ;;  %v2501_v57 = vld [vmem:[%s5931_s1 + $0x58] sm:$0xf0]  ;;  %v3653_v59 = vld [vmem:[%s5931_s1 + $0xd4] sm:$0xf] }
  0x70   :  { %2024 = vmatpush.bf16.msrb.mxu0 %v3260_v6  ;;  %v3641_v6 = vld [vmem:[%s5931_s1 + $0x74] sm:$0xf] }
  0x71   :  { %2038 = vmatpush.bf16.msrb.mxu1 %v3324_v7  ;;  %v2517_v7 = vld [vmem:[%s5931_s1 + $0x78] sm:$0xf0] }
  0x72   :  { %2052 = vmatpush.bf16.msrb.mxu2 %v3388_v8  ;;  %v3657_v8 = vld [vmem:[%s5931_s1 + $0xf4] sm:$0xf] }
  0x73   :  { %2066 = vmatpush.bf16.msrb.mxu3 %v3452_v13  ;;  %v3624_v13 = vld [vmem:[%s5932_s0 + $0x74] sm:$0xf0]  ;;  %v2584_v30 = vor.u32 %v3657_v8, %v2581_v11  ;;  %v3651_v8 = vld [vmem:[%s5931_s1 + $0xc4] sm:$0xf] }
  0x74   :  { %2025 = vmatpush.bf16.msrb.mxu0 %v3252_v20  ;;  %v3420_v20 = vor.u32 %v3868_v63, %v3419_v62  ;;  %v4873_v32 = vor.u32 %v3624_v13, %v2435_v12  ;;  %v3588_v62 = vor.u32 %v3910_v55, %v3587_v53  ;;  %v2504_v63 = vor.u32 %v3637_v56, %v2501_v57  ;;  %v3555_v53 = vld [vmem:[%s5931_s1 + $0x890] sm:$0xf]  ;;  %v3902_v55 = vld [vmem:[%s5931_s1 + $0x894] sm:$0xf0]  ;;  %v3629_v56 = vld [vmem:[%s5931_s1 + $0x14] sm:$0xf] }
  0x75   :  { %2039 = vmatpush.bf16.msrb.mxu1 %v3316_v21  ;;  %v3540_v21 = vor.u32 %v3898_v3, %v3539_v0  ;;  %v3515_v0 = vld [vmem:[%s5931_s1 + $0x840] sm:$0xf]  ;;  %v2469_v57 = vld [vmem:[%s5931_s1 + $0x18] sm:$0xf0] }
  0x76   :  { %2053 = vmatpush.bf16.msrb.mxu2 %v3380_v22  ;;  %v2437_v22 = vld [vmem:[%s5932_s0 + $0x78] sm:$0xf0]  ;;  %v3579_v3 = vld [vmem:[%s5931_s1 + $0x8c0] sm:$0xf] }
  0x77   :  { %2067 = vmatpush.bf16.msrb.mxu3 %v3444_v26  ;;  %v2520_v26 = vor.u32 %v3641_v6, %v2517_v7  ;;  %v4886_v41 = vor.u32 %v3615_v19, %v2437_v22  ;;  %v3635_v6 = vld [vmem:[%s5931_s1 + $0x44] sm:$0xf]  ;;  %v2493_v7 = vld [vmem:[%s5931_s1 + $0x48] sm:$0xf0]  ;;  %v3580_v12 = vor.u32 %v3908_v5, %v3579_v3  ;;  %v3906_v19 = vld [vmem:[%s5931_s1 + $0x8b4] sm:$0xf0]  ;;  %v2472_v3 = vor.u32 %v3629_v56, %v2469_v57 }
  0x78   :  { %2026 = vmatpush.bf16.msrb.mxu0 %v3244_v33  ;;  %v3912_v33 = vld [vmem:[%s5931_s1 + $0x8e4] sm:$0xf0]  ;;  %v2496_v13 = vor.u32 %v3635_v6, %v2493_v7  ;;  %v3649_v22 = vld [vmem:[%s5931_s1 + $0xb4] sm:$0xf]  ;;  %v3627_v5 = vld [vmem:[%s5931_s1 + $0x4] sm:$0xf] }
  0x79   :  { %2040 = vmatpush.bf16.msrb.mxu1 %v3308_v37  ;;  %v2509_v37 = vld [vmem:[%s5931_s1 + $0x68] sm:$0xf0]  ;;  %v3596_v49 = vor.u32 %v3912_v33, %v3595_v29  ;;  %v3563_v29 = vld [vmem:[%s5931_s1 + $0x8a0] sm:$0xf]  ;;  %v3904_v33 = vld [vmem:[%s5931_s1 + $0x8a4] sm:$0xf0] }
  0x7a   :  { %2054 = vmatpush.bf16.msrb.mxu2 %v3372_v38  ;;  %v4884_v38 = vor.u32 %v3625_v18, %v2443_v16  ;;  %v2512_v50 = vor.u32 %v3639_v34, %v2509_v37  ;;  %v3571_v16 = vld [vmem:[%s5931_s1 + $0x8b0] sm:$0xf]  ;;  %v3631_v34 = vld [vmem:[%s5931_s1 + $0x24] sm:$0xf]  ;;  %v2477_v37 = vld [vmem:[%s5931_s1 + $0x28] sm:$0xf0] }
  0x7b   :  { %2068 = vmatpush.bf16.msrb.mxu3 %v3436_v46  ;;  %v4894_v46 = vor.u32 %v3616_v23, %v2445_v24  ;;  %v2549_v23 = vld [vmem:[%s5931_s1 + $0xb8] sm:$0xf0]  ;;  %v2461_v6 = vld [vmem:[%s5931_s1 + $0x8] sm:$0xf0]  ;;  %v3669_v57 = vld [vmem:[%s5931_s1 + $0x154] sm:$0xf] }
  0x7c   :  { %2027 = vmatpush.bf16.msrb.mxu0 %v3236_v54  ;;  %v2576_v54 = vor.u32 %v3655_v42, %v2573_v45  ;;  %v3647_v42 = vld [vmem:[%s5931_s1 + $0xa4] sm:$0xf]  ;;  %v2541_v45 = vld [vmem:[%s5931_s1 + $0xa8] sm:$0xf0] }
  0x7d   :  { %2041 = vmatpush.bf16.msrb.mxu1 %v3300_v60  ;;  %v2565_v60 = vld [vmem:[%s5931_s1 + $0xd8] sm:$0xf0] }
  0x7e   :  { %2055 = vmatpush.bf16.msrb.mxu2 %v3364_v61  ;;  %v3524_v61 = vor.u32 %v3894_v52, %v3523_v51  ;;  %v2568_v4 = vor.u32 %v3653_v59, %v2565_v60  ;;  %v3491_v51 = vld [vmem:[%s5931_s1 + $0x810] sm:$0xf]  ;;  %v3886_v52 = vld [vmem:[%s5931_s1 + $0x814] sm:$0xf0]  ;;  %v3645_v59 = vld [vmem:[%s5931_s1 + $0x94] sm:$0xf] }
  0x7f   :  { %2069 = vmatpush.bf16.msrb.mxu3 %v3428_v2  ;;  %v3892_v2 = vld [vmem:[%s5931_s1 + $0x844] sm:$0xf0]  ;;  %v2533_v60 = vld [vmem:[%s5931_s1 + $0x98] sm:$0xf0] }
  0x80   :  { %2028 = vmatpush.bf16.msrb.mxu0 %v3228_v9  ;;  %v2557_v9 = vld [vmem:[%s5931_s1 + $0xc8] sm:$0xf0]  ;;  %v3516_v11 = vor.u32 %v3892_v2, %v3515_v0  ;;  %v3547_v0 = vld [vmem:[%s5931_s1 + $0x880] sm:$0xf]  ;;  %v3556_v2 = vor.u32 %v3902_v55, %v3555_v53  ;;  %v2536_v7 = vor.u32 %v3645_v59, %v2533_v60  ;;  %v2629_v59 = vld [vmem:[%s5931_s1 + $0x158] sm:$0xf0] }
  0x81   :  { %2042 = vmatpush.bf16.msrb.mxu1 %v3292_v14  ;;  %v3507_v14 = vld [vmem:[%s5931_s1 + $0x830] sm:$0xf]  ;;  %v2560_v18 = vor.u32 %v3651_v8, %v2557_v9  ;;  %v3643_v8 = vld [vmem:[%s5931_s1 + $0x84] sm:$0xf]  ;;  %v2525_v9 = vld [vmem:[%s5931_s1 + $0x88] sm:$0xf0] }
  0x82   :  { %2056 = vmatpush.bf16.msrb.mxu2 %v3356_v15  ;;  %v3890_v15 = vld [vmem:[%s5931_s1 + $0x834] sm:$0xf0]  ;;  %v2829_v53 = vld [vmem:[%s5931_s1 + $0x2e8] sm:$0xf0]  ;;  %v3685_v60 = vld [vmem:[%s5931_s1 + $0x1d4] sm:$0xf] }
  0x83   :  { %2070 = vmatpush.bf16.msrb.mxu3 %v3420_v20  ;;  %2029 = vmatmul.bf16.vlgmr.msrb.gmra.mxu0 %v4873_v32  ;;  %v3633_v20 = vld [vmem:[%s5931_s1 + $0x34] sm:$0xf]  ;;  %v3508_v24 = vor.u32 %v3890_v15, %v3507_v14  ;;  %v2709_v14 = vld [vmem:[%s5931_s1 + $0x1f8] sm:$0xf0] }
  0x84   :  { %2077 = vmatpush.bf16.msra.mxu0 %v3540_v21  ;;  %2043 = vmatmul.bf16.vlgmr.msrb.gmra.mxu1 %v4886_v41  ;;  %v2485_v21 = vld [vmem:[%s5931_s1 + $0x38] sm:$0xf0] }
  0x85   :  { %2091 = vmatpush.bf16.msra.mxu1 %v3604_v25  ;;  %2057 = vmatmul.bf16.vlgmr.msrb.gmra.mxu2 %v4884_v38  ;;  %v3572_v25 = vor.u32 %v3906_v19, %v3571_v16  ;;  %v3705_v16 = vld [vmem:[%s5931_s1 + $0x274] sm:$0xf] }
  0x86   :  { %2105 = vmatpush.bf16.msra.mxu2 %v2520_v26  ;;  %2071 = vmatmul.bf16.vlgmr.msrb.gmra.mxu3 %v4894_v46  ;;  %v2488_v26 = vor.u32 %v3633_v20, %v2485_v21  ;;  %v3721_v19 = vld [vmem:[%s5931_s1 + $0x2f4] sm:$0xf]  ;;  %v2464_v21 = vor.u32 %v3627_v5, %v2461_v6 }
  0x87   :  { %2119 = vmatpush.bf16.msra.mxu3 %v2584_v30  ;;  %v2552_v30 = vor.u32 %v3649_v22, %v2549_v23  ;;  %v2837_v22 = vld [vmem:[%s5931_s1 + $0x2f8] sm:$0xf0]  ;;  %v2451_v23 = vld [vmem:[%s5932_s0 + $0x40] sm:$0xf] }
  0x88   :  { %2078 = vmatpush.bf16.msra.mxu0 %v3532_v48  ;;  %v3500_v48 = vor.u32 %v3888_v28, %v3499_v27  ;;  %v3617_v27 = vld [vmem:[%s5932_s0 + $0x44] sm:$0xf]  ;;  %v2453_v28 = vld [vmem:[%s5932_s0 + $0x88] sm:$0xf0] }
  0x89   :  { %2092 = vmatpush.bf16.msra.mxu1 %v3596_v49  ;;  %v3564_v49 = vor.u32 %v3904_v33, %v3563_v29  ;;  %v3671_v33 = vld [vmem:[%s5931_s1 + $0x164] sm:$0xf] }
  0x8a   :  { %2106 = vmatpush.bf16.msra.mxu2 %v2512_v50  ;;  %v2480_v50 = vor.u32 %v3631_v34, %v2477_v37  ;;  %v2637_v34 = vld [vmem:[%s5931_s1 + $0x168] sm:$0xf0]  ;;  %v3687_v37 = vld [vmem:[%s5931_s1 + $0x1e4] sm:$0xf] }
  0x8b   :  { %2120 = vmatpush.bf16.msra.mxu3 %v2576_v54  ;;  %v2544_v54 = vor.u32 %v3647_v42, %v2541_v45  ;;  %v2840_v42 = vor.u32 %v3721_v19, %v2837_v22  ;;  %v3665_v19 = vld [vmem:[%s5931_s1 + $0x134] sm:$0xf] }
  0x8c   :  { %2079 = vmatpush.bf16.msra.mxu0 %v3524_v61  ;;  %v3492_v61 = vor.u32 %v3886_v52, %v3491_v51  ;;  %v5100_v51 = vor.u32 %v3617_v27, %v2453_v28  ;;  %v3719_v52 = vld [vmem:[%s5931_s1 + $0x2e4] sm:$0xf]  ;;  %v2805_v27 = vld [vmem:[%s5931_s1 + $0x2b8] sm:$0xf0] }
  0x8d   :  { %2093 = vmatpush.bf16.msra.mxu1 %v3588_v62  ;;  %v3483_v62 = vld [vmem:[%s5931_s1 + $0x800] sm:$0xf] }
  0x8e   :  { %2107 = vmatpush.bf16.msra.mxu2 %v2504_v63  ;;  %v3884_v63 = vld [vmem:[%s5931_s1 + $0x804] sm:$0xf0] }
  0x8f   :  { %2121 = vmatpush.bf16.msra.mxu3 %v2568_v4  ;;  %v3900_v4 = vld [vmem:[%s5931_s1 + $0x884] sm:$0xf0]  ;;  %v3484_v15 = vor.u32 %v3884_v63, %v3483_v62  ;;  %v2693_v62 = vld [vmem:[%s5931_s1 + $0x1d8] sm:$0xf0]  ;;  %v3701_v63 = vld [vmem:[%s5931_s1 + $0x254] sm:$0xf] }
  0x90   :  { %2080 = vmatpush.bf16.msra.mxu0 %v3516_v11  ;;  %v3673_v11 = vld [vmem:[%s5931_s1 + $0x174] sm:$0xf]  ;;  %v3548_v20 = vor.u32 %v3900_v4, %v3547_v0  ;;  %v2757_v0 = vld [vmem:[%s5931_s1 + $0x258] sm:$0xf0]  ;;  %v2632_v4 = vor.u32 %v3669_v57, %v2629_v59  ;;  %v2696_v5 = vor.u32 %v3685_v60, %v2693_v62 }
  0x91   :  { %2094 = vmatpush.bf16.msra.mxu1 %v3580_v12  ;;  %v2645_v12 = vld [vmem:[%s5931_s1 + $0x178] sm:$0xf0]  ;;  %v2760_v6 = vor.u32 %v3701_v63, %v2757_v0  ;;  %v3661_v57 = vld [vmem:[%s5931_s1 + $0x114] sm:$0xf] }
  0x92   :  { %2108 = vmatpush.bf16.msra.mxu2 %v2496_v13  ;;  %v3689_v13 = vld [vmem:[%s5931_s1 + $0x1f4] sm:$0xf]  ;;  %v2597_v59 = vld [vmem:[%s5931_s1 + $0x118] sm:$0xf0] }
  0x93   :  { %2122 = vmatpush.bf16.msra.mxu3 %v2560_v18  ;;  %v2773_v18 = vld [vmem:[%s5931_s1 + $0x278] sm:$0xf0]  ;;  %v2712_v29 = vor.u32 %v3689_v13, %v2709_v14  ;;  %v3715_v13 = vld [vmem:[%s5931_s1 + $0x2c4] sm:$0xf]  ;;  %v2813_v14 = vld [vmem:[%s5931_s1 + $0x2c8] sm:$0xf0] }
  0x94   :  { %2081 = vmatpush.bf16.msra.mxu0 %v3508_v24  ;;  %v3626_v24 = vld [vmem:[%s5932_s0 + $0x84] sm:$0xf0]  ;;  %v2816_v22 = vor.u32 %v3715_v13, %v2813_v14  ;;  %v3677_v60 = vld [vmem:[%s5931_s1 + $0x194] sm:$0xf]  ;;  %v2661_v62 = vld [vmem:[%s5931_s1 + $0x198] sm:$0xf0] }
  0x95   :  { %2095 = vmatpush.bf16.msra.mxu1 %v3572_v25  ;;  %v2528_v25 = vor.u32 %v3643_v8, %v2525_v9  ;;  %v5089_v45 = vor.u32 %v3626_v24, %v2451_v23  ;;  %v2621_v8 = vld [vmem:[%s5931_s1 + $0x148] sm:$0xf0]  ;;  %v2677_v23 = vld [vmem:[%s5931_s1 + $0x1b8] sm:$0xf0]  ;;  %v3697_v24 = vld [vmem:[%s5931_s1 + $0x234] sm:$0xf] }
  0x96   :  { %2109 = vmatpush.bf16.msra.mxu2 %v2488_v26  ;;  %v2648_v26 = vor.u32 %v3673_v11, %v2645_v12  ;;  %v3699_v11 = vld [vmem:[%s5931_s1 + $0x244] sm:$0xf]  ;;  %v2749_v12 = vld [vmem:[%s5931_s1 + $0x248] sm:$0xf0]  ;;  %v3693_v63 = vld [vmem:[%s5931_s1 + $0x214] sm:$0xf] }
  0x97   :  { %2123 = vmatpush.bf16.msra.mxu3 %v2552_v30  ;;  %v2776_v30 = vor.u32 %v3705_v16, %v2773_v18  ;;  %v2752_v18 = vor.u32 %v3699_v11, %v2749_v12  ;;  %v2725_v0 = vld [vmem:[%s5931_s1 + $0x218] sm:$0xf0]  ;;  %v2717_v12 = vld [vmem:[%s5931_s1 + $0x208] sm:$0xf0]  ;;  %v3707_v13 = vld [vmem:[%s5931_s1 + $0x284] sm:$0xf] }
  0x98   :  { %2082 = vmatpush.bf16.msra.mxu0 %v3500_v48  ;;  %v2701_v48 = vld [vmem:[%s5931_s1 + $0x1e8] sm:$0xf0] }
  0x99   :  { %2096 = vmatpush.bf16.msra.mxu1 %v3564_v49  ;;  %v3703_v49 = vld [vmem:[%s5931_s1 + $0x264] sm:$0xf]  ;;  %v2704_v55 = vor.u32 %v3687_v37, %v2701_v48  ;;  %v2669_v48 = vld [vmem:[%s5931_s1 + $0x1a8] sm:$0xf0] }
  0x9a   :  { %2110 = vmatpush.bf16.msra.mxu2 %v2480_v50  ;;  %v2765_v50 = vld [vmem:[%s5931_s1 + $0x268] sm:$0xf0]  ;;  %v3679_v37 = vld [vmem:[%s5931_s1 + $0x1a4] sm:$0xf] }
  0x9b   :  { %2124 = vmatpush.bf16.msra.mxu3 %v2544_v54  ;;  %v2640_v54 = vor.u32 %v3671_v33, %v2637_v34  ;;  %v2768_v56 = vor.u32 %v3703_v49, %v2765_v50  ;;  %v3663_v33 = vld [vmem:[%s5931_s1 + $0x124] sm:$0xf]  ;;  %v2605_v34 = vld [vmem:[%s5931_s1 + $0x128] sm:$0xf0] }
  0x9c   :  { %2083 = vmatpush.bf16.msra.mxu0 %v3492_v61  ;;  %v2832_v61 = vor.u32 %v3719_v52, %v2829_v53  ;;  %v3695_v49 = vld [vmem:[%s5931_s1 + $0x224] sm:$0xf]  ;;  %v2733_v50 = vld [vmem:[%s5931_s1 + $0x228] sm:$0xf0] }
  0x9d   :  { %2097 = vmatpush.bf16.msra.mxu1 %v3556_v2  ;;  %v3717_v2 = vld [vmem:[%s5931_s1 + $0x2d4] sm:$0xf]  ;;  %v3711_v52 = vld [vmem:[%s5931_s1 + $0x2a4] sm:$0xf]  ;;  %v2797_v53 = vld [vmem:[%s5931_s1 + $0x2a8] sm:$0xf0] }
  0x9e   :  { %2111 = vmatpush.bf16.msra.mxu2 %v2472_v3  ;;  %v2821_v3 = vld [vmem:[%s5931_s1 + $0x2d8] sm:$0xf0]  ;;  %v2781_v14 = vld [vmem:[%s5931_s1 + $0x288] sm:$0xf0] }
  0x9f   :  { %2125 = vmatpush.bf16.msra.mxu3 %v2536_v7  ;;  %v3667_v7 = vld [vmem:[%s5931_s1 + $0x144] sm:$0xf]  ;;  %v2824_v9 = vor.u32 %v3717_v2, %v2821_v3  ;;  %v3709_v2 = vld [vmem:[%s5931_s1 + $0x294] sm:$0xf]  ;;  %v2789_v3 = vld [vmem:[%s5931_s1 + $0x298] sm:$0xf0] }
  0xa0   :  { %2084 = vmatpush.bf16.msra.mxu0 %v3484_v15  ;;  %v2624_v15 = vor.u32 %v3667_v7, %v2621_v8  ;;  %v2664_v7 = vor.u32 %v3677_v60, %v2661_v62  ;;  %v2728_v8 = vor.u32 %v3693_v63, %v2725_v0  ;;  %v2792_v11 = vor.u32 %v3709_v2, %v2789_v3  ;;  %v3749_v60 = vld [vmem:[%s5931_s1 + $0x3d4] sm:$0xf]  ;;  %v2949_v62 = vld [vmem:[%s5931_s1 + $0x3d8] sm:$0xf0] }
  0xa1   :  { %2098 = vmatpush.bf16.msra.mxu1 %v3548_v20  ;;  %v2613_v20 = vld [vmem:[%s5931_s1 + $0x138] sm:$0xf0]  ;;  %v3765_v63 = vld [vmem:[%s5931_s1 + $0x454] sm:$0xf] }
  0xa2   :  { %2112 = vmatpush.bf16.msra.mxu2 %v2464_v21  ;;  %v3681_v21 = vld [vmem:[%s5931_s1 + $0x1b4] sm:$0xf]  ;;  %v2616_v28 = vor.u32 %v3665_v19, %v2613_v20  ;;  %v2965_v20 = vld [vmem:[%s5931_s1 + $0x3f8] sm:$0xf0] }
  0xa3   :  { %2126 = vmatpush.bf16.msra.mxu3 %v2528_v25  ;;  %2085 = vmatmul.bf16.vlgmr.msra.gmra.mxu0 %v5089_v45  ;;  %v2741_v25 = vld [vmem:[%s5931_s1 + $0x238] sm:$0xf0] }
  0xa4   :  { %2133 = vmatpush.bf16.msrb.mxu0 %v2648_v26  ;;  %2099 = vmatmul.bf16.vlgmr.msra.gmra.mxu1 %v5100_v51  ;;  %v3713_v26 = vld [vmem:[%s5931_s1 + $0x2b4] sm:$0xf]  ;;  %v3013_v0 = vld [vmem:[%s5931_s1 + $0x458] sm:$0xf0] }
  0xa5   :  { %2147 = vmatpush.bf16.msrb.mxu1 %v2712_v29  ;;  %2113 = vmatmul.bf16.vlgmr.msra.gmra.mxu2 %v4195_v58  ;;  %v3683_v58 = vld [vmem:[%s5931_s1 + $0x1c4] sm:$0xf]  ;;  %v2680_v29 = vor.u32 %v3681_v21, %v2677_v23  ;;  %v3769_v21 = vld [vmem:[%s5931_s1 + $0x474] sm:$0xf]  ;;  %v3077_v2 = vld [vmem:[%s5931_s1 + $0x4d8] sm:$0xf0] }
  0xa6   :  { %2161 = vmatpush.bf16.msrb.mxu2 %v2776_v30  ;;  %2127 = vmatmul.bf16.vlgmr.msra.gmra.mxu3 %v4231_v10  ;;  %v2685_v10 = vld [vmem:[%s5931_s1 + $0x1c8] sm:$0xf0]  ;;  %v2744_v30 = vor.u32 %v3697_v24, %v2741_v25  ;;  %v3785_v25 = vld [vmem:[%s5931_s1 + $0x4f4] sm:$0xf] }
  0xa7   :  { %2175 = vmatpush.bf16.msrb.mxu3 %v2840_v42  ;;  %v2688_v16 = vor.u32 %v3683_v58, %v2685_v10  ;;  %v2808_v42 = vor.u32 %v3713_v26, %v2805_v27  ;;  %v3675_v58 = vld [vmem:[%s5931_s1 + $0x184] sm:$0xf]  ;;  %v3093_v26 = vld [vmem:[%s5931_s1 + $0x4f8] sm:$0xf0]  ;;  %v2784_v27 = vor.u32 %v3707_v13, %v2781_v14  ;;  %v3729_v14 = vld [vmem:[%s5931_s1 + $0x334] sm:$0xf] }
  0xa8   :  { %2134 = vmatpush.bf16.msrb.mxu0 %v2640_v54  ;;  %v2608_v54 = vor.u32 %v3663_v33, %v2605_v34  ;;  %v3691_v10 = vld [vmem:[%s5931_s1 + $0x204] sm:$0xf]  ;;  %v2893_v34 = vld [vmem:[%s5931_s1 + $0x368] sm:$0xf0] }
  0xa9   :  { %2148 = vmatpush.bf16.msrb.mxu1 %v2704_v55  ;;  %v2672_v55 = vor.u32 %v3679_v37, %v2669_v48  ;;  %v2720_v24 = vor.u32 %v3691_v10, %v2717_v12  ;;  %v3735_v33 = vld [vmem:[%s5931_s1 + $0x364] sm:$0xf]  ;;  %v2957_v48 = vld [vmem:[%s5931_s1 + $0x3e8] sm:$0xf0] }
  0xaa   :  { %2162 = vmatpush.bf16.msrb.mxu2 %v2768_v56  ;;  %v2736_v56 = vor.u32 %v3695_v49, %v2733_v50  ;;  %v3751_v37 = vld [vmem:[%s5931_s1 + $0x3e4] sm:$0xf]  ;;  %v3021_v50 = vld [vmem:[%s5931_s1 + $0x468] sm:$0xf0] }
  0xab   :  { %2176 = vmatpush.bf16.msrb.mxu3 %v2832_v61  ;;  %v2800_v61 = vor.u32 %v3711_v52, %v2797_v53  ;;  %v3767_v49 = vld [vmem:[%s5931_s1 + $0x464] sm:$0xf]  ;;  %v3085_v53 = vld [vmem:[%s5931_s1 + $0x4e8] sm:$0xf0] }
  0xac   :  { %2135 = vmatpush.bf16.msrb.mxu0 %v2632_v4  ;;  %v2600_v4 = vor.u32 %v3661_v57, %v2597_v59  ;;  %v3783_v52 = vld [vmem:[%s5931_s1 + $0x4e4] sm:$0xf]  ;;  %v3733_v57 = vld [vmem:[%s5931_s1 + $0x354] sm:$0xf]  ;;  %v2885_v59 = vld [vmem:[%s5931_s1 + $0x358] sm:$0xf0] }
  0xad   :  { %2149 = vmatpush.bf16.msrb.mxu1 %v2696_v5  ;;  %v3659_v5 = vld [vmem:[%s5931_s1 + $0x104] sm:$0xf]  ;;  %v2888_v3 = vor.u32 %v3733_v57, %v2885_v59  ;;  %v3069_v10 = vld [vmem:[%s5931_s1 + $0x4c8] sm:$0xf0]  ;;  %v2917_v57 = vld [vmem:[%s5931_s1 + $0x398] sm:$0xf0] }
  0xae   :  { %2163 = vmatpush.bf16.msrb.mxu2 %v2760_v6  ;;  %v2589_v6 = vld [vmem:[%s5931_s1 + $0x108] sm:$0xf0]  ;;  %v3757_v59 = vld [vmem:[%s5931_s1 + $0x414] sm:$0xf] }
  0xaf   :  { %2177 = vmatpush.bf16.msrb.mxu3 %v2824_v9  ;;  %v2653_v9 = vld [vmem:[%s5931_s1 + $0x188] sm:$0xf0]  ;;  %v2592_v19 = vor.u32 %v3659_v5, %v2589_v6  ;;  %v3016_v5 = vor.u32 %v3765_v63, %v3013_v0  ;;  %v3747_v6 = vld [vmem:[%s5931_s1 + $0x3c4] sm:$0xf] }
  0xb0   :  { %2136 = vmatpush.bf16.msrb.mxu0 %v2624_v15  ;;  %v3737_v15 = vld [vmem:[%s5931_s1 + $0x374] sm:$0xf]  ;;  %v2656_v23 = vor.u32 %v3675_v58, %v2653_v9  ;;  %v3005_v58 = vld [vmem:[%s5931_s1 + $0x448] sm:$0xf0]  ;;  %v3779_v9 = vld [vmem:[%s5931_s1 + $0x4c4] sm:$0xf] }
  0xb1   :  { %2150 = vmatpush.bf16.msrb.mxu1 %v2688_v16  ;;  %v2901_v16 = vld [vmem:[%s5931_s1 + $0x378] sm:$0xf0]  ;;  %v3723_v0 = vld [vmem:[%s5931_s1 + $0x304] sm:$0xf] }
  0xb2   :  { %2164 = vmatpush.bf16.msrb.mxu2 %v2752_v18  ;;  %v3753_v18 = vld [vmem:[%s5931_s1 + $0x3f4] sm:$0xf] }
  0xb3   :  { %2178 = vmatpush.bf16.msrb.mxu3 %v2816_v22  ;;  %v3029_v22 = vld [vmem:[%s5931_s1 + $0x478] sm:$0xf0] }
  0xb4   :  { %2137 = vmatpush.bf16.msrb.mxu0 %v2616_v28  ;;  %v2904_v28 = vor.u32 %v3737_v15, %v2901_v16  ;;  %v2869_v15 = vld [vmem:[%s5931_s1 + $0x338] sm:$0xf0]  ;;  %v3745_v16 = vld [vmem:[%s5931_s1 + $0x3b4] sm:$0xf] }
  0xb5   :  { %2151 = vmatpush.bf16.msrb.mxu1 %v2680_v29  ;;  %v2968_v29 = vor.u32 %v3753_v18, %v2965_v20  ;;  %v3072_v18 = vor.u32 %v3779_v9, %v3069_v10  ;;  %v3761_v20 = vld [vmem:[%s5931_s1 + $0x434] sm:$0xf]  ;;  %v3157_v9 = vld [vmem:[%s5931_s1 + $0x578] sm:$0xf0] }
  0xb6   :  { %2165 = vmatpush.bf16.msrb.mxu2 %v2744_v30  ;;  %v3032_v30 = vor.u32 %v3769_v21, %v3029_v22  ;;  %v2997_v21 = vld [vmem:[%s5931_s1 + $0x438] sm:$0xf0]  ;;  %v3777_v22 = vld [vmem:[%s5931_s1 + $0x4b4] sm:$0xf] }
  0xb7   :  { %2179 = vmatpush.bf16.msrb.mxu3 %v2808_v42  ;;  %v3096_v42 = vor.u32 %v3785_v25, %v3093_v26  ;;  %v3000_v26 = vor.u32 %v3761_v20, %v2997_v21  ;;  %v3817_v10 = vld [vmem:[%s5931_s1 + $0x5f4] sm:$0xf]  ;;  %v3349_v20 = vld [vmem:[%s5931_s1 + $0x6f8] sm:$0xf0] }
  0xb8   :  { %2138 = vmatpush.bf16.msrb.mxu0 %v2608_v54  ;;  %v2896_v54 = vor.u32 %v3735_v33, %v2893_v34  ;;  %v2925_v33 = vld [vmem:[%s5931_s1 + $0x3a8] sm:$0xf0]  ;;  %v3759_v34 = vld [vmem:[%s5931_s1 + $0x424] sm:$0xf] }
  0xb9   :  { %2152 = vmatpush.bf16.msrb.mxu1 %v2672_v55  ;;  %v2960_v55 = vor.u32 %v3751_v37, %v2957_v48  ;;  %v2989_v37 = vld [vmem:[%s5931_s1 + $0x428] sm:$0xf0] }
  0xba   :  { %2166 = vmatpush.bf16.msrb.mxu2 %v2736_v56  ;;  %v3024_v56 = vor.u32 %v3767_v49, %v3021_v50  ;;  %v3053_v48 = vld [vmem:[%s5931_s1 + $0x4a8] sm:$0xf0] }
  0xbb   :  { %2180 = vmatpush.bf16.msrb.mxu3 %v2800_v61  ;;  %v3088_v61 = vor.u32 %v3783_v52, %v3085_v53  ;;  %v2992_v52 = vor.u32 %v3759_v34, %v2989_v37  ;;  %v3725_v53 = vld [vmem:[%s5931_s1 + $0x314] sm:$0xf]  ;;  %v3847_v34 = vld [vmem:[%s5931_s1 + $0x6e4] sm:$0xf]  ;;  %v3341_v37 = vld [vmem:[%s5931_s1 + $0x6e8] sm:$0xf0] }
  0xbc   :  { %2139 = vmatpush.bf16.msrb.mxu0 %v2600_v4  ;;  %v2952_v4 = vor.u32 %v3749_v60, %v2949_v62  ;;  %v2981_v60 = vld [vmem:[%s5931_s1 + $0x418] sm:$0xf0] }
  0xbd   :  { %2153 = vmatpush.bf16.msrb.mxu1 %v2664_v7  ;;  %v2941_v7 = vld [vmem:[%s5931_s1 + $0x3c8] sm:$0xf0]  ;;  %v3045_v62 = vld [vmem:[%s5931_s1 + $0x498] sm:$0xf0] }
  0xbe   :  { %2167 = vmatpush.bf16.msrb.mxu2 %v2728_v8  ;;  %v3763_v8 = vld [vmem:[%s5931_s1 + $0x444] sm:$0xf]  ;;  %v2944_v12 = vor.u32 %v3747_v6, %v2941_v7  ;;  %v2973_v6 = vld [vmem:[%s5931_s1 + $0x408] sm:$0xf0] }
  0xbf   :  { %2181 = vmatpush.bf16.msrb.mxu3 %v2792_v11  ;;  %v3008_v13 = vor.u32 %v3763_v8, %v3005_v58  ;;  %v3037_v7 = vld [vmem:[%s5931_s1 + $0x488] sm:$0xf0]  ;;  %v5452_v8 = vpop.f32.mrf.mxu0  ;;  %v3801_v58 = vld [vmem:[%s5931_s1 + $0x574] sm:$0xf] }
  0xc0   :  { %2140 = vmatpush.bf16.msrb.mxu0 %v2592_v19  ;;  %v2933_v19 = vld [vmem:[%s5931_s1 + $0x3b8] sm:$0xf0] }
  0xc1   :  { %2154 = vmatpush.bf16.msrb.mxu1 %v2656_v23  ;;  %v3061_v23 = vld [vmem:[%s5931_s1 + $0x4b8] sm:$0xf0]  ;;  %v2936_v25 = vor.u32 %v3745_v16, %v2933_v19  ;;  %v3849_v19 = vld [vmem:[%s5931_s1 + $0x6f4] sm:$0xf] }
  0xc2   :  { %2168 = vmatpush.bf16.msrb.mxu2 %v2720_v24  ;;  %v2872_v24 = vor.u32 %v3729_v14, %v2869_v15  ;;  %v3833_v14 = vld [vmem:[%s5931_s1 + $0x674] sm:$0xf]  ;;  %v3285_v15 = vld [vmem:[%s5931_s1 + $0x678] sm:$0xf0] }
  0xc3   :  { %2182 = vmatpush.bf16.msrb.mxu3 %v2784_v27  ;;  %2141 = vmatmul.bf16.vlgmr.msrb.gmra.mxu0 %v4209_v1  ;;  %v3781_v1 = vld [vmem:[%s5931_s1 + $0x4d4] sm:$0xf]  ;;  %v3727_v27 = vld [vmem:[%s5931_s1 + $0x324] sm:$0xf] }
  0xc4   :  { %2189 = vmatpush.bf16.msra.mxu0 %v2904_v28  ;;  %2155 = vmatmul.bf16.vlgmr.msrb.gmra.mxu1 %v4245_v17  ;;  %v3731_v17 = vld [vmem:[%s5931_s1 + $0x344] sm:$0xf]  ;;  %v2861_v28 = vld [vmem:[%s5931_s1 + $0x328] sm:$0xf0] }
  0xc5   :  { %2203 = vmatpush.bf16.msra.mxu1 %v2968_v29  ;;  %2169 = vmatmul.bf16.vlgmr.msrb.gmra.mxu2 %v4417_v39  ;;  %v2877_v39 = vld [vmem:[%s5931_s1 + $0x348] sm:$0xf0]  ;;  %v3743_v29 = vld [vmem:[%s5931_s1 + $0x3a4] sm:$0xf]  ;;  %v2864_v49 = vor.u32 %v3727_v27, %v2861_v28  ;;  %v3352_v28 = vor.u32 %v3849_v19, %v3349_v20  ;;  %v3841_v19 = vld [vmem:[%s5931_s1 + $0x6b4] sm:$0xf] }
  0xc6   :  { %2217 = vmatpush.bf16.msra.mxu2 %v3032_v30  ;;  %2183 = vmatmul.bf16.vlgmr.msrb.gmra.mxu3 %v4430_v44  ;;  %v3080_v44 = vor.u32 %v3781_v1, %v3077_v2  ;;  %v2880_v11 = vor.u32 %v3731_v17, %v2877_v39  ;;  %v3064_v30 = vor.u32 %v3777_v22, %v3061_v23  ;;  %v2845_v1 = vld [vmem:[%s5931_s1 + $0x308] sm:$0xf0]  ;;  %v3755_v17 = vld [vmem:[%s5931_s1 + $0x404] sm:$0xf]  ;;  %v3317_v20 = vld [vmem:[%s5931_s1 + $0x6b8] sm:$0xf0] }
  0xc7   :  { %2231 = vmatpush.bf16.msra.mxu3 %v3096_v42  ;;  %v3775_v42 = vld [vmem:[%s5931_s1 + $0x4a4] sm:$0xf]  ;;  %v2928_v50 = vor.u32 %v3743_v29, %v2925_v33  ;;  %v3160_v22 = vor.u32 %v3801_v58, %v3157_v9  ;;  %v3213_v29 = vld [vmem:[%s5931_s1 + $0x5e8] sm:$0xf0]  ;;  %v3793_v9 = vld [vmem:[%s5931_s1 + $0x534] sm:$0xf] }
  0xc8   :  { %2190 = vmatpush.bf16.msra.mxu0 %v2896_v54  ;;  %v2853_v54 = vld [vmem:[%s5931_s1 + $0x318] sm:$0xf0]  ;;  %v3815_v27 = vld [vmem:[%s5931_s1 + $0x5e4] sm:$0xf]  ;;  %v3277_v33 = vld [vmem:[%s5931_s1 + $0x668] sm:$0xf0] }
  0xc9   :  { %2204 = vmatpush.bf16.msra.mxu1 %v2960_v55  ;;  %v3741_v55 = vld [vmem:[%s5931_s1 + $0x394] sm:$0xf]  ;;  %v2856_v63 = vor.u32 %v3725_v53, %v2853_v54  ;;  %v3141_v53 = vld [vmem:[%s5931_s1 + $0x558] sm:$0xf0] }
  0xca   :  { %2218 = vmatpush.bf16.msra.mxu2 %v3024_v56  ;;  %v3056_v56 = vor.u32 %v3775_v42, %v3053_v48  ;;  %v2920_v2 = vor.u32 %v3741_v55, %v2917_v57  ;;  %v5504_v48 = vpop.f32.mrf.mxu2  ;;  %v3813_v54 = vld [vmem:[%s5931_s1 + $0x5d4] sm:$0xf]  ;;  %v3344_v55 = vor.u32 %v3847_v34, %v3341_v37  ;;  %v3245_v34 = vld [vmem:[%s5931_s1 + $0x628] sm:$0xf0] }
  0xcb   :  { %2232 = vmatpush.bf16.msra.mxu3 %v3088_v61  ;;  %v3773_v61 = vld [vmem:[%s5931_s1 + $0x494] sm:$0xf] }
  0xcc   :  { %2191 = vmatpush.bf16.msra.mxu0 %v2888_v3  ;;  %v2984_v3 = vor.u32 %v3757_v59, %v2981_v60  ;;  %v3048_v39 = vor.u32 %v3773_v61, %v3045_v62  ;;  %v3829_v57 = vld [vmem:[%s5931_s1 + $0x654] sm:$0xf]  ;;  %v3269_v59 = vld [vmem:[%s5931_s1 + $0x658] sm:$0xf0]  ;;  %v5525_v60 = vpop.f32.mrf.mxu0 }
  0xcd   :  { %2205 = vmatpush.bf16.msra.mxu1 %v2952_v4  ;;  %v3739_v4 = vld [vmem:[%s5931_s1 + $0x384] sm:$0xf]  ;;  %v3333_v61 = vld [vmem:[%s5931_s1 + $0x6d8] sm:$0xf0] }
  0xce   :  { %2219 = vmatpush.bf16.msra.mxu2 %v3016_v5  ;;  %v2909_v5 = vld [vmem:[%s5931_s1 + $0x388] sm:$0xf0] }
  0xcf   :  { %2233 = vmatpush.bf16.msra.mxu3 %v3080_v44  ;;  %v3771_v44 = vld [vmem:[%s5931_s1 + $0x484] sm:$0xf]  ;;  %v2912_v16 = vor.u32 %v3739_v4, %v2909_v5  ;;  %v3197_v4 = vld [vmem:[%s5931_s1 + $0x5c8] sm:$0xf0] }
  0xd0   :  { %2192 = vmatpush.bf16.msra.mxu0 %v2880_v11  ;;  %v5463_v11 = vpop.f32.mrf.mxu1  ;;  %v3040_v21 = vor.u32 %v3771_v44, %v3037_v7  ;;  %v3827_v5 = vld [vmem:[%s5931_s1 + $0x644] sm:$0xf] }
  0xd1   :  { %2206 = vmatpush.bf16.msra.mxu1 %v2944_v12  ;;  %v2848_v12 = vor.u32 %v3723_v0, %v2845_v1  ;;  %v5538_v0 = vpop.f32.mrf.mxu3  ;;  %v3795_v1 = vld [vmem:[%s5931_s1 + $0x544] sm:$0xf] }
  0xd2   :  { %2220 = vmatpush.bf16.msra.mxu2 %v3008_v13  ;;  %v3221_v13 = vld [vmem:[%s5931_s1 + $0x5f8] sm:$0xf0] }
  0xd3   :  { %2234 = vmatpush.bf16.msra.mxu3 %v3072_v18  ;;  %v2976_v18 = vor.u32 %v3755_v17, %v2973_v6  ;;  %v3224_v23 = vor.u32 %v3817_v10, %v3221_v13  ;;  %v3261_v17 = vld [vmem:[%s5931_s1 + $0x648] sm:$0xf0]  ;;  %v3125_v10 = vld [vmem:[%s5931_s1 + $0x538] sm:$0xf0] }
  0xd4   :  { %2193 = vmatpush.bf16.msra.mxu0 %v2872_v24  ;;  %v3288_v24 = vor.u32 %v3833_v14, %v3285_v15  ;;  %v3325_v6 = vld [vmem:[%s5931_s1 + $0x6c8] sm:$0xf0]  ;;  %v3264_v58 = vor.u32 %v3827_v5, %v3261_v17  ;;  %v3189_v14 = vld [vmem:[%s5931_s1 + $0x5b8] sm:$0xf0]  ;;  %v3825_v15 = vld [vmem:[%s5931_s1 + $0x634] sm:$0xf] }
  0xd5   :  { %2207 = vmatpush.bf16.msra.mxu1 %v2936_v25  ;;  %v3799_v25 = vld [vmem:[%s5931_s1 + $0x564] sm:$0xf]  ;;  %v3165_v5 = vld [vmem:[%s5931_s1 + $0x588] sm:$0xf0] }
  0xd6   :  { %2221 = vmatpush.bf16.msra.mxu2 %v3000_v26  ;;  %v3149_v26 = vld [vmem:[%s5931_s1 + $0x568] sm:$0xf0]  ;;  %v3819_v17 = vld [vmem:[%s5931_s1 + $0x604] sm:$0xf] }
  0xd7   :  { %2235 = vmatpush.bf16.msra.mxu3 %v3064_v30  ;;  %v3831_v30 = vld [vmem:[%s5931_s1 + $0x664] sm:$0xf]  ;;  %v3152_v42 = vor.u32 %v3799_v25, %v3149_v26  ;;  %v3117_v26 = vld [vmem:[%s5931_s1 + $0x528] sm:$0xf0] }
  0xd8   :  { %2194 = vmatpush.bf16.msra.mxu0 %v2864_v49  ;;  %v3216_v49 = vor.u32 %v3815_v27, %v3213_v29  ;;  %v5535_v62 = vpop.f32.mrf.mxu1  ;;  %v3791_v25 = vld [vmem:[%s5931_s1 + $0x524] sm:$0xf]  ;;  %v3320_v29 = vor.u32 %v3841_v19, %v3317_v20  ;;  %v3541_v19 = vld [vmem:[%s5931_s1 + $0x878] sm:$0xf0] }
  0xd9   :  { %2208 = vmatpush.bf16.msra.mxu1 %v2928_v50  ;;  %v3280_v50 = vor.u32 %v3831_v30, %v3277_v33  ;;  %v3807_v27 = vld [vmem:[%s5931_s1 + $0x5a4] sm:$0xf]  ;;  %v3181_v30 = vld [vmem:[%s5931_s1 + $0x5a8] sm:$0xf0]  ;;  %v5612_v37 = vpop.f32.mrf.mxu3 }
  0xda   :  { %2222 = vmatpush.bf16.msra.mxu2 %v2992_v52  ;;  %v3797_v52 = vld [vmem:[%s5931_s1 + $0x554] sm:$0xf]  ;;  %v3823_v33 = vld [vmem:[%s5931_s1 + $0x624] sm:$0xf] }
  0xdb   :  { %2236 = vmatpush.bf16.msra.mxu3 %v3056_v56  ;;  %v3205_v56 = vld [vmem:[%s5931_s1 + $0x5d8] sm:$0xf0] }
  0xdc   :  { %2195 = vmatpush.bf16.msra.mxu0 %v2856_v63  ;;  %v3144_v63 = vor.u32 %v3797_v52, %v3141_v53  ;;  %v3184_v52 = vor.u32 %v3807_v27, %v3181_v30  ;;  %v3248_v53 = vor.u32 %v3823_v33, %v3245_v34  ;;  %v3863_v34 = vld [vmem:[%s5931_s1 + $0x764] sm:$0xf] }
  0xdd   :  { %2209 = vmatpush.bf16.msra.mxu1 %v2920_v2  ;;  %v3133_v2 = vld [vmem:[%s5931_s1 + $0x548] sm:$0xf0] }
  0xde   :  { %2223 = vmatpush.bf16.msra.mxu2 %v2984_v3  ;;  %v3136_v44 = vor.u32 %v3795_v1, %v3133_v2  ;;  %v3101_v1 = vld [vmem:[%s5931_s1 + $0x508] sm:$0xf0] }
  0xdf   :  { %2237 = vmatpush.bf16.msra.mxu3 %v3048_v39  ;;  %v3843_v39 = vld [vmem:[%s5931_s1 + $0x6c4] sm:$0xf] }
  0xe0   :  { %2196 = vmatpush.bf16.msra.mxu0 %v2848_v12  ;;  %v3809_v12 = vld [vmem:[%s5931_s1 + $0x5b4] sm:$0xf]  ;;  %v3328_v13 = vor.u32 %v3843_v39, %v3325_v6 }
  0xe1   :  { %2210 = vmatpush.bf16.msra.mxu1 %v2912_v16  ;;  %v3253_v16 = vld [vmem:[%s5931_s1 + $0x638] sm:$0xf0]  ;;  %v5695_v20 = vpop.f32.mrf.mxu3 }
  0xe2   :  { %2224 = vmatpush.bf16.msra.mxu2 %v2976_v18  ;;  %v5582_v18 = vpop.f32.mrf.mxu2 }
  0xe3   :  { %2238 = vmatpush.bf16.msra.mxu3 %v3040_v21  ;;  %2197 = vmatmul.bf16.vlgmr.msra.gmra.mxu0 %v4428_v43  ;;  %v3845_v43 = vld [vmem:[%s5931_s1 + $0x6d4] sm:$0xf]  ;;  %v3128_v21 = vor.u32 %v3793_v9, %v3125_v10  ;;  %v3413_v10 = vld [vmem:[%s5931_s1 + $0x778] sm:$0xf0] }
  0xe4   :  { %2245 = vmatpush.bf16.msrb.mxu0 %v3160_v22  ;;  %2211 = vmatmul.bf16.vlgmr.msra.gmra.mxu1 %v4438_v47  ;;  %v3272_v47 = vor.u32 %v3829_v57, %v3269_v59  ;;  %v3336_v3 = vor.u32 %v3845_v43, %v3333_v61  ;;  %v5590_v22 = vpop.f32.mrf.mxu0  ;;  %v1877_v57 = vadd.f32 %v5463_v11, %v5452_v8  ;;  %v3173_v43 = vld [vmem:[%s5931_s1 + $0x598] sm:$0xf0]  ;;  %v3821_v61 = vld [vmem:[%s5931_s1 + $0x614] sm:$0xf] }
  0xe5   :  { %2259 = vmatpush.bf16.msrb.mxu1 %v3224_v23  ;;  %2225 = vmatmul.bf16.vlgmr.msra.gmra.mxu2 %v4645_v31  ;;  %v3208_v31 = vor.u32 %v3813_v54, %v3205_v56  ;;  %v3192_v23 = vor.u32 %v3809_v12, %v3189_v14  ;;  %v3789_v54 = vld [vmem:[%s5931_s1 + $0x514] sm:$0xf]  ;;  %v3301_v8 = vld [vmem:[%s5931_s1 + $0x698] sm:$0xf0] }
  0xe6   :  { %2273 = vmatpush.bf16.msrb.mxu2 %v3288_v24  ;;  %2239 = vmatmul.bf16.vlgmr.msra.gmra.mxu3 %v4658_v36  ;;  %v3811_v36 = vld [vmem:[%s5931_s1 + $0x5c4] sm:$0xf]  ;;  %v3256_v24 = vor.u32 %v3825_v15, %v3253_v16  ;;  %v3805_v56 = vld [vmem:[%s5931_s1 + $0x594] sm:$0xf]  ;;  %v1891_v39 = vadd.f32 %v5504_v48, %v1877_v57  ;;  %v3477_v15 = vld [vmem:[%s5931_s1 + $0x7f8] sm:$0xf0] }
  0xe7   :  { %2287 = vmatpush.bf16.msrb.mxu3 %v3352_v28  ;;  %v3200_v7 = vor.u32 %v3811_v36, %v3197_v4  ;;  %v5601_v28 = vpop.f32.mrf.mxu1  ;;  %v3176_v36 = vor.u32 %v3805_v56, %v3173_v43  ;;  %v3803_v4 = vld [vmem:[%s5931_s1 + $0x584] sm:$0xf]  ;;  %v3865_v48 = vld [vmem:[%s5931_s1 + $0x774] sm:$0xf]  ;;  %v1879_v56 = vadd.f32 %v5535_v62, %v5525_v60  ;;  %v3397_v60 = vld [vmem:[%s5931_s1 + $0x758] sm:$0xf0] }
  0xe8   :  { %2246 = vmatpush.bf16.msrb.mxu0 %v3152_v42  ;;  %v3839_v42 = vld [vmem:[%s5931_s1 + $0x6a4] sm:$0xf]  ;;  %v3881_v12 = vld [vmem:[%s5931_s1 + $0x7f4] sm:$0xf] }
  0xe9   :  { %2260 = vmatpush.bf16.msrb.mxu1 %v3216_v49  ;;  %v3309_v49 = vld [vmem:[%s5931_s1 + $0x6a8] sm:$0xf0]  ;;  %v3897_v16 = vld [vmem:[%s5931_s1 + $0x874] sm:$0xf]  ;;  %v3480_v30 = vor.u32 %v3881_v12, %v3477_v15 }
  0xea   :  { %2274 = vmatpush.bf16.msrb.mxu2 %v3280_v50  ;;  %v3120_v50 = vor.u32 %v3791_v25, %v3117_v26  ;;  %v3312_v59 = vor.u32 %v3839_v42, %v3309_v49  ;;  %v5652_v2 = vpop.f32.mrf.mxu2  ;;  %v3605_v25 = vld [vmem:[%s5931_s1 + $0x8f8] sm:$0xf0]  ;;  %v1905_v26 = vadd.f32 %v5538_v0, %v1891_v39  ;;  %v3544_v33 = vor.u32 %v3897_v16, %v3541_v19  ;;  %v3405_v42 = vld [vmem:[%s5931_s1 + $0x768] sm:$0xf0]  ;;  %v3879_v49 = vld [vmem:[%s5931_s1 + $0x7e4] sm:$0xf]  ;;  %v5767_v39 = vpop.f32.mrf.mxu3 }
  0xeb   :  { %2288 = vmatpush.bf16.msrb.mxu3 %v3344_v55  ;;  %v3109_v55 = vld [vmem:[%s5931_s1 + $0x518] sm:$0xf0]  ;;  %v3469_v0 = vld [vmem:[%s5931_s1 + $0x7e8] sm:$0xf0]  ;;  %v3877_v62 = vld [vmem:[%s5931_s1 + $0x7d4] sm:$0xf] }
  0xec   :  { %2247 = vmatpush.bf16.msrb.mxu0 %v3144_v63  ;;  %v3237_v63 = vld [vmem:[%s5931_s1 + $0x618] sm:$0xf0]  ;;  %v3112_v11 = vor.u32 %v3789_v54, %v3109_v55  ;;  %v5673_v9 = vpop.f32.mrf.mxu0  ;;  %v3911_v54 = vld [vmem:[%s5931_s1 + $0x8e4] sm:$0xf]  ;;  %v3597_v55 = vld [vmem:[%s5931_s1 + $0x8e8] sm:$0xf0]  ;;  %v1919_v57 = vadd.f32 %v5590_v22, %v1905_v26 }
  0xed   :  { %2261 = vmatpush.bf16.msrb.mxu1 %v3208_v31  ;;  %v3837_v31 = vld [vmem:[%s5931_s1 + $0x694] sm:$0xf]  ;;  %v3445_v26 = vld [vmem:[%s5931_s1 + $0x7b8] sm:$0xf0] }
  0xee   :  { %2275 = vmatpush.bf16.msrb.mxu2 %v3272_v47  ;;  %v3787_v47 = vld [vmem:[%s5931_s1 + $0x504] sm:$0xf]  ;;  %v3304_v6 = vor.u32 %v3837_v31, %v3301_v8  ;;  %v3861_v8 = vld [vmem:[%s5931_s1 + $0x754] sm:$0xf] }
  0xef   :  { %2289 = vmatpush.bf16.msrb.mxu3 %v3336_v3  ;;  %v3240_v3 = vor.u32 %v3821_v61, %v3237_v63  ;;  %v3104_v14 = vor.u32 %v3787_v47, %v3101_v1  ;;  %v3472_v63 = vor.u32 %v3879_v49, %v3469_v0  ;;  %v3461_v47 = vld [vmem:[%s5931_s1 + $0x7d8] sm:$0xf0]  ;;  %v3893_v1 = vld [vmem:[%s5931_s1 + $0x854] sm:$0xf] }
  0xf0   :  { %2248 = vmatpush.bf16.msrb.mxu0 %v3136_v44  ;;  %v3229_v44 = vld [vmem:[%s5931_s1 + $0x608] sm:$0xf0] }
  0xf1   :  { %2262 = vmatpush.bf16.msrb.mxu1 %v3200_v7  ;;  %v3835_v7 = vld [vmem:[%s5931_s1 + $0x684] sm:$0xf] }
  0xf2   :  { %2276 = vmatpush.bf16.msrb.mxu2 %v3264_v58  ;;  %v3293_v58 = vld [vmem:[%s5931_s1 + $0x688] sm:$0xf0]  ;;  %v5731_v43 = vpop.f32.mrf.mxu2 }
  0xf3   :  { %2290 = vmatpush.bf16.msrb.mxu3 %v3328_v13  ;;  %v5684_v13 = vpop.f32.mrf.mxu1  ;;  %v3296_v27 = vor.u32 %v3835_v7, %v3293_v58  ;;  %v3891_v7 = vld [vmem:[%s5931_s1 + $0x844] sm:$0xf]  ;;  %v3517_v58 = vld [vmem:[%s5931_s1 + $0x848] sm:$0xf0] }
  0xf4   :  { %2249 = vmatpush.bf16.msrb.mxu0 %v3128_v21  ;;  %v3168_v21 = vor.u32 %v3803_v4, %v3165_v5  ;;  %v5733_v61 = vpop.f32.mrf.mxu0  ;;  %v1893_v4 = vadd.f32 %v5582_v18, %v1879_v56  ;;  %v1933_v5 = vadd.f32 %v5601_v28, %v1919_v57  ;;  %v3389_v18 = vld [vmem:[%s5931_s1 + $0x748] sm:$0xf0] }
  0xf5   :  { %2263 = vmatpush.bf16.msrb.mxu1 %v3192_v23  ;;  %v3232_v23 = vor.u32 %v3819_v17, %v3229_v44  ;;  %v3400_v17 = vor.u32 %v3861_v8, %v3397_v60  ;;  %v3453_v44 = vld [vmem:[%s5931_s1 + $0x7c8] sm:$0xf0] }
  0xf6   :  { %2277 = vmatpush.bf16.msrb.mxu2 %v3256_v24  ;;  %v3913_v24 = vld [vmem:[%s5931_s1 + $0x8f4] sm:$0xf]  ;;  %v1907_v12 = vadd.f32 %v5612_v37, %v1893_v4 }
  0xf7   :  { %2291 = vmatpush.bf16.msrb.mxu3 %v3320_v29  ;;  %v3416_v29 = vor.u32 %v3865_v48, %v3413_v10  ;;  %v3907_v48 = vld [vmem:[%s5931_s1 + $0x8c4] sm:$0xf]  ;;  %v3581_v10 = vld [vmem:[%s5931_s1 + $0x8c8] sm:$0xf0]  ;;  %v3873_v37 = vld [vmem:[%s5931_s1 + $0x7b4] sm:$0xf] }
  0xf8   :  { %2250 = vmatpush.bf16.msrb.mxu0 %v3120_v50  ;;  %v3608_v50 = vor.u32 %v3913_v24, %v3605_v25  ;;  %v3381_v24 = vld [vmem:[%s5931_s1 + $0x738] sm:$0xf0]  ;;  %v3584_v25 = vor.u32 %v3907_v48, %v3581_v10  ;;  %v3448_v0 = vor.u32 %v3873_v37, %v3445_v26  ;;  %v3885_v4 = vld [vmem:[%s5931_s1 + $0x814] sm:$0xf]  ;;  %v3357_v48 = vld [vmem:[%s5931_s1 + $0x708] sm:$0xf0] }
  0xf9   :  { %2264 = vmatpush.bf16.msrb.mxu1 %v3184_v52  ;;  %v3895_v52 = vld [vmem:[%s5931_s1 + $0x864] sm:$0xf] }
  0xfa   :  { %2278 = vmatpush.bf16.msrb.mxu2 %v3248_v53  ;;  %v3533_v53 = vld [vmem:[%s5931_s1 + $0x868] sm:$0xf0]  ;;  %v2002_v16 = vpop.f32.mrf.mxu2 }
  0xfb   :  { %2292 = vmatpush.bf16.msrb.mxu3 %v3312_v59  ;;  %v3408_v59 = vor.u32 %v3863_v34, %v3405_v42  ;;  %v3536_v31 = vor.u32 %v3895_v52, %v3533_v53  ;;  %v5744_v22 = vpop.f32.mrf.mxu1  ;;  %v3855_v53 = vld [vmem:[%s5931_s1 + $0x724] sm:$0xf] }
  0xfc   :  { %2251 = vmatpush.bf16.msrb.mxu0 %v3112_v11  ;;  %v3600_v11 = vor.u32 %v3911_v54, %v3597_v55  ;;  %v3373_v54 = vld [vmem:[%s5931_s1 + $0x728] sm:$0xf0] }
  0xfd   :  { %2265 = vmatpush.bf16.msrb.mxu1 %v3176_v36  ;;  %v3525_v36 = vld [vmem:[%s5931_s1 + $0x858] sm:$0xf0]  ;;  %v3376_v60 = vor.u32 %v3855_v53, %v3373_v54  ;;  %v5908_v53 = vld [vmem:[%s5933_s2] sm:$0x3] }
  0xfe   :  { %2279 = vmatpush.bf16.msrb.mxu2 %v3240_v3  ;;  %v3589_v3 = vld [vmem:[%s5931_s1 + $0x8d8] sm:$0xf0] }
  0xff   :  { %2293 = vmatpush.bf16.msrb.mxu3 %v3304_v6  ;;  %v3859_v6 = vld [vmem:[%s5931_s1 + $0x744] sm:$0xf] }
 0x100   :  { %2252 = vmatpush.bf16.msrb.mxu0 %v3104_v14  ;;  %v1947_v14 = vadd.f32 %v5652_v2, %v1933_v5  ;;  %v3392_v15 = vor.u32 %v3859_v6, %v3389_v18  ;;  %v1921_v2 = vadd.f32 %v5673_v9, %v1907_v12  ;;  %v3573_v9 = vld [vmem:[%s5931_s1 + $0x8b8] sm:$0xf0] }
 0x101   :  { %2266 = vmatpush.bf16.msrb.mxu1 %v3168_v21  ;;  %v3520_v21 = vor.u32 %v3891_v7, %v3517_v58  ;;  %v3493_v5 = vld [vmem:[%s5931_s1 + $0x818] sm:$0xf0]  ;;  %v3851_v58 = vld [vmem:[%s5931_s1 + $0x704] sm:$0xf] }
 0x102   :  { %2280 = vmatpush.bf16.msrb.mxu2 %v3232_v23  ;;  %v3857_v23 = vld [vmem:[%s5931_s1 + $0x734] sm:$0xf]  ;;  %v1961_v34 = vadd.f32 %v5695_v20, %v1947_v14  ;;  %v3871_v20 = vld [vmem:[%s5931_s1 + $0x7a4] sm:$0xf]  ;;  %v1935_v55 = vadd.f32 %v5684_v13, %v1921_v2  ;;  %v3496_v7 = vor.u32 %v3885_v4, %v3493_v5  ;;  %v3421_v14 = vld [vmem:[%s5931_s1 + $0x788] sm:$0xf0]  ;;  %v3360_v37 = vor.u32 %v3851_v58, %v3357_v48 }
 0x103   :  { %2294 = vmatpush.bf16.msrb.mxu3 %v3296_v27  ;;  %2253 = vmatmul.bf16.vlgmr.msrb.gmra.mxu0 %v4656_v35  ;;  %v3909_v35 = vld [vmem:[%s5931_s1 + $0x8d4] sm:$0xf]  ;;  %v5821_v42 = vpop.f32.mrf.mxu1  ;;  %v3384_v49 = vor.u32 %v3857_v23, %v3381_v24  ;;  %v3903_v13 = vld [vmem:[%s5931_s1 + $0x8a4] sm:$0xf]  ;;  %v3549_v23 = vld [vmem:[%s5931_s1 + $0x888] sm:$0xf0] }
 0x104   :  { %2301 = vmatpush.bf16.msra.mxu0 %v3416_v29  ;;  %2267 = vmatmul.bf16.vlgmr.msrb.gmra.mxu1 %v4666_v40  ;;  %v3464_v40 = vor.u32 %v3877_v62, %v3461_v47  ;;  %v3592_v28 = vor.u32 %v3909_v35, %v3589_v3  ;;  %v3889_v27 = vld [vmem:[%s5931_s1 + $0x834] sm:$0xf]  ;;  %v3509_v29 = vld [vmem:[%s5931_s1 + $0x838] sm:$0xf0]  ;;  %v1975_v56 = vadd.f32 %v5733_v61, %v1961_v34  ;;  %v3565_v61 = vld [vmem:[%s5931_s1 + $0x8a8] sm:$0xf0] }
 0x105   :  { %2315 = vmatpush.bf16.msra.mxu1 %v3480_v30  ;;  %2281 = vmatmul.bf16.vlgmr.msrb.gmra.mxu2 %v4873_v32  ;;  %v3528_v32 = vor.u32 %v3893_v1, %v3525_v36  ;;  %v1976_v30 = vpop.f32.mrf.mxu0  ;;  %v3512_v52 = vor.u32 %v3889_v27, %v3509_v29  ;;  %v1949_v8 = vadd.f32 %v5731_v43, %v1935_v55  ;;  %v3853_v47 = vld [vmem:[%s5931_s1 + $0x714] sm:$0xf]  ;;  %v3365_v1 = vld [vmem:[%s5931_s1 + $0x718] sm:$0xf0] }
 0x106   :  { %2329 = vmatpush.bf16.msra.mxu2 %v3544_v33  ;;  %2295 = vmatmul.bf16.vlgmr.msrb.gmra.mxu3 %v4886_v41  ;;  %v3875_v41 = vld [vmem:[%s5931_s1 + $0x7c4] sm:$0xf]  ;;  %v3905_v33 = vld [vmem:[%s5931_s1 + $0x8b4] sm:$0xf]  ;;  %v1989_v43 = vadd.f32 %v5744_v22, %v1975_v56  ;;  %v3568_v35 = vor.u32 %v3903_v13, %v3565_v61  ;;  %v3429_v3 = vld [vmem:[%s5931_s1 + $0x798] sm:$0xf0] }
 0x107   :  { %2343 = vmatpush.bf16.msra.mxu3 %v3608_v50  ;;  %v3456_v19 = vor.u32 %v3875_v41, %v3453_v44  ;;  %v2016_v50 = vpop.f32.mrf.mxu3  ;;  %v3576_v57 = vor.u32 %v3905_v33, %v3573_v9  ;;  %v3869_v36 = vld [vmem:[%s5931_s1 + $0x794] sm:$0xf]  ;;  %v1963_v6 = vadd.f32 %v5767_v39, %v1949_v8  ;;  %v3867_v39 = vld [vmem:[%s5931_s1 + $0x784] sm:$0xf] }
 0x108   :  { %2302 = vmatpush.bf16.msra.mxu0 %v3408_v59  ;;  %v3437_v59 = vld [vmem:[%s5931_s1 + $0x7a8] sm:$0xf0]  ;;  %v3901_v22 = vld [vmem:[%s5931_s1 + $0x894] sm:$0xf]  ;;  %v2003_v18 = vadd.f32 %v2002_v16, %v1989_v43  ;;  %v3432_v44 = vor.u32 %v3869_v36, %v3429_v3  ;;  %v3424_v2 = vor.u32 %v3867_v39, %v3421_v14 }
 0x109   :  { %2316 = vmatpush.bf16.msra.mxu1 %v3472_v63  ;;  %v3887_v63 = vld [vmem:[%s5931_s1 + $0x824] sm:$0xf]  ;;  %v3440_v62 = vor.u32 %v3871_v20, %v3437_v59  ;;  %v1977_v10 = vadd.f32 %v1976_v30, %v1963_v6  ;;  %v3485_v16 = vld [vmem:[%s5931_s1 + $0x808] sm:$0xf0] }
 0x10a   :  { %2330 = vmatpush.bf16.msra.mxu2 %v3536_v31  ;;  %v3501_v31 = vld [vmem:[%s5931_s1 + $0x828] sm:$0xf0]  ;;  %v2017_v24 = vadd.f32 %v2016_v50, %v2003_v18 }
 0x10b   :  { %2344 = vmatpush.bf16.msra.mxu3 %v3600_v11  ;;  %v3504_v11 = vor.u32 %v3887_v63, %v3501_v31  ;;  %v2044_v41 = vpop.f32.mrf.mxu1  ;;  %v1991_v26 = vadd.f32 %v5821_v42, %v1977_v10 }
 0x10c   :  { %2303 = vmatpush.bf16.msra.mxu0 %v3400_v17  ;;  %v2004_v17 = vpop.f32.mrf.mxu2 }
 0x10d   :  { %2317 = vmatpush.bf16.msra.mxu1 %v3464_v40  ;;  %v2030_v40 = vpop.f32.mrf.mxu0  ;;  %v2005_v33 = vadd.f32 %v2004_v17, %v1991_v26 }
 0x10e   :  { %2331 = vmatpush.bf16.msra.mxu2 %v3528_v32  ;;  %v3557_v32 = vld [vmem:[%s5931_s1 + $0x898] sm:$0xf0]  ;;  %v2031_v27 = vadd.f32 %v2030_v40, %v2017_v24 }
 0x10f   :  { %2345 = vmatpush.bf16.msra.mxu3 %v3592_v28  ;;  %v3368_v28 = vor.u32 %v3853_v47, %v3365_v1  ;;  %v3560_v12 = vor.u32 %v3901_v22, %v3557_v32 }
 0x110   :  { %2304 = vmatpush.bf16.msra.mxu0 %v3392_v15  ;;  %v3883_v15 = vld [vmem:[%s5931_s1 + $0x804] sm:$0xf]  ;;  %v2045_v34 = vadd.f32 %v2044_v41, %v2031_v27 }
 0x111   :  { %2318 = vmatpush.bf16.msra.mxu1 %v3456_v19  ;;  %v2018_v19 = vpop.f32.mrf.mxu3 }
 0x112   :  { %2332 = vmatpush.bf16.msra.mxu2 %v3520_v21  ;;  %v3899_v21 = vld [vmem:[%s5931_s1 + $0x884] sm:$0xf] }
 0x113   :  { %2346 = vmatpush.bf16.msra.mxu3 %v3584_v25  ;;  %v3488_v25 = vor.u32 %v3883_v15, %v3485_v16  ;;  %v3552_v29 = vor.u32 %v3899_v21, %v3549_v23 }
 0x114   :  { %2305 = vmatpush.bf16.msra.mxu0 %v3384_v49  ;;  %v2058_v30 = vpop.f32.mrf.mxu2  ;;  %v2046_v49 = vpop.f32.mrf.mxu1 }
 0x115   :  { %2319 = vmatpush.bf16.msra.mxu1 %v3448_v0  ;;  %v2032_v9 = vpop.f32.mrf.mxu0  ;;  %v2019_v0 = vadd.f32 %v2018_v19, %v2005_v33 }
 0x116   :  { %2333 = vmatpush.bf16.msra.mxu2 %v3512_v52  ;;  %v2059_v52 = vadd.f32 %v2058_v30, %v2045_v34 }
 0x117   :  { %2347 = vmatpush.bf16.msra.mxu3 %v3576_v57  ;;  %v2033_v42 = vadd.f32 %v2032_v9, %v2019_v0 }
 0x118   :  { %2306 = vmatpush.bf16.msra.mxu0 %v3376_v60 }
 0x119   :  { %2320 = vmatpush.bf16.msra.mxu1 %v3440_v62  ;;  %v2072_v50 = vpop.f32.mrf.mxu3  ;;  %v2047_v56 = vadd.f32 %v2046_v49, %v2033_v42 }
 0x11a   :  { %2334 = vmatpush.bf16.msra.mxu2 %v3504_v11  ;;  %v2073_v54 = vadd.f32 %v2072_v50, %v2059_v52 }
 0x11b   :  { %2348 = vmatpush.bf16.msra.mxu3 %v3568_v35 }
 0x11c   :  { %2307 = vmatpush.bf16.msra.mxu0 %v3368_v28  ;;  %v2060_v20 = vpop.f32.mrf.mxu2 }
 0x11d   :  { %2321 = vmatpush.bf16.msra.mxu1 %v3432_v44 }
 0x11e   :  { %2335 = vmatpush.bf16.msra.mxu2 %v3496_v7 }
 0x11f   :  { %2349 = vmatpush.bf16.msra.mxu3 %v3560_v12 }
 0x120   :  { %2308 = vmatpush.bf16.msra.mxu0 %v3360_v37  ;;  %v2086_v55 = vpop.f32.mrf.mxu0 }
 0x121   :  { %2322 = vmatpush.bf16.msra.mxu1 %v3424_v2  ;;  %v2100_v57 = vpop.f32.mrf.mxu1  ;;  %v2074_v31 = vpop.f32.mrf.mxu3 }
 0x122   :  { %2336 = vmatpush.bf16.msra.mxu2 %v3488_v25 }
 0x123   :  { %2350 = vmatpush.bf16.msra.mxu3 %v3552_v29  ;;  %2309 = vmatmul.bf16.vlgmr.msra.gmra.mxu0 %v4884_v38  ;;  %v5913_v38 = vld [vmem:[%s5934_s3] sm:$0x3] }
 0x124   :  { %2323 = vmatmul.bf16.vlgmr.msra.gmra.mxu1 %v4894_v46  ;;  %v2087_v46 = vadd.f32 %v2086_v55, %v2073_v54  ;;  %v2369_v63 = vperm.slane %v5913_v38, 0 }
 0x125   :  { %2337 = vmatmul.bf16.vlgmr.msra.gmra.mxu2 %v5089_v45  ;;  %v2359_v45 = vperm.slane %v5908_v53, 0 }
 0x126   :  { %2351 = vmatmul.bf16.vlgmr.msra.gmra.mxu3 %v5100_v51  ;;  %v2061_v51 = vadd.f32 %v2060_v20, %v2047_v56  ;;  %v2101_v59 = vadd.f32 %v2100_v57, %v2087_v46 }
 0x128   :  { %v2363_v13 = vmul.f32 %v2359_v45, %v2101_v59  ;;  %v2075_v61 = vadd.f32 %v2074_v31, %v2061_v51  ;;  %v2088_v60 = vpop.f32.mrf.mxu0  ;;  %v2114_v43 = vpop.f32.mrf.mxu2 }
 0x129   :  { %v2102_v11 = vpop.f32.mrf.mxu1  ;;  %v2128_v35 = vpop.f32.mrf.mxu3 }
 0x12a   :  { %v2373_v8 = vadd.f32 %v2369_v63, %v2363_v13  ;;  %v2089_v62 = vadd.f32 %v2088_v60, %v2075_v61  ;;  %v2129_v18 = vadd.f32 %v2128_v35, %v2114_v43 }
 0x12c   :  { %2377 = vst [vmem:[%s5935_s4] sm:$0xff] %v2373_v8  ;;  %v2103_v47 = vadd.f32 %v2102_v11, %v2089_v62 }
 0x12e   :  { %v2365_v1 = vmul.f32 %v2359_v45, %v2103_v47 }
 0x130   :  { %v2375_v36 = vadd.f32 %v2369_v63, %v2365_v1  ;;  %v2116_v3 = vpop.f32.mrf.mxu2 }
 0x131   :  { %v2130_v4 = vpop.f32.mrf.mxu3 }
 0x132   :  { %2379 = vst [vmem:[%s5935_s4 + $0x10] sm:$0xff] %v2375_v36  ;;  %v2131_v10 = vadd.f32 %v2130_v4, %v2116_v3  ;;  %v2360_v36 = vperm.slane %v5908_v53, 1  ;;  %v2370_v3 = vperm.slane %v5913_v38, 1 }
 0x140   :  { %v2142_v5 = vpop.f32.mrf.mxu0 }
 0x141   :  { %v2156_v17 = vpop.f32.mrf.mxu1  ;;  %v2143_v28 = vadd.f32 %v2142_v5, %v2129_v18 }
 0x143   :  { %v2157_v48 = vadd.f32 %v2156_v17, %v2143_v28 }
 0x148   :  { %v2170_v40 = vpop.f32.mrf.mxu2  ;;  %v2144_v32 = vpop.f32.mrf.mxu0 }
 0x149   :  { %v2184_v22 = vpop.f32.mrf.mxu3  ;;  %v2158_v6 = vpop.f32.mrf.mxu1  ;;  %v2171_v12 = vadd.f32 %v2170_v40, %v2157_v48  ;;  %v2145_v15 = vadd.f32 %v2144_v32, %v2131_v10 }
 0x14b   :  { %v2185_v19 = vadd.f32 %v2184_v22, %v2171_v12  ;;  %v2159_v23 = vadd.f32 %v2158_v6, %v2145_v15 }
 0x150   :  { %v2172_v41 = vpop.f32.mrf.mxu2 }
 0x151   :  { %v2186_v44 = vpop.f32.mrf.mxu3  ;;  %v2173_v37 = vadd.f32 %v2172_v41, %v2159_v23 }
 0x153   :  { %v2187_v29 = vadd.f32 %v2186_v44, %v2173_v37 }
 0x160   :  { %v2198_v7 = vpop.f32.mrf.mxu0 }
 0x161   :  { %v2212_v58 = vpop.f32.mrf.mxu1  ;;  %v2199_v24 = vadd.f32 %v2198_v7, %v2185_v19 }
 0x163   :  { %v2213_v25 = vadd.f32 %v2212_v58, %v2199_v24 }
 0x168   :  { %v2226_v39 = vpop.f32.mrf.mxu2  ;;  %v2200_v16 = vpop.f32.mrf.mxu0 }
 0x169   :  { %v2240_v14 = vpop.f32.mrf.mxu3  ;;  %v2214_v21 = vpop.f32.mrf.mxu1  ;;  %v2227_v30 = vadd.f32 %v2226_v39, %v2213_v25  ;;  %v2201_v9 = vadd.f32 %v2200_v16, %v2187_v29 }
 0x16b   :  { %v2241_v34 = vadd.f32 %v2240_v14, %v2227_v30  ;;  %v2215_v50 = vadd.f32 %v2214_v21, %v2201_v9 }
 0x170   :  { %v2228_v2 = vpop.f32.mrf.mxu2 }
 0x171   :  { %v2242_v26 = vpop.f32.mrf.mxu3  ;;  %v2229_v42 = vadd.f32 %v2228_v2, %v2215_v50 }
 0x173   :  { %v2243_v56 = vadd.f32 %v2242_v26, %v2229_v42 }
 0x180   :  { %v2254_v27 = vpop.f32.mrf.mxu0 }
 0x181   :  { %v2268_v33 = vpop.f32.mrf.mxu1  ;;  %v2255_v0 = vadd.f32 %v2254_v27, %v2241_v34 }
 0x183   :  { %v2269_v20 = vadd.f32 %v2268_v33, %v2255_v0 }
 0x188   :  { %v2282_v49 = vpop.f32.mrf.mxu2  ;;  %v2256_v54 = vpop.f32.mrf.mxu0 }
 0x189   :  { %v2296_v52 = vpop.f32.mrf.mxu3  ;;  %v2270_v55 = vpop.f32.mrf.mxu1  ;;  %v2283_v46 = vadd.f32 %v2282_v49, %v2269_v20  ;;  %v2257_v57 = vadd.f32 %v2256_v54, %v2243_v56 }
 0x18b   :  { %v2297_v51 = vadd.f32 %v2296_v52, %v2283_v46  ;;  %v2271_v31 = vadd.f32 %v2270_v55, %v2257_v57 }
 0x190   :  { %v2284_v45 = vpop.f32.mrf.mxu2 }
 0x191   :  { %v2298_v59 = vpop.f32.mrf.mxu3  ;;  %v2285_v8 = vadd.f32 %v2284_v45, %v2271_v31 }
 0x193   :  { %v2299_v11 = vadd.f32 %v2298_v59, %v2285_v8 }
 0x1a0   :  { %v2310_v63 = vpop.f32.mrf.mxu0 }
 0x1a1   :  { %v2311_v13 = vadd.f32 %v2310_v63, %v2297_v51  ;;  %v2324_v61 = vpop.f32.mrf.mxu1 }
 0x1a3   :  { %v2325_v60 = vadd.f32 %v2324_v61, %v2311_v13 }
 0x1a8   :  { %v2338_v62 = vpop.f32.mrf.mxu2  ;;  %v2312_v43 = vpop.f32.mrf.mxu0 }
 0x1a9   :  { %v2339_v47 = vadd.f32 %v2338_v62, %v2325_v60  ;;  %v2352_v1 = vpop.f32.mrf.mxu3  ;;  %v2313_v4 = vadd.f32 %v2312_v43, %v2299_v11  ;;  %v2326_v17 = vpop.f32.mrf.mxu1 }
 0x1ab   :  { %v2353_v35 = vadd.f32 %v2352_v1, %v2339_v47  ;;  %v2327_v22 = vadd.f32 %v2326_v17, %v2313_v4 }
 0x1ad   :  { %v2364_v5 = vmul.f32 %v2360_v36, %v2353_v35 }
 0x1af   :  { %v2374_v40 = vadd.f32 %v2370_v3, %v2364_v5 }
 0x1b0   :  { %v2340_v32 = vpop.f32.mrf.mxu2 }
 0x1b1   :  { %2378 = vst [vmem:[%s5935_s4 + $0x8] sm:$0xff] %v2374_v40  ;;  %v2341_v6 = vadd.f32 %v2340_v32, %v2327_v22  ;;  %v2354_v18 = vpop.f32.mrf.mxu3 }
 0x1b3   :  { %v2355_v41 = vadd.f32 %v2354_v18, %v2341_v6 }
 0x1b5   :  { %v2366_v28 = vmul.f32 %v2360_v36, %v2355_v41 }
 0x1b7   :  { %v2376_v44 = vadd.f32 %v2370_v3, %v2366_v28 }
 0x1b9   :  { %2380 = vst [vmem:[%s5935_s4 + $0x18] sm:$0xff] %v2376_v44 }

// kernel: autoencoder_forward.20
= control target key start
LH: loop header
LB: loop body
LE: loop exit
PB: predicated region body
PF: predicated region fallthrough
CT: control target
= control target key end

     0   :  { %s891_s1 = inlined_call_operand.vmem [shape: bf16[256,128], index: 1, kind: input, shape index: {}]   ;;  %s892_s0 = inlined_call_operand.vmem [shape: bf16[128,256], index: 0, kind: input, shape index: {}]   ;;  %s893_s2 = inlined_call_operand.vmem [shape: f32[1,128], index: 2, kind: input, shape index: {}]   ;;  %s894_s3 = inlined_call_operand.vmem [shape: f32[1,128], index: 3, kind: input, shape index: {}]   ;;  %s895_s4 = inlined_call_operand.vmem [shape: bf16[128,128], index: 4, kind: output, shape index: {}]  }
   0x1   :  { %v582_v0 = vld [vmem:[%s891_s1 + $0x38] sm:$0xff]  ;;  %v581_v2 = vld [vmem:[%s891_s1 + $0x30] sm:$0xff]  ;;  %v580_v4 = vld [vmem:[%s891_s1 + $0x28] sm:$0xff] }
   0x2   :  { %v590_v1 = vld [vmem:[%s891_s1 + $0x78] sm:$0xff]  ;;  %241 = vmatpush.bf16.msra.mxu0 %v582_v0  ;;  %638 = vmatpush.bf16.msra.mxu2 %v582_v0  ;;  %v589_v3 = vld [vmem:[%s891_s1 + $0x70] sm:$0xff]  ;;  %v588_v5 = vld [vmem:[%s891_s1 + $0x68] sm:$0xff] }
   0x3   :  { %290 = vmatpush.bf16.msra.mxu1 %v590_v1  ;;  %646 = vmatpush.bf16.msra.mxu3 %v590_v1  ;;  %v579_v6 = vld [vmem:[%s891_s1 + $0x20] sm:$0xff]  ;;  %v578_v8 = vld [vmem:[%s891_s1 + $0x18] sm:$0xff]  ;;  %v577_v10 = vld [vmem:[%s891_s1 + $0x10] sm:$0xff] }
   0x4   :  { %v587_v7 = vld [vmem:[%s891_s1 + $0x60] sm:$0xff]  ;;  %v586_v9 = vld [vmem:[%s891_s1 + $0x58] sm:$0xff]  ;;  %v585_v11 = vld [vmem:[%s891_s1 + $0x50] sm:$0xff] }
   0x5   :  { %v576_v12 = vld [vmem:[%s891_s1 + $0x8] sm:$0xff]  ;;  %v575_v14 = vld [vmem:[%s891_s1] sm:$0xff]  ;;  %v441_v28 = vld [vmem:[%s892_s0 + $0x10] sm:$0xf] }
   0x6   :  { %242 = vmatpush.bf16.msra.mxu0 %v581_v2  ;;  %639 = vmatpush.bf16.msra.mxu2 %v581_v2  ;;  %v584_v13 = vld [vmem:[%s891_s1 + $0x48] sm:$0xff]  ;;  %v583_v15 = vld [vmem:[%s891_s1 + $0x40] sm:$0xff]  ;;  %v562_v29 = vld [vmem:[%s892_s0 + $0x14] sm:$0xf0] }
   0x7   :  { %291 = vmatpush.bf16.msra.mxu1 %v589_v3  ;;  %647 = vmatpush.bf16.msra.mxu3 %v589_v3  ;;  %v433_v16 = vld [vmem:[%s892_s0] sm:$0xf]  ;;  %v560_v17 = vld [vmem:[%s892_s0 + $0x4] sm:$0xf0]  ;;  %v559_v20 = vld [vmem:[%s892_s0 + $0x4] sm:$0xf]  ;;  %v442_v36 = vor.u32 %v562_v29, %v441_v28 }
   0x8   :  { %v465_v18 = vld [vmem:[%s892_s0 + $0x40] sm:$0xf]  ;;  %v568_v19 = vld [vmem:[%s892_s0 + $0x44] sm:$0xf0]  ;;  %v435_v21 = vld [vmem:[%s892_s0 + $0x8] sm:$0xf0]  ;;  %v434_v24 = vor.u32 %v560_v17, %v433_v16 }
   0x9   :  { %v567_v22 = vld [vmem:[%s892_s0 + $0x44] sm:$0xf]  ;;  %v467_v23 = vld [vmem:[%s892_s0 + $0x48] sm:$0xf0]  ;;  %v466_v25 = vor.u32 %v568_v19, %v465_v18  ;;  %v438_v26 = vor.u32 %v559_v20, %v435_v21  ;;  %v473_v30 = vld [vmem:[%s892_s0 + $0x50] sm:$0xf] }
   0xa   :  { %243 = vmatpush.bf16.msra.mxu0 %v580_v4  ;;  %640 = vmatpush.bf16.msra.mxu2 %v580_v4  ;;  %v470_v27 = vor.u32 %v567_v22, %v467_v23  ;;  %v570_v31 = vld [vmem:[%s892_s0 + $0x54] sm:$0xf0]  ;;  %v561_v32 = vld [vmem:[%s892_s0 + $0x14] sm:$0xf]  ;;  %v443_v33 = vld [vmem:[%s892_s0 + $0x18] sm:$0xf0] }
   0xb   :  { %292 = vmatpush.bf16.msra.mxu1 %v588_v5  ;;  %648 = vmatpush.bf16.msra.mxu3 %v588_v5  ;;  %v569_v34 = vld [vmem:[%s892_s0 + $0x54] sm:$0xf]  ;;  %v475_v35 = vld [vmem:[%s892_s0 + $0x58] sm:$0xf0]  ;;  %v474_v37 = vor.u32 %v570_v31, %v473_v30  ;;  %v446_v38 = vor.u32 %v561_v32, %v443_v33  ;;  %v449_v40 = vld [vmem:[%s892_s0 + $0x20] sm:$0xf] }
   0xc   :  { %v478_v39 = vor.u32 %v569_v34, %v475_v35  ;;  %v564_v41 = vld [vmem:[%s892_s0 + $0x24] sm:$0xf0]  ;;  %v481_v42 = vld [vmem:[%s892_s0 + $0x60] sm:$0xf]  ;;  %v563_v44 = vld [vmem:[%s892_s0 + $0x24] sm:$0xf] }
   0xd   :  { %v572_v43 = vld [vmem:[%s892_s0 + $0x64] sm:$0xf0]  ;;  %v451_v45 = vld [vmem:[%s892_s0 + $0x28] sm:$0xf0]  ;;  %v571_v46 = vld [vmem:[%s892_s0 + $0x64] sm:$0xf]  ;;  %v450_v48 = vor.u32 %v564_v41, %v449_v40 }
   0xe   :  { %244 = vmatpush.bf16.msra.mxu0 %v579_v6  ;;  %641 = vmatpush.bf16.msra.mxu2 %v579_v6  ;;  %v483_v47 = vld [vmem:[%s892_s0 + $0x68] sm:$0xf0]  ;;  %v482_v49 = vor.u32 %v572_v43, %v481_v42  ;;  %v454_v50 = vor.u32 %v563_v44, %v451_v45  ;;  %v457_v52 = vld [vmem:[%s892_s0 + $0x30] sm:$0xf]  ;;  %v566_v53 = vld [vmem:[%s892_s0 + $0x34] sm:$0xf0] }
   0xf   :  { %293 = vmatpush.bf16.msra.mxu1 %v587_v7  ;;  %649 = vmatpush.bf16.msra.mxu3 %v587_v7  ;;  %v486_v51 = vor.u32 %v571_v46, %v483_v47  ;;  %v489_v54 = vld [vmem:[%s892_s0 + $0x70] sm:$0xf]  ;;  %v574_v55 = vld [vmem:[%s892_s0 + $0x74] sm:$0xf0]  ;;  %v565_v56 = vld [vmem:[%s892_s0 + $0x34] sm:$0xf]  ;;  %v458_v60 = vor.u32 %v566_v53, %v457_v52 }
  0x10   :  { %v459_v57 = vld [vmem:[%s892_s0 + $0x38] sm:$0xf0]  ;;  %v573_v58 = vld [vmem:[%s892_s0 + $0x74] sm:$0xf]  ;;  %v490_v61 = vor.u32 %v574_v55, %v489_v54  ;;  %v828_v3 = vld [vmem:[%s893_s2] ss:$0 sm:$0xff] }
  0x11   :  { %v491_v59 = vld [vmem:[%s892_s0 + $0x78] sm:$0xf0]  ;;  %v462_v62 = vor.u32 %v565_v56, %v459_v57  ;;  %v834_v7 = vld [vmem:[%s894_s3] ss:$0 sm:$0xff] }
  0x12   :  { %245 = vmatpush.bf16.msra.mxu0 %v578_v8  ;;  %642 = vmatpush.bf16.msra.mxu2 %v578_v8  ;;  %v494_v63 = vor.u32 %v573_v58, %v491_v59 }
  0x13   :  { %294 = vmatpush.bf16.msra.mxu1 %v586_v9  ;;  %650 = vmatpush.bf16.msra.mxu3 %v586_v9 }
  0x16   :  { %246 = vmatpush.bf16.msra.mxu0 %v577_v10  ;;  %643 = vmatpush.bf16.msra.mxu2 %v577_v10 }
  0x17   :  { %295 = vmatpush.bf16.msra.mxu1 %v585_v11  ;;  %651 = vmatpush.bf16.msra.mxu3 %v585_v11 }
  0x1a   :  { %247 = vmatpush.bf16.msra.mxu0 %v576_v12  ;;  %644 = vmatpush.bf16.msra.mxu2 %v576_v12 }
  0x1b   :  { %296 = vmatpush.bf16.msra.mxu1 %v584_v13  ;;  %652 = vmatpush.bf16.msra.mxu3 %v584_v13 }
  0x1e   :  { %248 = vmatpush.bf16.msra.mxu0 %v575_v14  ;;  %645 = vmatpush.bf16.msra.mxu2 %v575_v14 }
  0x1f   :  { %297 = vmatpush.bf16.msra.mxu1 %v583_v15  ;;  %653 = vmatpush.bf16.msra.mxu3 %v583_v15 }
  0x21   :  { %249 = vmatmul.bf16.vlgmr.msra.gmra.mxu0 %v434_v24  ;;  %269 = vmatmul.bf16.vlgmr.msra.gmra.mxu2 %v466_v25 }
  0x22   :  { %298 = vmatmul.bf16.vlgmr.msra.gmra.mxu1 %v438_v26  ;;  %318 = vmatmul.bf16.vlgmr.msra.gmra.mxu3 %v470_v27 }
  0x31   :  { %254 = vmatmul.bf16.gmra.mxu0 %v442_v36  ;;  %274 = vmatmul.bf16.gmra.mxu2 %v474_v37 }
  0x32   :  { %303 = vmatmul.bf16.gmra.mxu1 %v446_v38  ;;  %323 = vmatmul.bf16.gmra.mxu3 %v478_v39 }
  0x41   :  { %259 = vmatmul.bf16.gmra.mxu0 %v450_v48  ;;  %279 = vmatmul.bf16.gmra.mxu2 %v482_v49 }
  0x42   :  { %308 = vmatmul.bf16.gmra.mxu1 %v454_v50  ;;  %328 = vmatmul.bf16.gmra.mxu3 %v486_v51 }
  0x51   :  { %264 = vmatmul.bf16.gmra.mxu0 %v458_v60  ;;  %284 = vmatmul.bf16.gmra.mxu2 %v490_v61 }
  0x52   :  { %313 = vmatmul.bf16.gmra.mxu1 %v462_v62  ;;  %333 = vmatmul.bf16.gmra.mxu3 %v494_v63 }
  0x9e   :  { %v250_v0 = vpop.f32.mrf.mxu0 }
  0x9f   :  { %v299_v1 = vpop.f32.mrf.mxu1 }
  0xa0   :  { %v300_v2 = vadd.f32 %v299_v1, %v250_v0 }
  0xa2   :  { %v343_v6 = vmul.f32 %v828_v3, %v300_v2 }
  0xa4   :  { %v270_v4 = vpop.f32.mrf.mxu2  ;;  %v363_v12 = vadd.f32 %v834_v7, %v343_v6 }
  0xa5   :  { %v319_v5 = vpop.f32.mrf.mxu3 }
  0xa6   :  { %v252_v8 = vpop.f32.mrf.mxu0  ;;  %v320_v10 = vadd.f32 %v319_v5, %v270_v4  ;;  %v379_v18 = vmax.f32 %v363_v12, 0.0 }
  0xa7   :  { %v301_v9 = vpop.f32.mrf.mxu1 }
  0xa8   :  { %v302_v11 = vadd.f32 %v301_v9, %v252_v8  ;;  %v351_v14 = vmul.f32 %v828_v3, %v320_v10 }
  0xaa   :  { %v344_v13 = vmul.f32 %v828_v3, %v302_v11  ;;  %v371_v23 = vadd.f32 %v834_v7, %v351_v14 }
  0xac   :  { %v364_v15 = vadd.f32 %v834_v7, %v344_v13  ;;  %v272_v16 = vpop.f32.mrf.mxu2  ;;  %v387_v28 = vmax.f32 %v371_v23, 0.0 }
  0xad   :  { %v321_v17 = vpop.f32.mrf.mxu3 }
  0xae   :  { %v380_v19 = vmax.f32 %v364_v15, 0.0  ;;  %v322_v20 = vadd.f32 %v321_v17, %v272_v16  ;;  %v255_v21 = vpop.f32.mrf.mxu0 }
  0xaf   :  { %v304_v22 = vpop.f32.mrf.mxu1 }
  0xb0   :  { %v594_v24 = vpack.c.bf16 %v380_v19, %v379_v18  ;;  %v352_v25 = vmul.f32 %v828_v3, %v322_v20  ;;  %v305_v27 = vadd.f32 %v304_v22, %v255_v21 }
  0xb2   :  { %595 = vst [vmem:[%s895_s4] sm:$0xff] %v594_v24   ;;  %v372_v26 = vadd.f32 %v834_v7, %v352_v25  ;;  %v345_v33 = vmul.f32 %v828_v3, %v305_v27 }
  0xb4   :  { %v388_v29 = vmax.f32 %v372_v26, 0.0  ;;  %v275_v30 = vpop.f32.mrf.mxu2  ;;  %v365_v38 = vadd.f32 %v834_v7, %v345_v33 }
  0xb5   :  { %v324_v31 = vpop.f32.mrf.mxu3 }
  0xb6   :  { %v614_v32 = vpack.c.bf16 %v388_v29, %v387_v28  ;;  %v257_v34 = vpop.f32.mrf.mxu0  ;;  %v325_v36 = vadd.f32 %v324_v31, %v275_v30  ;;  %v381_v44 = vmax.f32 %v365_v38, 0.0 }
  0xb7   :  { %v306_v35 = vpop.f32.mrf.mxu1 }
  0xb8   :  { %634 = vst [vmem:[%s895_s4 + $0x20] sm:$0xff] %v614_v32   ;;  %v307_v37 = vadd.f32 %v306_v35, %v257_v34  ;;  %v353_v40 = vmul.f32 %v828_v3, %v325_v36 }
  0xba   :  { %v346_v39 = vmul.f32 %v828_v3, %v307_v37  ;;  %v373_v49 = vadd.f32 %v834_v7, %v353_v40 }
  0xbc   :  { %v366_v41 = vadd.f32 %v834_v7, %v346_v39  ;;  %v277_v42 = vpop.f32.mrf.mxu2  ;;  %v389_v54 = vmax.f32 %v373_v49, 0.0 }
  0xbd   :  { %v326_v43 = vpop.f32.mrf.mxu3 }
  0xbe   :  { %v382_v45 = vmax.f32 %v366_v41, 0.0  ;;  %v327_v46 = vadd.f32 %v326_v43, %v277_v42  ;;  %v260_v47 = vpop.f32.mrf.mxu0 }
  0xbf   :  { %v309_v48 = vpop.f32.mrf.mxu1 }
  0xc0   :  { %v599_v50 = vpack.c.bf16 %v382_v45, %v381_v44  ;;  %v354_v51 = vmul.f32 %v828_v3, %v327_v46  ;;  %v310_v53 = vadd.f32 %v309_v48, %v260_v47 }
  0xc2   :  { %631 = vst [vmem:[%s895_s4 + $0x8] sm:$0xff] %v599_v50   ;;  %v374_v52 = vadd.f32 %v834_v7, %v354_v51  ;;  %v347_v59 = vmul.f32 %v828_v3, %v310_v53 }
  0xc4   :  { %v390_v55 = vmax.f32 %v374_v52, 0.0  ;;  %v280_v56 = vpop.f32.mrf.mxu2  ;;  %v367_v0 = vadd.f32 %v834_v7, %v347_v59 }
  0xc5   :  { %v329_v57 = vpop.f32.mrf.mxu3 }
  0xc6   :  { %v619_v58 = vpack.c.bf16 %v390_v55, %v389_v54  ;;  %v262_v60 = vpop.f32.mrf.mxu0  ;;  %v330_v62 = vadd.f32 %v329_v57, %v280_v56  ;;  %v383_v8 = vmax.f32 %v367_v0, 0.0 }
  0xc7   :  { %v311_v61 = vpop.f32.mrf.mxu1 }
  0xc8   :  { %635 = vst [vmem:[%s895_s4 + $0x28] sm:$0xff] %v619_v58   ;;  %v312_v63 = vadd.f32 %v311_v61, %v262_v60  ;;  %v355_v2 = vmul.f32 %v828_v3, %v330_v62 }
  0xca   :  { %v348_v1 = vmul.f32 %v828_v3, %v312_v63  ;;  %v375_v13 = vadd.f32 %v834_v7, %v355_v2 }
  0xcc   :  { %v368_v4 = vadd.f32 %v834_v7, %v348_v1  ;;  %v282_v5 = vpop.f32.mrf.mxu2  ;;  %v391_v18 = vmax.f32 %v375_v13, 0.0 }
  0xcd   :  { %v331_v6 = vpop.f32.mrf.mxu3 }
  0xce   :  { %v384_v9 = vmax.f32 %v368_v4, 0.0  ;;  %v332_v10 = vadd.f32 %v331_v6, %v282_v5  ;;  %v265_v11 = vpop.f32.mrf.mxu0 }
  0xcf   :  { %v314_v12 = vpop.f32.mrf.mxu1 }
  0xd0   :  { %v604_v14 = vpack.c.bf16 %v384_v9, %v383_v8  ;;  %v356_v15 = vmul.f32 %v828_v3, %v332_v10  ;;  %v315_v17 = vadd.f32 %v314_v12, %v265_v11 }
  0xd2   :  { %632 = vst [vmem:[%s895_s4 + $0x10] sm:$0xff] %v604_v14   ;;  %v376_v16 = vadd.f32 %v834_v7, %v356_v15  ;;  %v349_v23 = vmul.f32 %v828_v3, %v315_v17 }
  0xd4   :  { %v392_v19 = vmax.f32 %v376_v16, 0.0  ;;  %v285_v20 = vpop.f32.mrf.mxu2  ;;  %v369_v28 = vadd.f32 %v834_v7, %v349_v23 }
  0xd5   :  { %v334_v21 = vpop.f32.mrf.mxu3 }
  0xd6   :  { %v624_v22 = vpack.c.bf16 %v392_v19, %v391_v18  ;;  %v267_v24 = vpop.f32.mrf.mxu0  ;;  %v335_v26 = vadd.f32 %v334_v21, %v285_v20  ;;  %v385_v34 = vmax.f32 %v369_v28, 0.0 }
  0xd7   :  { %v316_v25 = vpop.f32.mrf.mxu1 }
  0xd8   :  { %636 = vst [vmem:[%s895_s4 + $0x30] sm:$0xff] %v624_v22   ;;  %v317_v27 = vadd.f32 %v316_v25, %v267_v24  ;;  %v357_v30 = vmul.f32 %v828_v3, %v335_v26 }
  0xda   :  { %v350_v29 = vmul.f32 %v828_v3, %v317_v27  ;;  %v377_v37 = vadd.f32 %v834_v7, %v357_v30 }
  0xdc   :  { %v370_v31 = vadd.f32 %v834_v7, %v350_v29  ;;  %v287_v32 = vpop.f32.mrf.mxu2  ;;  %v393_v41 = vmax.f32 %v377_v37, 0.0 }
  0xdd   :  { %v336_v33 = vpop.f32.mrf.mxu3 }
  0xde   :  { %v386_v35 = vmax.f32 %v370_v31, 0.0  ;;  %v337_v36 = vadd.f32 %v336_v33, %v287_v32 }
  0xe0   :  { %v609_v38 = vpack.c.bf16 %v386_v35, %v385_v34  ;;  %v358_v39 = vmul.f32 %v828_v3, %v337_v36 }
  0xe2   :  { %633 = vst [vmem:[%s895_s4 + $0x18] sm:$0xff] %v609_v38   ;;  %v378_v40 = vadd.f32 %v834_v7, %v358_v39 }
  0xe4   :  { %v394_v42 = vmax.f32 %v378_v40, 0.0 }
  0xe6   :  { %v629_v43 = vpack.c.bf16 %v394_v42, %v393_v41 }
  0xe8   :  { %637 = vst [vmem:[%s895_s4 + $0x38] sm:$0xff] %v629_v43  }

// kernel: autoencoder_forward.21
= control target key start
LH: loop header
LB: loop body
LE: loop exit
PB: predicated region body
PF: predicated region fallthrough
CT: control target
= control target key end

     0   :  { %s998_s15 = smov 0   ;;  %s1000_s16 = smov 0   ;;  %s1188_s0 = inlined_call_operand.vmem [shape: bf16[512,128], index: 0, kind: input, shape index: {}]   ;;  %s1189_s1 = inlined_call_operand.vmem [shape: bf16[128,128], index: 1, kind: input, shape index: {}]   ;;  %s1190_s2 = inlined_call_operand.vmem [shape: f32[1,128], index: 2, kind: input, shape index: {}]   ;;  %s1191_s3 = inlined_call_operand.vmem [shape: f32[1,128], index: 3, kind: input, shape index: {}]   ;;  %s1192_s4 = inlined_call_operand.vmem [shape: f32[512,128], index: 4, kind: output, shape index: {}]  }
   0x1   :  { %s1002_s17 = smov 0  }
   0x2 LB: > { %s26_s18 = sadd.s32 1, %s967_s16  ;;  %p772_p0 = scmp.ge.s32.totalorder %s971_s17, 1  ;;  %s971_s17 = sphi %s1002_s17, %s14_s17   ;;  %s967_s16 = sphi %s1000_s16, %s1194_s16   ;;  %s963_s15 = sphi %s998_s15, %s1193_s15  }
   0x3   : > { %p28_p1 = scmp.ge.s32.totalorder %s26_s18, 2  ;;  %p202_p2 = scmp.lt.s32.totalorder %s971_s17, 3 }
   0x5   : > { %s1196_s18 = smov (%p28_p1, %s26_s18), 0  ;;  %p203_p3 = pnand %p772_p0, %p202_p2 }
   0x6   : > { %s773_s27 = sshll.u32 (!%p203_p3), %s963_s15, 5 }
   0x7   : > { %206 = sbr.rel (%p203_p3) target bundleno = 239 (0xef), region = 36  ;;  %p242_p4 = scmp.lt.s32.totalorder (!%p203_p3), %s773_s27, 63 }
   0xc   : > { %v898_v0 = vld [vmem:[%s1189_s1 + $0x38] sm:$0xff]  ;;  %v897_v1 = vld [vmem:[%s1189_s1 + $0x30] sm:$0xff]  ;;  %v896_v2 = vld [vmem:[%s1189_s1 + $0x28] sm:$0xff]  ;;  %s1198_s27 = smov (!%p242_p4, %s773_s27), 63 }
   0xd   : > { %458 = vmatpush.bf16.msra.mxu0 %v898_v0  ;;  %899 = vmatpush.bf16.msra.mxu1 %v898_v0  ;;  %v895_v3 = vld [vmem:[%s1189_s1 + $0x20] sm:$0xff]  ;;  %v894_v4 = vld [vmem:[%s1189_s1 + $0x18] sm:$0xff]  ;;  %v893_v5 = vld [vmem:[%s1189_s1 + $0x10] sm:$0xff]  ;;  %s774_s8 = sshll.u32 %s1198_s27, 2  ;;  %s776_s19 = sshll.u32 %s1198_s27, 3 }
   0xe   : > { %900 = vmatpush.bf16.msra.mxu2 %v898_v0  ;;  %901 = vmatpush.bf16.msra.mxu3 %v898_v0  ;;  %v892_v6 = vld [vmem:[%s1189_s1 + $0x8] sm:$0xff]  ;;  %v891_v7 = vld [vmem:[%s1189_s1] sm:$0xff]  ;;  %s1049_s13 = scalar_lea.vmem %s1188_s0, %s774_s8  ;;  %s1083_s24 = scalar_lea.vmem %s1192_s4, %s776_s19 }
   0xf   : > { %v875_v8 = vld [vmem:[%s1049_s13] sm:$0xff]  ;;  %v876_v12 = vld [vmem:[%s1049_s13 + $0x8] sm:$0xff]  ;;  %v877_v16 = vld [vmem:[%s1049_s13 + $0x10] sm:$0xff] }
  0x10   : > { %v879_v9 = vld [vmem:[%s1049_s13 + $0x20] sm:$0xff]  ;;  %v880_v13 = vld [vmem:[%s1049_s13 + $0x28] sm:$0xff]  ;;  %v881_v17 = vld [vmem:[%s1049_s13 + $0x30] sm:$0xff] }
  0x11   : > { %459 = vmatpush.bf16.msra.mxu0 %v897_v1  ;;  %902 = vmatpush.bf16.msra.mxu1 %v897_v1  ;;  %v883_v10 = vld [vmem:[%s1049_s13 + $0x40] sm:$0xff]  ;;  %v884_v14 = vld [vmem:[%s1049_s13 + $0x48] sm:$0xff]  ;;  %v885_v18 = vld [vmem:[%s1049_s13 + $0x50] sm:$0xff] }
  0x12   : > { %903 = vmatpush.bf16.msra.mxu2 %v897_v1  ;;  %904 = vmatpush.bf16.msra.mxu3 %v897_v1  ;;  %v887_v11 = vld [vmem:[%s1049_s13 + $0x60] sm:$0xff]  ;;  %v888_v15 = vld [vmem:[%s1049_s13 + $0x68] sm:$0xff]  ;;  %v889_v19 = vld [vmem:[%s1049_s13 + $0x70] sm:$0xff] }
  0x13   : > { %v878_v20 = vld [vmem:[%s1049_s13 + $0x18] sm:$0xff]  ;;  %v1070_v24 = vld [vmem:[%s1190_s2] ss:$0 sm:$0xff] }
  0x14   : > { %v882_v21 = vld [vmem:[%s1049_s13 + $0x38] sm:$0xff]  ;;  %v1076_v25 = vld [vmem:[%s1191_s3] ss:$0 sm:$0xff] }
  0x15   : > { %460 = vmatpush.bf16.msra.mxu0 %v896_v2  ;;  %905 = vmatpush.bf16.msra.mxu1 %v896_v2  ;;  %v886_v22 = vld [vmem:[%s1049_s13 + $0x58] sm:$0xff] }
  0x16   : > { %906 = vmatpush.bf16.msra.mxu2 %v896_v2  ;;  %907 = vmatpush.bf16.msra.mxu3 %v896_v2  ;;  %v890_v23 = vld [vmem:[%s1049_s13 + $0x78] sm:$0xff] }
  0x19   : > { %461 = vmatpush.bf16.msra.mxu0 %v895_v3  ;;  %908 = vmatpush.bf16.msra.mxu1 %v895_v3 }
  0x1a   : > { %909 = vmatpush.bf16.msra.mxu2 %v895_v3  ;;  %910 = vmatpush.bf16.msra.mxu3 %v895_v3 }
  0x1d   : > { %462 = vmatpush.bf16.msra.mxu0 %v894_v4  ;;  %911 = vmatpush.bf16.msra.mxu1 %v894_v4 }
  0x1e   : > { %912 = vmatpush.bf16.msra.mxu2 %v894_v4  ;;  %913 = vmatpush.bf16.msra.mxu3 %v894_v4 }
  0x21   : > { %463 = vmatpush.bf16.msra.mxu0 %v893_v5  ;;  %914 = vmatpush.bf16.msra.mxu1 %v893_v5 }
  0x22   : > { %915 = vmatpush.bf16.msra.mxu2 %v893_v5  ;;  %916 = vmatpush.bf16.msra.mxu3 %v893_v5 }
  0x25   : > { %464 = vmatpush.bf16.msra.mxu0 %v892_v6  ;;  %917 = vmatpush.bf16.msra.mxu1 %v892_v6 }
  0x26   : > { %918 = vmatpush.bf16.msra.mxu2 %v892_v6  ;;  %919 = vmatpush.bf16.msra.mxu3 %v892_v6 }
  0x29   : > { %465 = vmatpush.bf16.msra.mxu0 %v891_v7  ;;  %920 = vmatpush.bf16.msra.mxu1 %v891_v7 }
  0x2a   : > { %921 = vmatpush.bf16.msra.mxu2 %v891_v7  ;;  %922 = vmatpush.bf16.msra.mxu3 %v891_v7 }
  0x2c   : > { %466 = vmatmul.bf16.vlgmr.msra.gmra.mxu0 %v875_v8  ;;  %486 = vmatmul.bf16.vlgmr.msra.gmra.mxu1 %v879_v9 }
  0x2d   : > { %506 = vmatmul.bf16.vlgmr.msra.gmra.mxu2 %v883_v10  ;;  %526 = vmatmul.bf16.vlgmr.msra.gmra.mxu3 %v887_v11 }
  0x3c   : > { %471 = vmatmul.bf16.gmra.mxu0 %v876_v12  ;;  %491 = vmatmul.bf16.gmra.mxu1 %v880_v13 }
  0x3d   : > { %511 = vmatmul.bf16.gmra.mxu2 %v884_v14  ;;  %531 = vmatmul.bf16.gmra.mxu3 %v888_v15 }
  0x4c   : > { %476 = vmatmul.bf16.gmra.mxu0 %v877_v16  ;;  %496 = vmatmul.bf16.gmra.mxu1 %v881_v17 }
  0x4d   : > { %516 = vmatmul.bf16.gmra.mxu2 %v885_v18  ;;  %536 = vmatmul.bf16.gmra.mxu3 %v889_v19 }
  0x5c   : > { %481 = vmatmul.bf16.gmra.mxu0 %v878_v20  ;;  %501 = vmatmul.bf16.gmra.mxu1 %v882_v21 }
  0x5d   : > { %521 = vmatmul.bf16.gmra.mxu2 %v886_v22  ;;  %541 = vmatmul.bf16.gmra.mxu3 %v890_v23 }
  0xa9   : > { %v467_v26 = vpop.f32.mrf.mxu0  ;;  %v487_v27 = vpop.f32.mrf.mxu1 }
  0xaa   : > { %v551_v28 = vmul.f32 %v1070_v24, %v467_v26  ;;  %v559_v29 = vmul.f32 %v1070_v24, %v487_v27 }
  0xac   : > { %v587_v30 = vadd.f32 %v1076_v25, %v551_v28  ;;  %v595_v31 = vadd.f32 %v1076_v25, %v559_v29 }
  0xae   : > { %619 = vst [vmem:[%s1083_s24] sm:$0xff] %v587_v30 }
  0xaf   : > { %627 = vst [vmem:[%s1083_s24 + $0x40] sm:$0xff] %v595_v31 }
  0xb0   : > { %v507_v32 = vpop.f32.mrf.mxu2  ;;  %v527_v33 = vpop.f32.mrf.mxu3 }
  0xb1   : > { %v567_v34 = vmul.f32 %v1070_v24, %v507_v32  ;;  %v575_v35 = vmul.f32 %v1070_v24, %v527_v33  ;;  %v469_v36 = vpop.f32.mrf.mxu0  ;;  %v489_v37 = vpop.f32.mrf.mxu1 }
  0xb2   : > { %v552_v38 = vmul.f32 %v1070_v24, %v469_v36  ;;  %v560_v39 = vmul.f32 %v1070_v24, %v489_v37 }
  0xb3   : > { %v603_v40 = vadd.f32 %v1076_v25, %v567_v34  ;;  %v611_v41 = vadd.f32 %v1076_v25, %v575_v35 }
  0xb4   : > { %v588_v42 = vadd.f32 %v1076_v25, %v552_v38  ;;  %v596_v43 = vadd.f32 %v1076_v25, %v560_v39 }
  0xb5   : > { %635 = vst [vmem:[%s1083_s24 + $0x80] sm:$0xff] %v603_v40 }
  0xb6   : > { %643 = vst [vmem:[%s1083_s24 + $0xc0] sm:$0xff] %v611_v41 }
  0xb7   : > { %620 = vst [vmem:[%s1083_s24 + $0x8] sm:$0xff] %v588_v42 }
  0xb8   : > { %628 = vst [vmem:[%s1083_s24 + $0x48] sm:$0xff] %v596_v43  ;;  %v509_v44 = vpop.f32.mrf.mxu2  ;;  %v529_v45 = vpop.f32.mrf.mxu3 }
  0xb9   : > { %v568_v46 = vmul.f32 %v1070_v24, %v509_v44  ;;  %v576_v47 = vmul.f32 %v1070_v24, %v529_v45  ;;  %v472_v48 = vpop.f32.mrf.mxu0  ;;  %v492_v49 = vpop.f32.mrf.mxu1 }
  0xba   : > { %v553_v50 = vmul.f32 %v1070_v24, %v472_v48  ;;  %v561_v51 = vmul.f32 %v1070_v24, %v492_v49 }
  0xbb   : > { %v604_v52 = vadd.f32 %v1076_v25, %v568_v46  ;;  %v612_v53 = vadd.f32 %v1076_v25, %v576_v47 }
  0xbc   : > { %v589_v54 = vadd.f32 %v1076_v25, %v553_v50  ;;  %v597_v55 = vadd.f32 %v1076_v25, %v561_v51 }
  0xbd   : > { %636 = vst [vmem:[%s1083_s24 + $0x88] sm:$0xff] %v604_v52 }
  0xbe   : > { %644 = vst [vmem:[%s1083_s24 + $0xc8] sm:$0xff] %v612_v53 }
  0xbf   : > { %621 = vst [vmem:[%s1083_s24 + $0x10] sm:$0xff] %v589_v54 }
  0xc0   : > { %629 = vst [vmem:[%s1083_s24 + $0x50] sm:$0xff] %v597_v55  ;;  %v512_v56 = vpop.f32.mrf.mxu2  ;;  %v532_v57 = vpop.f32.mrf.mxu3 }
  0xc1   : > { %v569_v58 = vmul.f32 %v1070_v24, %v512_v56  ;;  %v577_v59 = vmul.f32 %v1070_v24, %v532_v57  ;;  %v474_v60 = vpop.f32.mrf.mxu0  ;;  %v494_v61 = vpop.f32.mrf.mxu1 }
  0xc2   : > { %v554_v62 = vmul.f32 %v1070_v24, %v474_v60  ;;  %v562_v63 = vmul.f32 %v1070_v24, %v494_v61 }
  0xc3   : > { %v605_v0 = vadd.f32 %v1076_v25, %v569_v58  ;;  %v613_v1 = vadd.f32 %v1076_v25, %v577_v59 }
  0xc4   : > { %v590_v2 = vadd.f32 %v1076_v25, %v554_v62  ;;  %v598_v3 = vadd.f32 %v1076_v25, %v562_v63 }
  0xc5   : > { %637 = vst [vmem:[%s1083_s24 + $0x90] sm:$0xff] %v605_v0 }
  0xc6   : > { %645 = vst [vmem:[%s1083_s24 + $0xd0] sm:$0xff] %v613_v1 }
  0xc7   : > { %622 = vst [vmem:[%s1083_s24 + $0x18] sm:$0xff] %v590_v2 }
  0xc8   : > { %630 = vst [vmem:[%s1083_s24 + $0x58] sm:$0xff] %v598_v3  ;;  %v514_v4 = vpop.f32.mrf.mxu2  ;;  %v534_v5 = vpop.f32.mrf.mxu3 }
  0xc9   : > { %v570_v6 = vmul.f32 %v1070_v24, %v514_v4  ;;  %v578_v7 = vmul.f32 %v1070_v24, %v534_v5  ;;  %v477_v8 = vpop.f32.mrf.mxu0  ;;  %v497_v9 = vpop.f32.mrf.mxu1 }
  0xca   : > { %v555_v10 = vmul.f32 %v1070_v24, %v477_v8  ;;  %v563_v11 = vmul.f32 %v1070_v24, %v497_v9 }
  0xcb   : > { %v606_v12 = vadd.f32 %v1076_v25, %v570_v6  ;;  %v614_v13 = vadd.f32 %v1076_v25, %v578_v7 }
  0xcc   : > { %v591_v14 = vadd.f32 %v1076_v25, %v555_v10  ;;  %v599_v15 = vadd.f32 %v1076_v25, %v563_v11 }
  0xcd   : > { %638 = vst [vmem:[%s1083_s24 + $0x98] sm:$0xff] %v606_v12 }
  0xce   : > { %646 = vst [vmem:[%s1083_s24 + $0xd8] sm:$0xff] %v614_v13 }
  0xcf   : > { %623 = vst [vmem:[%s1083_s24 + $0x20] sm:$0xff] %v591_v14 }
  0xd0   : > { %631 = vst [vmem:[%s1083_s24 + $0x60] sm:$0xff] %v599_v15  ;;  %v517_v16 = vpop.f32.mrf.mxu2  ;;  %v537_v17 = vpop.f32.mrf.mxu3 }
  0xd1   : > { %v571_v18 = vmul.f32 %v1070_v24, %v517_v16  ;;  %v579_v19 = vmul.f32 %v1070_v24, %v537_v17  ;;  %v479_v20 = vpop.f32.mrf.mxu0  ;;  %v499_v21 = vpop.f32.mrf.mxu1 }
  0xd2   : > { %v556_v22 = vmul.f32 %v1070_v24, %v479_v20  ;;  %v564_v23 = vmul.f32 %v1070_v24, %v499_v21 }
  0xd3   : > { %v607_v26 = vadd.f32 %v1076_v25, %v571_v18  ;;  %v615_v27 = vadd.f32 %v1076_v25, %v579_v19 }
  0xd4   : > { %v592_v28 = vadd.f32 %v1076_v25, %v556_v22  ;;  %v600_v29 = vadd.f32 %v1076_v25, %v564_v23 }
  0xd5   : > { %639 = vst [vmem:[%s1083_s24 + $0xa0] sm:$0xff] %v607_v26 }
  0xd6   : > { %647 = vst [vmem:[%s1083_s24 + $0xe0] sm:$0xff] %v615_v27 }
  0xd7   : > { %624 = vst [vmem:[%s1083_s24 + $0x28] sm:$0xff] %v592_v28 }
  0xd8   : > { %632 = vst [vmem:[%s1083_s24 + $0x68] sm:$0xff] %v600_v29  ;;  %v519_v30 = vpop.f32.mrf.mxu2  ;;  %v539_v31 = vpop.f32.mrf.mxu3 }
  0xd9   : > { %v572_v32 = vmul.f32 %v1070_v24, %v519_v30  ;;  %v580_v33 = vmul.f32 %v1070_v24, %v539_v31  ;;  %v482_v34 = vpop.f32.mrf.mxu0  ;;  %v502_v35 = vpop.f32.mrf.mxu1 }
  0xda   : > { %v557_v36 = vmul.f32 %v1070_v24, %v482_v34  ;;  %v565_v37 = vmul.f32 %v1070_v24, %v502_v35 }
  0xdb   : > { %v608_v38 = vadd.f32 %v1076_v25, %v572_v32  ;;  %v616_v39 = vadd.f32 %v1076_v25, %v580_v33 }
  0xdc   : > { %v593_v40 = vadd.f32 %v1076_v25, %v557_v36  ;;  %v601_v41 = vadd.f32 %v1076_v25, %v565_v37 }
  0xdd   : > { %640 = vst [vmem:[%s1083_s24 + $0xa8] sm:$0xff] %v608_v38 }
  0xde   : > { %648 = vst [vmem:[%s1083_s24 + $0xe8] sm:$0xff] %v616_v39 }
  0xdf   : > { %625 = vst [vmem:[%s1083_s24 + $0x30] sm:$0xff] %v593_v40 }
  0xe0   : > { %633 = vst [vmem:[%s1083_s24 + $0x70] sm:$0xff] %v601_v41  ;;  %v522_v42 = vpop.f32.mrf.mxu2  ;;  %v542_v43 = vpop.f32.mrf.mxu3 }
  0xe1   : > { %v573_v44 = vmul.f32 %v1070_v24, %v522_v42  ;;  %v581_v45 = vmul.f32 %v1070_v24, %v542_v43  ;;  %v484_v46 = vpop.f32.mrf.mxu0  ;;  %v504_v47 = vpop.f32.mrf.mxu1 }
  0xe2   : > { %v558_v48 = vmul.f32 %v1070_v24, %v484_v46  ;;  %v566_v49 = vmul.f32 %v1070_v24, %v504_v47 }
  0xe3   : > { %v609_v50 = vadd.f32 %v1076_v25, %v573_v44  ;;  %v617_v51 = vadd.f32 %v1076_v25, %v581_v45 }
  0xe4   : > { %v594_v52 = vadd.f32 %v1076_v25, %v558_v48  ;;  %v602_v53 = vadd.f32 %v1076_v25, %v566_v49 }
  0xe5   : > { %641 = vst [vmem:[%s1083_s24 + $0xb0] sm:$0xff] %v609_v50 }
  0xe6   : > { %649 = vst [vmem:[%s1083_s24 + $0xf0] sm:$0xff] %v617_v51 }
  0xe7   : > { %626 = vst [vmem:[%s1083_s24 + $0x38] sm:$0xff] %v594_v52 }
  0xe8   : > { %634 = vst [vmem:[%s1083_s24 + $0x78] sm:$0xff] %v602_v53  ;;  %v524_v54 = vpop.f32.mrf.mxu2  ;;  %v544_v55 = vpop.f32.mrf.mxu3 }
  0xe9   : > { %v574_v56 = vmul.f32 %v1070_v24, %v524_v54  ;;  %v582_v57 = vmul.f32 %v1070_v24, %v544_v55 }
  0xeb   : > { %v610_v58 = vadd.f32 %v1076_v25, %v574_v56  ;;  %v618_v59 = vadd.f32 %v1076_v25, %v582_v57 }
  0xed   : > { %642 = vst [vmem:[%s1083_s24 + $0xb8] sm:$0xff] %v610_v58 }
  0xee   : > { %650 = vst [vmem:[%s1083_s24 + $0xf8] sm:$0xff] %v618_v59 }
  0xef PF: > { %s14_s17 = sadd.s32 1, %s971_s17   ;;  %s1193_s15 = smov %s967_s16 }
  0xf0   : > { %p11_p5 = scmp.ge.s32.totalorder %s14_s17, 4   ;;  %s1194_s16 = smov %s1196_s18 }
  0xf2   :  { %13 = sbr.rel (!%p11_p5) target bundleno = 2 (0x2), region = 75 }

</bundles_post_ra>
